<compile_context>
chip_gen: v7x
topology: tpu7x:2x2x1
jax: 0.10.0
libtpu: 0.0.40
codegen_flags: <defaults>
</compile_context>

<pallas_src>
import functools

import jax
import jax.numpy as jnp
from jax.experimental import pallas as pl
from jax.experimental.pallas import tpu as pltpu


_VMEM_LIMIT = 48 * 1024 * 1024


# --------------------------------------------------------------------------
# helpers
# --------------------------------------------------------------------------

def _pick_tile(n, target):
    """Largest multiple-of-8 divisor of n that is <= target (else n itself)."""
    if n <= target:
        return n
    t = (target // 8) * 8
    while t >= 8:
        if n % t == 0:
            return t
        t -= 8
    return n


def _cparams(sem):
    return pltpu.CompilerParams(dimension_semantics=sem,
                                vmem_limit_bytes=_VMEM_LIMIT)


# --------------------------------------------------------------------------
# Pallas kernels
# --------------------------------------------------------------------------

def _pairwise_kernel(q_ref, pt_ref, pp_ref, o_ref):
    """o[i, j] = -||q_i - p_j||^2 for a row-tile of queries (matches knn()).

    q_ref : (1, TQ, 3) queries, pt_ref : (1, 3, N) keys channels-first,
    pp_ref: (1, 1, N) precomputed key squared norms (hoisted out of kernel).
    """
    q = q_ref[0]                                                      # (TQ, 3)
    gram = jnp.dot(q, pt_ref[0], preferred_element_type=jnp.float32)  # (TQ, N)
    qq = jnp.sum(q * q, axis=1, keepdims=True)                        # (TQ, 1)
    o_ref[0] = 2.0 * gram - qq - pp_ref[0]


def _mlp1_kernel(x_ref, w0_ref, b0_ref, w1_ref, b1_ref, w2_ref, b2_ref, o_ref):
    """Fused mlp1: three (Conv1d k=1 + ReLU) layers, intermediates stay on-chip."""
    h = x_ref[...]                                                    # bf16
    for w_ref, b_ref in ((w0_ref, b0_ref), (w1_ref, b1_ref), (w2_ref, b2_ref)):
        a = jnp.dot(h, w_ref[...], preferred_element_type=jnp.float32)
        h = jnp.maximum(a + b_ref[...], 0.0).astype(jnp.bfloat16)
    o_ref[...] = h


def _graph_a_kernel(g_ref, w1_ref, b1_ref, w2_ref, b2_ref, o_ref):
    """local_maxpool + linear1 (no ReLU) + conv1 + ReLU, fused."""
    m = jnp.max(g_ref[...], axis=1)                                   # (TM, Cin) bf16
    h = jnp.dot(m, w1_ref[...], preferred_element_type=jnp.float32) + b1_ref[...]
    h = h.astype(jnp.bfloat16)                                        # linear1 (no relu)
    a = jnp.dot(h, w2_ref[...], preferred_element_type=jnp.float32) + b2_ref[...]
    o_ref[...] = jnp.maximum(a, 0.0).astype(o_ref.dtype)              # conv1 + relu


def _graph_b_kernel(g_ref, w1_ref, b1_ref, w2_ref, b2_ref, o_ref):
    """local_maxpool + linear2 (no ReLU) + conv2 + running global max over points."""
    t = pl.program_id(2)

    @pl.when(t == 0)
    def _init():
        o_ref[...] = jnp.full_like(o_ref, -jnp.inf)

    m = jnp.max(g_ref[0], axis=1)                                     # (TN, Cin) bf16
    h = jnp.dot(m, w1_ref[...], preferred_element_type=jnp.float32) + b1_ref[...]
    h = h.astype(jnp.bfloat16)                                        # linear2 (no relu)
    a = jnp.dot(h, w2_ref[...], preferred_element_type=jnp.float32) + b2_ref[...]
    o_ref[0] = jnp.maximum(o_ref[0], jnp.max(a, axis=0, keepdims=True))


def _mlp2_kernel(x_ref, w0_ref, b0_ref, w1_ref, b1_ref, o_ref):
    """Fused mlp2: Conv1d(1024->512)+ReLU then Conv1d(512->512)."""
    h = x_ref[...].astype(jnp.bfloat16)
    a = jnp.dot(h, w0_ref[...], preferred_element_type=jnp.float32) + b0_ref[...]
    h = jnp.maximum(a, 0.0).astype(jnp.bfloat16)
    a = jnp.dot(h, w1_ref[...], preferred_element_type=jnp.float32) + b1_ref[...]
    o_ref[...] = a


# --------------------------------------------------------------------------
# pallas_call wrappers
# --------------------------------------------------------------------------

def pairwise_neg_sqdist(pts, *, tq=512):
    """Row-tiled -||q - p||^2 ; keys channels-first, key norms hoisted."""
    B, N, D = pts.shape
    TQ = _pick_tile(N, tq)
    pts_t = jnp.transpose(pts, (0, 2, 1))                      # (B, 3, N)
    pp = jnp.transpose(jnp.sum(pts * pts, axis=-1, keepdims=True), (0, 2, 1))  # (B,1,N)
    return pl.pallas_call(
        _pairwise_kernel,
        out_shape=jax.ShapeDtypeStruct((B, N, N), jnp.float32),
        grid=(B, N // TQ),
        in_specs=[pl.BlockSpec((1, TQ, D), lambda b, t: (b, t, 0)),
                  pl.BlockSpec((1, D, N), lambda b, t: (b, 0, 0)),
                  pl.BlockSpec((1, 1, N), lambda b, t: (b, 0, 0))],
        out_specs=pl.BlockSpec((1, TQ, N), lambda b, t: (b, t, 0)),
        compiler_params=_cparams(("parallel", "parallel")),
    )(pts, pts_t, pp)


def mlp1(x, params, *, tm=1024):
    M, Cin = x.shape
    TM = _pick_tile(M, tm)
    w0 = params["mlp1_w0"].astype(jnp.bfloat16)
    w1 = params["mlp1_w1"].astype(jnp.bfloat16)
    w2 = params["mlp1_w2"].astype(jnp.bfloat16)
    b0 = params["mlp1_b0"].reshape(1, -1).astype(jnp.float32)
    b1 = params["mlp1_b1"].reshape(1, -1).astype(jnp.float32)
    b2 = params["mlp1_b2"].reshape(1, -1).astype(jnp.float32)
    Cout = w2.shape[1]
    return pl.pallas_call(
        _mlp1_kernel,
        out_shape=jax.ShapeDtypeStruct((M, Cout), jnp.bfloat16),
        grid=(M // TM,),
        in_specs=[pl.BlockSpec((TM, Cin), lambda i: (i, 0)),
                  pl.BlockSpec(w0.shape, lambda i: (0, 0)),
                  pl.BlockSpec(b0.shape, lambda i: (0, 0)),
                  pl.BlockSpec(w1.shape, lambda i: (0, 0)),
                  pl.BlockSpec(b1.shape, lambda i: (0, 0)),
                  pl.BlockSpec(w2.shape, lambda i: (0, 0)),
                  pl.BlockSpec(b2.shape, lambda i: (0, 0))],
        out_specs=pl.BlockSpec((TM, Cout), lambda i: (i, 0)),
        compiler_params=_cparams(("parallel",)),
    )(x, w0, b0, w1, b1, w2, b2)


def graph_block1(g, w1, b1, w2, b2, *, tm=1024):
    """max over k neighbors -> linear1 -> conv1+ReLU, one fused kernel."""
    M, K, Cin = g.shape
    C1, C2 = w1.shape[1], w2.shape[1]
    TM = _pick_tile(M, tm)
    w1b = w1.astype(jnp.bfloat16)
    w2b = w2.astype(jnp.bfloat16)
    b1f = b1.reshape(1, C1).astype(jnp.float32)
    b2f = b2.reshape(1, C2).astype(jnp.float32)
    return pl.pallas_call(
        _graph_a_kernel,
        out_shape=jax.ShapeDtypeStruct((M, C2), jnp.bfloat16),
        grid=(M // TM,),
        in_specs=[pl.BlockSpec((TM, K, Cin), lambda i: (i, 0, 0)),
                  pl.BlockSpec((Cin, C1), lambda i: (0, 0)),
                  pl.BlockSpec((1, C1), lambda i: (0, 0)),
                  pl.BlockSpec((C1, C2), lambda i: (0, 0)),
                  pl.BlockSpec((1, C2), lambda i: (0, 0))],
        out_specs=pl.BlockSpec((TM, C2), lambda i: (i, 0)),
        compiler_params=_cparams(("parallel",)),
    )(g, w1b, b1f, w2b, b2f)


def graph_block2_globalmax(g, w1, b1, w2, b2, *, tn=512):
    """max over k neighbors -> linear2 -> conv2 -> global max over points.

    g: (B, N, K, Cin) bf16.  The point axis is split into P parallel partitions
    (partial maxes) so v7x's 2 TensorCores both get work even at B=1; the tiny
    (B, P, Cout) partial result is reduced with jnp.max in the wrapper.
    """
    B, N, K, Cin = g.shape
    C1, Cout = w1.shape[1], w2.shape[1]
    TN = _pick_tile(N, tn)
    n_tiles = N // TN
    P = 2 if (n_tiles % 2 == 0 and n_tiles >= 2) else 1
    inner = n_tiles // P
    w1b = w1.astype(jnp.bfloat16)
    w2b = w2.astype(jnp.bfloat16)
    b1f = b1.reshape(1, C1).astype(jnp.float32)
    b2f = b2.reshape(1, Cout).astype(jnp.float32)
    out = pl.pallas_call(
        _graph_b_kernel,
        out_shape=jax.ShapeDtypeStruct((B, P, Cout), jnp.float32),
        grid=(B, P, inner),
        in_specs=[pl.BlockSpec((1, TN, K, Cin),
                               lambda b, p, t: (b, p * inner + t, 0, 0)),
                  pl.BlockSpec((Cin, C1), lambda b, p, t: (0, 0)),
                  pl.BlockSpec((1, C1), lambda b, p, t: (0, 0)),
                  pl.BlockSpec((C1, Cout), lambda b, p, t: (0, 0)),
                  pl.BlockSpec((1, Cout), lambda b, p, t: (0, 0))],
        out_specs=pl.BlockSpec((1, 1, Cout), lambda b, p, t: (b, p, 0)),
        compiler_params=_cparams(("parallel", "parallel", "arbitrary")),
    )(g, w1b, b1f, w2b, b2f)
    return jnp.max(out, axis=1)                                # (B, Cout) f32


def mlp2(x, params):
    B, Cin = x.shape
    w0 = params["mlp2_w0"].astype(jnp.bfloat16)
    w1 = params["mlp2_w1"].astype(jnp.bfloat16)
    b0 = params["mlp2_b0"].reshape(1, -1).astype(jnp.float32)
    b1 = params["mlp2_b1"].reshape(1, -1).astype(jnp.float32)
    Cout = w1.shape[1]
    return pl.pallas_call(
        _mlp2_kernel,
        out_shape=jax.ShapeDtypeStruct((B, Cout), jnp.float32),
        grid=(1,),
        in_specs=[pl.BlockSpec((B, Cin), lambda i: (0, 0)),
                  pl.BlockSpec(w0.shape, lambda i: (0, 0)),
                  pl.BlockSpec(b0.shape, lambda i: (0, 0)),
                  pl.BlockSpec(w1.shape, lambda i: (0, 0)),
                  pl.BlockSpec(b1.shape, lambda i: (0, 0))],
        out_specs=pl.BlockSpec((B, Cout), lambda i: (0, 0)),
        compiler_params=_cparams(("arbitrary",)),
    )(x, w0, b0, w1, b1)


# --------------------------------------------------------------------------
# FoldNet_Encoder forward
# --------------------------------------------------------------------------

def foldnet_encoder_forward(pts, params, *, k):
    """pts: (B, N, 3) float32 (the torch module's input before its internal
    transpose).  Returns feat: (B, 1, 512) float32."""
    B, N, _ = pts.shape
    BN = B * N

    # --- knn: pairwise -squared-distance in Pallas, top-k in JAX ---
    neg_d2 = pairwise_neg_sqdist(pts)                    # (B, N, N) f32
    _, idx = jax.lax.top_k(neg_d2, k)                    # (B, N, k)
    # NOTE: like the torch reference, self appears at slot 0 because its
    # -distance is (near-)zero; tie-break order between torch.topk and
    # lax.top_k may differ for exact-duplicate points.
    # TODO(synk): an in-kernel running top-k (16x argmax+mask per query tile)
    # would avoid the (B,N,N) HBM round-trip; kept as lax.top_k for robustness.
    idx_base = jnp.arange(B, dtype=idx.dtype).reshape(B, 1, 1) * N
    idx_flat = (idx + idx_base).reshape(-1)              # (B*N*k,)

    # --- local_cov: outer product of the two nearest neighbors (tiny glue) ---
    pts_flat = pts.reshape(BN, 3)
    neigh = jnp.take(pts_flat, idx_flat, axis=0).reshape(B, N, k, 3)
    n0 = neigh[:, :, 0, :]                               # (B, N, 3)
    n1 = neigh[:, :, 1, :]                               # (B, N, 3)
    outer = (n0[:, :, :, None] * n1[:, :, None, :]).reshape(B, N, 9)
    x12 = jnp.concatenate([pts, outer], axis=-1).astype(jnp.bfloat16)  # (B, N, 12)

    # --- mlp1: 3x (Conv1d(k=1) + ReLU), fused into one Pallas kernel ---
    h = mlp1(x12.reshape(BN, 12), params)                              # (BN, 64) bf16

    # --- graph_layer ---
    # TODO(synk): the data-dependent neighbor gathers stay in XLA (jnp.take);
    # fusing them into the Pallas kernels needs per-row manual DMA gather.
    # They now move bf16, halving the gather HBM traffic.
    g = jnp.take(h, idx_flat, axis=0).reshape(BN, k, 64)               # bf16
    h = graph_block1(g, params["lin1_w"], params["lin1_b"],
                     params["conv1_w"], params["conv1_b"])             # (BN, 128) bf16
    g = jnp.take(h, idx_flat, axis=0).reshape(B, N, k, 128)            # bf16
    gmax = graph_block2_globalmax(g, params["lin2_w"], params["lin2_b"],
                                  params["conv2_w"], params["conv2_b"])  # (B, 1024) f32

    # --- mlp2 (fused) ---
    f = mlp2(gmax, params)                                             # (B, 512) f32
    return f.reshape(B, 1, 512)


# --------------------------------------------------------------------------
# Deterministic parameter init (shapes from FoldNet_Encoder.__init__)
# --------------------------------------------------------------------------

def init_params(key):
    def layer(kk, cin, cout):
        kw, kb = jax.random.split(kk)
        w = jax.random.normal(kw, (cin, cout), jnp.float32) / jnp.sqrt(float(cin))
        b = 0.01 * jax.random.normal(kb, (cout,), jnp.float32)
        return w, b

    keys = jax.random.split(key, 9)
    p = {}
    p["mlp1_w0"], p["mlp1_b0"] = layer(keys[0], 12, 64)
    p["mlp1_w1"], p["mlp1_b1"] = layer(keys[1], 64, 64)
    p["mlp1_w2"], p["mlp1_b2"] = layer(keys[2], 64, 64)
    p["lin1_w"], p["lin1_b"] = layer(keys[3], 64, 64)
    p["conv1_w"], p["conv1_b"] = layer(keys[4], 64, 128)
    p["lin2_w"], p["lin2_b"] = layer(keys[5], 128, 128)
    p["conv2_w"], p["conv2_b"] = layer(keys[6], 128, 1024)
    p["mlp2_w0"], p["mlp2_b0"] = layer(keys[7], 1024, 512)
    p["mlp2_w1"], p["mlp2_b1"] = layer(keys[8], 512, 512)
    return p


if __name__ == "__main__":
    B, N, K = 2, 64, 16   # small point cloud; module defaults are n=2048, k=16
    root = jax.random.PRNGKey(0)
    k_param, k_pts = jax.random.split(root)
    pts = jax.random.normal(k_pts, (B, N, 3), jnp.float32)
    params = init_params(k_param)

    fwd = jax.jit(functools.partial(foldnet_encoder_forward, k=K))
    feat = fwd(pts, params)
    jax.block_until_ready(feat)
    assert feat.shape == (B, 1, 512) and feat.dtype == jnp.float32
    assert bool(jnp.all(jnp.isfinite(feat)))
    print("KERNEL_OK")
</pallas_src>

<mosaic_0001>
module attributes {stable_mosaic.version = 11 : i64} {
  func.func @_pairwise_kernel(%arg0: i32, %arg1: i32, %arg2: memref<1x64x3xf32, #tpu.memory_space<vmem>>, %arg3: memref<1x3x64xf32, #tpu.memory_space<vmem>>, %arg4: memref<1x1x64xf32, #tpu.memory_space<vmem>>, %arg5: memref<1x64x64xf32, #tpu.memory_space<vmem>>) attributes {dimension_semantics = [#tpu.dimension_semantics<parallel>, #tpu.dimension_semantics<parallel>], iteration_bounds = array<i64: 2, 1>, scalar_prefetch = 0 : i64, scratch_operands = 0 : i64, tpu.core_type = #tpu.core_type<tc>, window_params = [{transform_indices = @transform_0, window_bounds = array<i64: 1, 64, 3>}, {transform_indices = @transform_1, window_bounds = array<i64: 1, 3, 64>}, {transform_indices = @transform_2, window_bounds = array<i64: 1, 1, 64>}, {transform_indices = @transform_3, window_bounds = array<i64: 1, 64, 64>}]} {
    %c0 = arith.constant 0 : index
    %c0_0 = arith.constant 0 : index
    %c0_1 = arith.constant 0 : index
    %0 = vector.load %arg2[%c0, %c0_0, %c0_1] : memref<1x64x3xf32, #tpu.memory_space<vmem>>, vector<1x64x3xf32>
    %1 = vector.shape_cast %0 : vector<1x64x3xf32> to vector<64x3xf32>
    %c0_2 = arith.constant 0 : index
    %c0_3 = arith.constant 0 : index
    %c0_4 = arith.constant 0 : index
    %2 = vector.load %arg3[%c0_2, %c0_3, %c0_4] : memref<1x3x64xf32, #tpu.memory_space<vmem>>, vector<1x3x64xf32>
    %3 = vector.shape_cast %2 : vector<1x3x64xf32> to vector<3x64xf32>
    %cst = arith.constant dense<0.000000e+00> : vector<64x64xf32>
    %4 = tpu.matmul %1, %3, %cst {dimension_numbers = #tpu.dot_dimension_numbers<[1], [0], [0], [1], [0, 0, 1, 1], [], []>} : vector<64x3xf32>, vector<3x64xf32>, vector<64x64xf32> -> vector<64x64xf32>
    %5 = arith.mulf %1, %1 : vector<64x3xf32>
    %cst_5 = arith.constant dense<0.000000e+00> : vector<64xf32>
    %6 = vector.multi_reduction <add>, %5, %cst_5 [1] : vector<64x3xf32> to vector<64xf32>
    %7 = vector.shape_cast %6 : vector<64xf32> to vector<64x1xf32>
    %cst_6 = arith.constant 2.000000e+00 : f32
    %8 = vector.broadcast %cst_6 : f32 to vector<64x64xf32>
    %9 = arith.mulf %8, %4 : vector<64x64xf32>
    %10 = vector.broadcast %7 : vector<64x1xf32> to vector<64x64xf32>
    %11 = arith.subf %9, %10 : vector<64x64xf32>
    %c0_7 = arith.constant 0 : index
    %c0_8 = arith.constant 0 : index
    %c0_9 = arith.constant 0 : index
    %12 = vector.load %arg4[%c0_7, %c0_8, %c0_9] : memref<1x1x64xf32, #tpu.memory_space<vmem>>, vector<1x1x64xf32>
    %13 = vector.shape_cast %12 : vector<1x1x64xf32> to vector<1x64xf32>
    %14 = vector.broadcast %13 : vector<1x64xf32> to vector<64x64xf32>
    %15 = arith.subf %11, %14 : vector<64x64xf32>
    %c0_10 = arith.constant 0 : index
    %c0_11 = arith.constant 0 : index
    %c0_12 = arith.constant 0 : index
    %16 = vector.load %arg5[%c0_10, %c0_11, %c0_12] : memref<1x64x64xf32, #tpu.memory_space<vmem>>, vector<1x64x64xf32>
    %17 = vector.shape_cast %16 : vector<1x64x64xf32> to vector<64x64xf32>
    %18 = vector.shape_cast %15 : vector<64x64xf32> to vector<1x64x64xf32>
    tpu.vector_store %arg5[%c0_10, %c0_11, %c0_12], %18 {strides = array<i32>} : memref<1x64x64xf32, #tpu.memory_space<vmem>>, vector<1x64x64xf32>,
    return
  }
  func.func @transform_0(%arg0: i32, %arg1: i32) -> (i32, i32, i32) {
    %c0_i32 = arith.constant 0 : i32
    %c0_i32_0 = arith.constant 0 : i32
    return %arg0, %arg1, %c0_i32 : i32, i32, i32
  }
  func.func @transform_1(%arg0: i32, %arg1: i32) -> (i32, i32, i32) {
    %c0_i32 = arith.constant 0 : i32
    %c0_i32_0 = arith.constant 0 : i32
    %c0_i32_1 = arith.constant 0 : i32
    return %arg0, %c0_i32, %c0_i32_0 : i32, i32, i32
  }
  func.func @transform_2(%arg0: i32, %arg1: i32) -> (i32, i32, i32) {
    %c0_i32 = arith.constant 0 : i32
    %c0_i32_0 = arith.constant 0 : i32
    %c0_i32_1 = arith.constant 0 : i32
    return %arg0, %c0_i32, %c0_i32_0 : i32, i32, i32
  }
  func.func @transform_3(%arg0: i32, %arg1: i32) -> (i32, i32, i32) {
    %c0_i32 = arith.constant 0 : i32
    %c0_i32_0 = arith.constant 0 : i32
    return %arg0, %arg1, %c0_i32 : i32, i32, i32
  }
}

module attributes {stable_mosaic.version = 11 : i64} {
  func.func @_mlp1_kernel(%arg0: i32, %arg1: memref<128x12xbf16, #tpu.memory_space<vmem>>, %arg2: memref<12x64xbf16, #tpu.memory_space<vmem>>, %arg3: memref<1x64xf32, #tpu.memory_space<vmem>>, %arg4: memref<64x64xbf16, #tpu.memory_space<vmem>>, %arg5: memref<1x64xf32, #tpu.memory_space<vmem>>, %arg6: memref<64x64xbf16, #tpu.memory_space<vmem>>, %arg7: memref<1x64xf32, #tpu.memory_space<vmem>>, %arg8: memref<128x64xbf16, #tpu.memory_space<vmem>>) attributes {dimension_semantics = [#tpu.dimension_semantics<parallel>], iteration_bounds = array<i64: 1>, scalar_prefetch = 0 : i64, scratch_operands = 0 : i64, tpu.core_type = #tpu.core_type<tc>, window_params = [{transform_indices = @transform_0, window_bounds = array<i64: 128, 12>}, {pipeline_mode = #tpu.pipeline_mode<synchronous>, transform_indices = @transform_1, window_bounds = array<i64: 12, 64>}, {pipeline_mode = #tpu.pipeline_mode<synchronous>, transform_indices = @transform_2, window_bounds = array<i64: 1, 64>}, {pipeline_mode = #tpu.pipeline_mode<synchronous>, transform_indices = @transform_3, window_bounds = array<i64: 64, 64>}, {pipeline_mode = #tpu.pipeline_mode<synchronous>, transform_indices = @transform_4, window_bounds = array<i64: 1, 64>}, {pipeline_mode = #tpu.pipeline_mode<synchronous>, transform_indices = @transform_5, window_bounds = array<i64: 64, 64>}, {pipeline_mode = #tpu.pipeline_mode<synchronous>, transform_indices = @transform_6, window_bounds = array<i64: 1, 64>}, {transform_indices = @transform_7, window_bounds = array<i64: 128, 64>}]} {
    %c0 = arith.constant 0 : index
    %c0_0 = arith.constant 0 : index
    %0 = vector.load %arg1[%c0, %c0_0] : memref<128x12xbf16, #tpu.memory_space<vmem>>, vector<128x12xbf16>
    %c0_1 = arith.constant 0 : index
    %c0_2 = arith.constant 0 : index
    %1 = vector.load %arg2[%c0_1, %c0_2] : memref<12x64xbf16, #tpu.memory_space<vmem>>, vector<12x64xbf16>
    %cst = arith.constant dense<0.000000e+00> : vector<128x64xf32>
    %2 = tpu.matmul %0, %1, %cst {dimension_numbers = #tpu.dot_dimension_numbers<[1], [0], [0], [1], [0, 0, 1, 1], [], []>} : vector<128x12xbf16>, vector<12x64xbf16>, vector<128x64xf32> -> vector<128x64xf32>
    %c0_3 = arith.constant 0 : index
    %c0_4 = arith.constant 0 : index
    %3 = vector.load %arg3[%c0_3, %c0_4] : memref<1x64xf32, #tpu.memory_space<vmem>>, vector<1x64xf32>
    %4 = vector.broadcast %3 : vector<1x64xf32> to vector<128x64xf32>
    %5 = arith.addf %2, %4 : vector<128x64xf32>
    %cst_5 = arith.constant 0.000000e+00 : f32
    %6 = vector.broadcast %cst_5 : f32 to vector<128x64xf32>
    %7 = arith.maximumf %5, %6 : vector<128x64xf32>
    %8 = arith.truncf %7 : vector<128x64xf32> to vector<128x64xbf16>
    %c0_6 = arith.constant 0 : index
    %c0_7 = arith.constant 0 : index
    %9 = vector.load %arg4[%c0_6, %c0_7] : memref<64x64xbf16, #tpu.memory_space<vmem>>, vector<64x64xbf16>
    %cst_8 = arith.constant dense<0.000000e+00> : vector<128x64xf32>
    %10 = tpu.matmul %8, %9, %cst_8 {dimension_numbers = #tpu.dot_dimension_numbers<[1], [0], [0], [1], [0, 0, 1, 1], [], []>} : vector<128x64xbf16>, vector<64x64xbf16>, vector<128x64xf32> -> vector<128x64xf32>
    %c0_9 = arith.constant 0 : index
    %c0_10 = arith.constant 0 : index
    %11 = vector.load %arg5[%c0_9, %c0_10] : memref<1x64xf32, #tpu.memory_space<vmem>>, vector<1x64xf32>
    %12 = vector.broadcast %11 : vector<1x64xf32> to vector<128x64xf32>
    %13 = arith.addf %10, %12 : vector<128x64xf32>
    %cst_11 = arith.constant 0.000000e+00 : f32
    %14 = vector.broadcast %cst_11 : f32 to vector<128x64xf32>
    %15 = arith.maximumf %13, %14 : vector<128x64xf32>
    %16 = arith.truncf %15 : vector<128x64xf32> to vector<128x64xbf16>
    %c0_12 = arith.constant 0 : index
    %c0_13 = arith.constant 0 : index
    %17 = vector.load %arg6[%c0_12, %c0_13] : memref<64x64xbf16, #tpu.memory_space<vmem>>, vector<64x64xbf16>
    %cst_14 = arith.constant dense<0.000000e+00> : vector<128x64xf32>
    %18 = tpu.matmul %16, %17, %cst_14 {dimension_numbers = #tpu.dot_dimension_numbers<[1], [0], [0], [1], [0, 0, 1, 1], [], []>} : vector<128x64xbf16>, vector<64x64xbf16>, vector<128x64xf32> -> vector<128x64xf32>
    %c0_15 = arith.constant 0 : index
    %c0_16 = arith.constant 0 : index
    %19 = vector.load %arg7[%c0_15, %c0_16] : memref<1x64xf32, #tpu.memory_space<vmem>>, vector<1x64xf32>
    %20 = vector.broadcast %19 : vector<1x64xf32> to vector<128x64xf32>
    %21 = arith.addf %18, %20 : vector<128x64xf32>
    %cst_17 = arith.constant 0.000000e+00 : f32
    %22 = vector.broadcast %cst_17 : f32 to vector<128x64xf32>
    %23 = arith.maximumf %21, %22 : vector<128x64xf32>
    %24 = arith.truncf %23 : vector<128x64xf32> to vector<128x64xbf16>
    %c0_18 = arith.constant 0 : index
    %c0_19 = arith.constant 0 : index
    %25 = vector.load %arg8[%c0_18, %c0_19] : memref<128x64xbf16, #tpu.memory_space<vmem>>, vector<128x64xbf16>
    tpu.vector_store %arg8[%c0_18, %c0_19], %24 {strides = array<i32>} : memref<128x64xbf16, #tpu.memory_space<vmem>>, vector<128x64xbf16>,
    return
  }
  func.func @transform_0(%arg0: i32) -> (i32, i32) {
    %c0_i32 = arith.constant 0 : i32
    %c0_i32_0 = arith.constant 0 : i32
    return %arg0, %c0_i32 : i32, i32
  }
  func.func @transform_1(%arg0: i32) -> (i32, i32) {
    %c0_i32 = arith.constant 0 : i32
    %c0_i32_0 = arith.constant 0 : i32
    %c0_i32_1 = arith.constant 0 : i32
    return %c0_i32, %c0_i32_0 : i32, i32
  }
  func.func @transform_2(%arg0: i32) -> (i32, i32) {
    %c0_i32 = arith.constant 0 : i32
    %c0_i32_0 = arith.constant 0 : i32
    %c0_i32_1 = arith.constant 0 : i32
    return %c0_i32, %c0_i32_0 : i32, i32
  }
  func.func @transform_3(%arg0: i32) -> (i32, i32) {
    %c0_i32 = arith.constant 0 : i32
    %c0_i32_0 = arith.constant 0 : i32
    %c0_i32_1 = arith.constant 0 : i32
    return %c0_i32, %c0_i32_0 : i32, i32
  }
  func.func @transform_4(%arg0: i32) -> (i32, i32) {
    %c0_i32 = arith.constant 0 : i32
    %c0_i32_0 = arith.constant 0 : i32
    %c0_i32_1 = arith.constant 0 : i32
    return %c0_i32, %c0_i32_0 : i32, i32
  }
  func.func @transform_5(%arg0: i32) -> (i32, i32) {
    %c0_i32 = arith.constant 0 : i32
    %c0_i32_0 = arith.constant 0 : i32
    %c0_i32_1 = arith.constant 0 : i32
    return %c0_i32, %c0_i32_0 : i32, i32
  }
  func.func @transform_6(%arg0: i32) -> (i32, i32) {
    %c0_i32 = arith.constant 0 : i32
    %c0_i32_0 = arith.constant 0 : i32
    %c0_i32_1 = arith.constant 0 : i32
    return %c0_i32, %c0_i32_0 : i32, i32
  }
  func.func @transform_7(%arg0: i32) -> (i32, i32) {
    %c0_i32 = arith.constant 0 : i32
    %c0_i32_0 = arith.constant 0 : i32
    return %arg0, %c0_i32 : i32, i32
  }
}

module attributes {stable_mosaic.version = 11 : i64} {
  func.func @_graph_a_kernel(%arg0: i32, %arg1: memref<128x16x64xbf16, #tpu.memory_space<vmem>>, %arg2: memref<64x64xbf16, #tpu.memory_space<vmem>>, %arg3: memref<1x64xf32, #tpu.memory_space<vmem>>, %arg4: memref<64x128xbf16, #tpu.memory_space<vmem>>, %arg5: memref<1x128xf32, #tpu.memory_space<vmem>>, %arg6: memref<128x128xbf16, #tpu.memory_space<vmem>>) attributes {dimension_semantics = [#tpu.dimension_semantics<parallel>], iteration_bounds = array<i64: 1>, scalar_prefetch = 0 : i64, scratch_operands = 0 : i64, tpu.core_type = #tpu.core_type<tc>, window_params = [{transform_indices = @transform_0, window_bounds = array<i64: 128, 16, 64>}, {pipeline_mode = #tpu.pipeline_mode<synchronous>, transform_indices = @transform_1, window_bounds = array<i64: 64, 64>}, {pipeline_mode = #tpu.pipeline_mode<synchronous>, transform_indices = @transform_2, window_bounds = array<i64: 1, 64>}, {pipeline_mode = #tpu.pipeline_mode<synchronous>, transform_indices = @transform_3, window_bounds = array<i64: 64, 128>}, {pipeline_mode = #tpu.pipeline_mode<synchronous>, transform_indices = @transform_4, window_bounds = array<i64: 1, 128>}, {transform_indices = @transform_5, window_bounds = array<i64: 128, 128>}]} {
    %c0 = arith.constant 0 : index
    %c0_0 = arith.constant 0 : index
    %c0_1 = arith.constant 0 : index
    %0 = vector.load %arg1[%c0, %c0_0, %c0_1] : memref<128x16x64xbf16, #tpu.memory_space<vmem>>, vector<128x16x64xbf16>
    %cst = arith.constant dense<0xFF80> : vector<128x64xbf16>
    %1 = vector.multi_reduction <maximumf>, %0, %cst [1] : vector<128x16x64xbf16> to vector<128x64xbf16>
    %c0_2 = arith.constant 0 : index
    %c0_3 = arith.constant 0 : index
    %2 = vector.load %arg2[%c0_2, %c0_3] : memref<64x64xbf16, #tpu.memory_space<vmem>>, vector<64x64xbf16>
    %cst_4 = arith.constant dense<0.000000e+00> : vector<128x64xf32>
    %3 = tpu.matmul %1, %2, %cst_4 {dimension_numbers = #tpu.dot_dimension_numbers<[1], [0], [0], [1], [0, 0, 1, 1], [], []>} : vector<128x64xbf16>, vector<64x64xbf16>, vector<128x64xf32> -> vector<128x64xf32>
    %c0_5 = arith.constant 0 : index
    %c0_6 = arith.constant 0 : index
    %4 = vector.load %arg3[%c0_5, %c0_6] : memref<1x64xf32, #tpu.memory_space<vmem>>, vector<1x64xf32>
    %5 = vector.broadcast %4 : vector<1x64xf32> to vector<128x64xf32>
    %6 = arith.addf %3, %5 : vector<128x64xf32>
    %7 = arith.truncf %6 : vector<128x64xf32> to vector<128x64xbf16>
    %c0_7 = arith.constant 0 : index
    %c0_8 = arith.constant 0 : index
    %8 = vector.load %arg4[%c0_7, %c0_8] : memref<64x128xbf16, #tpu.memory_space<vmem>>, vector<64x128xbf16>
    %cst_9 = arith.constant dense<0.000000e+00> : vector<128x128xf32>
    %9 = tpu.matmul %7, %8, %cst_9 {dimension_numbers = #tpu.dot_dimension_numbers<[1], [0], [0], [1], [0, 0, 1, 1], [], []>} : vector<128x64xbf16>, vector<64x128xbf16>, vector<128x128xf32> -> vector<128x128xf32>
    %c0_10 = arith.constant 0 : index
    %c0_11 = arith.constant 0 : index
    %10 = vector.load %arg5[%c0_10, %c0_11] : memref<1x128xf32, #tpu.memory_space<vmem>>, vector<1x128xf32>
    %11 = vector.broadcast %10 : vector<1x128xf32> to vector<128x128xf32>
    %12 = arith.addf %9, %11 : vector<128x128xf32>
    %cst_12 = arith.constant 0.000000e+00 : f32
    %13 = vector.broadcast %cst_12 : f32 to vector<128x128xf32>
    %14 = arith.maximumf %12, %13 : vector<128x128xf32>
    %15 = arith.truncf %14 : vector<128x128xf32> to vector<128x128xbf16>
    %c0_13 = arith.constant 0 : index
    %c0_14 = arith.constant 0 : index
    %16 = vector.load %arg6[%c0_13, %c0_14] : memref<128x128xbf16, #tpu.memory_space<vmem>>, vector<128x128xbf16>
    tpu.vector_store %arg6[%c0_13, %c0_14], %15 {strides = array<i32>} : memref<128x128xbf16, #tpu.memory_space<vmem>>, vector<128x128xbf16>,
    return
  }
  func.func @transform_0(%arg0: i32) -> (i32, i32, i32) {
    %c0_i32 = arith.constant 0 : i32
    %c0_i32_0 = arith.constant 0 : i32
    %c0_i32_1 = arith.constant 0 : i32
    return %arg0, %c0_i32, %c0_i32_0 : i32, i32, i32
  }
  func.func @transform_1(%arg0: i32) -> (i32, i32) {
    %c0_i32 = arith.constant 0 : i32
    %c0_i32_0 = arith.constant 0 : i32
    %c0_i32_1 = arith.constant 0 : i32
    return %c0_i32, %c0_i32_0 : i32, i32
  }
  func.func @transform_2(%arg0: i32) -> (i32, i32) {
    %c0_i32 = arith.constant 0 : i32
    %c0_i32_0 = arith.constant 0 : i32
    %c0_i32_1 = arith.constant 0 : i32
    return %c0_i32, %c0_i32_0 : i32, i32
  }
  func.func @transform_3(%arg0: i32) -> (i32, i32) {
    %c0_i32 = arith.constant 0 : i32
    %c0_i32_0 = arith.constant 0 : i32
    %c0_i32_1 = arith.constant 0 : i32
    return %c0_i32, %c0_i32_0 : i32, i32
  }
  func.func @transform_4(%arg0: i32) -> (i32, i32) {
    %c0_i32 = arith.constant 0 : i32
    %c0_i32_0 = arith.constant 0 : i32
    %c0_i32_1 = arith.constant 0 : i32
    return %c0_i32, %c0_i32_0 : i32, i32
  }
  func.func @transform_5(%arg0: i32) -> (i32, i32) {
    %c0_i32 = arith.constant 0 : i32
    %c0_i32_0 = arith.constant 0 : i32
    return %arg0, %c0_i32 : i32, i32
  }
}

module attributes {stable_mosaic.version = 11 : i64} {
  func.func @_graph_b_kernel(%arg0: i32, %arg1: i32, %arg2: i32, %arg3: memref<1x64x16x128xbf16, #tpu.memory_space<vmem>>, %arg4: memref<128x128xbf16, #tpu.memory_space<vmem>>, %arg5: memref<1x128xf32, #tpu.memory_space<vmem>>, %arg6: memref<128x1024xbf16, #tpu.memory_space<vmem>>, %arg7: memref<1x1024xf32, #tpu.memory_space<vmem>>, %arg8: memref<1x1x1024xf32, #tpu.memory_space<vmem>>) attributes {dimension_semantics = [#tpu.dimension_semantics<parallel>, #tpu.dimension_semantics<parallel>, #tpu.dimension_semantics<arbitrary>], iteration_bounds = array<i64: 2, 1, 1>, scalar_prefetch = 0 : i64, scratch_operands = 0 : i64, tpu.core_type = #tpu.core_type<tc>, window_params = [{transform_indices = @transform_0, window_bounds = array<i64: 1, 64, 16, 128>}, {pipeline_mode = #tpu.pipeline_mode<synchronous>, transform_indices = @transform_1, window_bounds = array<i64: 128, 128>}, {pipeline_mode = #tpu.pipeline_mode<synchronous>, transform_indices = @transform_2, window_bounds = array<i64: 1, 128>}, {pipeline_mode = #tpu.pipeline_mode<synchronous>, transform_indices = @transform_3, window_bounds = array<i64: 128, 1024>}, {pipeline_mode = #tpu.pipeline_mode<synchronous>, transform_indices = @transform_4, window_bounds = array<i64: 1, 1024>}, {transform_indices = @transform_5, window_bounds = array<i64: 1, 1, 1024>}]} {
    %c0_i32 = arith.constant 0 : i32
    %0 = arith.cmpi eq, %arg2, %c0_i32 : i32
    %1 = arith.extui %0 : i1 to i32
    %c0_i32_0 = arith.constant 0 : i32
    %2 = arith.cmpi ne, %1, %c0_i32_0 : i32
    scf.if %2 {
      %cst_21 = arith.constant 0xFF800000 : f32
      %25 = vector.broadcast %cst_21 : f32 to vector<1x1x1024xf32>
      %c0_22 = arith.constant 0 : index
      %c0_23 = arith.constant 0 : index
      %c0_24 = arith.constant 0 : index
      %26 = vector.load %arg8[%c0_22, %c0_23, %c0_24] : memref<1x1x1024xf32, #tpu.memory_space<vmem>>, vector<1x1x1024xf32>
      tpu.vector_store %arg8[%c0_22, %c0_23, %c0_24], %25 {strides = array<i32>} : memref<1x1x1024xf32, #tpu.memory_space<vmem>>, vector<1x1x1024xf32>,
    } else {
    }
    %c0 = arith.constant 0 : index
    %c0_1 = arith.constant 0 : index
    %c0_2 = arith.constant 0 : index
    %c0_3 = arith.constant 0 : index
    %3 = vector.load %arg3[%c0, %c0_1, %c0_2, %c0_3] : memref<1x64x16x128xbf16, #tpu.memory_space<vmem>>, vector<1x64x16x128xbf16>
    %4 = vector.shape_cast %3 : vector<1x64x16x128xbf16> to vector<64x16x128xbf16>
    %cst = arith.constant dense<0xFF80> : vector<64x128xbf16>
    %5 = vector.multi_reduction <maximumf>, %4, %cst [1] : vector<64x16x128xbf16> to vector<64x128xbf16>
    %c0_4 = arith.constant 0 : index
    %c0_5 = arith.constant 0 : index
    %6 = vector.load %arg4[%c0_4, %c0_5] : memref<128x128xbf16, #tpu.memory_space<vmem>>, vector<128x128xbf16>
    %cst_6 = arith.constant dense<0.000000e+00> : vector<64x128xf32>
    %7 = tpu.matmul %5, %6, %cst_6 {dimension_numbers = #tpu.dot_dimension_numbers<[1], [0], [0], [1], [0, 0, 1, 1], [], []>} : vector<64x128xbf16>, vector<128x128xbf16>, vector<64x128xf32> -> vector<64x128xf32>
    %c0_7 = arith.constant 0 : index
    %c0_8 = arith.constant 0 : index
    %8 = vector.load %arg5[%c0_7, %c0_8] : memref<1x128xf32, #tpu.memory_space<vmem>>, vector<1x128xf32>
    %9 = vector.broadcast %8 : vector<1x128xf32> to vector<64x128xf32>
    %10 = arith.addf %7, %9 : vector<64x128xf32>
    %11 = arith.truncf %10 : vector<64x128xf32> to vector<64x128xbf16>
    %c0_9 = arith.constant 0 : index
    %c0_10 = arith.constant 0 : index
    %12 = vector.load %arg6[%c0_9, %c0_10] : memref<128x1024xbf16, #tpu.memory_space<vmem>>, vector<128x1024xbf16>
    %cst_11 = arith.constant dense<0.000000e+00> : vector<64x1024xf32>
    %13 = tpu.matmul %11, %12, %cst_11 {dimension_numbers = #tpu.dot_dimension_numbers<[1], [0], [0], [1], [0, 0, 1, 1], [], []>} : vector<64x128xbf16>, vector<128x1024xbf16>, vector<64x1024xf32> -> vector<64x1024xf32>
    %c0_12 = arith.constant 0 : index
    %c0_13 = arith.constant 0 : index
    %14 = vector.load %arg7[%c0_12, %c0_13] : memref<1x1024xf32, #tpu.memory_space<vmem>>, vector<1x1024xf32>
    %15 = vector.broadcast %14 : vector<1x1024xf32> to vector<64x1024xf32>
    %16 = arith.addf %13, %15 : vector<64x1024xf32>
    %c0_14 = arith.constant 0 : index
    %c0_15 = arith.constant 0 : index
    %c0_16 = arith.constant 0 : index
    %17 = vector.load %arg8[%c0_14, %c0_15, %c0_16] : memref<1x1x1024xf32, #tpu.memory_space<vmem>>, vector<1x1x1024xf32>
    %18 = vector.shape_cast %17 : vector<1x1x1024xf32> to vector<1x1024xf32>
    %cst_17 = arith.constant dense<0xFF800000> : vector<1024xf32>
    %19 = vector.multi_reduction <maximumf>, %16, %cst_17 [0] : vector<64x1024xf32> to vector<1024xf32>
    %20 = vector.shape_cast %19 : vector<1024xf32> to vector<1x1024xf32>
    %21 = arith.maximumf %18, %20 : vector<1x1024xf32>
    %c0_18 = arith.constant 0 : index
    %c0_19 = arith.constant 0 : index
    %c0_20 = arith.constant 0 : index
    %22 = vector.load %arg8[%c0_18, %c0_19, %c0_20] : memref<1x1x1024xf32, #tpu.memory_space<vmem>>, vector<1x1x1024xf32>
    %23 = vector.shape_cast %22 : vector<1x1x1024xf32> to vector<1x1024xf32>
    %24 = vector.shape_cast %21 : vector<1x1024xf32> to vector<1x1x1024xf32>
    tpu.vector_store %arg8[%c0_18, %c0_19, %c0_20], %24 {strides = array<i32>} : memref<1x1x1024xf32, #tpu.memory_space<vmem>>, vector<1x1x1024xf32>,
    return
  }
  func.func @transform_0(%arg0: i32, %arg1: i32, %arg2: i32) -> (i32, i32, i32, i32) {
    %c1_i32 = arith.constant 1 : i32
    %0 = arith.muli %arg1, %c1_i32 : i32
    %1 = arith.addi %0, %arg2 : i32
    %c0_i32 = arith.constant 0 : i32
    %c0_i32_0 = arith.constant 0 : i32
    %c0_i32_1 = arith.constant 0 : i32
    return %arg0, %1, %c0_i32, %c0_i32_0 : i32, i32, i32, i32
  }
  func.func @transform_1(%arg0: i32, %arg1: i32, %arg2: i32) -> (i32, i32) {
    %c0_i32 = arith.constant 0 : i32
    %c0_i32_0 = arith.constant 0 : i32
    %c0_i32_1 = arith.constant 0 : i32
    return %c0_i32, %c0_i32_0 : i32, i32
  }
  func.func @transform_2(%arg0: i32, %arg1: i32, %arg2: i32) -> (i32, i32) {
    %c0_i32 = arith.constant 0 : i32
    %c0_i32_0 = arith.constant 0 : i32
    %c0_i32_1 = arith.constant 0 : i32
    return %c0_i32, %c0_i32_0 : i32, i32
  }
  func.func @transform_3(%arg0: i32, %arg1: i32, %arg2: i32) -> (i32, i32) {
    %c0_i32 = arith.constant 0 : i32
    %c0_i32_0 = arith.constant 0 : i32
    %c0_i32_1 = arith.constant 0 : i32
    return %c0_i32, %c0_i32_0 : i32, i32
  }
  func.func @transform_4(%arg0: i32, %arg1: i32, %arg2: i32) -> (i32, i32) {
    %c0_i32 = arith.constant 0 : i32
    %c0_i32_0 = arith.constant 0 : i32
    %c0_i32_1 = arith.constant 0 : i32
    return %c0_i32, %c0_i32_0 : i32, i32
  }
  func.func @transform_5(%arg0: i32, %arg1: i32, %arg2: i32) -> (i32, i32, i32) {
    %c0_i32 = arith.constant 0 : i32
    %c0_i32_0 = arith.constant 0 : i32
    return %arg0, %arg1, %c0_i32 : i32, i32, i32
  }
}

module attributes {stable_mosaic.version = 11 : i64} {
  func.func @_mlp2_kernel(%arg0: i32, %arg1: memref<2x1024xf32, #tpu.memory_space<vmem>>, %arg2: memref<1024x512xbf16, #tpu.memory_space<vmem>>, %arg3: memref<1x512xf32, #tpu.memory_space<vmem>>, %arg4: memref<512x512xbf16, #tpu.memory_space<vmem>>, %arg5: memref<1x512xf32, #tpu.memory_space<vmem>>, %arg6: memref<2x512xf32, #tpu.memory_space<vmem>>) attributes {dimension_semantics = [#tpu.dimension_semantics<arbitrary>], iteration_bounds = array<i64: 1>, scalar_prefetch = 0 : i64, scratch_operands = 0 : i64, tpu.core_type = #tpu.core_type<tc>, window_params = [{pipeline_mode = #tpu.pipeline_mode<synchronous>, transform_indices = @transform_0, window_bounds = array<i64: 2, 1024>}, {pipeline_mode = #tpu.pipeline_mode<synchronous>, transform_indices = @transform_1, window_bounds = array<i64: 1024, 512>}, {pipeline_mode = #tpu.pipeline_mode<synchronous>, transform_indices = @transform_2, window_bounds = array<i64: 1, 512>}, {pipeline_mode = #tpu.pipeline_mode<synchronous>, transform_indices = @transform_3, window_bounds = array<i64: 512, 512>}, {pipeline_mode = #tpu.pipeline_mode<synchronous>, transform_indices = @transform_4, window_bounds = array<i64: 1, 512>}, {pipeline_mode = #tpu.pipeline_mode<synchronous>, transform_indices = @transform_5, window_bounds = array<i64: 2, 512>}]} {
    %c0 = arith.constant 0 : index
    %c0_0 = arith.constant 0 : index
    %0 = vector.load %arg1[%c0, %c0_0] : memref<2x1024xf32, #tpu.memory_space<vmem>>, vector<2x1024xf32>
    %1 = arith.truncf %0 : vector<2x1024xf32> to vector<2x1024xbf16>
    %c0_1 = arith.constant 0 : index
    %c0_2 = arith.constant 0 : index
    %2 = vector.load %arg2[%c0_1, %c0_2] : memref<1024x512xbf16, #tpu.memory_space<vmem>>, vector<1024x512xbf16>
    %cst = arith.constant dense<0.000000e+00> : vector<2x512xf32>
    %3 = tpu.matmul %1, %2, %cst {dimension_numbers = #tpu.dot_dimension_numbers<[1], [0], [0], [1], [0, 0, 1, 1], [], []>} : vector<2x1024xbf16>, vector<1024x512xbf16>, vector<2x512xf32> -> vector<2x512xf32>
    %c0_3 = arith.constant 0 : index
    %c0_4 = arith.constant 0 : index
    %4 = vector.load %arg3[%c0_3, %c0_4] : memref<1x512xf32, #tpu.memory_space<vmem>>, vector<1x512xf32>
    %5 = vector.broadcast %4 : vector<1x512xf32> to vector<2x512xf32>
    %6 = arith.addf %3, %5 : vector<2x512xf32>
    %cst_5 = arith.constant 0.000000e+00 : f32
    %7 = vector.broadcast %cst_5 : f32 to vector<2x512xf32>
    %8 = arith.maximumf %6, %7 : vector<2x512xf32>
    %9 = arith.truncf %8 : vector<2x512xf32> to vector<2x512xbf16>
    %c0_6 = arith.constant 0 : index
    %c0_7 = arith.constant 0 : index
    %10 = vector.load %arg4[%c0_6, %c0_7] : memref<512x512xbf16, #tpu.memory_space<vmem>>, vector<512x512xbf16>
    %cst_8 = arith.constant dense<0.000000e+00> : vector<2x512xf32>
    %11 = tpu.matmul %9, %10, %cst_8 {dimension_numbers = #tpu.dot_dimension_numbers<[1], [0], [0], [1], [0, 0, 1, 1], [], []>} : vector<2x512xbf16>, vector<512x512xbf16>, vector<2x512xf32> -> vector<2x512xf32>
    %c0_9 = arith.constant 0 : index
    %c0_10 = arith.constant 0 : index
    %12 = vector.load %arg5[%c0_9, %c0_10] : memref<1x512xf32, #tpu.memory_space<vmem>>, vector<1x512xf32>
    %13 = vector.broadcast %12 : vector<1x512xf32> to vector<2x512xf32>
    %14 = arith.addf %11, %13 : vector<2x512xf32>
    %c0_11 = arith.constant 0 : index
    %c0_12 = arith.constant 0 : index
    %15 = vector.load %arg6[%c0_11, %c0_12] : memref<2x512xf32, #tpu.memory_space<vmem>>, vector<2x512xf32>
    tpu.vector_store %arg6[%c0_11, %c0_12], %14 {strides = array<i32>} : memref<2x512xf32, #tpu.memory_space<vmem>>, vector<2x512xf32>,
    return
  }
  func.func @transform_0(%arg0: i32) -> (i32, i32) {
    %c0_i32 = arith.constant 0 : i32
    %c0_i32_0 = arith.constant 0 : i32
    %c0_i32_1 = arith.constant 0 : i32
    return %c0_i32, %c0_i32_0 : i32, i32
  }
  func.func @transform_1(%arg0: i32) -> (i32, i32) {
    %c0_i32 = arith.constant 0 : i32
    %c0_i32_0 = arith.constant 0 : i32
    %c0_i32_1 = arith.constant 0 : i32
    return %c0_i32, %c0_i32_0 : i32, i32
  }
  func.func @transform_2(%arg0: i32) -> (i32, i32) {
    %c0_i32 = arith.constant 0 : i32
    %c0_i32_0 = arith.constant 0 : i32
    %c0_i32_1 = arith.constant 0 : i32
    return %c0_i32, %c0_i32_0 : i32, i32
  }
  func.func @transform_3(%arg0: i32) -> (i32, i32) {
    %c0_i32 = arith.constant 0 : i32
    %c0_i32_0 = arith.constant 0 : i32
    %c0_i32_1 = arith.constant 0 : i32
    return %c0_i32, %c0_i32_0 : i32, i32
  }
  func.func @transform_4(%arg0: i32) -> (i32, i32) {
    %c0_i32 = arith.constant 0 : i32
    %c0_i32_0 = arith.constant 0 : i32
    %c0_i32_1 = arith.constant 0 : i32
    return %c0_i32, %c0_i32_0 : i32, i32
  }
  func.func @transform_5(%arg0: i32) -> (i32, i32) {
    %c0_i32 = arith.constant 0 : i32
    %c0_i32_0 = arith.constant 0 : i32
    %c0_i32_1 = arith.constant 0 : i32
    return %c0_i32, %c0_i32_0 : i32, i32
  }
}

</mosaic_0001>

<bundles_post_ra>
// kernel: foldnet_encoder_forward.5
= control target key start
LH: loop header
LB: loop body
LE: loop exit
PB: predicated region body
PF: predicated region fallthrough
CT: control target
= control target key end

     0   :  { %s681_s12 = smov 0   ;;  %s683_s13 = smov 0   ;;  %s763_s0 = inlined_call_operand.vmem [shape: f32[2,64,3], index: 0, kind: input, shape index: {}]   ;;  %s764_s1 = inlined_call_operand.vmem [shape: f32[2,3,64], index: 1, kind: input, shape index: {}]   ;;  %s765_s2 = inlined_call_operand.vmem [shape: f32[2,1,64], index: 2, kind: input, shape index: {}]   ;;  %s766_s3 = inlined_call_operand.vmem [shape: f32[2,64,64], index: 3, kind: output, shape index: {}]  }
   0x1   :  { %s685_s14 = smov 0  }
   0x2 LB: > { %s25_s15 = sadd.s32 1, %s655_s13  ;;  %p568_p0 = scmp.ge.s32.totalorder %s659_s14, 1  ;;  %s659_s14 = sphi %s685_s14, %s13_s14   ;;  %s655_s13 = sphi %s683_s13, %s768_s13   ;;  %s651_s12 = sphi %s681_s12, %s767_s12  }
   0x3   : > { %p27_p1 = scmp.ge.s32.totalorder %s25_s15, 2  ;;  %p175_p2 = scmp.lt.s32.totalorder %s659_s14, 3 }
   0x5   : > { %s770_s15 = smov (%p27_p1, %s25_s15), 0  ;;  %p176_p3 = pnand %p568_p0, %p175_p2 }
   0x6   : > { %p215_p4 = scmp.lt.s32.totalorder (!%p176_p3), %s651_s12, 1  ;;  %vm275_vm0 = vcmask (!%p176_p3), 1042432   ;;  %vm250_vm1 = vcmask (!%p176_p3), 23552   ;;  %vm447_vm2 = vcmask (!%p176_p3), 523264  }
   0x7   : > { %179 = sbr.rel (%p176_p3) target bundleno = 245 (0xf5), region = 32 }
   0xe   : > { %s772_s12 = smov (!%p215_p4, %s651_s12), 1 }
   0xf   : > { %s586_s16 = sshll.u32 %s772_s12, 6  ;;  %s571_s17 = sshll.u32 %s772_s12, 2 }
  0x10   : > { %s222_s20 = scalar_lea.vmem %s763_s0, %s586_s16  ;;  %s227_s23 = scalar_lea.vmem %s764_s1, %s571_s17 }
  0x11   : > { %v249_v0 = vld [vmem:[%s227_s23] sm:$0x7]  ;;  %v242_v4 = vld [vmem:[%s222_s20 + $0x8] sm:$0xff]  ;;  %v243_v6 = vld [vmem:[%s222_s20 + $0x10] sm:$0xff]  ;;  %s230_s26 = scalar_lea.vmem %s765_s2, %s772_s12  ;;  %s736_s29 = scalar_lea.vmem %s766_s3, %s586_s16 }
  0x12   : > { %v241_v1 = vld [vmem:[%s222_s20] sm:$0xff]  ;;  %597 = vmatprep.subr.msk.mxu0 %vm275_vm0, %v249_v0  ;;  %611 = vmatprep.subr.msk.mxu1 %vm275_vm0, %v249_v0  ;;  %v246_v5 = vld [vmem:[%s222_s20 + $0x28] sm:$0xff]  ;;  %v247_v7 = vld [vmem:[%s222_s20 + $0x30] sm:$0xff]  ;;  %v386_v9 = vmul.f32 %v243_v6, %v243_v6  ;;  %v385_v12 = vmul.f32 %v242_v4, %v242_v4 }
  0x13   : > { %v245_v2 = vld [vmem:[%s222_s20 + $0x20] sm:$0xff]  ;;  %v384_v3 = vmul.f32 %v241_v1, %v241_v1  ;;  %598 = vmatpush3.msk.msra.mxu0 %vm275_vm0, %v249_v0  ;;  %612 = vmatpush3.msk.msra.mxu1 %vm275_vm0, %v249_v0  ;;  %v244_v8 = vld [vmem:[%s222_s20 + $0x18] sm:$0xff]  ;;  %v389_v18 = vmul.f32 %v246_v5, %v246_v5  ;;  %v390_v22 = vmul.f32 %v247_v7, %v247_v7 }
  0x14   : > { %599 = vmatprep.mubr.msk.f32.mxu0 %vm250_vm1, %v241_v1  ;;  %605 = vmatprep.mubr.msk.f32.mxu1 %vm250_vm1, %v245_v2  ;;  %v387_v11 = vmul.f32 %v244_v8, %v244_v8  ;;  %v248_v13 = vld [vmem:[%s222_s20 + $0x38] sm:$0xff]  ;;  %v398_v14 = vsel %vm250_vm1, %v386_v9, 0.0  ;;  %v388_v15 = vmul.f32 %v245_v2, %v245_v2  ;;  %v395_v17 = vsel %vm250_vm1, %v385_v12, 0.0  ;;  %v583_v37 = vld [vmem:[%s230_s26] ss:$0 sm:$0xff] }
  0x15   : > { %v392_v10 = vsel %vm250_vm1, %v384_v3, 0.0  ;;  %600 = vmatmul.mubr.msk.f32.vlgmr.msra.gmra.mrb[0].mxu0 %vm250_vm1, %v242_v4  ;;  %606 = vmatmul.mubr.msk.f32.vlgmr.msra.gmra.mrb[0].mxu1 %vm250_vm1, %v246_v5  ;;  %v407_v19 = vsel %vm250_vm1, %v389_v18, 0.0  ;;  %v391_v21 = vmul.f32 %v248_v13, %v248_v13  ;;  %v410_v24 = vsel %vm250_vm1, %v390_v22, 0.0 }
  0x16   : > { %602 = vmatprep.mubr.msk.f32.mxu0 %vm250_vm1, %v243_v6  ;;  %608 = vmatprep.mubr.msk.f32.mxu1 %vm250_vm1, %v247_v7  ;;  %v401_v16 = vsel %vm250_vm1, %v387_v11, 0.0  ;;  %v404_v20 = vsel %vm250_vm1, %v388_v15, 0.0 }
  0x17   : > { %399 = vadd.xlane.f32.xlu1 %v398_v14  ;;  %393 = vadd.xlane.f32.xlu0 %v392_v10  ;;  %v413_v23 = vsel %vm250_vm1, %v391_v21, 0.0 }
  0x19   : > { %603 = vmatmul.mubr.msk.f32.gmra.mrb[2].mxu0 %vm250_vm1, %v244_v8  ;;  %609 = vmatmul.mubr.msk.f32.gmra.mrb[2].mxu1 %vm250_vm1, %v248_v13 }
  0x1b   : > { %402 = vadd.xlane.f32.xlu1 %v401_v16  ;;  %396 = vadd.xlane.f32.xlu0 %v395_v17 }
  0x1f   : > { %408 = vadd.xlane.f32.xlu1 %v407_v19  ;;  %405 = vadd.xlane.f32.xlu0 %v404_v20 }
  0x23   : > { %414 = vadd.xlane.f32.xlu1 %v413_v23  ;;  %411 = vadd.xlane.f32.xlu0 %v410_v24 }
  0xa4   : > { %v400_v25 = vpop.xlane.xlu1 %399  ;;  %v394_v26 = vpop.xlane.xlu0 %393 }
  0xa8   : > { %v403_v27 = vpop.xlane.xlu1 %402  ;;  %v397_v28 = vpop.xlane.xlu0 %396 }
  0xac   : > { %v409_v29 = vpop.xlane.xlu1 %408  ;;  %v406_v30 = vpop.xlane.xlu0 %405 }
  0xb0   : > { %v415_v42 = vpop.xlane.xlu1 %414  ;;  %v412_v43 = vpop.xlane.xlu0 %411 }
  0xe8   : > { %v601_v31 = vpop.f32.mrb[0].mxu0  ;;  %v607_v32 = vpop.f32.mrb[0].mxu1 }
  0xe9   : > { %v417_v33 = vmul.f32 2.0, %v601_v31  ;;  %v421_v34 = vmul.f32 2.0, %v607_v32  ;;  %v345_v35 = vpop.f32.mrb[1].mxu0  ;;  %v365_v36 = vpop.f32.mrb[1].mxu1 }
  0xea   : > { %v416_v38 = vmul.f32 2.0, %v345_v35  ;;  %v420_v39 = vmul.f32 2.0, %v365_v36 }
  0xeb   : > { %v425_v40 = vsub.f32 %v417_v33, %v397_v28  ;;  %v429_v41 = vsub.f32 %v421_v34, %v409_v29 }
  0xec   : > { %v424_v44 = vsub.f32 %v416_v38, %v394_v26  ;;  %v428_v45 = vsub.f32 %v420_v39, %v406_v30  ;;  %v604_v46 = vpop.f32.mrb[2].mxu0  ;;  %v610_v47 = vpop.f32.mrb[2].mxu1 }
  0xed   : > { %v440_v48 = vsub.f32 %v425_v40, %v583_v37  ;;  %v444_v49 = vsub.f32 %v429_v41, %v583_v37  ;;  %v419_v50 = vmul.f32 2.0, %v604_v46  ;;  %v423_v51 = vmul.f32 2.0, %v610_v47  ;;  %v355_v52 = vpop.f32.mrb[3].mxu0  ;;  %v375_v53 = vpop.f32.mrb[3].mxu1 }
  0xee   : > { %v439_v54 = vsub.f32 %v424_v44, %v583_v37  ;;  %v443_v55 = vsub.f32 %v428_v45, %v583_v37  ;;  %v418_v56 = vmul.f32 2.0, %v355_v52  ;;  %v422_v57 = vmul.f32 2.0, %v375_v53 }
  0xef   : > { %449 = vst.msk [vmem:[%s736_s29 + $0x8] sm:$0xff] %vm447_vm2, %v440_v48  ;;  %453 = vst.msk [vmem:[%s736_s29 + $0x28] sm:$0xff] %vm447_vm2, %v444_v49  ;;  %v427_v58 = vsub.f32 %v419_v50, %v403_v27  ;;  %v431_v59 = vsub.f32 %v423_v51, %v415_v42 }
  0xf0   : > { %448 = vst.msk [vmem:[%s736_s29] sm:$0xff] %vm447_vm2, %v439_v54  ;;  %452 = vst.msk [vmem:[%s736_s29 + $0x20] sm:$0xff] %vm447_vm2, %v443_v55  ;;  %v426_v60 = vsub.f32 %v418_v56, %v400_v25  ;;  %v430_v61 = vsub.f32 %v422_v57, %v412_v43 }
  0xf1   : > { %v442_v62 = vsub.f32 %v427_v58, %v583_v37  ;;  %v446_v63 = vsub.f32 %v431_v59, %v583_v37 }
  0xf2   : > { %v441_v0 = vsub.f32 %v426_v60, %v583_v37  ;;  %v445_v1 = vsub.f32 %v430_v61, %v583_v37 }
  0xf3   : > { %451 = vst.msk [vmem:[%s736_s29 + $0x18] sm:$0xff] %vm447_vm2, %v442_v62  ;;  %455 = vst.msk [vmem:[%s736_s29 + $0x38] sm:$0xff] %vm447_vm2, %v446_v63 }
  0xf4   : > { %450 = vst.msk [vmem:[%s736_s29 + $0x10] sm:$0xff] %vm447_vm2, %v441_v0  ;;  %454 = vst.msk [vmem:[%s736_s29 + $0x30] sm:$0xff] %vm447_vm2, %v445_v1 }
  0xf5 PF: > { %s13_s14 = sadd.s32 1, %s659_s14   ;;  %s767_s12 = smov %s655_s13 }
  0xf6   : > { %p10_p5 = scmp.ge.s32.totalorder %s13_s14, 4   ;;  %s768_s13 = smov %s770_s15 }
  0xf8   :  { %12 = sbr.rel (!%p10_p5) target bundleno = 2 (0x2), region = 68 }

// kernel: foldnet_encoder_forward.6
= control target key start
LH: loop header
LB: loop body
LE: loop exit
PB: predicated region body
PF: predicated region fallthrough
CT: control target
= control target key end

     0   :  { %vm122_vm0 = vcmask 1045504   ;;  %vm97_vm1 = vcmask 97280   ;;  %vm286_vm2 = vcmask 523264   ;;  %vm672_vm3 = vcmask 519168   ;;  %s1095_s1 = inlined_call_operand.vmem [shape: bf16[12,64], index: 1, kind: input, shape index: {}]   ;;  %s1096_s0 = inlined_call_operand.vmem [shape: bf16[128,12], index: 0, kind: input, shape index: {}]   ;;  %s1097_s3 = inlined_call_operand.vmem [shape: bf16[64,64], index: 3, kind: input, shape index: {}]   ;;  %s1098_s5 = inlined_call_operand.vmem [shape: bf16[64,64], index: 5, kind: input, shape index: {}]   ;;  %s1099_s2 = inlined_call_operand.vmem [shape: f32[1,64], index: 2, kind: input, shape index: {}]   ;;  %s1100_s4 = inlined_call_operand.vmem [shape: f32[1,64], index: 4, kind: input, shape index: {}]   ;;  %s1101_s6 = inlined_call_operand.vmem [shape: f32[1,64], index: 6, kind: input, shape index: {}]   ;;  %s1102_s7 = inlined_call_operand.vmem [shape: bf16[128,64], index: 7, kind: output, shape index: {}]  }
   0x1   :  { %v872_v0 = vld [vmem:[%s1095_s1] sm:$0x3f]   ;;  %v874_v3 = vld [vmem:[%s1096_s0 + $0x8] sm:$0xff]   ;;  %v875_v4 = vld [vmem:[%s1096_s0 + $0x10] sm:$0xff]  }
   0x2   :  { %v873_v1 = vld [vmem:[%s1096_s0] sm:$0xff]   ;;  %870 = vmatprep.subr.msk.bf16.mxu0 %vm122_vm0, %v872_v0  ;;  %v124_v2 = vsel %vm122_vm0, %v872_v0, 0  ;;  %871 = vmatprep.subr.msk.bf16.mxu1 %vm122_vm0, %v872_v0  ;;  %v878_v6 = vld [vmem:[%s1096_s0 + $0x28] sm:$0xff]   ;;  %v879_v7 = vld [vmem:[%s1096_s0 + $0x30] sm:$0xff]  }
   0x3   :  { %803 = vmatpush3.bf16.msra.mxu0 %v124_v2  ;;  %804 = vmatprep.mubr.msk.bf16.mxu0 %vm97_vm1, %v873_v1  ;;  %v877_v5 = vld [vmem:[%s1096_s0 + $0x20] sm:$0xff]   ;;  %v876_v8 = vld [vmem:[%s1096_s0 + $0x18] sm:$0xff]   ;;  %v882_v10 = vld [vmem:[%s1097_s3 + $0x8] sm:$0xff]  }
   0x4   :  { %869 = vmatpush3.bf16.msra.mxu1 %v124_v2  ;;  %812 = vmatprep.mubr.msk.bf16.mxu1 %vm97_vm1, %v877_v5  ;;  %v881_v9 = vld [vmem:[%s1097_s3] sm:$0xff]   ;;  %v880_v11 = vld [vmem:[%s1096_s0 + $0x38] sm:$0xff]   ;;  %v883_v12 = vld [vmem:[%s1097_s3 + $0x10] sm:$0xff]  }
   0x5   :  { %820 = vmatprep.subr.bf16.mxu1 %v881_v9  ;;  %v884_v13 = vld [vmem:[%s1097_s3 + $0x18] sm:$0xff]   ;;  %v885_v14 = vld [vmem:[%s1098_s5] sm:$0xff]   ;;  %v886_v15 = vld [vmem:[%s1098_s5 + $0x8] sm:$0xff]  }
   0x6   :  { %805 = vmatmul.mubr.msk.bf16.vlgmr.msra.gmra.mrb[0].mxu0 %vm97_vm1, %v874_v3  ;;  %844 = vmatprep.subr.bf16.mxu0 %v885_v14  ;;  %v693_v16 = vld [vmem:[%s1099_s2] ss:$0 sm:$0xff] }
   0x7   :  { %808 = vmatprep.mubr.msk.bf16.mxu0 %vm97_vm1, %v875_v4  ;;  %813 = vmatmul.mubr.msk.bf16.vlgmr.msra.gmra.mrb[0].mxu1 %vm97_vm1, %v878_v6 }
   0x8   :  { %816 = vmatprep.mubr.msk.bf16.mxu1 %vm97_vm1, %v879_v7  ;;  %821 = vmatpush3.bf16.msra.mxu1 %v881_v9  ;;  %v887_v9 = vld [vmem:[%s1098_s5 + $0x10] sm:$0xff]  }
   0x9   :  { %822 = vmatprep.subr.bf16.mxu1 %v882_v10  ;;  %845 = vmatpush3.bf16.msra.mxu0 %v885_v14 }
   0xa   :  { %846 = vmatprep.subr.bf16.mxu0 %v886_v15 }
   0xc   :  { %823 = vmatpush3.bf16.msra.mxu1 %v882_v10  ;;  %v888_v10 = vld [vmem:[%s1098_s5 + $0x18] sm:$0xff]  }
   0xd   :  { %824 = vmatprep.subr.bf16.mxu1 %v883_v12  ;;  %847 = vmatpush3.bf16.msra.mxu0 %v886_v15 }
   0xe   :  { %809 = vmatmul.mubr.msk.bf16.gmra.mrb[4].mxu0 %vm97_vm1, %v876_v8  ;;  %848 = vmatprep.subr.bf16.mxu0 %v887_v9 }
   0xf   :  { %817 = vmatmul.mubr.msk.bf16.gmra.mrb[4].mxu1 %vm97_vm1, %v880_v11  ;;  %v711_v11 = vld [vmem:[%s1100_s4] ss:$0 sm:$0xff] }
  0x10   :  { %825 = vmatpush3.bf16.msra.mxu1 %v883_v12 }
  0x11   :  { %826 = vmatprep.subr.bf16.mxu1 %v884_v13  ;;  %849 = vmatpush3.bf16.msra.mxu0 %v887_v9 }
  0x12   :  { %850 = vmatprep.subr.bf16.mxu0 %v888_v10 }
  0x14   :  { %827 = vmatpush3.bf16.msra.mxu1 %v884_v13 }
  0x15   :  { %851 = vmatpush3.bf16.msra.mxu0 %v888_v10 }
  0xd9   :  { %v806_v17 = vpop.f32.mrb[0].mxu0 }
  0xda   :  { %v169_v18 = vadd.f32 %v806_v17, %v693_v16  ;;  %v160_v19 = vpop.f32.mrb[1].mxu0  ;;  %v814_v22 = vpop.f32.mrb[0].mxu1 }
  0xdb   :  { %v161_v20 = vadd.f32 %v693_v16, %v160_v19  ;;  %v807_v21 = vpop.f32.mrb[2].mxu0  ;;  %v201_v25 = vadd.f32 %v814_v22, %v693_v16  ;;  %v192_v26 = vpop.f32.mrb[1].mxu1 }
  0xdc   :  { %v172_v23 = vadd.f32 %v807_v21, %v693_v16  ;;  %v163_v24 = vpop.f32.mrb[3].mxu0  ;;  %v193_v28 = vadd.f32 %v693_v16, %v192_v26  ;;  %v815_v29 = vpop.f32.mrb[2].mxu1  ;;  %v225_v30 = vmax.f32 %v169_v18, 0.0 }
  0xdd   :  { %v164_v27 = vadd.f32 %v693_v16, %v163_v24  ;;  %v233_v32 = vmax.f32 %v201_v25, 0.0  ;;  %v204_v33 = vadd.f32 %v815_v29, %v693_v16  ;;  %v195_v34 = vpop.f32.mrb[3].mxu1  ;;  %v223_v35 = vmax.f32 %v161_v20, 0.0 }
  0xde   :  { %v226_v31 = vmax.f32 %v172_v23, 0.0  ;;  %v231_v37 = vmax.f32 %v193_v28, 0.0  ;;  %v196_v38 = vadd.f32 %v693_v16, %v195_v34 }
  0xdf   :  { %v224_v36 = vmax.f32 %v164_v27, 0.0  ;;  %v234_v40 = vmax.f32 %v204_v33, 0.0 }
  0xe0   :  { %v240_v39 = vpack.c.bf16 %v226_v31, %v225_v30  ;;  %v232_v43 = vmax.f32 %v196_v38, 0.0 }
  0xe1   :  { %v239_v41 = vpack.c.bf16 %v224_v36, %v223_v35  ;;  %v810_v42 = vpop.f32.mrb[4].mxu0  ;;  %v244_v46 = vpack.c.bf16 %v234_v40, %v233_v32 }
  0xe2   :  { %v185_v44 = vadd.f32 %v810_v42, %v693_v16  ;;  %v176_v45 = vpop.f32.mrb[5].mxu0  ;;  %v243_v49 = vpack.c.bf16 %v232_v43, %v231_v37  ;;  %v818_v50 = vpop.f32.mrb[4].mxu1 }
  0xe3   :  { %v177_v47 = vadd.f32 %v693_v16, %v176_v45  ;;  %v811_v48 = vpop.f32.mrb[6].mxu0  ;;  %828 = vmatprep.mubr.msk.bf16.mxu1 %vm286_vm2, %v239_v41  ;;  %v217_v53 = vadd.f32 %v818_v50, %v693_v16  ;;  %v208_v54 = vpop.f32.mrb[5].mxu1 }
  0xe4   :  { %v188_v51 = vadd.f32 %v811_v48, %v693_v16  ;;  %v179_v52 = vpop.f32.mrb[7].mxu0  ;;  %829 = vmatmul.mubr.msk.bf16.vlgmr.msra.gmra.mrb[8].mxu1 %vm286_vm2, %v240_v39  ;;  %v209_v56 = vadd.f32 %v693_v16, %v208_v54  ;;  %v819_v57 = vpop.f32.mrb[6].mxu1  ;;  %v229_v58 = vmax.f32 %v185_v44, 0.0 }
  0xe5   :  { %v180_v55 = vadd.f32 %v693_v16, %v179_v52  ;;  %v237_v60 = vmax.f32 %v217_v53, 0.0  ;;  %v220_v61 = vadd.f32 %v819_v57, %v693_v16  ;;  %v211_v62 = vpop.f32.mrb[7].mxu1  ;;  %v227_v63 = vmax.f32 %v177_v47, 0.0 }
  0xe6   :  { %v230_v59 = vmax.f32 %v188_v51, 0.0  ;;  %v235_v1 = vmax.f32 %v209_v56, 0.0  ;;  %v212_v2 = vadd.f32 %v693_v16, %v211_v62 }
  0xe7   :  { %v228_v0 = vmax.f32 %v180_v55, 0.0  ;;  %v238_v4 = vmax.f32 %v220_v61, 0.0 }
  0xe8   :  { %v242_v3 = vpack.c.bf16 %v230_v59, %v229_v58  ;;  %v236_v6 = vmax.f32 %v212_v2, 0.0 }
  0xe9   :  { %v241_v5 = vpack.c.bf16 %v228_v0, %v227_v63  ;;  %v246_v7 = vpack.c.bf16 %v238_v4, %v237_v60  ;;  %v1013_v4 = vld [vmem:[%s1101_s6] ss:$0 sm:$0xff] }
  0xea   :  { %v245_v8 = vpack.c.bf16 %v236_v6, %v235_v1 }
  0xeb   :  { %832 = vmatprep.mubr.msk.bf16.mxu1 %vm286_vm2, %v241_v5 }
  0xec   :  { %833 = vmatmul.mubr.msk.bf16.gmra.mrb[12].mxu1 %vm286_vm2, %v242_v3 }
  0xed   :  { %836 = vmatprep.mubr.msk.bf16.mxu1 %vm286_vm2, %v243_v49 }
  0xf4   :  { %837 = vmatmul.mubr.msk.bf16.gmra.mrb[16].mxu1 %vm286_vm2, %v244_v46 }
  0xf5   :  { %840 = vmatprep.mubr.msk.bf16.mxu1 %vm286_vm2, %v245_v8 }
  0xfc   :  { %841 = vmatmul.mubr.msk.bf16.gmra.mrb[20].mxu1 %vm286_vm2, %v246_v7 }
 0x1b7   :  { %v830_v12 = vpop.f32.mrb[8].mxu1 }
 0x1b8   :  { %v354_v13 = vadd.f32 %v830_v12, %v711_v11  ;;  %v345_v14 = vpop.f32.mrb[9].mxu1 }
 0x1b9   :  { %v346_v15 = vadd.f32 %v711_v11, %v345_v14  ;;  %v831_v16 = vpop.f32.mrb[10].mxu1 }
 0x1ba   :  { %v357_v17 = vadd.f32 %v831_v16, %v711_v11  ;;  %v348_v18 = vpop.f32.mrb[11].mxu1  ;;  %v410_v20 = vmax.f32 %v354_v13, 0.0 }
 0x1bb   :  { %v349_v19 = vadd.f32 %v711_v11, %v348_v18  ;;  %v408_v22 = vmax.f32 %v346_v15, 0.0 }
 0x1bc   :  { %v411_v21 = vmax.f32 %v357_v17, 0.0 }
 0x1bd   :  { %v409_v23 = vmax.f32 %v349_v19, 0.0 }
 0x1be   :  { %v425_v24 = vpack.c.bf16 %v411_v21, %v410_v20 }
 0x1bf   :  { %v424_v25 = vpack.c.bf16 %v409_v23, %v408_v22  ;;  %v834_v26 = vpop.f32.mrb[12].mxu1 }
 0x1c0   :  { %v370_v27 = vadd.f32 %v834_v26, %v711_v11  ;;  %v361_v28 = vpop.f32.mrb[13].mxu1 }
 0x1c1   :  { %v362_v29 = vadd.f32 %v711_v11, %v361_v28  ;;  %v835_v30 = vpop.f32.mrb[14].mxu1  ;;  %852 = vmatprep.mubr.msk.bf16.mxu0 %vm286_vm2, %v424_v25 }
 0x1c2   :  { %v373_v31 = vadd.f32 %v835_v30, %v711_v11  ;;  %v364_v32 = vpop.f32.mrb[15].mxu1  ;;  %853 = vmatmul.mubr.msk.bf16.vlgmr.msra.gmra.mrb[8].mxu0 %vm286_vm2, %v425_v24  ;;  %v414_v34 = vmax.f32 %v370_v27, 0.0 }
 0x1c3   :  { %v365_v33 = vadd.f32 %v711_v11, %v364_v32  ;;  %v412_v36 = vmax.f32 %v362_v29, 0.0 }
 0x1c4   :  { %v415_v35 = vmax.f32 %v373_v31, 0.0 }
 0x1c5   :  { %v413_v37 = vmax.f32 %v365_v33, 0.0 }
 0x1c6   :  { %v427_v38 = vpack.c.bf16 %v415_v35, %v414_v34 }
 0x1c7   :  { %v426_v39 = vpack.c.bf16 %v413_v37, %v412_v36  ;;  %v838_v40 = vpop.f32.mrb[16].mxu1 }
 0x1c8   :  { %v386_v41 = vadd.f32 %v838_v40, %v711_v11  ;;  %v377_v42 = vpop.f32.mrb[17].mxu1 }
 0x1c9   :  { %v378_v43 = vadd.f32 %v711_v11, %v377_v42  ;;  %v839_v44 = vpop.f32.mrb[18].mxu1  ;;  %856 = vmatprep.mubr.msk.bf16.mxu0 %vm286_vm2, %v426_v39 }
 0x1ca   :  { %v389_v45 = vadd.f32 %v839_v44, %v711_v11  ;;  %v380_v46 = vpop.f32.mrb[19].mxu1  ;;  %857 = vmatmul.mubr.msk.bf16.gmra.mrb[12].mxu0 %vm286_vm2, %v427_v38  ;;  %v418_v48 = vmax.f32 %v386_v41, 0.0 }
 0x1cb   :  { %v381_v47 = vadd.f32 %v711_v11, %v380_v46  ;;  %v416_v50 = vmax.f32 %v378_v43, 0.0 }
 0x1cc   :  { %v419_v49 = vmax.f32 %v389_v45, 0.0 }
 0x1cd   :  { %v417_v51 = vmax.f32 %v381_v47, 0.0 }
 0x1ce   :  { %v429_v52 = vpack.c.bf16 %v419_v49, %v418_v48 }
 0x1cf   :  { %v428_v53 = vpack.c.bf16 %v417_v51, %v416_v50  ;;  %v842_v54 = vpop.f32.mrb[20].mxu1 }
 0x1d0   :  { %v402_v55 = vadd.f32 %v842_v54, %v711_v11  ;;  %v393_v56 = vpop.f32.mrb[21].mxu1 }
 0x1d1   :  { %v394_v57 = vadd.f32 %v711_v11, %v393_v56  ;;  %v843_v58 = vpop.f32.mrb[22].mxu1  ;;  %860 = vmatprep.mubr.msk.bf16.mxu0 %vm286_vm2, %v428_v53 }
 0x1d2   :  { %v405_v59 = vadd.f32 %v843_v58, %v711_v11  ;;  %v396_v60 = vpop.f32.mrb[23].mxu1  ;;  %861 = vmatmul.mubr.msk.bf16.gmra.mrb[16].mxu0 %vm286_vm2, %v429_v52  ;;  %v422_v62 = vmax.f32 %v402_v55, 0.0 }
 0x1d3   :  { %v397_v61 = vadd.f32 %v711_v11, %v396_v60  ;;  %v420_v0 = vmax.f32 %v394_v57, 0.0 }
 0x1d4   :  { %v423_v63 = vmax.f32 %v405_v59, 0.0 }
 0x1d5   :  { %v421_v1 = vmax.f32 %v397_v61, 0.0 }
 0x1d6   :  { %v431_v2 = vpack.c.bf16 %v423_v63, %v422_v62 }
 0x1d7   :  { %v430_v3 = vpack.c.bf16 %v421_v1, %v420_v0 }
 0x1d9   :  { %864 = vmatprep.mubr.msk.bf16.mxu0 %vm286_vm2, %v430_v3 }
 0x1da   :  { %865 = vmatmul.mubr.msk.bf16.gmra.mrb[20].mxu0 %vm286_vm2, %v431_v2 }
 0x295   :  { %v854_v5 = vpop.f32.mrb[8].mxu0 }
 0x296   :  { %v538_v6 = vadd.f32 %v854_v5, %v1013_v4  ;;  %v529_v7 = vpop.f32.mrb[9].mxu0 }
 0x297   :  { %v530_v8 = vadd.f32 %v1013_v4, %v529_v7  ;;  %v855_v9 = vpop.f32.mrb[10].mxu0 }
 0x298   :  { %v594_v10 = vmax.f32 %v538_v6, 0.0  ;;  %v541_v11 = vadd.f32 %v855_v9, %v1013_v4  ;;  %v532_v12 = vpop.f32.mrb[11].mxu0 }
 0x299   :  { %v592_v13 = vmax.f32 %v530_v8, 0.0  ;;  %v533_v14 = vadd.f32 %v1013_v4, %v532_v12 }
 0x29a   :  { %v755_v15 = vpack.c.bf16 %v594_v10, %v594_v10  ;;  %v595_v16 = vmax.f32 %v541_v11, 0.0 }
 0x29b   :  { %v753_v17 = vpack.c.bf16 %v592_v13, %v592_v13  ;;  %v593_v18 = vmax.f32 %v533_v14, 0.0 }
 0x29c   :  { %675 = vst.msk [vmem:[%s1102_s7 + $0x8] sm:$0xf] %vm672_vm3, %v755_v15  ;;  %v756_v19 = vpack.c.bf16 %v595_v16, %v595_v16 }
 0x29d   :  { %673 = vst.msk [vmem:[%s1102_s7] sm:$0xf] %vm672_vm3, %v753_v17  ;;  %v754_v20 = vpack.c.bf16 %v593_v18, %v593_v18  ;;  %v858_v21 = vpop.f32.mrb[12].mxu0 }
 0x29e   :  { %676 = vst.msk [vmem:[%s1102_s7 + $0xc] sm:$0xf] %vm672_vm3, %v756_v19  ;;  %v554_v22 = vadd.f32 %v858_v21, %v1013_v4  ;;  %v545_v23 = vpop.f32.mrb[13].mxu0 }
 0x29f   :  { %674 = vst.msk [vmem:[%s1102_s7 + $0x4] sm:$0xf] %vm672_vm3, %v754_v20  ;;  %v546_v24 = vadd.f32 %v1013_v4, %v545_v23  ;;  %v859_v25 = vpop.f32.mrb[14].mxu0 }
 0x2a0   :  { %v598_v26 = vmax.f32 %v554_v22, 0.0  ;;  %v557_v27 = vadd.f32 %v859_v25, %v1013_v4  ;;  %v548_v28 = vpop.f32.mrb[15].mxu0 }
 0x2a1   :  { %v596_v29 = vmax.f32 %v546_v24, 0.0  ;;  %v549_v30 = vadd.f32 %v1013_v4, %v548_v28 }
 0x2a2   :  { %v759_v31 = vpack.c.bf16 %v598_v26, %v598_v26  ;;  %v599_v32 = vmax.f32 %v557_v27, 0.0 }
 0x2a3   :  { %v757_v33 = vpack.c.bf16 %v596_v29, %v596_v29  ;;  %v597_v34 = vmax.f32 %v549_v30, 0.0 }
 0x2a4   :  { %679 = vst.msk [vmem:[%s1102_s7 + $0x18] sm:$0xf] %vm672_vm3, %v759_v31  ;;  %v760_v35 = vpack.c.bf16 %v599_v32, %v599_v32 }
 0x2a5   :  { %677 = vst.msk [vmem:[%s1102_s7 + $0x10] sm:$0xf] %vm672_vm3, %v757_v33  ;;  %v758_v36 = vpack.c.bf16 %v597_v34, %v597_v34  ;;  %v862_v37 = vpop.f32.mrb[16].mxu0 }
 0x2a6   :  { %680 = vst.msk [vmem:[%s1102_s7 + $0x1c] sm:$0xf] %vm672_vm3, %v760_v35  ;;  %v570_v38 = vadd.f32 %v862_v37, %v1013_v4  ;;  %v561_v39 = vpop.f32.mrb[17].mxu0 }
 0x2a7   :  { %678 = vst.msk [vmem:[%s1102_s7 + $0x14] sm:$0xf] %vm672_vm3, %v758_v36  ;;  %v562_v40 = vadd.f32 %v1013_v4, %v561_v39  ;;  %v863_v41 = vpop.f32.mrb[18].mxu0 }
 0x2a8   :  { %v602_v42 = vmax.f32 %v570_v38, 0.0  ;;  %v573_v43 = vadd.f32 %v863_v41, %v1013_v4  ;;  %v564_v44 = vpop.f32.mrb[19].mxu0 }
 0x2a9   :  { %v600_v45 = vmax.f32 %v562_v40, 0.0  ;;  %v565_v46 = vadd.f32 %v1013_v4, %v564_v44 }
 0x2aa   :  { %v763_v47 = vpack.c.bf16 %v602_v42, %v602_v42  ;;  %v603_v48 = vmax.f32 %v573_v43, 0.0 }
 0x2ab   :  { %v761_v49 = vpack.c.bf16 %v600_v45, %v600_v45  ;;  %v601_v50 = vmax.f32 %v565_v46, 0.0 }
 0x2ac   :  { %683 = vst.msk [vmem:[%s1102_s7 + $0x28] sm:$0xf] %vm672_vm3, %v763_v47  ;;  %v764_v51 = vpack.c.bf16 %v603_v48, %v603_v48 }
 0x2ad   :  { %681 = vst.msk [vmem:[%s1102_s7 + $0x20] sm:$0xf] %vm672_vm3, %v761_v49  ;;  %v762_v52 = vpack.c.bf16 %v601_v50, %v601_v50  ;;  %v866_v53 = vpop.f32.mrb[20].mxu0 }
 0x2ae   :  { %684 = vst.msk [vmem:[%s1102_s7 + $0x2c] sm:$0xf] %vm672_vm3, %v764_v51  ;;  %v586_v54 = vadd.f32 %v866_v53, %v1013_v4  ;;  %v577_v55 = vpop.f32.mrb[21].mxu0 }
 0x2af   :  { %682 = vst.msk [vmem:[%s1102_s7 + $0x24] sm:$0xf] %vm672_vm3, %v762_v52  ;;  %v578_v56 = vadd.f32 %v1013_v4, %v577_v55  ;;  %v867_v57 = vpop.f32.mrb[22].mxu0 }
 0x2b0   :  { %v606_v58 = vmax.f32 %v586_v54, 0.0  ;;  %v589_v59 = vadd.f32 %v867_v57, %v1013_v4  ;;  %v580_v60 = vpop.f32.mrb[23].mxu0 }
 0x2b1   :  { %v604_v61 = vmax.f32 %v578_v56, 0.0  ;;  %v581_v62 = vadd.f32 %v1013_v4, %v580_v60 }
 0x2b2   :  { %v767_v63 = vpack.c.bf16 %v606_v58, %v606_v58  ;;  %v607_v0 = vmax.f32 %v589_v59, 0.0 }
 0x2b3   :  { %v765_v1 = vpack.c.bf16 %v604_v61, %v604_v61  ;;  %v605_v2 = vmax.f32 %v581_v62, 0.0 }
 0x2b4   :  { %687 = vst.msk [vmem:[%s1102_s7 + $0x38] sm:$0xf] %vm672_vm3, %v767_v63  ;;  %v768_v3 = vpack.c.bf16 %v607_v0, %v607_v0 }
 0x2b5   :  { %685 = vst.msk [vmem:[%s1102_s7 + $0x30] sm:$0xf] %vm672_vm3, %v765_v1  ;;  %v766_v5 = vpack.c.bf16 %v605_v2, %v605_v2 }
 0x2b6   :  { %688 = vst.msk [vmem:[%s1102_s7 + $0x3c] sm:$0xf] %vm672_vm3, %v768_v3 }
 0x2b7   :  { %686 = vst.msk [vmem:[%s1102_s7 + $0x34] sm:$0xf] %vm672_vm3, %v766_v5 }

// kernel: foldnet_encoder_forward.7
= control target key start
LH: loop header
LB: loop body
LE: loop exit
PB: predicated region body
PF: predicated region fallthrough
CT: control target
= control target key end

     0   :  { %vm918_vm0 = vcmask 523264   ;;  %vm2855_vm1 = vcmask 1041409   ;;  %vm2857_vm2 = vcmask 1042434   ;;  %vm2859_vm3 = vcmask 1043459   ;;  %s5023_s1 = inlined_call_operand.vmem [shape: bf16[64,64], index: 1, kind: input, shape index: {}]   ;;  %s5024_s0 = inlined_call_operand.vmem [shape: bf16[128,16,64], index: 0, kind: input, shape index: {}]   ;;  %s5025_s3 = inlined_call_operand.vmem [shape: bf16[64,128], index: 3, kind: input, shape index: {}]   ;;  %s5026_s2 = inlined_call_operand.vmem [shape: f32[1,64], index: 2, kind: input, shape index: {}]   ;;  %s5027_s4 = inlined_call_operand.vmem [shape: f32[1,128], index: 4, kind: input, shape index: {}]   ;;  %s5028_s5 = inlined_call_operand.vmem [shape: bf16[128,128], index: 5, kind: output, shape index: {}]  }
   0x1   :  { %v3700_v0 = vld [vmem:[%s5023_s1] sm:$0xff]   ;;  %v3701_v1 = vld [vmem:[%s5023_s1 + $0x8] sm:$0xff]   ;;  %v3702_v2 = vld [vmem:[%s5023_s1 + $0x10] sm:$0xff]   ;;  %vm2861_vm4 = vcmask 1044484   ;;  %vm2863_vm5 = vcmask 1045509   ;;  %vm2865_vm6 = vcmask 1046534  }
   0x2   :  { %3652 = vmatprep.subr.bf16.mxu0 %v3700_v0  ;;  %v3703_v3 = vld [vmem:[%s5023_s1 + $0x18] sm:$0xff]   ;;  %v3704_v4 = vld [vmem:[%s5024_s0] sm:$0xff]   ;;  %v3705_v5 = vld [vmem:[%s5024_s0 + $0x8] sm:$0xff]   ;;  %vm2867_vm7 = vcmask 1047559  }
   0x3   :  { %3653 = vmatpush3.bf16.msra.mxu0 %v3700_v0  ;;  %v3706_v6 = vld [vmem:[%s5024_s0 + $0x10] sm:$0xff]   ;;  %v3707_v7 = vld [vmem:[%s5024_s0 + $0x18] sm:$0xff]   ;;  %v3708_v8 = vld [vmem:[%s5024_s0 + $0x20] sm:$0xff]   ;;  %v921_v9 = vsel %vm918_vm0, %v3704_v4, 4286644096 }
   0x4   :  { %3654 = vmatprep.subr.bf16.mxu0 %v3701_v1  ;;  %v923_v10 = vunpack.i.l.bf16 %v921_v9  ;;  %v924_v11 = vunpack.i.h.bf16 %v921_v9  ;;  %v934_v12 = vsel %vm918_vm0, %v3705_v5, 4286644096  ;;  %v3709_v13 = vld [vmem:[%s5024_s0 + $0x28] sm:$0xff]   ;;  %v3710_v14 = vld [vmem:[%s5024_s0 + $0x30] sm:$0xff]   ;;  %v947_v17 = vsel %vm918_vm0, %v3706_v6, 4286644096 }
   0x5   :  { %v936_v15 = vunpack.i.l.bf16 %v934_v12  ;;  %v937_v16 = vunpack.i.h.bf16 %v934_v12  ;;  %v949_v19 = vunpack.i.l.bf16 %v947_v17  ;;  %v950_v20 = vunpack.i.h.bf16 %v947_v17  ;;  %v3711_v30 = vld [vmem:[%s5024_s0 + $0x38] sm:$0xff]   ;;  %v3712_v63 = vld [vmem:[%s5024_s0 + $0x40] sm:$0xff]   ;;  %v3713_v4 = vld [vmem:[%s5024_s0 + $0x48] sm:$0xff]  }
   0x6   :  { %v925_v18 = vmax.f32 %v923_v10, %v924_v11  ;;  %v960_v21 = vsel %vm918_vm0, %v3707_v7, 4286644096  ;;  %v973_v25 = vsel %vm918_vm0, %v3708_v8, 4286644096  ;;  %v986_v33 = vsel %vm918_vm0, %v3709_v13, 4286644096 }
   0x7   :  { %3655 = vmatpush3.bf16.msra.mxu0 %v3701_v1  ;;  %v938_v22 = vmax.f32 %v936_v15, %v937_v16  ;;  %v962_v23 = vunpack.i.l.bf16 %v960_v21  ;;  %v963_v24 = vunpack.i.h.bf16 %v960_v21  ;;  %v951_v27 = vmax.f32 %v949_v19, %v950_v20  ;;  %v3714_v13 = vld [vmem:[%s5024_s0 + $0x50] sm:$0xff]  }
   0x8   :  { %3656 = vmatprep.subr.bf16.mxu0 %v3702_v2  ;;  %v926_v26 = vrot.slane %v925_v18, 4  ;;  %v975_v28 = vunpack.i.l.bf16 %v973_v25  ;;  %v976_v29 = vunpack.i.h.bf16 %v973_v25  ;;  %v999_v34 = vsel %vm918_vm0, %v3710_v14, 4286644096 }
   0x9   :  { %v939_v31 = vrot.slane %v938_v22, 4  ;;  %v964_v32 = vmax.f32 %v962_v23, %v963_v24  ;;  %v952_v36 = vrot.slane %v951_v27, 4  ;;  %v988_v38 = vunpack.i.l.bf16 %v986_v33 }
   0xa   :  { %v927_v35 = vmax.f32 %v925_v18, %v926_v26  ;;  %v977_v37 = vmax.f32 %v975_v28, %v976_v29  ;;  %v989_v41 = vunpack.i.h.bf16 %v986_v33  ;;  %v1001_v42 = vunpack.i.l.bf16 %v999_v34  ;;  %v3715_v18 = vld [vmem:[%s5024_s0 + $0x58] sm:$0xff]  }
   0xb   :  { %3657 = vmatpush3.bf16.msra.mxu0 %v3702_v2  ;;  %v940_v39 = vmax.f32 %v938_v22, %v939_v31  ;;  %v965_v40 = vrot.slane %v964_v32, 4  ;;  %v953_v44 = vmax.f32 %v951_v27, %v952_v36  ;;  %v1002_v46 = vunpack.i.h.bf16 %v999_v34 }
   0xc   :  { %3658 = vmatprep.subr.bf16.mxu0 %v3703_v3  ;;  %v928_v43 = vrot.slane %v927_v35, 2  ;;  %v978_v45 = vrot.slane %v977_v37, 4  ;;  %v990_v49 = vmax.f32 %v988_v38, %v989_v41  ;;  %v1012_v50 = vsel %vm918_vm0, %v3711_v30, 4286644096 }
   0xd   :  { %v941_v47 = vrot.slane %v940_v39, 2  ;;  %v966_v48 = vmax.f32 %v964_v32, %v965_v40  ;;  %v954_v52 = vrot.slane %v953_v44, 2  ;;  %v1003_v54 = vmax.f32 %v1001_v42, %v1002_v46  ;;  %v3717_v40 = vld [vmem:[%s5024_s0 + $0x68] sm:$0xff]  }
   0xe   :  { %v929_v51 = vmax.f32 %v927_v35, %v928_v43  ;;  %v979_v53 = vmax.f32 %v977_v37, %v978_v45  ;;  %v991_v57 = vrot.slane %v990_v49, 4  ;;  %v1014_v58 = vunpack.i.l.bf16 %v1012_v50  ;;  %v3716_v35 = vld [vmem:[%s5024_s0 + $0x60] sm:$0xff]  }
   0xf   :  { %3659 = vmatpush3.bf16.msra.mxu0 %v3703_v3  ;;  %v942_v55 = vmax.f32 %v940_v39, %v941_v47  ;;  %v967_v56 = vrot.slane %v966_v48, 2  ;;  %v955_v60 = vmax.f32 %v953_v44, %v954_v52  ;;  %v1004_v62 = vrot.slane %v1003_v54, 4 }
  0x10   :  { %v930_v59 = vrot.slane %v929_v51, 1  ;;  %v980_v61 = vrot.slane %v979_v53, 2  ;;  %v992_v2 = vmax.f32 %v990_v49, %v991_v57  ;;  %v1015_v3 = vunpack.i.h.bf16 %v1012_v50  ;;  %v3718_v49 = vld [vmem:[%s5024_s0 + $0x70] sm:$0xff]  }
  0x11   :  { %v943_v0 = vrot.slane %v942_v55, 1  ;;  %v968_v1 = vmax.f32 %v966_v48, %v967_v56  ;;  %v956_v6 = vrot.slane %v955_v60, 1  ;;  %v1005_v8 = vmax.f32 %v1003_v54, %v1004_v62  ;;  %v3719_v62 = vld [vmem:[%s5024_s0 + $0x78] sm:$0xff]  }
  0x12   :  { %v3916_v5 = vmax.f32 %v929_v51, %v930_v59  ;;  %v981_v7 = vmax.f32 %v979_v53, %v980_v61  ;;  %v993_v11 = vrot.slane %v992_v2, 2  ;;  %v1016_v12 = vmax.f32 %v1014_v58, %v1015_v3 }
  0x13   :  { %v3918_v9 = vmax.f32 %v942_v55, %v943_v0  ;;  %v969_v10 = vrot.slane %v968_v1, 1  ;;  %v3925_v15 = vmax.f32 %v955_v60, %v956_v6  ;;  %v1006_v17 = vrot.slane %v1005_v8, 2 }
  0x14   :  { %v932_v14 = vpack.i.bf16 %v3916_v5, %v3916_v5  ;;  %v982_v16 = vrot.slane %v981_v7, 1  ;;  %v994_v21 = vmax.f32 %v992_v2, %v993_v11  ;;  %v1017_v22 = vrot.slane %v1016_v12, 4 }
  0x15   :  { %v945_v19 = vpack.i.bf16 %v3918_v9, %v3918_v9  ;;  %v3932_v20 = vmax.f32 %v968_v1, %v969_v10  ;;  %v958_v23 = vpack.i.bf16 %v3925_v15, %v3925_v15  ;;  %v1007_v25 = vmax.f32 %v1005_v8, %v1006_v17 }
  0x16   :  { %v3936_v24 = vmax.f32 %v981_v7, %v982_v16  ;;  %v1025_v26 = vsel %vm918_vm0, %v3712_v63, 4286644096  ;;  %v995_v28 = vrot.slane %v994_v21, 1  ;;  %v1018_v29 = vmax.f32 %v1016_v12, %v1017_v22 }
  0x17   :  { %v971_v27 = vpack.i.bf16 %v3932_v20, %v3932_v20  ;;  %v1027_v30 = vunpack.i.l.bf16 %v1025_v26  ;;  %v1008_v32 = vrot.slane %v1007_v25, 1  ;;  %v1028_v33 = vunpack.i.h.bf16 %v1025_v26 }
  0x18   :  { %v984_v31 = vpack.i.bf16 %v3936_v24, %v3936_v24  ;;  %v1038_v34 = vsel %vm918_vm0, %v3713_v4, 4286644096  ;;  %v3947_v36 = vmax.f32 %v994_v21, %v995_v28  ;;  %v1019_v37 = vrot.slane %v1018_v29, 2 }
  0x19   :  { %v1040_v38 = vunpack.i.l.bf16 %v1038_v34  ;;  %v1041_v39 = vunpack.i.h.bf16 %v1038_v34  ;;  %v3952_v41 = vmax.f32 %v1007_v25, %v1008_v32  ;;  %v1029_v42 = vmax.f32 %v1027_v30, %v1028_v33 }
  0x1a   :  { %v1051_v43 = vsel %vm918_vm0, %v3714_v13, 4286644096  ;;  %v1064_v44 = vsel %vm918_vm0, %v3715_v18, 4286644096  ;;  %v997_v45 = vpack.i.bf16 %v3947_v36, %v3947_v36  ;;  %v1020_v46 = vmax.f32 %v1018_v29, %v1019_v37 }
  0x1b   :  { %v1042_v47 = vmax.f32 %v1040_v38, %v1041_v39  ;;  %v1053_v48 = vunpack.i.l.bf16 %v1051_v43  ;;  %v1010_v50 = vpack.i.bf16 %v3952_v41, %v3952_v41  ;;  %v1030_v51 = vrot.slane %v1029_v42, 4 }
  0x1c   :  { %v1054_v52 = vunpack.i.h.bf16 %v1051_v43  ;;  %v1066_v53 = vunpack.i.l.bf16 %v1064_v44  ;;  %v1021_v54 = vrot.slane %v1020_v46, 1  ;;  %v1067_v56 = vunpack.i.h.bf16 %v1064_v44 }
  0x1d   :  { %v1043_v55 = vrot.slane %v1042_v47, 4  ;;  %v1077_v57 = vsel %vm918_vm0, %v3716_v35, 4286644096  ;;  %v1031_v58 = vmax.f32 %v1029_v42, %v1030_v51  ;;  %v1090_v2 = vsel %vm918_vm0, %v3717_v40, 4286644096 }
  0x1e   :  { %v1055_v59 = vmax.f32 %v1053_v48, %v1054_v52  ;;  %v1079_v60 = vunpack.i.l.bf16 %v1077_v57  ;;  %v1080_v61 = vunpack.i.h.bf16 %v1077_v57  ;;  %v3967_v63 = vmax.f32 %v1020_v46, %v1021_v54 }
  0x1f   :  { %v1044_v0 = vmax.f32 %v1042_v47, %v1043_v55  ;;  %v1068_v1 = vmax.f32 %v1066_v53, %v1067_v56  ;;  %v1032_v3 = vrot.slane %v1031_v58, 2  ;;  %v1092_v7 = vunpack.i.l.bf16 %v1090_v2 }
  0x20   :  { %v1056_v4 = vrot.slane %v1055_v59, 4  ;;  %v1081_v6 = vmax.f32 %v1079_v60, %v1080_v61  ;;  %v1023_v8 = vpack.i.bf16 %v3967_v63, %v3967_v63  ;;  %v1093_v12 = vunpack.i.h.bf16 %v1090_v2  ;;  %v3722_v63 = vld [vmem:[%s5024_s0 + $0x90] sm:$0xff]  }
  0x21   :  { %v1045_v10 = vrot.slane %v1044_v0, 2  ;;  %v1069_v11 = vrot.slane %v1068_v1, 4  ;;  %v1033_v13 = vmax.f32 %v1031_v58, %v1032_v3  ;;  %v1103_v18 = vsel %vm918_vm0, %v3718_v49, 4286644096 }
  0x22   :  { %v1057_v16 = vmax.f32 %v1055_v59, %v1056_v4  ;;  %v1082_v17 = vrot.slane %v1081_v6, 4  ;;  %v1094_v25 = vmax.f32 %v1092_v7, %v1093_v12  ;;  %v1105_v26 = vunpack.i.l.bf16 %v1103_v18 }
  0x23   :  { %v1046_v21 = vmax.f32 %v1044_v0, %v1045_v10  ;;  %v1070_v22 = vmax.f32 %v1068_v1, %v1069_v11  ;;  %v1034_v28 = vrot.slane %v1033_v13, 1  ;;  %v1106_v32 = vunpack.i.h.bf16 %v1103_v18 }
  0x24   :  { %v1058_v29 = vrot.slane %v1057_v16, 2  ;;  %v1083_v30 = vmax.f32 %v1081_v6, %v1082_v17  ;;  %v1095_v35 = vrot.slane %v1094_v25, 4  ;;  %v1116_v37 = vsel %vm918_vm0, %v3719_v62, 4286644096 }
  0x25   :  { %v1047_v33 = vrot.slane %v1046_v21, 1  ;;  %v1071_v34 = vrot.slane %v1070_v22, 2  ;;  %v1035_v38 = vmax.f32 %v1033_v13, %v1034_v28  ;;  %v1107_v42 = vmax.f32 %v1105_v26, %v1106_v32 }
  0x26   :  { %v1059_v39 = vmax.f32 %v1057_v16, %v1058_v29  ;;  %v1084_v40 = vrot.slane %v1083_v30, 2  ;;  %v1096_v46 = vmax.f32 %v1094_v25, %v1095_v35  ;;  %v1118_v47 = vunpack.i.l.bf16 %v1116_v37  ;;  %v3723_v35 = vld [vmem:[%s5024_s0 + $0x98] sm:$0xff]  }
  0x27   :  { %v1048_v43 = vmax.f32 %v1046_v21, %v1047_v33  ;;  %v1072_v44 = vmax.f32 %v1070_v22, %v1071_v34  ;;  %v1036_v48 = vpack.i.bf16 %v1035_v38, %v1035_v38  ;;  %v1108_v52 = vrot.slane %v1107_v42, 4  ;;  %v3721_v22 = vld [vmem:[%s5024_s0 + $0x88] sm:$0xff]  }
  0x28   :  { %v1060_v49 = vrot.slane %v1059_v39, 1  ;;  %v1085_v51 = vmax.f32 %v1083_v30, %v1084_v40  ;;  %v1097_v55 = vrot.slane %v1096_v46, 2  ;;  %v1119_v56 = vunpack.i.h.bf16 %v1116_v37  ;;  %v3724_v37 = vld [vmem:[%s5024_s0 + $0xa0] sm:$0xff]  }
  0x29   :  { %v1049_v53 = vpack.i.bf16 %v1048_v43, %v1048_v43  ;;  %v1073_v54 = vrot.slane %v1072_v44, 1  ;;  %v1109_v59 = vmax.f32 %v1107_v42, %v1108_v52  ;;  %v2727_v60 = vunpack.c.l.b16 %v932_v14  ;;  %v3725_v43 = vld [vmem:[%s5024_s0 + $0xa8] sm:$0xff]  }
  0x2a   :  { %v1061_v57 = vmax.f32 %v1059_v39, %v1060_v49  ;;  %v1086_v58 = vrot.slane %v1085_v51, 1  ;;  %v1098_v62 = vmax.f32 %v1096_v46, %v1097_v55  ;;  %v1120_v0 = vmax.f32 %v1118_v47, %v1119_v56 }
  0x2b   :  { %v1074_v61 = vmax.f32 %v1072_v44, %v1073_v54  ;;  %v2728_v1 = vunpack.c.l.b16 %v945_v19  ;;  %v1110_v4 = vrot.slane %v1109_v59, 2  ;;  %v2729_v6 = vunpack.c.l.b16 %v958_v23  ;;  %v3720_v23 = vld [vmem:[%s5024_s0 + $0x80] sm:$0xff]  }
  0x2c   :  { %v1062_v2 = vpack.i.bf16 %v1061_v57, %v1061_v57  ;;  %v1087_v3 = vmax.f32 %v1085_v51, %v1086_v58  ;;  %v1099_v5 = vrot.slane %v1098_v62, 1  ;;  %v1121_v14 = vrot.slane %v1120_v0, 4 }
  0x2d   :  { %v1075_v7 = vpack.i.bf16 %v1074_v61, %v1074_v61  ;;  %v2730_v10 = vunpack.c.l.b16 %v971_v27  ;;  %v1111_v9 = vmax.f32 %v1109_v59, %v1110_v4  ;;  %v2731_v19 = vunpack.c.l.b16 %v984_v31 }
  0x2e   :  { %v1088_v11 = vpack.i.bf16 %v1087_v3, %v1087_v3  ;;  %v2732_v15 = vunpack.c.l.b16 %v997_v45  ;;  %v1100_v12 = vmax.f32 %v1098_v62, %v1099_v5  ;;  %v1122_v13 = vmax.f32 %v1120_v0, %v1121_v14 }
  0x2f   :  { %v2733_v20 = vunpack.c.l.b16 %v1010_v50  ;;  %v2734_v27 = vunpack.c.l.b16 %v1023_v8  ;;  %v1112_v24 = vrot.slane %v1111_v9, 1  ;;  %v2735_v31 = vunpack.c.l.b16 %v1036_v48 }
  0x30   :  { %v2736_v16 = vunpack.c.l.b16 %v1049_v53  ;;  %v2737_v17 = vunpack.c.l.b16 %v1062_v2  ;;  %v1101_v36 = vpack.i.bf16 %v1100_v12, %v1100_v12  ;;  %v1123_v45 = vrot.slane %v1122_v13, 2 }
  0x31   :  { %v2738_v18 = vunpack.c.l.b16 %v1075_v7  ;;  %v2739_v21 = vunpack.c.l.b16 %v1088_v11  ;;  %v1113_v25 = vmax.f32 %v1111_v9, %v1112_v24  ;;  %v2856_v41 = vsel %vm2855_vm1, %v2728_v1, %v2727_v60  ;;  %v3726_v60 = vld [vmem:[%s5024_s0 + $0xb0] sm:$0xff]  }
  0x32   :  { %v2869_v50 = vsel %vm2855_vm1, %v2736_v16, %v2735_v31  ;;  %v1129_v8 = vsel %vm918_vm0, %v3720_v23, 4286644096  ;;  %v1124_v26 = vmax.f32 %v1122_v13, %v1123_v45  ;;  %v2740_v28 = vunpack.c.l.b16 %v1101_v36 }
  0x33   :  { %v2858_v29 = vsel %vm2857_vm2, %v2729_v6, %v2856_v41  ;;  %v2870_v30 = vsel %vm2857_vm2, %v2737_v17, %v2869_v50  ;;  %v1114_v32 = vpack.i.bf16 %v1113_v25, %v1113_v25  ;;  %v1131_v38 = vunpack.i.l.bf16 %v1129_v8 }
  0x34   :  { %v2860_v33 = vsel %vm2859_vm3, %v2730_v10, %v2858_v29  ;;  %v2871_v34 = vsel %vm2859_vm3, %v2738_v18, %v2870_v30  ;;  %v1125_v39 = vrot.slane %v1124_v26, 1  ;;  %v1132_v44 = vunpack.i.h.bf16 %v1129_v8 }
  0x35   :  { %v2862_v40 = vsel %vm2861_vm4, %v2731_v19, %v2860_v33  ;;  %v2872_v42 = vsel %vm2861_vm4, %v2739_v21, %v2871_v34  ;;  %v2741_v46 = vunpack.c.l.b16 %v1114_v32  ;;  %v1142_v49 = vsel %vm918_vm0, %v3721_v22, 4286644096  ;;  %v3728_v33 = vld [vmem:[%s5024_s0 + $0xc0] sm:$0xff]  }
  0x36   :  { %v2864_v47 = vsel %vm2863_vm5, %v2732_v15, %v2862_v40  ;;  %v2873_v48 = vsel %vm2863_vm5, %v2740_v28, %v2872_v42  ;;  %v1126_v51 = vmax.f32 %v1124_v26, %v1125_v39  ;;  %v1133_v53 = vmax.f32 %v1131_v38, %v1132_v44  ;;  %v3729_v44 = vld [vmem:[%s5024_s0 + $0xc8] sm:$0xff]  }
  0x37   :  { %v2866_v52 = vsel %vm2865_vm6, %v2733_v20, %v2864_v47  ;;  %v1144_v54 = vunpack.i.l.bf16 %v1142_v49  ;;  %v2874_v56 = vsel %vm2865_vm6, %v2741_v46, %v2873_v48  ;;  %v1145_v57 = vunpack.i.h.bf16 %v1142_v49 }
  0x38   :  { %v2868_v55 = vsel %vm2867_vm7, %v2734_v27, %v2866_v52  ;;  %v1155_v58 = vsel %vm918_vm0, %v3722_v63, 4286644096  ;;  %v1127_v59 = vpack.i.bf16 %v1126_v51, %v1126_v51  ;;  %v1134_v61 = vrot.slane %v1133_v53, 4  ;;  %v3727_v27 = vld [vmem:[%s5024_s0 + $0xb8] sm:$0xff]  }
  0x39   :  { %v1157_v62 = vunpack.i.l.bf16 %v1155_v58  ;;  %v1158_v0 = vunpack.i.h.bf16 %v1155_v58  ;;  %v1146_v1 = vmax.f32 %v1144_v54, %v1145_v57  ;;  %v1168_v2 = vsel %vm918_vm0, %v3723_v35, 4286644096 }
  0x3a   :  { %v1181_v3 = vsel %vm918_vm0, %v3724_v37, 4286644096  ;;  %v1194_v4 = vsel %vm918_vm0, %v3725_v43, 4286644096  ;;  %v2742_v6 = vunpack.c.l.b16 %v1127_v59  ;;  %v1135_v7 = vmax.f32 %v1133_v53, %v1134_v61 }
  0x3b   :  { %v1159_v5 = vmax.f32 %v1157_v62, %v1158_v0  ;;  %v1170_v14 = vunpack.i.l.bf16 %v1168_v2  ;;  %v1147_v10 = vrot.slane %v1146_v1, 4  ;;  %v1171_v11 = vunpack.i.h.bf16 %v1168_v2 }
  0x3c   :  { %v1183_v9 = vunpack.i.l.bf16 %v1181_v3  ;;  %v1184_v19 = vunpack.i.h.bf16 %v1181_v3  ;;  %v2875_v15 = vsel %vm2867_vm7, %v2742_v6, %v2874_v56  ;;  %v1136_v23 = vrot.slane %v1135_v7, 2  ;;  %v3731_v6 = vld [vmem:[%s5024_s0 + $0xd8] sm:$0xff]  }
  0x3d   :  { %v1160_v12 = vrot.slane %v1159_v5, 4  ;;  %v1196_v13 = vunpack.i.l.bf16 %v1194_v4  ;;  %v2974_v20 = vpack.c.b16 %v2875_v15, %v2868_v55  ;;  %v1148_v24 = vmax.f32 %v1146_v1, %v1147_v10  ;;  %v3730_v55 = vld [vmem:[%s5024_s0 + $0xd0] sm:$0xff]  }
  0x3e   :  { %v1172_v31 = vmax.f32 %v1170_v14, %v1171_v11  ;;  %v1185_v16 = vmax.f32 %v1183_v9, %v1184_v19  ;;  %v1137_v17 = vmax.f32 %v1135_v7, %v1136_v23  ;;  %v1197_v45 = vunpack.i.h.bf16 %v1194_v4  ;;  %v3732_v11 = vld [vmem:[%s5024_s0 + $0xe0] sm:$0xff]  }
  0x3f   :  { %v1161_v36 = vmax.f32 %v1159_v5, %v1160_v12  ;;  %v1207_v18 = vsel %vm918_vm0, %v3726_v60, 4286644096  ;;  %3660 = vmatprep.mubr.msk.bf16.mxu0 %vm918_vm0, %v2974_v20  ;;  %v1149_v21 = vrot.slane %v1148_v24, 2  ;;  %v1220_v32 = vsel %vm918_vm0, %v3727_v27, 4286644096 }
  0x40   :  { %v1173_v22 = vrot.slane %v1172_v31, 4  ;;  %v1186_v25 = vrot.slane %v1185_v16, 4  ;;  %v1209_v41 = vunpack.i.l.bf16 %v1207_v18  ;;  %v1138_v50 = vrot.slane %v1137_v17, 1 }
  0x41   :  { %v1162_v63 = vrot.slane %v1161_v36, 2  ;;  %v1198_v8 = vmax.f32 %v1196_v13, %v1197_v45  ;;  %v1210_v26 = vunpack.i.h.bf16 %v1207_v18  ;;  %v1150_v28 = vmax.f32 %v1148_v24, %v1149_v21  ;;  %v3733_v24 = vld [vmem:[%s5024_s0 + $0xe8] sm:$0xff]  }
  0x42   :  { %v1174_v29 = vmax.f32 %v1172_v31, %v1173_v22  ;;  %v1187_v30 = vmax.f32 %v1185_v16, %v1186_v25  ;;  %v4048_v34 = vmax.f32 %v1137_v17, %v1138_v50  ;;  %v1222_v43 = vunpack.i.l.bf16 %v1220_v32 }
  0x43   :  { %v1163_v35 = vmax.f32 %v1161_v36, %v1162_v63  ;;  %v1199_v37 = vrot.slane %v1198_v8, 4  ;;  %v1211_v38 = vmax.f32 %v1209_v41, %v1210_v26  ;;  %v1151_v39 = vrot.slane %v1150_v28, 1 }
  0x44   :  { %v1175_v40 = vrot.slane %v1174_v29, 2  ;;  %v1188_v42 = vrot.slane %v1187_v30, 2  ;;  %v1140_v46 = vpack.i.bf16 %v4048_v34, %v4048_v34  ;;  %v1223_v54 = vunpack.i.h.bf16 %v1220_v32 }
  0x45   :  { %v1164_v47 = vrot.slane %v1163_v35, 1  ;;  %v1200_v48 = vmax.f32 %v1198_v8, %v1199_v37  ;;  %v1212_v49 = vrot.slane %v1211_v38, 4  ;;  %v4055_v51 = vmax.f32 %v1150_v28, %v1151_v39  ;;  %v3734_v37 = vld [vmem:[%s5024_s0 + $0xf0] sm:$0xff]  }
  0x46   :  { %v1176_v52 = vmax.f32 %v1174_v29, %v1175_v40  ;;  %v1189_v53 = vmax.f32 %v1187_v30, %v1188_v42  ;;  %v1233_v59 = vsel %vm918_vm0, %v3728_v33, 4286644096  ;;  %v1224_v0 = vmax.f32 %v1222_v43, %v1223_v54 }
  0x47   :  { %v4060_v56 = vmax.f32 %v1163_v35, %v1164_v47  ;;  %v1201_v57 = vrot.slane %v1200_v48, 2  ;;  %v1213_v58 = vmax.f32 %v1211_v38, %v1212_v49  ;;  %v1153_v60 = vpack.i.bf16 %v4055_v51, %v4055_v51  ;;  %v3735_v49 = vld [vmem:[%s5024_s0 + $0xf8] sm:$0xff]   ;;  %v3736_v51 = vld [vmem:[%s5024_s0 + $0x100] sm:$0xff]  }
  0x48   :  { %v1177_v61 = vrot.slane %v1176_v52, 1  ;;  %v1190_v62 = vrot.slane %v1189_v53, 1  ;;  %v1235_v4 = vunpack.i.l.bf16 %v1233_v59  ;;  %v1225_v14 = vrot.slane %v1224_v0, 4 }
  0x49   :  { %v1166_v1 = vpack.i.bf16 %v4060_v56, %v4060_v56  ;;  %v1202_v2 = vmax.f32 %v1200_v48, %v1201_v57  ;;  %v1214_v3 = vrot.slane %v1213_v58, 2  ;;  %v1236_v10 = vunpack.i.h.bf16 %v1233_v59 }
  0x4a   :  { %v4070_v7 = vmax.f32 %v1176_v52, %v1177_v61  ;;  %v4072_v5 = vmax.f32 %v1189_v53, %v1190_v62  ;;  %v1246_v15 = vsel %vm918_vm0, %v3729_v44, 4286644096  ;;  %v1259_v23 = vsel %vm918_vm0, %v3730_v55, 4286644096 }
  0x4b   :  { %v1203_v9 = vrot.slane %v1202_v2, 1  ;;  %v1215_v19 = vmax.f32 %v1213_v58, %v1214_v3  ;;  %v1226_v20 = vmax.f32 %v1224_v0, %v1225_v14  ;;  %v1237_v27 = vmax.f32 %v1235_v4, %v1236_v10 }
  0x4c   :  { %v1179_v12 = vpack.i.bf16 %v4070_v7, %v4070_v7  ;;  %v1192_v13 = vpack.i.bf16 %v4072_v5, %v4072_v5  ;;  %v1248_v17 = vunpack.i.l.bf16 %v1246_v15  ;;  %v1249_v36 = vunpack.i.h.bf16 %v1246_v15 }
  0x4d   :  { %v4086_v31 = vmax.f32 %v1202_v2, %v1203_v9  ;;  %v1216_v16 = vrot.slane %v1215_v19, 1  ;;  %v1227_v45 = vrot.slane %v1226_v20, 2  ;;  %v1238_v18 = vrot.slane %v1237_v27, 4 }
  0x4e   :  { %v1261_v21 = vunpack.i.l.bf16 %v1259_v23  ;;  %v1262_v22 = vunpack.i.h.bf16 %v1259_v23  ;;  %v1250_v50 = vmax.f32 %v1248_v17, %v1249_v36  ;;  %v1272_v63 = vsel %vm918_vm0, %v3731_v6, 4286644096 }
  0x4f   :  { %v1205_v25 = vpack.i.bf16 %v4086_v31, %v4086_v31  ;;  %v4090_v41 = vmax.f32 %v1215_v19, %v1216_v16  ;;  %v1228_v8 = vmax.f32 %v1226_v20, %v1227_v45  ;;  %v1239_v26 = vmax.f32 %v1237_v27, %v1238_v18  ;;  %v3737_v31 = vld [vmem:[%s5024_s0 + $0x108] sm:$0xff]  }
  0x50   :  { %v1263_v28 = vmax.f32 %v1261_v21, %v1262_v22  ;;  %v1274_v29 = vunpack.i.l.bf16 %v1272_v63  ;;  %v1251_v32 = vrot.slane %v1250_v50, 4  ;;  %v1275_v33 = vunpack.i.h.bf16 %v1272_v63 }
  0x51   :  { %v1218_v30 = vpack.i.bf16 %v4090_v41, %v4090_v41  ;;  %v1285_v35 = vsel %vm918_vm0, %v3732_v11, 4286644096  ;;  %v1229_v38 = vrot.slane %v1228_v8, 1  ;;  %v1240_v39 = vrot.slane %v1239_v26, 2 }
  0x52   :  { %v1264_v40 = vrot.slane %v1263_v28, 4  ;;  %v1287_v42 = vunpack.i.l.bf16 %v1285_v35  ;;  %v1252_v43 = vmax.f32 %v1250_v50, %v1251_v32  ;;  %v1276_v44 = vmax.f32 %v1274_v29, %v1275_v33 }
  0x53   :  { %v1288_v47 = vunpack.i.h.bf16 %v1285_v35  ;;  %v1298_v48 = vsel %vm918_vm0, %v3733_v24, 4286644096  ;;  %v4103_v52 = vmax.f32 %v1228_v8, %v1229_v38  ;;  %v1241_v53 = vmax.f32 %v1239_v26, %v1240_v39 }
  0x54   :  { %v1265_v54 = vmax.f32 %v1263_v28, %v1264_v40  ;;  %v1300_v55 = vunpack.i.l.bf16 %v1298_v48  ;;  %v1253_v57 = vrot.slane %v1252_v43, 2  ;;  %v1277_v58 = vrot.slane %v1276_v44, 4 }
  0x55   :  { %v1289_v59 = vmax.f32 %v1287_v42, %v1288_v47  ;;  %v1301_v61 = vunpack.i.h.bf16 %v1298_v48  ;;  %v1231_v62 = vpack.i.bf16 %v4103_v52, %v4103_v52  ;;  %v1242_v0 = vrot.slane %v1241_v53, 1 }
  0x56   :  { %v1266_v2 = vrot.slane %v1265_v54, 2  ;;  %v1311_v3 = vsel %vm918_vm0, %v3734_v37, 4286644096  ;;  %v1254_v4 = vmax.f32 %v1252_v43, %v1253_v57  ;;  %v1278_v6 = vmax.f32 %v1276_v44, %v1277_v58 }
  0x57   :  { %v1290_v14 = vrot.slane %v1289_v59, 4  ;;  %v1302_v10 = vmax.f32 %v1300_v55, %v1301_v61  ;;  %v1243_v11 = vmax.f32 %v1241_v53, %v1242_v0  ;;  %v1313_v19 = vunpack.i.l.bf16 %v1311_v3 }
  0x58   :  { %v1267_v9 = vmax.f32 %v1265_v54, %v1266_v2  ;;  %v1314_v15 = vunpack.i.h.bf16 %v1311_v3  ;;  %v1255_v23 = vrot.slane %v1254_v4, 1  ;;  %v1279_v20 = vrot.slane %v1278_v6, 2 }
  0x59   :  { %v1291_v27 = vmax.f32 %v1289_v59, %v1290_v14  ;;  %v1303_v24 = vrot.slane %v1302_v10, 4  ;;  %v1244_v16 = vpack.i.bf16 %v1243_v11, %v1243_v11  ;;  %v1324_v45 = vsel %vm918_vm0, %v3735_v49, 4286644096 }
  0x5a   :  { %v1268_v17 = vrot.slane %v1267_v9, 1  ;;  %v1315_v36 = vmax.f32 %v1313_v19, %v1314_v15  ;;  %v1256_v18 = vmax.f32 %v1254_v4, %v1255_v23  ;;  %v1280_v21 = vmax.f32 %v1278_v6, %v1279_v20 }
  0x5b   :  { %v1292_v22 = vrot.slane %v1291_v27, 2  ;;  %v1304_v50 = vmax.f32 %v1302_v10, %v1303_v24  ;;  %v1326_v26 = vunpack.i.l.bf16 %v1324_v45  ;;  %v1327_v28 = vunpack.i.h.bf16 %v1324_v45  ;;  %v3739_v24 = vld [vmem:[%s5024_s0 + $0x118] sm:$0xff]   ;;  %v3741_v45 = vld [vmem:[%s5024_s0 + $0x128] sm:$0xff]  }
  0x5c   :  { %v1269_v63 = vmax.f32 %v1267_v9, %v1268_v17  ;;  %v1316_v8 = vrot.slane %v1315_v36, 4  ;;  %v1257_v29 = vpack.i.bf16 %v1256_v18, %v1256_v18  ;;  %v1281_v32 = vrot.slane %v1280_v21, 1 }
  0x5d   :  { %v1293_v33 = vmax.f32 %v1291_v27, %v1292_v22  ;;  %v1305_v35 = vrot.slane %v1304_v50, 2  ;;  %v1328_v39 = vmax.f32 %v1326_v26, %v1327_v28  ;;  %v2743_v40 = vunpack.c.l.b16 %v1140_v46 }
  0x5e   :  { %v1270_v37 = vpack.i.bf16 %v1269_v63, %v1269_v63  ;;  %v1317_v38 = vmax.f32 %v1315_v36, %v1316_v8  ;;  %v1282_v42 = vmax.f32 %v1280_v21, %v1281_v32  ;;  %v2744_v47 = vunpack.c.l.b16 %v1153_v60  ;;  %v3740_v36 = vld [vmem:[%s5024_s0 + $0x120] sm:$0xff]  }
  0x5f   :  { %v1294_v43 = vrot.slane %v1293_v33, 1  ;;  %v1306_v44 = vmax.f32 %v1304_v50, %v1305_v35  ;;  %v1329_v49 = vrot.slane %v1328_v39, 4  ;;  %v2745_v52 = vunpack.c.l.b16 %v1166_v1 }
  0x60   :  { %v1318_v48 = vrot.slane %v1317_v38, 2  ;;  %v2746_v53 = vunpack.c.l.b16 %v1179_v12  ;;  %v1283_v54 = vpack.i.bf16 %v1282_v42, %v1282_v42  ;;  %v2747_v55 = vunpack.c.l.b16 %v1192_v13 }
  0x61   :  { %v1295_v34 = vmax.f32 %v1293_v33, %v1294_v43  ;;  %v1307_v46 = vrot.slane %v1306_v44, 1  ;;  %v1330_v57 = vmax.f32 %v1328_v39, %v1329_v49  ;;  %v2748_v56 = vunpack.c.l.b16 %v1205_v25  ;;  %v3738_v25 = vld [vmem:[%s5024_s0 + $0x110] sm:$0xff]  }
  0x62   :  { %v1319_v60 = vmax.f32 %v1317_v38, %v1318_v48  ;;  %v2749_v1 = vunpack.c.l.b16 %v1218_v30  ;;  %v2750_v58 = vunpack.c.l.b16 %v1231_v62  ;;  %v2751_v59 = vunpack.c.l.b16 %v1244_v16  ;;  %v3742_v39 = vld [vmem:[%s5024_s0 + $0x130] sm:$0xff]  }
  0x63   :  { %v1296_v7 = vpack.i.bf16 %v1295_v34, %v1295_v34  ;;  %v1308_v12 = vmax.f32 %v1306_v44, %v1307_v46  ;;  %v1331_v13 = vrot.slane %v1330_v57, 2  ;;  %v2752_v61 = vunpack.c.l.b16 %v1257_v29 }
  0x64   :  { %v1320_v5 = vrot.slane %v1319_v60, 1  ;;  %v2753_v0 = vunpack.c.l.b16 %v1270_v37  ;;  %v2754_v3 = vunpack.c.l.b16 %v1283_v54  ;;  %v2876_v6 = vsel %vm2855_vm1, %v2744_v47, %v2743_v40 }
  0x65   :  { %v1309_v2 = vpack.i.bf16 %v1308_v12, %v1308_v12  ;;  %v2755_v4 = vunpack.c.l.b16 %v1296_v7  ;;  %v1332_v30 = vmax.f32 %v1330_v57, %v1331_v13  ;;  %v2877_v62 = vsel %vm2857_vm2, %v2745_v52, %v2876_v6 }
  0x66   :  { %v1321_v41 = vmax.f32 %v1319_v60, %v1320_v5  ;;  %v2883_v14 = vsel %vm2855_vm1, %v2752_v61, %v2751_v59  ;;  %v2878_v11 = vsel %vm2859_vm3, %v2746_v53, %v2877_v62  ;;  %v1337_v19 = vsel %vm918_vm0, %v3736_v51, 4286644096 }
  0x67   :  { %v2756_v10 = vunpack.c.l.b16 %v1309_v2  ;;  %v2884_v9 = vsel %vm2857_vm2, %v2753_v0, %v2883_v14  ;;  %v1333_v23 = vrot.slane %v1332_v30, 1  ;;  %v2879_v20 = vsel %vm2861_vm4, %v2747_v55, %v2878_v11  ;;  %v3744_v11 = vld [vmem:[%s5024_s0 + $0x140] sm:$0xff]  }
  0x68   :  { %v1322_v15 = vpack.i.bf16 %v1321_v41, %v1321_v41  ;;  %v2885_v27 = vsel %vm2859_vm3, %v2754_v3, %v2884_v9  ;;  %v2880_v16 = vsel %vm2863_vm5, %v2748_v56, %v2879_v20  ;;  %v1339_v18 = vunpack.i.l.bf16 %v1337_v19 }
  0x69   :  { %v2886_v17 = vsel %vm2861_vm4, %v2755_v4, %v2885_v27  ;;  %v1340_v21 = vunpack.i.h.bf16 %v1337_v19  ;;  %v1334_v22 = vmax.f32 %v1332_v30, %v1333_v23  ;;  %v2881_v63 = vsel %vm2865_vm6, %v2749_v1, %v2880_v16 }
  0x6a   :  { %v2757_v50 = vunpack.c.l.b16 %v1322_v15  ;;  %v2887_v8 = vsel %vm2863_vm5, %v2756_v10, %v2886_v17  ;;  %v2882_v26 = vsel %vm2867_vm7, %v2750_v58, %v2881_v63  ;;  %v1350_v29 = vsel %vm918_vm0, %v3737_v31, 4286644096  ;;  %v3743_v58 = vld [vmem:[%s5024_s0 + $0x138] sm:$0xff]  }
  0x6b   :  { %v1341_v28 = vmax.f32 %v1339_v18, %v1340_v21  ;;  %v1363_v32 = vsel %vm918_vm0, %v3738_v25, 4286644096  ;;  %v1335_v33 = vpack.i.bf16 %v1334_v22, %v1334_v22  ;;  %v1352_v37 = vunpack.i.l.bf16 %v1350_v29  ;;  %v3745_v21 = vld [vmem:[%s5024_s0 + $0x148] sm:$0xff]   ;;  %v3746_v22 = vld [vmem:[%s5024_s0 + $0x150] sm:$0xff]  }
  0x6c   :  { %v2888_v35 = vsel %vm2865_vm6, %v2757_v50, %v2887_v8  ;;  %v1353_v38 = vunpack.i.h.bf16 %v1350_v29  ;;  %v1365_v42 = vunpack.i.l.bf16 %v1363_v32  ;;  %v1366_v43 = vunpack.i.h.bf16 %v1363_v32 }
  0x6d   :  { %v1342_v40 = vrot.slane %v1341_v28, 4  ;;  %v1376_v44 = vsel %vm918_vm0, %v3739_v24, 4286644096  ;;  %v2758_v47 = vunpack.c.l.b16 %v1335_v33  ;;  %v1389_v34 = vsel %vm918_vm0, %v3740_v36, 4286644096 }
  0x6e   :  { %v1354_v48 = vmax.f32 %v1352_v37, %v1353_v38  ;;  %v1378_v49 = vunpack.i.l.bf16 %v1376_v44  ;;  %v1379_v52 = vunpack.i.h.bf16 %v1376_v44  ;;  %v1367_v54 = vmax.f32 %v1365_v42, %v1366_v43 }
  0x6f   :  { %v1343_v53 = vmax.f32 %v1341_v28, %v1342_v40  ;;  %v1402_v46 = vsel %vm918_vm0, %v3741_v45, 4286644096  ;;  %v2889_v55 = vsel %vm2867_vm7, %v2758_v47, %v2888_v35  ;;  %v1391_v57 = vunpack.i.l.bf16 %v1389_v34  ;;  %v3747_v47 = vld [vmem:[%s5024_s0 + $0x158] sm:$0xff]  }
  0x70   :  { %v1355_v51 = vrot.slane %v1354_v48, 4  ;;  %v1380_v60 = vmax.f32 %v1378_v49, %v1379_v52  ;;  %v2975_v56 = vpack.c.b16 %v2889_v55, %v2882_v26  ;;  %v1368_v7 = vrot.slane %v1367_v54, 4 }
  0x71   :  { %v1344_v1 = vrot.slane %v1343_v53, 2  ;;  %v1392_v12 = vunpack.i.h.bf16 %v1389_v34  ;;  %v1404_v13 = vunpack.i.l.bf16 %v1402_v46  ;;  %v1405_v61 = vunpack.i.h.bf16 %v1402_v46 }
  0x72   :  { %v1356_v59 = vmax.f32 %v1354_v48, %v1355_v51  ;;  %v1381_v5 = vrot.slane %v1380_v60, 4  ;;  %3661 = vmatmul.mubr.msk.bf16.vlgmr.msra.gmra.mrb[0].mxu0 %vm918_vm0, %v2975_v56  ;;  %v1369_v2 = vmax.f32 %v1367_v54, %v1368_v7  ;;  %v1415_v4 = vsel %vm918_vm0, %v3742_v39, 4286644096  ;;  %v3748_v48 = vld [vmem:[%s5024_s0 + $0x160] sm:$0xff]  }
  0x73   :  { %v1345_v0 = vmax.f32 %v1343_v53, %v1344_v1  ;;  %v1393_v3 = vmax.f32 %v1391_v57, %v1392_v12  ;;  %v1406_v25 = vmax.f32 %v1404_v13, %v1405_v61  ;;  %v1417_v41 = vunpack.i.l.bf16 %v1415_v4  ;;  %v3750_v13 = vld [vmem:[%s5024_s0 + $0x170] sm:$0xff]  }
  0x74   :  { %v1357_v6 = vrot.slane %v1356_v59, 2  ;;  %v1382_v31 = vmax.f32 %v1380_v60, %v1381_v5  ;;  %v1370_v62 = vrot.slane %v1369_v2, 2  ;;  %v1418_v10 = vunpack.i.h.bf16 %v1415_v4  ;;  %v3749_v5 = vld [vmem:[%s5024_s0 + $0x168] sm:$0xff]  }
  0x75   :  { %v1346_v30 = vrot.slane %v1345_v0, 1  ;;  %v1394_v14 = vrot.slane %v1393_v3, 4  ;;  %v1407_v15 = vrot.slane %v1406_v25, 4  ;;  %v1428_v23 = vsel %vm918_vm0, %v3743_v58, 4286644096 }
  0x76   :  { %v1358_v9 = vmax.f32 %v1356_v59, %v1357_v6  ;;  %v1383_v19 = vrot.slane %v1382_v31, 2  ;;  %v1371_v27 = vmax.f32 %v1369_v2, %v1370_v62  ;;  %v1419_v16 = vmax.f32 %v1417_v41, %v1418_v10 }
  0x77   :  { %v4180_v20 = vmax.f32 %v1345_v0, %v1346_v30  ;;  %v1395_v24 = vmax.f32 %v1393_v3, %v1394_v14  ;;  %v1408_v45 = vmax.f32 %v1406_v25, %v1407_v15  ;;  %v1430_v18 = vunpack.i.l.bf16 %v1428_v23 }
  0x78   :  { %v1359_v17 = vrot.slane %v1358_v9, 1  ;;  %v1384_v36 = vmax.f32 %v1382_v31, %v1383_v19  ;;  %v1372_v63 = vrot.slane %v1371_v27, 1  ;;  %v1420_v26 = vrot.slane %v1419_v16, 4 }
  0x79   :  { %v1348_v50 = vpack.i.bf16 %v4180_v20, %v4180_v20  ;;  %v1396_v8 = vrot.slane %v1395_v24, 2  ;;  %v1409_v32 = vrot.slane %v1408_v45, 2  ;;  %v1431_v33 = vunpack.i.h.bf16 %v1428_v23 }
  0x7a   :  { %v4190_v28 = vmax.f32 %v1358_v9, %v1359_v17  ;;  %v1385_v29 = vrot.slane %v1384_v36, 1  ;;  %v4192_v35 = vmax.f32 %v1371_v27, %v1372_v63  ;;  %v1421_v38 = vmax.f32 %v1419_v16, %v1420_v26 }
  0x7b   :  { %v1397_v37 = vmax.f32 %v1395_v24, %v1396_v8  ;;  %v1441_v39 = vsel %vm918_vm0, %v3744_v11, 4286644096  ;;  %v1410_v43 = vmax.f32 %v1408_v45, %v1409_v32  ;;  %v1432_v44 = vmax.f32 %v1430_v18, %v1431_v33  ;;  %v3751_v33 = vld [vmem:[%s5024_s0 + $0x178] sm:$0xff]  }
  0x7c   :  { %v1361_v40 = vpack.i.bf16 %v4190_v28, %v4190_v28  ;;  %v4197_v42 = vmax.f32 %v1384_v36, %v1385_v29  ;;  %v1374_v49 = vpack.i.bf16 %v4192_v35, %v4192_v35  ;;  %v1422_v53 = vrot.slane %v1421_v38, 2 }
  0x7d   :  { %v1398_v52 = vrot.slane %v1397_v37, 1  ;;  %v1443_v54 = vunpack.i.l.bf16 %v1441_v39  ;;  %v1411_v46 = vrot.slane %v1410_v43, 1  ;;  %v1433_v55 = vrot.slane %v1432_v44, 4 }
  0x7e   :  { %v1387_v34 = vpack.i.bf16 %v4197_v42, %v4197_v42  ;;  %v1444_v51 = vunpack.i.h.bf16 %v1441_v39  ;;  %v1423_v57 = vmax.f32 %v1421_v38, %v1422_v53  ;;  %v1454_v56 = vsel %vm918_vm0, %v3745_v21, 4286644096 }
  0x7f   :  { %v4209_v60 = vmax.f32 %v1397_v37, %v1398_v52  ;;  %v1467_v1 = vsel %vm918_vm0, %v3746_v22, 4286644096  ;;  %v4213_v7 = vmax.f32 %v1410_v43, %v1411_v46  ;;  %v1434_v12 = vmax.f32 %v1432_v44, %v1433_v55 }
  0x80   :  { %v1445_v58 = vmax.f32 %v1443_v54, %v1444_v51  ;;  %v1456_v59 = vunpack.i.l.bf16 %v1454_v56  ;;  %v1424_v0 = vrot.slane %v1423_v57, 1  ;;  %v1457_v2 = vunpack.i.h.bf16 %v1454_v56 }
  0x81   :  { %v1400_v61 = vpack.i.bf16 %v4209_v60, %v4209_v60  ;;  %v1469_v3 = vunpack.i.l.bf16 %v1467_v1  ;;  %v1413_v4 = vpack.i.bf16 %v4213_v7, %v4213_v7  ;;  %v1435_v6 = vrot.slane %v1434_v12, 2  ;;  %v3752_v60 = vld [vmem:[%s5024_s0 + $0x180] sm:$0xff]  }
  0x82   :  { %v1446_v31 = vrot.slane %v1445_v58, 4  ;;  %v1470_v25 = vunpack.i.h.bf16 %v1467_v1  ;;  %v4225_v41 = vmax.f32 %v1423_v57, %v1424_v0  ;;  %v1458_v30 = vmax.f32 %v1456_v59, %v1457_v2 }
  0x83   :  { %v1480_v62 = vsel %vm918_vm0, %v3747_v47, 4286644096  ;;  %v1493_v14 = vsel %vm918_vm0, %v3748_v48, 4286644096  ;;  %v1436_v10 = vmax.f32 %v1434_v12, %v1435_v6  ;;  %v1506_v22 = vsel %vm918_vm0, %v3749_v5, 4286644096 }
  0x84   :  { %v1447_v11 = vmax.f32 %v1445_v58, %v1446_v31  ;;  %v1471_v9 = vmax.f32 %v1469_v3, %v1470_v25  ;;  %v1482_v19 = vunpack.i.l.bf16 %v1480_v62  ;;  %v1426_v15 = vpack.i.bf16 %v4225_v41, %v4225_v41 }
  0x85   :  { %v1459_v23 = vrot.slane %v1458_v30, 4  ;;  %v1483_v27 = vunpack.i.h.bf16 %v1480_v62  ;;  %v1495_v24 = vunpack.i.l.bf16 %v1493_v14  ;;  %v1437_v16 = vrot.slane %v1436_v10, 1 }
  0x86   :  { %v1448_v17 = vrot.slane %v1447_v11, 2  ;;  %v1472_v36 = vrot.slane %v1471_v9, 4  ;;  %v1496_v45 = vunpack.i.h.bf16 %v1493_v14  ;;  %v1519_v63 = vsel %vm918_vm0, %v3750_v13, 4286644096 }
  0x87   :  { %v1460_v18 = vmax.f32 %v1458_v30, %v1459_v23  ;;  %v1484_v21 = vmax.f32 %v1482_v19, %v1483_v27  ;;  %v1438_v8 = vmax.f32 %v1436_v10, %v1437_v16  ;;  %v1508_v39 = vunpack.i.l.bf16 %v1506_v22 }
  0x88   :  { %v1449_v26 = vmax.f32 %v1447_v11, %v1448_v17  ;;  %v1473_v29 = vmax.f32 %v1471_v9, %v1472_v36  ;;  %v1497_v32 = vmax.f32 %v1495_v24, %v1496_v45  ;;  %v1509_v43 = vunpack.i.h.bf16 %v1506_v22 }
  0x89   :  { %v1461_v37 = vrot.slane %v1460_v18, 2  ;;  %v1485_v38 = vrot.slane %v1484_v21, 4  ;;  %v1439_v44 = vpack.i.bf16 %v1438_v8, %v1438_v8  ;;  %v1521_v55 = vunpack.i.l.bf16 %v1519_v63 }
  0x8a   :  { %v1450_v47 = vrot.slane %v1449_v26, 1  ;;  %v1474_v48 = vrot.slane %v1473_v29, 2  ;;  %v1498_v52 = vrot.slane %v1497_v32, 4  ;;  %v1510_v46 = vmax.f32 %v1508_v39, %v1509_v43 }
  0x8b   :  { %v1462_v53 = vmax.f32 %v1460_v18, %v1461_v37  ;;  %v1486_v54 = vmax.f32 %v1484_v21, %v1485_v38  ;;  %v1522_v1 = vunpack.i.h.bf16 %v1519_v63  ;;  %v1532_v5 = vsel %vm918_vm0, %v3751_v33, 4286644096 }
  0x8c   :  { %v1451_v51 = vmax.f32 %v1449_v26, %v1450_v47  ;;  %v1475_v57 = vmax.f32 %v1473_v29, %v1474_v48  ;;  %v1499_v56 = vmax.f32 %v1497_v32, %v1498_v52  ;;  %v1511_v59 = vrot.slane %v1510_v46, 4 }
  0x8d   :  { %v1463_v12 = vrot.slane %v1462_v53, 1  ;;  %v1487_v58 = vrot.slane %v1486_v54, 2  ;;  %v1523_v3 = vmax.f32 %v1521_v55, %v1522_v1  ;;  %v1534_v30 = vunpack.i.l.bf16 %v1532_v5 }
  0x8e   :  { %v1452_v13 = vpack.i.bf16 %v1451_v51, %v1451_v51  ;;  %v1476_v0 = vrot.slane %v1475_v57, 1  ;;  %v1500_v2 = vrot.slane %v1499_v56, 2  ;;  %v1512_v25 = vmax.f32 %v1510_v46, %v1511_v59  ;;  %v3754_v59 = vld [vmem:[%s5024_s0 + $0x190] sm:$0xff]  }
  0x8f   :  { %v1464_v6 = vmax.f32 %v1462_v53, %v1463_v12  ;;  %v1488_v31 = vmax.f32 %v1486_v54, %v1487_v58  ;;  %v1524_v10 = vrot.slane %v1523_v3, 4  ;;  %v1535_v11 = vunpack.i.h.bf16 %v1532_v5  ;;  %v3753_v54 = vld [vmem:[%s5024_s0 + $0x188] sm:$0xff]   ;;  %v3755_v5 = vld [vmem:[%s5024_s0 + $0x198] sm:$0xff]  }
  0x90   :  { %v1477_v62 = vmax.f32 %v1475_v57, %v1476_v0  ;;  %v1501_v14 = vmax.f32 %v1499_v56, %v1500_v2  ;;  %v1513_v23 = vrot.slane %v1512_v25, 2  ;;  %v2759_v27 = vunpack.c.l.b16 %v1348_v50 }
  0x91   :  { %v1465_v9 = vpack.i.bf16 %v1464_v6, %v1464_v6  ;;  %v1489_v19 = vrot.slane %v1488_v31, 1  ;;  %v1525_v17 = vmax.f32 %v1523_v3, %v1524_v10  ;;  %v1536_v36 = vmax.f32 %v1534_v30, %v1535_v11  ;;  %v3756_v30 = vld [vmem:[%s5024_s0 + $0x1a0] sm:$0xff]  }
  0x92   :  { %v1478_v24 = vpack.i.bf16 %v1477_v62, %v1477_v62  ;;  %v1502_v16 = vrot.slane %v1501_v14, 1  ;;  %v1514_v18 = vmax.f32 %v1512_v25, %v1513_v23  ;;  %v2760_v21 = vunpack.c.l.b16 %v1361_v40 }
  0x93   :  { %v1490_v45 = vmax.f32 %v1488_v31, %v1489_v19  ;;  %v2761_v22 = vunpack.c.l.b16 %v1374_v49  ;;  %v1526_v8 = vrot.slane %v1525_v17, 2  ;;  %v1537_v26 = vrot.slane %v1536_v36, 4 }
  0x94   :  { %v1503_v63 = vmax.f32 %v1501_v14, %v1502_v16  ;;  %v2762_v20 = vunpack.c.l.b16 %v1387_v34  ;;  %v1515_v29 = vrot.slane %v1514_v18, 1  ;;  %v2763_v32 = vunpack.c.l.b16 %v1400_v61 }
  0x95   :  { %v1491_v50 = vpack.i.bf16 %v1490_v45, %v1490_v45  ;;  %v2764_v28 = vunpack.c.l.b16 %v1413_v4  ;;  %v1527_v35 = vmax.f32 %v1525_v17, %v1526_v8  ;;  %v1538_v49 = vmax.f32 %v1536_v36, %v1537_v26  ;;  %v3758_v26 = vld [vmem:[%s5024_s0 + $0x1b0] sm:$0xff]  }
  0x96   :  { %v1504_v40 = vpack.i.bf16 %v1503_v63, %v1503_v63  ;;  %v2765_v33 = vunpack.c.l.b16 %v1426_v15  ;;  %v1516_v37 = vmax.f32 %v1514_v18, %v1515_v29  ;;  %v2766_v42 = vunpack.c.l.b16 %v1439_v44 }
  0x97   :  { %v2767_v34 = vunpack.c.l.b16 %v1452_v13  ;;  %v2768_v38 = vunpack.c.l.b16 %v1465_v9  ;;  %v1528_v61 = vrot.slane %v1527_v35, 1  ;;  %v1539_v39 = vrot.slane %v1538_v49, 2 }
  0x98   :  { %v2769_v43 = vunpack.c.l.b16 %v1478_v24  ;;  %v2770_v7 = vunpack.c.l.b16 %v1491_v50  ;;  %v1517_v4 = vpack.i.bf16 %v1516_v37, %v1516_v37  ;;  %v2771_v47 = vunpack.c.l.b16 %v1504_v40 }
  0x99   :  { %v2890_v48 = vsel %vm2855_vm1, %v2760_v21, %v2759_v27  ;;  %v2897_v52 = vsel %vm2855_vm1, %v2768_v38, %v2767_v34  ;;  %v1529_v41 = vmax.f32 %v1527_v35, %v1528_v61  ;;  %v1540_v15 = vmax.f32 %v1538_v49, %v1539_v39  ;;  %v3757_v27 = vld [vmem:[%s5024_s0 + $0x1a8] sm:$0xff]   ;;  %v3759_v38 = vld [vmem:[%s5024_s0 + $0x1b8] sm:$0xff]  }
  0x9a   :  { %v2891_v44 = vsel %vm2857_vm2, %v2761_v22, %v2890_v48  ;;  %v2898_v53 = vsel %vm2857_vm2, %v2769_v43, %v2897_v52  ;;  %v2772_v46 = vunpack.c.l.b16 %v1517_v4  ;;  %v1545_v57 = vsel %vm918_vm0, %v3752_v60, 4286644096 }
  0x9b   :  { %v2892_v55 = vsel %vm2859_vm3, %v2762_v20, %v2891_v44  ;;  %v2899_v51 = vsel %vm2859_vm3, %v2770_v7, %v2898_v53  ;;  %v1530_v56 = vpack.i.bf16 %v1529_v41, %v1529_v41  ;;  %v1541_v1 = vrot.slane %v1540_v15, 1 }
  0x9c   :  { %v2893_v12 = vsel %vm2861_vm4, %v2763_v32, %v2892_v55  ;;  %v2900_v58 = vsel %vm2861_vm4, %v2771_v47, %v2899_v51  ;;  %v1547_v2 = vunpack.i.l.bf16 %v1545_v57  ;;  %v1548_v3 = vunpack.i.h.bf16 %v1545_v57 }
  0x9d   :  { %v2894_v13 = vsel %vm2863_vm5, %v2764_v28, %v2893_v12  ;;  %v2901_v0 = vsel %vm2863_vm5, %v2772_v46, %v2900_v58  ;;  %v1542_v6 = vmax.f32 %v1540_v15, %v1541_v1  ;;  %v2773_v31 = vunpack.c.l.b16 %v1530_v56  ;;  %v3760_v12 = vld [vmem:[%s5024_s0 + $0x1c0] sm:$0xff]  }
  0x9e   :  { %v2895_v25 = vsel %vm2865_vm6, %v2765_v33, %v2894_v13  ;;  %v1558_v62 = vsel %vm918_vm0, %v3753_v54, 4286644096  ;;  %v1549_v10 = vmax.f32 %v1547_v2, %v1548_v3  ;;  %v1571_v24 = vsel %vm918_vm0, %v3754_v59, 4286644096 }
  0x9f   :  { %v2896_v14 = vsel %vm2867_vm7, %v2766_v42, %v2895_v25  ;;  %v1560_v11 = vunpack.i.l.bf16 %v1558_v62  ;;  %v1561_v9 = vunpack.i.h.bf16 %v1558_v62  ;;  %v1543_v19 = vpack.i.bf16 %v1542_v6, %v1542_v6 }
  0xa0   :  { %v2902_v23 = vsel %vm2865_vm6, %v2773_v31, %v2901_v0  ;;  %v1584_v16 = vsel %vm918_vm0, %v3755_v5, 4286644096  ;;  %v1550_v17 = vrot.slane %v1549_v10, 4  ;;  %v1573_v45 = vunpack.i.l.bf16 %v1571_v24 }
  0xa1   :  { %v1562_v36 = vmax.f32 %v1560_v11, %v1561_v9  ;;  %v1574_v18 = vunpack.i.h.bf16 %v1571_v24  ;;  %v2774_v21 = vunpack.c.l.b16 %v1543_v19  ;;  %v1586_v22 = vunpack.i.l.bf16 %v1584_v16  ;;  %v3761_v19 = vld [vmem:[%s5024_s0 + $0x1c8] sm:$0xff]  }
  0xa2   :  { %v1587_v63 = vunpack.i.h.bf16 %v1584_v16  ;;  %v1597_v8 = vsel %vm918_vm0, %v3756_v30, 4286644096  ;;  %v1551_v20 = vmax.f32 %v1549_v10, %v1550_v17  ;;  %v1610_v49 = vsel %vm918_vm0, %v3757_v27, 4286644096 }
  0xa3   :  { %v1563_v50 = vrot.slane %v1562_v36, 4  ;;  %v1575_v29 = vmax.f32 %v1573_v45, %v1574_v18  ;;  %v1599_v32 = vunpack.i.l.bf16 %v1597_v8  ;;  %v2903_v28 = vsel %vm2867_vm7, %v2774_v21, %v2902_v23  ;;  %v3762_v23 = vld [vmem:[%s5024_s0 + $0x1d0] sm:$0xff]  }
  0xa4   :  { %v1588_v40 = vmax.f32 %v1586_v22, %v1587_v63  ;;  %v1600_v35 = vunpack.i.h.bf16 %v1597_v8  ;;  %v2976_v33 = vpack.c.b16 %v2903_v28, %v2896_v14  ;;  %v1552_v37 = vrot.slane %v1551_v20, 2 }
  0xa5   :  { %v1564_v42 = vmax.f32 %v1562_v36, %v1563_v50  ;;  %v1576_v34 = vrot.slane %v1575_v29, 4  ;;  %v1612_v39 = vunpack.i.l.bf16 %v1610_v49  ;;  %v1613_v43 = vunpack.i.h.bf16 %v1610_v49 }
  0xa6   :  { %v1589_v60 = vrot.slane %v1588_v40, 4  ;;  %v1601_v61 = vmax.f32 %v1599_v32, %v1600_v35  ;;  %3664 = vmatprep.mubr.msk.bf16.mxu0 %vm918_vm0, %v2976_v33  ;;  %v1553_v7 = vmax.f32 %v1551_v20, %v1552_v37  ;;  %v1623_v48 = vsel %vm918_vm0, %v3758_v26, 4286644096  ;;  %v3763_v20 = vld [vmem:[%s5024_s0 + $0x1d8] sm:$0xff]   ;;  %v3764_v37 = vld [vmem:[%s5024_s0 + $0x1e0] sm:$0xff]  }
  0xa7   :  { %v1565_v4 = vrot.slane %v1564_v42, 2  ;;  %v1577_v47 = vmax.f32 %v1575_v29, %v1576_v34  ;;  %v1614_v15 = vmax.f32 %v1612_v39, %v1613_v43  ;;  %v1625_v44 = vunpack.i.l.bf16 %v1623_v48 }
  0xa8   :  { %v1590_v52 = vmax.f32 %v1588_v40, %v1589_v60  ;;  %v1602_v41 = vrot.slane %v1601_v61, 4  ;;  %v1554_v53 = vrot.slane %v1553_v7, 1  ;;  %v1626_v55 = vunpack.i.h.bf16 %v1623_v48 }
  0xa9   :  { %v1566_v54 = vmax.f32 %v1564_v42, %v1565_v4  ;;  %v1578_v46 = vrot.slane %v1577_v47, 2  ;;  %v1615_v56 = vrot.slane %v1614_v15, 4  ;;  %v1636_v1 = vsel %vm918_vm0, %v3759_v38, 4286644096 }
  0xaa   :  { %v1591_v51 = vrot.slane %v1590_v52, 2  ;;  %v1603_v57 = vmax.f32 %v1601_v61, %v1602_v41  ;;  %v4308_v58 = vmax.f32 %v1553_v7, %v1554_v53  ;;  %v1627_v13 = vmax.f32 %v1625_v44, %v1626_v55  ;;  %v3765_v41 = vld [vmem:[%s5024_s0 + $0x1e8] sm:$0xff]  }
  0xab   :  { %v1567_v59 = vrot.slane %v1566_v54, 1  ;;  %v1579_v5 = vmax.f32 %v1577_v47, %v1578_v46  ;;  %v1616_v3 = vmax.f32 %v1614_v15, %v1615_v56  ;;  %v1638_v6 = vunpack.i.l.bf16 %v1636_v1  ;;  %v3766_v15 = vld [vmem:[%s5024_s0 + $0x1f0] sm:$0xff]  }
  0xac   :  { %v1592_v0 = vmax.f32 %v1590_v52, %v1591_v51  ;;  %v1604_v2 = vrot.slane %v1603_v57, 2  ;;  %v1556_v31 = vpack.i.bf16 %v4308_v58, %v4308_v58  ;;  %v1628_v62 = vrot.slane %v1627_v13, 4 }
  0xad   :  { %v4312_v25 = vmax.f32 %v1566_v54, %v1567_v59  ;;  %v1580_v30 = vrot.slane %v1579_v5, 1  ;;  %v1617_v11 = vrot.slane %v1616_v3, 2  ;;  %v1639_v9 = vunpack.i.h.bf16 %v1636_v1 }
  0xae   :  { %v1593_v14 = vrot.slane %v1592_v0, 1  ;;  %v1605_v10 = vmax.f32 %v1603_v57, %v1604_v2  ;;  %v1629_v16 = vmax.f32 %v1627_v13, %v1628_v62  ;;  %v1649_v17 = vsel %vm918_vm0, %v3760_v12, 4286644096 }
  0xaf   :  { %v1569_v27 = vpack.i.bf16 %v4312_v25, %v4312_v25  ;;  %v4322_v24 = vmax.f32 %v1579_v5, %v1580_v30  ;;  %v1618_v18 = vmax.f32 %v1616_v3, %v1617_v11  ;;  %v1640_v21 = vmax.f32 %v1638_v6, %v1639_v9 }
  0xb0   :  { %v4325_v36 = vmax.f32 %v1592_v0, %v1593_v14  ;;  %v1606_v45 = vrot.slane %v1605_v10, 1  ;;  %v1630_v63 = vrot.slane %v1629_v16, 2  ;;  %v1651_v8 = vunpack.i.l.bf16 %v1649_v17 }
  0xb1   :  { %v1582_v22 = vpack.i.bf16 %v4322_v24, %v4322_v24  ;;  %v1652_v26 = vunpack.i.h.bf16 %v1649_v17  ;;  %v1619_v32 = vrot.slane %v1618_v18, 1  ;;  %v1641_v28 = vrot.slane %v1640_v21, 4 }
  0xb2   :  { %v1595_v50 = vpack.i.bf16 %v4325_v36, %v4325_v36  ;;  %v4334_v29 = vmax.f32 %v1605_v10, %v1606_v45  ;;  %v1631_v40 = vmax.f32 %v1629_v16, %v1630_v63  ;;  %v1662_v49 = vsel %vm918_vm0, %v3761_v19, 4286644096  ;;  %v3768_v36 = vld [vmem:[%s5024_s0 + $0x200] sm:$0xff]  }
  0xb3   :  { %v1653_v35 = vmax.f32 %v1651_v8, %v1652_v26  ;;  %v1675_v33 = vsel %vm918_vm0, %v3762_v23, 4286644096  ;;  %v4343_v34 = vmax.f32 %v1618_v18, %v1619_v32  ;;  %v1642_v38 = vmax.f32 %v1640_v21, %v1641_v28  ;;  %v3767_v23 = vld [vmem:[%s5024_s0 + $0x1f8] sm:$0xff]  }
  0xb4   :  { %v1608_v42 = vpack.i.bf16 %v4334_v29, %v4334_v29  ;;  %v1664_v60 = vunpack.i.l.bf16 %v1662_v49  ;;  %v1632_v61 = vrot.slane %v1631_v40, 1  ;;  %v1665_v43 = vunpack.i.h.bf16 %v1662_v49 }
  0xb5   :  { %v1654_v39 = vrot.slane %v1653_v35, 4  ;;  %v1677_v7 = vunpack.i.l.bf16 %v1675_v33  ;;  %v1621_v4 = vpack.i.bf16 %v4343_v34, %v4343_v34  ;;  %v1643_v47 = vrot.slane %v1642_v38, 2 }
  0xb6   :  { %v1678_v48 = vunpack.i.h.bf16 %v1675_v33  ;;  %v1688_v52 = vsel %vm918_vm0, %v3763_v20, 4286644096  ;;  %v4354_v44 = vmax.f32 %v1631_v40, %v1632_v61  ;;  %v1666_v54 = vmax.f32 %v1664_v60, %v1665_v43 }
  0xb7   :  { %v1655_v53 = vmax.f32 %v1653_v35, %v1654_v39  ;;  %v1690_v46 = vunpack.i.l.bf16 %v1688_v52  ;;  %v1644_v55 = vmax.f32 %v1642_v38, %v1643_v47  ;;  %v1691_v57 = vunpack.i.h.bf16 %v1688_v52 }
  0xb8   :  { %v1679_v51 = vmax.f32 %v1677_v7, %v1678_v48  ;;  %v1701_v56 = vsel %vm918_vm0, %v3764_v37, 4286644096  ;;  %v1634_v1 = vpack.i.bf16 %v4354_v44, %v4354_v44  ;;  %v1667_v59 = vrot.slane %v1666_v54, 4 }
  0xb9   :  { %v1656_v12 = vrot.slane %v1655_v53, 2  ;;  %v1703_v5 = vunpack.i.l.bf16 %v1701_v56  ;;  %v1645_v13 = vrot.slane %v1644_v55, 1  ;;  %v1692_v2 = vmax.f32 %v1690_v46, %v1691_v57 }
  0xba   :  { %v1680_v0 = vrot.slane %v1679_v51, 4  ;;  %v1704_v3 = vunpack.i.h.bf16 %v1701_v56  ;;  %v1668_v30 = vmax.f32 %v1666_v54, %v1667_v59  ;;  %v1714_v62 = vsel %vm918_vm0, %v3765_v41, 4286644096 }
  0xbb   :  { %v1657_v6 = vmax.f32 %v1655_v53, %v1656_v12  ;;  %v1727_v14 = vsel %vm918_vm0, %v3766_v15, 4286644096  ;;  %v1646_v10 = vmax.f32 %v1644_v55, %v1645_v13  ;;  %v1693_v9 = vrot.slane %v1692_v2, 4 }
  0xbc   :  { %v1681_v11 = vmax.f32 %v1679_v51, %v1680_v0  ;;  %v1705_v19 = vmax.f32 %v1703_v5, %v1704_v3  ;;  %v1669_v17 = vrot.slane %v1668_v30, 2  ;;  %v1716_v45 = vunpack.i.l.bf16 %v1714_v62 }
  0xbd   :  { %v1658_v16 = vrot.slane %v1657_v6, 1  ;;  %v1717_v18 = vunpack.i.h.bf16 %v1714_v62  ;;  %v1647_v21 = vpack.i.bf16 %v1646_v10, %v1646_v10  ;;  %v1694_v8 = vmax.f32 %v1692_v2, %v1693_v9 }
  0xbe   :  { %v1682_v63 = vrot.slane %v1681_v11, 2  ;;  %v1706_v26 = vrot.slane %v1705_v19, 4  ;;  %v1670_v32 = vmax.f32 %v1668_v30, %v1669_v17  ;;  %v1729_v40 = vunpack.i.l.bf16 %v1727_v14 }
  0xbf   :  { %v1659_v20 = vmax.f32 %v1657_v6, %v1658_v16  ;;  %v1718_v28 = vmax.f32 %v1716_v45, %v1717_v18  ;;  %v1695_v49 = vrot.slane %v1694_v8, 2  ;;  %v1730_v37 = vunpack.i.h.bf16 %v1727_v14 }
  0xc0   :  { %v1683_v35 = vmax.f32 %v1681_v11, %v1682_v63  ;;  %v1707_v33 = vmax.f32 %v1705_v19, %v1706_v26  ;;  %v1671_v60 = vrot.slane %v1670_v32, 1  ;;  %v1740_v39 = vsel %vm918_vm0, %v3767_v23, 4286644096 }
  0xc1   :  { %v1660_v38 = vpack.i.bf16 %v1659_v20, %v1659_v20  ;;  %v1719_v61 = vrot.slane %v1718_v28, 4  ;;  %v1696_v7 = vmax.f32 %v1694_v8, %v1695_v49  ;;  %v1731_v48 = vmax.f32 %v1729_v40, %v1730_v37  ;;  %v3769_v20 = vld [vmem:[%s5024_s0 + $0x208] sm:$0xff]  }
  0xc2   :  { %v1684_v43 = vrot.slane %v1683_v35, 1  ;;  %v1708_v47 = vrot.slane %v1707_v33, 2  ;;  %v1672_v52 = vmax.f32 %v1670_v32, %v1671_v60  ;;  %v1742_v15 = vunpack.i.l.bf16 %v1740_v39  ;;  %v3770_v32 = vld [vmem:[%s5024_s0 + $0x210] sm:$0xff]  }
  0xc3   :  { %v1720_v41 = vmax.f32 %v1718_v28, %v1719_v61  ;;  %v1743_v53 = vunpack.i.h.bf16 %v1740_v39  ;;  %v1697_v46 = vrot.slane %v1696_v7, 1  ;;  %v1732_v51 = vrot.slane %v1731_v48, 4 }
  0xc4   :  { %v1685_v54 = vmax.f32 %v1683_v35, %v1684_v43  ;;  %v1709_v55 = vmax.f32 %v1707_v33, %v1708_v47  ;;  %v1673_v57 = vpack.i.bf16 %v1672_v52, %v1672_v52  ;;  %v2775_v59 = vunpack.c.l.b16 %v1556_v31  ;;  %v3771_v47 = vld [vmem:[%s5024_s0 + $0x218] sm:$0xff]  }
  0xc5   :  { %v1721_v56 = vrot.slane %v1720_v41, 2  ;;  %v1744_v12 = vmax.f32 %v1742_v15, %v1743_v53  ;;  %v1698_v13 = vmax.f32 %v1696_v7, %v1697_v46  ;;  %v1733_v2 = vmax.f32 %v1731_v48, %v1732_v51  ;;  %v3772_v48 = vld [vmem:[%s5024_s0 + $0x220] sm:$0xff]  }
  0xc6   :  { %v1686_v5 = vpack.i.bf16 %v1685_v54, %v1685_v54  ;;  %v1710_v0 = vrot.slane %v1709_v55, 1  ;;  %v2776_v30 = vunpack.c.l.b16 %v1569_v27  ;;  %v2777_v62 = vunpack.c.l.b16 %v1582_v22 }
  0xc7   :  { %v1722_v3 = vmax.f32 %v1720_v41, %v1721_v56  ;;  %v1745_v6 = vrot.slane %v1744_v12, 4  ;;  %v1699_v14 = vpack.i.bf16 %v1698_v13, %v1698_v13  ;;  %v1734_v11 = vrot.slane %v1733_v2, 2 }
  0xc8   :  { %v1711_v10 = vmax.f32 %v1709_v55, %v1710_v0  ;;  %v2778_v58 = vunpack.c.l.b16 %v1595_v50  ;;  %v2779_v19 = vunpack.c.l.b16 %v1608_v42  ;;  %v2780_v25 = vunpack.c.l.b16 %v1621_v4 }
  0xc9   :  { %v1723_v31 = vrot.slane %v1722_v3, 1  ;;  %v1746_v9 = vmax.f32 %v1744_v12, %v1745_v6  ;;  %v1735_v24 = vmax.f32 %v1733_v2, %v1734_v11  ;;  %v2781_v22 = vunpack.c.l.b16 %v1634_v1  ;;  %v3773_v12 = vld [vmem:[%s5024_s0 + $0x228] sm:$0xff]   ;;  %v3774_v2 = vld [vmem:[%s5024_s0 + $0x230] sm:$0xff]  }
  0xca   :  { %v1712_v27 = vpack.i.bf16 %v1711_v10, %v1711_v10  ;;  %v2782_v23 = vunpack.c.l.b16 %v1647_v21  ;;  %v2783_v17 = vunpack.c.l.b16 %v1660_v38  ;;  %v2784_v29 = vunpack.c.l.b16 %v1673_v57 }
  0xcb   :  { %v1724_v50 = vmax.f32 %v1722_v3, %v1723_v31  ;;  %v1747_v16 = vrot.slane %v1746_v9, 2  ;;  %v1736_v42 = vrot.slane %v1735_v24, 1  ;;  %v2785_v45 = vunpack.c.l.b16 %v1686_v5 }
  0xcc   :  { %v2786_v18 = vunpack.c.l.b16 %v1699_v14  ;;  %v2787_v34 = vunpack.c.l.b16 %v1712_v27  ;;  %v2904_v8 = vsel %vm2855_vm1, %v2776_v30, %v2775_v59  ;;  %v2911_v44 = vsel %vm2855_vm1, %v2784_v29, %v2783_v17 }
  0xcd   :  { %v1725_v4 = vpack.i.bf16 %v1724_v50, %v1724_v50  ;;  %v1748_v63 = vmax.f32 %v1746_v9, %v1747_v16  ;;  %v1737_v1 = vmax.f32 %v1735_v24, %v1736_v42  ;;  %v2905_v21 = vsel %vm2857_vm2, %v2777_v62, %v2904_v8 }
  0xce   :  { %v2912_v26 = vsel %vm2857_vm2, %v2785_v45, %v2911_v44  ;;  %v1753_v28 = vsel %vm918_vm0, %v3768_v36, 4286644096  ;;  %v2906_v49 = vsel %vm2859_vm3, %v2778_v58, %v2905_v21  ;;  %v1766_v53 = vsel %vm918_vm0, %v3769_v20, 4286644096 }
  0xcf   :  { %v1749_v40 = vrot.slane %v1748_v63, 1  ;;  %v2788_v35 = vunpack.c.l.b16 %v1725_v4  ;;  %v2913_v33 = vsel %vm2859_vm3, %v2786_v18, %v2912_v26  ;;  %v1738_v37 = vpack.i.bf16 %v1737_v1, %v1737_v1 }
  0xd0   :  { %v2907_v38 = vsel %vm2861_vm4, %v2779_v19, %v2906_v49  ;;  %v2914_v60 = vsel %vm2861_vm4, %v2787_v34, %v2913_v33  ;;  %v1755_v61 = vunpack.i.l.bf16 %v1753_v28  ;;  %v1756_v52 = vunpack.i.h.bf16 %v1753_v28 }
  0xd1   :  { %v1750_v39 = vmax.f32 %v1748_v63, %v1749_v40  ;;  %v2908_v43 = vsel %vm2863_vm5, %v2780_v25, %v2907_v38  ;;  %v2915_v7 = vsel %vm2863_vm5, %v2788_v35, %v2914_v60  ;;  %v2789_v41 = vunpack.c.l.b16 %v1738_v37  ;;  %v3776_v38 = vld [vmem:[%s5024_s0 + $0x240] sm:$0xff]  }
  0xd2   :  { %v2909_v15 = vsel %vm2865_vm6, %v2781_v22, %v2908_v43  ;;  %v1779_v54 = vsel %vm918_vm0, %v3770_v32, 4286644096  ;;  %v1757_v51 = vmax.f32 %v1755_v61, %v1756_v52  ;;  %v1768_v57 = vunpack.i.l.bf16 %v1766_v53 }
  0xd3   :  { %v1751_v46 = vpack.i.bf16 %v1750_v39, %v1750_v39  ;;  %v2910_v55 = vsel %vm2867_vm7, %v2782_v23, %v2909_v15  ;;  %v2916_v56 = vsel %vm2865_vm6, %v2789_v41, %v2915_v7  ;;  %v1769_v59 = vunpack.i.h.bf16 %v1766_v53  ;;  %v3775_v23 = vld [vmem:[%s5024_s0 + $0x238] sm:$0xff]  }
  0xd4   :  { %v1781_v5 = vunpack.i.l.bf16 %v1779_v54  ;;  %v1782_v13 = vunpack.i.h.bf16 %v1779_v54  ;;  %v1758_v3 = vrot.slane %v1757_v51, 4  ;;  %v1792_v6 = vsel %vm918_vm0, %v3771_v47, 4286644096 }
  0xd5   :  { %v2790_v0 = vunpack.c.l.b16 %v1751_v46  ;;  %v1805_v30 = vsel %vm918_vm0, %v3772_v48, 4286644096  ;;  %v1770_v62 = vmax.f32 %v1768_v57, %v1769_v59  ;;  %v1794_v10 = vunpack.i.l.bf16 %v1792_v6  ;;  %v3777_v46 = vld [vmem:[%s5024_s0 + $0x248] sm:$0xff]  }
  0xd6   :  { %v1783_v14 = vmax.f32 %v1781_v5, %v1782_v13  ;;  %v1795_v11 = vunpack.i.h.bf16 %v1792_v6  ;;  %v1759_v31 = vmax.f32 %v1757_v51, %v1758_v3  ;;  %v1807_v9 = vunpack.i.l.bf16 %v1805_v30 }
  0xd7   :  { %v2917_v58 = vsel %vm2867_vm7, %v2790_v0, %v2916_v56  ;;  %v1808_v19 = vunpack.i.h.bf16 %v1805_v30  ;;  %v1771_v27 = vrot.slane %v1770_v62, 4  ;;  %v1818_v16 = vsel %vm918_vm0, %v3773_v12, 4286644096  ;;  %v3778_v0 = vld [vmem:[%s5024_s0 + $0x250] sm:$0xff]  }
  0xd8   :  { %v2977_v25 = vpack.c.b16 %v2917_v58, %v2910_v55  ;;  %v1784_v24 = vrot.slane %v1783_v14, 4  ;;  %v1796_v22 = vmax.f32 %v1794_v10, %v1795_v11  ;;  %v1760_v36 = vrot.slane %v1759_v31, 2  ;;  %v3779_v58 = vld [vmem:[%s5024_s0 + $0x258] sm:$0xff]  }
  0xd9   :  { %v1809_v50 = vmax.f32 %v1807_v9, %v1808_v19  ;;  %v1831_v17 = vsel %vm918_vm0, %v3774_v2, 4286644096  ;;  %v1772_v29 = vmax.f32 %v1770_v62, %v1771_v27  ;;  %v1820_v18 = vunpack.i.l.bf16 %v1818_v16 }
  0xda   :  { %3665 = vmatmul.mubr.msk.bf16.gmra.mrb[4].mxu0 %vm918_vm0, %v2977_v25  ;;  %v1785_v42 = vmax.f32 %v1783_v14, %v1784_v24  ;;  %v1797_v45 = vrot.slane %v1796_v22, 4  ;;  %v1761_v34 = vmax.f32 %v1759_v31, %v1760_v36  ;;  %v1821_v63 = vunpack.i.h.bf16 %v1818_v16 }
  0xdb   :  { %v1810_v4 = vrot.slane %v1809_v50, 4  ;;  %v1833_v8 = vunpack.i.l.bf16 %v1831_v17  ;;  %v1773_v44 = vrot.slane %v1772_v29, 2  ;;  %v1834_v26 = vunpack.i.h.bf16 %v1831_v17 }
  0xdc   :  { %v1786_v1 = vrot.slane %v1785_v42, 2  ;;  %v1798_v21 = vmax.f32 %v1796_v22, %v1797_v45  ;;  %v1762_v20 = vrot.slane %v1761_v34, 1  ;;  %v1822_v28 = vmax.f32 %v1820_v18, %v1821_v63 }
  0xdd   :  { %v1811_v32 = vmax.f32 %v1809_v50, %v1810_v4  ;;  %v1844_v40 = vsel %vm918_vm0, %v3775_v23, 4286644096  ;;  %v1774_v35 = vmax.f32 %v1772_v29, %v1773_v44  ;;  %v1835_v37 = vmax.f32 %v1833_v8, %v1834_v26  ;;  %v3780_v29 = vld [vmem:[%s5024_s0 + $0x260] sm:$0xff]  }
  0xde   :  { %v1787_v49 = vmax.f32 %v1785_v42, %v1786_v1  ;;  %v1799_v33 = vrot.slane %v1798_v21, 2  ;;  %v4436_v60 = vmax.f32 %v1761_v34, %v1762_v20  ;;  %v1823_v39 = vrot.slane %v1822_v28, 4  ;;  %v3781_v42 = vld [vmem:[%s5024_s0 + $0x268] sm:$0xff]  }
  0xdf   :  { %v1812_v61 = vrot.slane %v1811_v32, 2  ;;  %v1846_v43 = vunpack.i.l.bf16 %v1844_v40  ;;  %v1775_v7 = vrot.slane %v1774_v35, 1  ;;  %v1836_v52 = vrot.slane %v1835_v37, 4 }
  0xe0   :  { %v1788_v47 = vrot.slane %v1787_v49, 1  ;;  %v1800_v48 = vmax.f32 %v1798_v21, %v1799_v33  ;;  %v1764_v41 = vpack.i.bf16 %v4436_v60, %v4436_v60  ;;  %v1824_v53 = vmax.f32 %v1822_v28, %v1823_v39  ;;  %v3782_v28 = vld [vmem:[%s5024_s0 + $0x270] sm:$0xff]  }
  0xe1   :  { %v1813_v15 = vmax.f32 %v1811_v32, %v1812_v61  ;;  %v1847_v54 = vunpack.i.h.bf16 %v1844_v40  ;;  %v4443_v55 = vmax.f32 %v1774_v35, %v1775_v7  ;;  %v1837_v56 = vmax.f32 %v1835_v37, %v1836_v52 }
  0xe2   :  { %v4445_v51 = vmax.f32 %v1787_v49, %v1788_v47  ;;  %v1801_v57 = vrot.slane %v1800_v48, 1  ;;  %v1825_v59 = vrot.slane %v1824_v53, 2  ;;  %v1857_v13 = vsel %vm918_vm0, %v3776_v38, 4286644096 }
  0xe3   :  { %v1814_v12 = vrot.slane %v1813_v15, 1  ;;  %v1848_v5 = vmax.f32 %v1846_v43, %v1847_v54  ;;  %v1777_v2 = vpack.i.bf16 %v4443_v55, %v4443_v55  ;;  %v1838_v30 = vrot.slane %v1837_v56, 2 }
  0xe4   :  { %v1790_v3 = vpack.i.bf16 %v4445_v51, %v4445_v51  ;;  %v4455_v6 = vmax.f32 %v1800_v48, %v1801_v57  ;;  %v1826_v14 = vmax.f32 %v1824_v53, %v1825_v59  ;;  %v1859_v11 = vunpack.i.l.bf16 %v1857_v13  ;;  %v3783_v59 = vld [vmem:[%s5024_s0 + $0x278] sm:$0xff]  }
  0xe5   :  { %v4457_v62 = vmax.f32 %v1813_v15, %v1814_v12  ;;  %v1849_v10 = vrot.slane %v1848_v5, 4  ;;  %v1839_v9 = vmax.f32 %v1837_v56, %v1838_v30  ;;  %v1860_v19 = vunpack.i.h.bf16 %v1857_v13 }
  0xe6   :  { %v1803_v31 = vpack.i.bf16 %v4455_v6, %v4455_v6  ;;  %v1870_v25 = vsel %vm918_vm0, %v3777_v46, 4286644096  ;;  %v1827_v24 = vrot.slane %v1826_v14, 1  ;;  %v1883_v17 = vsel %vm918_vm0, %v3778_v0, 4286644096 }
  0xe7   :  { %v1816_v27 = vpack.i.bf16 %v4457_v62, %v4457_v62  ;;  %v1850_v22 = vmax.f32 %v1848_v5, %v1849_v10  ;;  %v1872_v23 = vunpack.i.l.bf16 %v1870_v25  ;;  %v1840_v36 = vrot.slane %v1839_v9, 1  ;;  %v3784_v62 = vld [vmem:[%s5024_s0 + $0x280] sm:$0xff]  }
  0xe8   :  { %v1861_v50 = vmax.f32 %v1859_v11, %v1860_v19  ;;  %v1873_v16 = vunpack.i.h.bf16 %v1870_v25  ;;  %v4474_v45 = vmax.f32 %v1826_v14, %v1827_v24  ;;  %v1885_v34 = vunpack.i.l.bf16 %v1883_v17 }
  0xe9   :  { %v1851_v18 = vrot.slane %v1850_v22, 2  ;;  %v1886_v4 = vunpack.i.h.bf16 %v1883_v17  ;;  %v4476_v63 = vmax.f32 %v1839_v9, %v1840_v36  ;;  %v1896_v1 = vsel %vm918_vm0, %v3779_v58, 4286644096 }
  0xea   :  { %v1862_v8 = vrot.slane %v1861_v50, 4  ;;  %v1874_v44 = vmax.f32 %v1872_v23, %v1873_v16  ;;  %v1829_v21 = vpack.i.bf16 %v4474_v45, %v4474_v45  ;;  %v1898_v32 = vunpack.i.l.bf16 %v1896_v1 }
  0xeb   :  { %v1852_v26 = vmax.f32 %v1850_v22, %v1851_v18  ;;  %v1887_v20 = vmax.f32 %v1885_v34, %v1886_v4  ;;  %v1842_v40 = vpack.i.bf16 %v4476_v63, %v4476_v63  ;;  %v1899_v33 = vunpack.i.h.bf16 %v1896_v1 }
  0xec   :  { %v1863_v35 = vmax.f32 %v1861_v50, %v1862_v8  ;;  %v1875_v49 = vrot.slane %v1874_v44, 4  ;;  %v1909_v61 = vsel %vm918_vm0, %v3780_v29, 4286644096  ;;  %v1922_v39 = vsel %vm918_vm0, %v3781_v42, 4286644096 }
  0xed   :  { %v1853_v37 = vrot.slane %v1852_v26, 1  ;;  %v1888_v38 = vrot.slane %v1887_v20, 4  ;;  %v1900_v47 = vmax.f32 %v1898_v32, %v1899_v33  ;;  %v1911_v48 = vunpack.i.l.bf16 %v1909_v61 }
  0xee   :  { %v1864_v43 = vrot.slane %v1863_v35, 2  ;;  %v1876_v7 = vmax.f32 %v1874_v44, %v1875_v49  ;;  %v1912_v53 = vunpack.i.h.bf16 %v1909_v61  ;;  %v1924_v54 = vunpack.i.l.bf16 %v1922_v39 }
  0xef   :  { %v4488_v52 = vmax.f32 %v1852_v26, %v1853_v37  ;;  %v1889_v15 = vmax.f32 %v1887_v20, %v1888_v38  ;;  %v1901_v56 = vrot.slane %v1900_v47, 4  ;;  %v1925_v12 = vunpack.i.h.bf16 %v1922_v39 }
  0xf0   :  { %v1865_v46 = vmax.f32 %v1863_v35, %v1864_v43  ;;  %v1877_v57 = vrot.slane %v1876_v7, 2  ;;  %v1913_v0 = vmax.f32 %v1911_v48, %v1912_v53  ;;  %v1935_v30 = vsel %vm918_vm0, %v3782_v28, 4286644096 }
  0xf1   :  { %v1855_v5 = vpack.i.bf16 %v4488_v52, %v4488_v52  ;;  %v1890_v13 = vrot.slane %v1889_v15, 2  ;;  %v1902_v11 = vmax.f32 %v1900_v47, %v1901_v56  ;;  %v1926_v58 = vmax.f32 %v1924_v54, %v1925_v12 }
  0xf2   :  { %v1866_v14 = vrot.slane %v1865_v46, 1  ;;  %v1878_v10 = vmax.f32 %v1876_v7, %v1877_v57  ;;  %v1914_v19 = vrot.slane %v1913_v0, 4  ;;  %v1937_v25 = vunpack.i.l.bf16 %v1935_v30 }
  0xf3   :  { %v1891_v9 = vmax.f32 %v1889_v15, %v1890_v13  ;;  %v1938_v24 = vunpack.i.h.bf16 %v1935_v30  ;;  %v1903_v36 = vrot.slane %v1902_v11, 2  ;;  %v1927_v50 = vrot.slane %v1926_v58, 4 }
  0xf4   :  { %v1867_v22 = vmax.f32 %v1865_v46, %v1866_v14  ;;  %v1879_v23 = vrot.slane %v1878_v10, 1  ;;  %v1915_v17 = vmax.f32 %v1913_v0, %v1914_v19  ;;  %v1948_v42 = vsel %vm918_vm0, %v3783_v59, 4286644096  ;;  %v3785_v19 = vld [vmem:[%s5024_s0 + $0x288] sm:$0xff]  }
  0xf5   :  { %v1892_v16 = vrot.slane %v1891_v9, 1  ;;  %v1939_v29 = vmax.f32 %v1937_v25, %v1938_v24  ;;  %v1904_v4 = vmax.f32 %v1902_v11, %v1903_v36  ;;  %v1928_v8 = vmax.f32 %v1926_v58, %v1927_v50  ;;  %v3786_v25 = vld [vmem:[%s5024_s0 + $0x290] sm:$0xff]  }
  0xf6   :  { %v1868_v18 = vpack.i.bf16 %v1867_v22, %v1867_v22  ;;  %v1880_v34 = vmax.f32 %v1878_v10, %v1879_v23  ;;  %v1916_v1 = vrot.slane %v1915_v17, 2  ;;  %v1950_v20 = vunpack.i.l.bf16 %v1948_v42 }
  0xf7   :  { %v1893_v44 = vmax.f32 %v1891_v9, %v1892_v16  ;;  %v1940_v26 = vrot.slane %v1939_v29, 4  ;;  %v1905_v28 = vrot.slane %v1904_v4, 1  ;;  %v1929_v35 = vrot.slane %v1928_v8, 2 }
  0xf8   :  { %v1881_v32 = vpack.i.bf16 %v1880_v34, %v1880_v34  ;;  %v1951_v49 = vunpack.i.h.bf16 %v1948_v42  ;;  %v1917_v37 = vmax.f32 %v1915_v17, %v1916_v1  ;;  %v2791_v61 = vunpack.c.l.b16 %v1764_v41 }
  0xf9   :  { %v1894_v33 = vpack.i.bf16 %v1893_v44, %v1893_v44  ;;  %v1941_v38 = vmax.f32 %v1939_v29, %v1940_v26  ;;  %v1906_v39 = vmax.f32 %v1904_v4, %v1905_v28  ;;  %v1930_v43 = vmax.f32 %v1928_v8, %v1929_v35  ;;  %v3787_v29 = vld [vmem:[%s5024_s0 + $0x298] sm:$0xff]   ;;  %v3788_v26 = vld [vmem:[%s5024_s0 + $0x2a0] sm:$0xff]  }
  0xfa   :  { %v1952_v7 = vmax.f32 %v1950_v20, %v1951_v49  ;;  %v2792_v47 = vunpack.c.l.b16 %v1777_v2  ;;  %v1918_v48 = vrot.slane %v1917_v37, 1  ;;  %v2793_v15 = vunpack.c.l.b16 %v1790_v3  ;;  %v3789_v20 = vld [vmem:[%s5024_s0 + $0x2a8] sm:$0xff]  }
  0xfb   :  { %v1942_v52 = vrot.slane %v1941_v38, 2  ;;  %v2794_v53 = vunpack.c.l.b16 %v1803_v31  ;;  %v1907_v54 = vpack.i.bf16 %v1906_v39, %v1906_v39  ;;  %v1931_v60 = vrot.slane %v1930_v43, 1 }
  0xfc   :  { %v1953_v41 = vrot.slane %v1952_v7, 4  ;;  %v2795_v46 = vunpack.c.l.b16 %v1816_v27  ;;  %v1919_v57 = vmax.f32 %v1917_v37, %v1918_v48  ;;  %v2796_v2 = vunpack.c.l.b16 %v1829_v21 }
  0xfd   :  { %v1943_v55 = vmax.f32 %v1941_v38, %v1942_v52  ;;  %v2797_v51 = vunpack.c.l.b16 %v1842_v40  ;;  %v1932_v3 = vmax.f32 %v1930_v43, %v1931_v60  ;;  %v2798_v31 = vunpack.c.l.b16 %v1855_v5 }
  0xfe   :  { %v1954_v6 = vmax.f32 %v1952_v7, %v1953_v41  ;;  %v2799_v56 = vunpack.c.l.b16 %v1868_v18  ;;  %v1920_v12 = vpack.i.bf16 %v1919_v57, %v1919_v57  ;;  %v2800_v13 = vunpack.c.l.b16 %v1881_v32 }
  0xff   :  { %v1944_v59 = vrot.slane %v1943_v55, 1  ;;  %v2801_v0 = vunpack.c.l.b16 %v1894_v33  ;;  %v1933_v27 = vpack.i.bf16 %v1932_v3, %v1932_v3  ;;  %v2802_v45 = vunpack.c.l.b16 %v1907_v54 }
 0x100   :  { %v1955_v30 = vrot.slane %v1954_v6, 2  ;;  %v2918_v21 = vsel %vm2855_vm1, %v2792_v47, %v2791_v61  ;;  %v2803_v63 = vunpack.c.l.b16 %v1920_v12  ;;  %v2925_v5 = vsel %vm2855_vm1, %v2800_v13, %v2799_v56  ;;  %v3791_v12 = vld [vmem:[%s5024_s0 + $0x2b8] sm:$0xff]  }
 0x101   :  { %v1945_v14 = vmax.f32 %v1943_v55, %v1944_v59  ;;  %v2919_v40 = vsel %vm2857_vm2, %v2793_v15, %v2918_v21  ;;  %v2804_v11 = vunpack.c.l.b16 %v1933_v27  ;;  %v2926_v9 = vsel %vm2857_vm2, %v2801_v0, %v2925_v5 }
 0x102   :  { %v1956_v10 = vmax.f32 %v1954_v6, %v1955_v30  ;;  %v2920_v58 = vsel %vm2859_vm3, %v2794_v53, %v2919_v40  ;;  %v2927_v23 = vsel %vm2859_vm3, %v2802_v45, %v2926_v9  ;;  %v1961_v36 = vsel %vm918_vm0, %v3784_v62, 4286644096  ;;  %v3790_v53 = vld [vmem:[%s5024_s0 + $0x2b0] sm:$0xff]  }
 0x103   :  { %v1946_v24 = vpack.i.bf16 %v1945_v14, %v1945_v14  ;;  %v2921_v22 = vsel %vm2861_vm4, %v2795_v46, %v2920_v58  ;;  %v2928_v17 = vsel %vm2861_vm4, %v2803_v63, %v2927_v23  ;;  %v1963_v42 = vunpack.i.l.bf16 %v1961_v36 }
 0x104   :  { %v1957_v50 = vrot.slane %v1956_v10, 1  ;;  %v2922_v16 = vsel %vm2863_vm5, %v2796_v2, %v2921_v22  ;;  %v2929_v4 = vsel %vm2863_vm5, %v2804_v11, %v2928_v17  ;;  %v1964_v8 = vunpack.i.h.bf16 %v1961_v36 }
 0x105   :  { %v2805_v18 = vunpack.c.l.b16 %v1946_v24  ;;  %v2923_v34 = vsel %vm2865_vm6, %v2797_v51, %v2922_v16  ;;  %v1974_v32 = vsel %vm918_vm0, %v3785_v19, 4286644096  ;;  %v1987_v28 = vsel %vm918_vm0, %v3786_v25, 4286644096  ;;  %v3792_v16 = vld [vmem:[%s5024_s0 + $0x2c0] sm:$0xff]  }
 0x106   :  { %v1958_v44 = vmax.f32 %v1956_v10, %v1957_v50  ;;  %v2924_v1 = vsel %vm2867_vm7, %v2798_v31, %v2923_v34  ;;  %v1965_v49 = vmax.f32 %v1963_v42, %v1964_v8  ;;  %v1976_v33 = vunpack.i.l.bf16 %v1974_v32 }
 0x107   :  { %v2930_v35 = vsel %vm2865_vm6, %v2805_v18, %v2929_v4  ;;  %v1977_v37 = vunpack.i.h.bf16 %v1974_v32  ;;  %v1989_v61 = vunpack.i.l.bf16 %v1987_v28  ;;  %v1990_v39 = vunpack.i.h.bf16 %v1987_v28  ;;  %v3793_v28 = vld [vmem:[%s5024_s0 + $0x2c8] sm:$0xff]  }
 0x108   :  { %v1959_v38 = vpack.i.bf16 %v1958_v44, %v1958_v44  ;;  %v2000_v43 = vsel %vm918_vm0, %v3787_v29, 4286644096  ;;  %v1966_v7 = vrot.slane %v1965_v49, 4  ;;  %v2013_v60 = vsel %vm918_vm0, %v3788_v26, 4286644096 }
 0x109   :  { %v1978_v47 = vmax.f32 %v1976_v33, %v1977_v37  ;;  %v2002_v48 = vunpack.i.l.bf16 %v2000_v43  ;;  %v2003_v52 = vunpack.i.h.bf16 %v2000_v43  ;;  %v1991_v54 = vmax.f32 %v1989_v61, %v1990_v39 }
 0x10a   :  { %v2806_v15 = vunpack.c.l.b16 %v1959_v38  ;;  %v2026_v41 = vsel %vm918_vm0, %v3789_v20, 4286644096  ;;  %v1967_v46 = vmax.f32 %v1965_v49, %v1966_v7  ;;  %v2015_v2 = vunpack.i.l.bf16 %v2013_v60  ;;  %v3794_v7 = vld [vmem:[%s5024_s0 + $0x2d0] sm:$0xff]  }
 0x10b   :  { %v1979_v57 = vrot.slane %v1978_v47, 4  ;;  %v2004_v55 = vmax.f32 %v2002_v48, %v2003_v52  ;;  %v1992_v3 = vrot.slane %v1991_v54, 4  ;;  %v2016_v6 = vunpack.i.h.bf16 %v2013_v60 }
 0x10c   :  { %v2931_v51 = vsel %vm2867_vm7, %v2806_v15, %v2930_v35  ;;  %v2028_v31 = vunpack.i.l.bf16 %v2026_v41  ;;  %v1968_v59 = vrot.slane %v1967_v46, 2  ;;  %v2029_v30 = vunpack.i.h.bf16 %v2026_v41 }
 0x10d   :  { %v2978_v56 = vpack.c.b16 %v2931_v51, %v2924_v1  ;;  %v1980_v13 = vmax.f32 %v1978_v47, %v1979_v57  ;;  %v2005_v0 = vrot.slane %v2004_v55, 4  ;;  %v1993_v62 = vmax.f32 %v1991_v54, %v1992_v3 }
 0x10e   :  { %v2017_v27 = vmax.f32 %v2015_v2, %v2016_v6  ;;  %v2039_v45 = vsel %vm918_vm0, %v3790_v53, 4286644096  ;;  %v1969_v21 = vmax.f32 %v1967_v46, %v1968_v59  ;;  %v2030_v11 = vmax.f32 %v2028_v31, %v2029_v30  ;;  %v3795_v46 = vld [vmem:[%s5024_s0 + $0x2d8] sm:$0xff]  }
 0x10f   :  { %3668 = vmatprep.mubr.msk.bf16.mxu0 %vm918_vm0, %v2978_v56  ;;  %v1981_v14 = vrot.slane %v1980_v13, 2  ;;  %v2006_v63 = vmax.f32 %v2004_v55, %v2005_v0  ;;  %v2041_v40 = vunpack.i.l.bf16 %v2039_v45  ;;  %v1994_v5 = vrot.slane %v1993_v62, 2 }
 0x110   :  { %v2018_v10 = vrot.slane %v2017_v27, 4  ;;  %v2042_v58 = vunpack.i.h.bf16 %v2039_v45  ;;  %v1970_v9 = vrot.slane %v1969_v21, 1  ;;  %v2052_v24 = vsel %vm918_vm0, %v3791_v12, 4286644096  ;;  %v3796_v12 = vld [vmem:[%s5024_s0 + $0x2e0] sm:$0xff]  }
 0x111   :  { %v1982_v19 = vmax.f32 %v1980_v13, %v1981_v14  ;;  %v2007_v25 = vrot.slane %v2006_v63, 2  ;;  %v1995_v22 = vmax.f32 %v1993_v62, %v1994_v5  ;;  %v2031_v36 = vrot.slane %v2030_v11, 4  ;;  %v3797_v14 = vld [vmem:[%s5024_s0 + $0x2e8] sm:$0xff]  }
 0x112   :  { %v2019_v23 = vmax.f32 %v2017_v27, %v2018_v10  ;;  %v2043_v50 = vmax.f32 %v2041_v40, %v2042_v58  ;;  %v4568_v17 = vmax.f32 %v1969_v21, %v1970_v9  ;;  %v2054_v18 = vunpack.i.l.bf16 %v2052_v24 }
 0x113   :  { %v1983_v29 = vrot.slane %v1982_v19, 1  ;;  %v2008_v42 = vmax.f32 %v2006_v63, %v2007_v25  ;;  %v1996_v34 = vrot.slane %v1995_v22, 1  ;;  %v2032_v8 = vmax.f32 %v2030_v11, %v2031_v36  ;;  %v3798_v36 = vld [vmem:[%s5024_s0 + $0x2f0] sm:$0xff]  }
 0x114   :  { %v2020_v4 = vrot.slane %v2019_v23, 2  ;;  %v2044_v44 = vrot.slane %v2043_v50, 4  ;;  %v1972_v1 = vpack.i.bf16 %v4568_v17, %v4568_v17  ;;  %v2055_v32 = vunpack.i.h.bf16 %v2052_v24 }
 0x115   :  { %v4572_v26 = vmax.f32 %v1982_v19, %v1983_v29  ;;  %v2009_v20 = vrot.slane %v2008_v42, 1  ;;  %v4577_v35 = vmax.f32 %v1995_v22, %v1996_v34  ;;  %v2033_v33 = vrot.slane %v2032_v8, 2 }
 0x116   :  { %v2021_v49 = vmax.f32 %v2019_v23, %v2020_v4  ;;  %v2045_v37 = vmax.f32 %v2043_v50, %v2044_v44  ;;  %v2056_v39 = vmax.f32 %v2054_v18, %v2055_v32  ;;  %v2065_v43 = vsel %vm918_vm0, %v3792_v16, 4286644096 }
 0x117   :  { %v1985_v38 = vpack.i.bf16 %v4572_v26, %v4572_v26  ;;  %v4581_v61 = vmax.f32 %v2008_v42, %v2009_v20  ;;  %v1998_v47 = vpack.i.bf16 %v4577_v35, %v4577_v35  ;;  %v2034_v52 = vmax.f32 %v2032_v8, %v2033_v33 }
 0x118   :  { %v2022_v48 = vrot.slane %v2021_v49, 1  ;;  %v2046_v15 = vrot.slane %v2045_v37, 2  ;;  %v2057_v54 = vrot.slane %v2056_v39, 4  ;;  %v2067_v60 = vunpack.i.l.bf16 %v2065_v43 }
 0x119   :  { %v2011_v53 = vpack.i.bf16 %v4581_v61, %v4581_v61  ;;  %v2068_v41 = vunpack.i.h.bf16 %v2065_v43  ;;  %v2035_v55 = vrot.slane %v2034_v52, 1  ;;  %v2078_v51 = vsel %vm918_vm0, %v3793_v28, 4286644096  ;;  %v3799_v43 = vld [vmem:[%s5024_s0 + $0x2f8] sm:$0xff]  }
 0x11a   :  { %v4594_v57 = vmax.f32 %v2021_v49, %v2022_v48  ;;  %v2047_v2 = vmax.f32 %v2045_v37, %v2046_v15  ;;  %v2058_v3 = vmax.f32 %v2056_v39, %v2057_v54  ;;  %v2080_v31 = vunpack.i.l.bf16 %v2078_v51 }
 0x11b   :  { %v2069_v6 = vmax.f32 %v2067_v60, %v2068_v41  ;;  %v2081_v56 = vunpack.i.h.bf16 %v2078_v51  ;;  %v4602_v13 = vmax.f32 %v2034_v52, %v2035_v55  ;;  %v2091_v62 = vsel %vm918_vm0, %v3794_v7, 4286644096 }
 0x11c   :  { %v2024_v59 = vpack.i.bf16 %v4594_v57, %v4594_v57  ;;  %v2048_v0 = vrot.slane %v2047_v2, 1  ;;  %v2059_v27 = vrot.slane %v2058_v3, 2  ;;  %v2093_v21 = vunpack.i.l.bf16 %v2091_v62 }
 0x11d   :  { %v2070_v30 = vrot.slane %v2069_v6, 4  ;;  %v2082_v45 = vmax.f32 %v2080_v31, %v2081_v56  ;;  %v2037_v63 = vpack.i.bf16 %v4602_v13, %v4602_v13  ;;  %v2094_v5 = vunpack.i.h.bf16 %v2091_v62  ;;  %v3835_v13 = vld [vmem:[%s5025_s3 + $0x18] sm:$0xff]  }
 0x11e   :  { %v4610_v40 = vmax.f32 %v2047_v2, %v2048_v0  ;;  %v2104_v10 = vsel %vm918_vm0, %v3795_v46, 4286644096  ;;  %v2060_v11 = vmax.f32 %v2058_v3, %v2059_v27  ;;  %v2117_v23 = vsel %vm918_vm0, %v3796_v12, 4286644096 }
 0x11f   :  { %v2071_v58 = vmax.f32 %v2069_v6, %v2070_v30  ;;  %v2083_v9 = vrot.slane %v2082_v45, 4  ;;  %v2106_v19 = vunpack.i.l.bf16 %v2104_v10  ;;  %v2095_v24 = vmax.f32 %v2093_v21, %v2094_v5 }
 0x120   :  { %v2050_v25 = vpack.i.bf16 %v4610_v40, %v4610_v40  ;;  %v2107_v22 = vunpack.i.h.bf16 %v2104_v10  ;;  %v2061_v50 = vrot.slane %v2060_v11, 1  ;;  %v2119_v42 = vunpack.i.l.bf16 %v2117_v23 }
 0x121   :  { %v2072_v16 = vrot.slane %v2071_v58, 2  ;;  %v2084_v29 = vmax.f32 %v2082_v45, %v2083_v9  ;;  %v2096_v18 = vrot.slane %v2095_v24, 4  ;;  %v2120_v4 = vunpack.i.h.bf16 %v2117_v23 }
 0x122   :  { %v2108_v34 = vmax.f32 %v2106_v19, %v2107_v22  ;;  %v2130_v8 = vsel %vm918_vm0, %v3797_v14, 4286644096  ;;  %v4620_v44 = vmax.f32 %v2060_v11, %v2061_v50  ;;  %v2143_v15 = vsel %vm918_vm0, %v3798_v36, 4286644096  ;;  %v3832_v19 = vld [vmem:[%s5025_s3] sm:$0xff]   ;;  %v3833_v50 = vld [vmem:[%s5025_s3 + $0x8] sm:$0xff]  }
 0x123   :  { %v2073_v20 = vmax.f32 %v2071_v58, %v2072_v16  ;;  %v2085_v32 = vrot.slane %v2084_v29, 2  ;;  %v2132_v28 = vunpack.i.l.bf16 %v2130_v8  ;;  %v2097_v49 = vmax.f32 %v2095_v24, %v2096_v18  ;;  %3676 = vmatprep.subr.bf16.mxu1 %v3832_v19 }
 0x124   :  { %v2109_v33 = vrot.slane %v2108_v34, 4  ;;  %v2121_v37 = vmax.f32 %v2119_v42, %v2120_v4  ;;  %v2133_v39 = vunpack.i.h.bf16 %v2130_v8  ;;  %v2063_v7 = vpack.i.bf16 %v4620_v44, %v4620_v44  ;;  %3677 = vmatpush3.bf16.msra.mxu1 %v3832_v19 }
 0x125   :  { %v2074_v48 = vrot.slane %v2073_v20, 1  ;;  %v2086_v52 = vmax.f32 %v2084_v29, %v2085_v32  ;;  %v2098_v54 = vrot.slane %v2097_v49, 2  ;;  %v2145_v51 = vunpack.i.l.bf16 %v2143_v15  ;;  %3678 = vmatprep.subr.bf16.mxu1 %v3833_v50 }
 0x126   :  { %v2110_v60 = vmax.f32 %v2108_v34, %v2109_v33  ;;  %v2122_v41 = vrot.slane %v2121_v37, 4  ;;  %v2134_v46 = vmax.f32 %v2132_v28, %v2133_v39  ;;  %v2146_v3 = vunpack.i.h.bf16 %v2143_v15 }
 0x127   :  { %v2075_v55 = vmax.f32 %v2073_v20, %v2074_v48  ;;  %v2087_v2 = vrot.slane %v2086_v52, 1  ;;  %v2099_v6 = vmax.f32 %v2097_v49, %v2098_v54  ;;  %v2156_v30 = vsel %vm918_vm0, %v3799_v43, 4286644096 }
 0x128   :  { %v2111_v31 = vrot.slane %v2110_v60, 2  ;;  %v2123_v56 = vmax.f32 %v2121_v37, %v2122_v41  ;;  %v2135_v12 = vrot.slane %v2134_v46, 4  ;;  %v2147_v27 = vmax.f32 %v2145_v51, %v2146_v3  ;;  %3679 = vmatpush3.bf16.msra.mxu1 %v3833_v50 }
 0x129   :  { %v2076_v0 = vpack.i.bf16 %v2075_v55, %v2075_v55  ;;  %v2088_v62 = vmax.f32 %v2086_v52, %v2087_v2  ;;  %v2100_v45 = vrot.slane %v2099_v6, 1  ;;  %v2158_v58 = vunpack.i.l.bf16 %v2156_v30  ;;  %v3800_v52 = vld [vmem:[%s5024_s0 + $0x300] sm:$0xff]  }
 0x12a   :  { %v2112_v21 = vmax.f32 %v2110_v60, %v2111_v31  ;;  %v2124_v14 = vrot.slane %v2123_v56, 2  ;;  %v2136_v5 = vmax.f32 %v2134_v46, %v2135_v12  ;;  %v2148_v11 = vrot.slane %v2147_v27, 4  ;;  %v3802_v31 = vld [vmem:[%s5024_s0 + $0x310] sm:$0xff]  }
 0x12b   :  { %v2089_v10 = vpack.i.bf16 %v2088_v62, %v2088_v62  ;;  %v2159_v9 = vunpack.i.h.bf16 %v2156_v30  ;;  %v2101_v24 = vmax.f32 %v2099_v6, %v2100_v45  ;;  %v2807_v42 = vunpack.c.l.b16 %v1972_v1  ;;  %v3834_v1 = vld [vmem:[%s5025_s3 + $0x10] sm:$0xff]   ;;  %v3801_v6 = vld [vmem:[%s5024_s0 + $0x308] sm:$0xff]  }
 0x12c   :  { %v2113_v22 = vrot.slane %v2112_v21, 1  ;;  %v2125_v23 = vmax.f32 %v2123_v56, %v2124_v14  ;;  %v2137_v36 = vrot.slane %v2136_v5, 2  ;;  %v2149_v16 = vmax.f32 %v2147_v27, %v2148_v11  ;;  %3680 = vmatprep.subr.bf16.mxu1 %v3834_v1 }
 0x12d   :  { %v2160_v29 = vmax.f32 %v2158_v58, %v2159_v9  ;;  %v2808_v18 = vunpack.c.l.b16 %v1985_v38  ;;  %v2102_v34 = vpack.i.bf16 %v2101_v24, %v2101_v24  ;;  %v2809_v28 = vunpack.c.l.b16 %v1998_v47  ;;  %3681 = vmatpush3.bf16.msra.mxu1 %v3834_v1  ;;  %v3804_v24 = vld [vmem:[%s5024_s0 + $0x320] sm:$0xff]   ;;  %v3806_v1 = vld [vmem:[%s5024_s0 + $0x330] sm:$0xff]  }
 0x12e   :  { %v2114_v4 = vmax.f32 %v2112_v21, %v2113_v22  ;;  %v2126_v8 = vrot.slane %v2125_v23, 1  ;;  %v2138_v44 = vmax.f32 %v2136_v5, %v2137_v36  ;;  %v2150_v20 = vrot.slane %v2149_v16, 2  ;;  %3682 = vmatprep.subr.bf16.mxu1 %v3835_v13  ;;  %v3803_v21 = vld [vmem:[%s5024_s0 + $0x318] sm:$0xff]   ;;  %v3805_v22 = vld [vmem:[%s5024_s0 + $0x328] sm:$0xff]  }
 0x12f   :  { %v2161_v32 = vrot.slane %v2160_v29, 4  ;;  %v2810_v17 = vunpack.c.l.b16 %v2011_v53  ;;  %v2811_v33 = vunpack.c.l.b16 %v2024_v59  ;;  %v2812_v35 = vunpack.c.l.b16 %v2037_v63 }
 0x130   :  { %v2115_v26 = vpack.i.bf16 %v2114_v4, %v2114_v4  ;;  %v2127_v38 = vmax.f32 %v2125_v23, %v2126_v8  ;;  %v2139_v49 = vrot.slane %v2138_v44, 1  ;;  %v2151_v37 = vmax.f32 %v2149_v16, %v2150_v20 }
 0x131   :  { %v2162_v39 = vmax.f32 %v2160_v29, %v2161_v32  ;;  %v2813_v61 = vunpack.c.l.b16 %v2050_v25  ;;  %v2814_v43 = vunpack.c.l.b16 %v2063_v7  ;;  %v2815_v48 = vunpack.c.l.b16 %v2076_v0  ;;  %3683 = vmatpush3.bf16.msra.mxu1 %v3835_v13 }
 0x132   :  { %v2128_v47 = vpack.i.bf16 %v2127_v38, %v2127_v38  ;;  %v2140_v53 = vmax.f32 %v2138_v44, %v2139_v49  ;;  %v2152_v57 = vrot.slane %v2151_v37, 1  ;;  %v2816_v15 = vunpack.c.l.b16 %v2089_v10 }
 0x133   :  { %v2163_v59 = vrot.slane %v2162_v39, 2  ;;  %v2817_v54 = vunpack.c.l.b16 %v2102_v34  ;;  %v2818_v40 = vunpack.c.l.b16 %v2115_v26  ;;  %v2932_v7 = vsel %vm2855_vm1, %v2808_v18, %v2807_v42 }
 0x134   :  { %v2141_v63 = vpack.i.bf16 %v2140_v53, %v2140_v53  ;;  %v2819_v25 = vunpack.c.l.b16 %v2128_v47  ;;  %v2153_v60 = vmax.f32 %v2151_v37, %v2152_v57  ;;  %v2933_v46 = vsel %vm2857_vm2, %v2809_v28, %v2932_v7 }
 0x135   :  { %v2164_v41 = vmax.f32 %v2162_v39, %v2163_v59  ;;  %v2939_v55 = vsel %vm2855_vm1, %v2816_v15, %v2815_v48  ;;  %v2934_v51 = vsel %vm2859_vm3, %v2810_v17, %v2933_v46  ;;  %v2169_v56 = vsel %vm918_vm0, %v3800_v52, 4286644096  ;;  %v3807_v52 = vld [vmem:[%s5024_s0 + $0x338] sm:$0xff]  }
 0x136   :  { %v2820_v2 = vunpack.c.l.b16 %v2141_v63  ;;  %v2940_v3 = vsel %vm2857_vm2, %v2817_v54, %v2939_v55  ;;  %v2154_v12 = vpack.i.bf16 %v2153_v60, %v2153_v60  ;;  %v2935_v62 = vsel %vm2861_vm4, %v2811_v33, %v2934_v51 }
 0x137   :  { %v2165_v0 = vrot.slane %v2164_v41, 1  ;;  %v2941_v27 = vsel %vm2859_vm3, %v2818_v40, %v2940_v3  ;;  %v2936_v30 = vsel %vm2863_vm5, %v2812_v35, %v2935_v62  ;;  %v2171_v14 = vunpack.i.l.bf16 %v2169_v56 }
 0x138   :  { %v2942_v45 = vsel %vm2861_vm4, %v2819_v25, %v2941_v27  ;;  %v2172_v5 = vunpack.i.h.bf16 %v2169_v56  ;;  %v2821_v11 = vunpack.c.l.b16 %v2154_v12  ;;  %v2937_v58 = vsel %vm2865_vm6, %v2813_v61, %v2936_v30 }
 0x139   :  { %v2166_v10 = vmax.f32 %v2164_v41, %v2165_v0  ;;  %v2943_v9 = vsel %vm2863_vm5, %v2820_v2, %v2942_v45  ;;  %v2938_v19 = vsel %vm2867_vm7, %v2814_v43, %v2937_v58  ;;  %v2182_v36 = vsel %vm918_vm0, %v3801_v6, 4286644096  ;;  %v3808_v0 = vld [vmem:[%s5024_s0 + $0x340] sm:$0xff]  }
 0x13a   :  { %v2173_v23 = vmax.f32 %v2171_v14, %v2172_v5  ;;  %v2195_v50 = vsel %vm918_vm0, %v3802_v31, 4286644096  ;;  %v2944_v29 = vsel %vm2865_vm6, %v2821_v11, %v2943_v9  ;;  %v2184_v42 = vunpack.i.l.bf16 %v2182_v36 }
 0x13b   :  { %v2167_v16 = vpack.i.bf16 %v2166_v10, %v2166_v10  ;;  %v2185_v18 = vunpack.i.h.bf16 %v2182_v36  ;;  %v2197_v4 = vunpack.i.l.bf16 %v2195_v50  ;;  %v2198_v8 = vunpack.i.h.bf16 %v2195_v50 }
 0x13c   :  { %v2174_v34 = vrot.slane %v2173_v23, 4  ;;  %v2208_v44 = vsel %vm918_vm0, %v3803_v21, 4286644096  ;;  %v2221_v49 = vsel %vm918_vm0, %v3804_v24, 4286644096 }
 0x13d   :  { %v2822_v20 = vunpack.c.l.b16 %v2167_v16  ;;  %v2186_v32 = vmax.f32 %v2184_v42, %v2185_v18  ;;  %v2210_v28 = vunpack.i.l.bf16 %v2208_v44  ;;  %v2211_v17 = vunpack.i.h.bf16 %v2208_v44  ;;  %v3809_v18 = vld [vmem:[%s5024_s0 + $0x348] sm:$0xff]  }
 0x13e   :  { %v2175_v26 = vmax.f32 %v2173_v23, %v2174_v34  ;;  %v2199_v38 = vmax.f32 %v2197_v4, %v2198_v8  ;;  %v2234_v33 = vsel %vm918_vm0, %v3805_v22, 4286644096  ;;  %v2223_v61 = vunpack.i.l.bf16 %v2221_v49  ;;  %v3810_v34 = vld [vmem:[%s5024_s0 + $0x350] sm:$0xff]  }
 0x13f   :  { %v2945_v37 = vsel %vm2867_vm7, %v2822_v20, %v2944_v29  ;;  %v2187_v39 = vrot.slane %v2186_v32, 4  ;;  %v2212_v35 = vmax.f32 %v2210_v28, %v2211_v17  ;;  %v2224_v48 = vunpack.i.h.bf16 %v2221_v49 }
 0x140   :  { %v2979_v47 = vpack.c.b16 %v2945_v37, %v2938_v19  ;;  %v2176_v53 = vrot.slane %v2175_v26, 2  ;;  %v2200_v43 = vrot.slane %v2199_v38, 4  ;;  %v2236_v15 = vunpack.i.l.bf16 %v2234_v33 }
 0x141   :  { %v2188_v57 = vmax.f32 %v2186_v32, %v2187_v39  ;;  %v2213_v59 = vrot.slane %v2212_v35, 4  ;;  %v2237_v54 = vunpack.i.h.bf16 %v2234_v33  ;;  %v2225_v40 = vmax.f32 %v2223_v61, %v2224_v48 }
 0x142   :  { %3669 = vmatmul.mubr.msk.bf16.gmra.mrb[8].mxu0 %vm918_vm0, %v2979_v47  ;;  %v2177_v13 = vmax.f32 %v2175_v26, %v2176_v53  ;;  %v2201_v63 = vmax.f32 %v2199_v38, %v2200_v43  ;;  %v2247_v25 = vsel %vm918_vm0, %v3806_v1, 4286644096  ;;  %v2260_v12 = vsel %vm918_vm0, %v3807_v52, 4286644096  ;;  %v3811_v47 = vld [vmem:[%s5024_s0 + $0x358] sm:$0xff]   ;;  %v3812_v53 = vld [vmem:[%s5024_s0 + $0x360] sm:$0xff]  }
 0x143   :  { %v2189_v7 = vrot.slane %v2188_v57, 2  ;;  %v2214_v60 = vmax.f32 %v2212_v35, %v2213_v59  ;;  %v2238_v41 = vmax.f32 %v2236_v15, %v2237_v54  ;;  %v2249_v46 = vunpack.i.l.bf16 %v2247_v25 }
 0x144   :  { %v2178_v55 = vrot.slane %v2177_v13, 1  ;;  %v2202_v2 = vrot.slane %v2201_v63, 2  ;;  %v2226_v51 = vrot.slane %v2225_v40, 4  ;;  %v2250_v3 = vunpack.i.h.bf16 %v2247_v25 }
 0x145   :  { %v2190_v6 = vmax.f32 %v2188_v57, %v2189_v7  ;;  %v2215_v31 = vrot.slane %v2214_v60, 2  ;;  %v2239_v56 = vrot.slane %v2238_v41, 4  ;;  %v4714_v21 = vpop.f32.mrb[0].mxu0  ;;  %v2262_v11 = vunpack.i.l.bf16 %v2260_v12 }
 0x146   :  { %v4712_v62 = vmax.f32 %v2177_v13, %v2178_v55  ;;  %v2203_v27 = vmax.f32 %v2201_v63, %v2202_v2  ;;  %v2227_v30 = vmax.f32 %v2225_v40, %v2226_v51  ;;  %v2251_v45 = vmax.f32 %v2249_v46, %v2250_v3  ;;  %v4716_v58 = vpop.f32.mrb[1].mxu0  ;;  %v3813_v2 = vld [vmem:[%s5024_s0 + $0x368] sm:$0xff]   ;;  %v3814_v51 = vld [vmem:[%s5024_s0 + $0x370] sm:$0xff]  }
 0x147   :  { %v2191_v14 = vrot.slane %v2190_v6, 1  ;;  %v2216_v5 = vmax.f32 %v2214_v60, %v2215_v31  ;;  %v2240_v10 = vmax.f32 %v2238_v41, %v2239_v56  ;;  %v4720_v23 = vpop.f32.mrb[2].mxu0  ;;  %v2263_v29 = vunpack.i.h.bf16 %v2260_v12 }
 0x148   :  { %v2180_v9 = vpack.i.bf16 %v4712_v62, %v4712_v62  ;;  %v2204_v19 = vrot.slane %v2203_v27, 1  ;;  %v2228_v24 = vrot.slane %v2227_v30, 2  ;;  %v2252_v22 = vrot.slane %v2251_v45, 4  ;;  %v4724_v42 = vpop.f32.mrb[3].mxu0 }
 0x149   :  { %v4722_v36 = vmax.f32 %v2190_v6, %v2191_v14  ;;  %v2217_v50 = vrot.slane %v2216_v5, 1  ;;  %v2241_v16 = vrot.slane %v2240_v10, 2  ;;  %v2273_v20 = vsel %vm918_vm0, %v3808_v0, 4286644096 }
 0x14a   :  { %v4732_v4 = vmax.f32 %v2203_v27, %v2204_v19  ;;  %v2229_v8 = vmax.f32 %v2227_v30, %v2228_v24  ;;  %v2253_v44 = vmax.f32 %v2251_v45, %v2252_v22  ;;  %v2264_v1 = vmax.f32 %v2262_v11, %v2263_v29 }
 0x14b   :  { %v2193_v32 = vpack.i.bf16 %v4722_v36, %v4722_v36  ;;  %v4737_v28 = vmax.f32 %v2216_v5, %v2217_v50  ;;  %v2242_v17 = vmax.f32 %v2240_v10, %v2241_v16  ;;  %v2275_v33 = vunpack.i.l.bf16 %v2273_v20 }
 0x14c   :  { %v2206_v26 = vpack.i.bf16 %v4732_v4, %v4732_v4  ;;  %v2230_v38 = vrot.slane %v2229_v8, 1  ;;  %v2254_v49 = vrot.slane %v2253_v44, 2  ;;  %v2265_v35 = vrot.slane %v2264_v1, 4 }
 0x14d   :  { %v2219_v37 = vpack.i.bf16 %v4737_v28, %v4737_v28  ;;  %v2243_v39 = vrot.slane %v2242_v17, 1  ;;  %v2276_v61 = vunpack.i.h.bf16 %v2273_v20  ;;  %v2286_v52 = vsel %vm918_vm0, %v3809_v18, 4286644096 }
 0x14e   :  { %v4749_v43 = vmax.f32 %v2229_v8, %v2230_v38  ;;  %v2255_v48 = vmax.f32 %v2253_v44, %v2254_v49  ;;  %v2299_v57 = vsel %vm918_vm0, %v3810_v34, 4286644096  ;;  %v2266_v15 = vmax.f32 %v2264_v1, %v2265_v35 }
 0x14f   :  { %v4753_v59 = vmax.f32 %v2242_v17, %v2243_v39  ;;  %v2277_v54 = vmax.f32 %v2275_v33, %v2276_v61  ;;  %v2288_v13 = vunpack.i.l.bf16 %v2286_v52  ;;  %v2289_v25 = vunpack.i.h.bf16 %v2286_v52  ;;  %v3815_v17 = vld [vmem:[%s5024_s0 + $0x378] sm:$0xff]  }
 0x150   :  { %v2232_v63 = vpack.i.bf16 %v4749_v43, %v4749_v43  ;;  %v2256_v40 = vrot.slane %v2255_v48, 1  ;;  %v2301_v7 = vunpack.i.l.bf16 %v2299_v57  ;;  %v2267_v41 = vrot.slane %v2266_v15, 2  ;;  %v3816_v43 = vld [vmem:[%s5024_s0 + $0x380] sm:$0xff]  }
 0x151   :  { %v2245_v60 = vpack.i.bf16 %v4753_v59, %v4753_v59  ;;  %v2278_v46 = vrot.slane %v2277_v54, 4  ;;  %v2302_v55 = vunpack.i.h.bf16 %v2299_v57  ;;  %v2290_v6 = vmax.f32 %v2288_v13, %v2289_v25 }
 0x152   :  { %v4765_v3 = vmax.f32 %v2255_v48, %v2256_v40  ;;  %v2312_v31 = vsel %vm918_vm0, %v3811_v47, 4286644096  ;;  %v2325_v56 = vsel %vm918_vm0, %v3812_v53, 4286644096  ;;  %v2268_v12 = vmax.f32 %v2266_v15, %v2267_v41 }
 0x153   :  { %v2279_v0 = vmax.f32 %v2277_v54, %v2278_v46  ;;  %v2303_v27 = vmax.f32 %v2301_v7, %v2302_v55  ;;  %v2314_v30 = vunpack.i.l.bf16 %v2312_v31  ;;  %v2291_v14 = vrot.slane %v2290_v6, 4 }
 0x154   :  { %v2258_v45 = vpack.i.bf16 %v4765_v3, %v4765_v3  ;;  %v2315_v5 = vunpack.i.h.bf16 %v2312_v31  ;;  %v2327_v10 = vunpack.i.l.bf16 %v2325_v56  ;;  %v2269_v11 = vrot.slane %v2268_v12, 1 }
 0x155   :  { %v2280_v19 = vrot.slane %v2279_v0, 2  ;;  %v2304_v24 = vrot.slane %v2303_v27, 4  ;;  %v2328_v22 = vunpack.i.h.bf16 %v2325_v56  ;;  %v2292_v50 = vmax.f32 %v2290_v6, %v2291_v14 }
 0x156   :  { %v2316_v16 = vmax.f32 %v2314_v30, %v2315_v5  ;;  %v2338_v29 = vsel %vm918_vm0, %v3813_v2, 4286644096  ;;  %v2351_v18 = vsel %vm918_vm0, %v3814_v51, 4286644096  ;;  %v2270_v34 = vmax.f32 %v2268_v12, %v2269_v11 }
 0x157   :  { %v2281_v8 = vmax.f32 %v2279_v0, %v2280_v19  ;;  %v2305_v44 = vmax.f32 %v2303_v27, %v2304_v24  ;;  %v2329_v20 = vmax.f32 %v2327_v10, %v2328_v22  ;;  %v2293_v1 = vrot.slane %v2292_v50, 2 }
 0x158   :  { %v2317_v38 = vrot.slane %v2316_v16, 4  ;;  %v2340_v49 = vunpack.i.l.bf16 %v2338_v29  ;;  %v2341_v33 = vunpack.i.h.bf16 %v2338_v29  ;;  %v2271_v39 = vpack.i.bf16 %v2270_v34, %v2270_v34 }
 0x159   :  { %v2282_v35 = vrot.slane %v2281_v8, 1  ;;  %v2306_v61 = vrot.slane %v2305_v44, 2  ;;  %v2330_v47 = vrot.slane %v2329_v20, 4  ;;  %v2294_v53 = vmax.f32 %v2292_v50, %v2293_v1 }
 0x15a   :  { %v2318_v48 = vmax.f32 %v2316_v16, %v2317_v38  ;;  %v2342_v52 = vmax.f32 %v2340_v49, %v2341_v33  ;;  %v2353_v57 = vunpack.i.l.bf16 %v2351_v18  ;;  %v2354_v40 = vunpack.i.h.bf16 %v2351_v18 }
 0x15b   :  { %v2283_v15 = vmax.f32 %v2281_v8, %v2282_v35  ;;  %v2307_v54 = vmax.f32 %v2305_v44, %v2306_v61  ;;  %v2331_v13 = vmax.f32 %v2329_v20, %v2330_v47  ;;  %v2295_v25 = vrot.slane %v2294_v53, 1 }
 0x15c   :  { %v2319_v7 = vrot.slane %v2318_v48, 2  ;;  %v2343_v41 = vrot.slane %v2342_v52, 4  ;;  %v2364_v46 = vsel %vm918_vm0, %v3815_v17, 4286644096  ;;  %v2355_v6 = vmax.f32 %v2353_v57, %v2354_v40 }
 0x15d   :  { %v2284_v55 = vpack.i.bf16 %v2283_v15, %v2283_v15  ;;  %v2308_v2 = vrot.slane %v2307_v54, 1  ;;  %v2332_v51 = vrot.slane %v2331_v13, 2  ;;  %v2296_v31 = vmax.f32 %v2294_v53, %v2295_v25 }
 0x15e   :  { %v2320_v56 = vmax.f32 %v2318_v48, %v2319_v7  ;;  %v2344_v12 = vmax.f32 %v2342_v52, %v2343_v41  ;;  %v2366_v0 = vunpack.i.l.bf16 %v2364_v46  ;;  %v2356_v14 = vrot.slane %v2355_v6, 4 }
 0x15f   :  { %v2309_v27 = vmax.f32 %v2307_v54, %v2308_v2  ;;  %v2333_v30 = vmax.f32 %v2331_v13, %v2332_v51  ;;  %v2367_v5 = vunpack.i.h.bf16 %v2364_v46  ;;  %v2297_v10 = vpack.i.bf16 %v2296_v31, %v2296_v31  ;;  %v3817_v54 = vld [vmem:[%s5024_s0 + $0x388] sm:$0xff]   ;;  %v3818_v51 = vld [vmem:[%s5024_s0 + $0x390] sm:$0xff]  }
 0x160   :  { %v2321_v11 = vrot.slane %v2320_v56, 1  ;;  %v2345_v19 = vrot.slane %v2344_v12, 2  ;;  %v2823_v24 = vunpack.c.l.b16 %v2180_v9  ;;  %v2357_v16 = vmax.f32 %v2355_v6, %v2356_v14  ;;  %v3819_v6 = vld [vmem:[%s5024_s0 + $0x398] sm:$0xff]  }
 0x161   :  { %v2310_v22 = vpack.i.bf16 %v2309_v27, %v2309_v27  ;;  %v2334_v50 = vrot.slane %v2333_v30, 1  ;;  %v2368_v29 = vmax.f32 %v2366_v0, %v2367_v5  ;;  %v2824_v8 = vunpack.c.l.b16 %v2193_v32  ;;  %v3820_v5 = vld [vmem:[%s5024_s0 + $0x3a0] sm:$0xff]  }
 0x162   :  { %v2322_v18 = vmax.f32 %v2320_v56, %v2321_v11  ;;  %v2346_v34 = vmax.f32 %v2344_v12, %v2345_v19  ;;  %v2825_v44 = vunpack.c.l.b16 %v2206_v26  ;;  %v2358_v17 = vrot.slane %v2357_v16, 2 }
 0x163   :  { %v2335_v20 = vmax.f32 %v2333_v30, %v2334_v50  ;;  %v2369_v1 = vrot.slane %v2368_v29, 4  ;;  %v2826_v62 = vunpack.c.l.b16 %v2219_v37  ;;  %v2827_v49 = vunpack.c.l.b16 %v2232_v63 }
 0x164   :  { %v2323_v9 = vpack.i.bf16 %v2322_v18, %v2322_v18  ;;  %v2347_v38 = vrot.slane %v2346_v34, 1  ;;  %v2828_v36 = vunpack.c.l.b16 %v2245_v60  ;;  %v2359_v4 = vmax.f32 %v2357_v16, %v2358_v17 }
 0x165   :  { %v2336_v32 = vpack.i.bf16 %v2335_v20, %v2335_v20  ;;  %v2370_v26 = vmax.f32 %v2368_v29, %v2369_v1  ;;  %v2829_v33 = vunpack.c.l.b16 %v2258_v45  ;;  %v2830_v28 = vunpack.c.l.b16 %v2271_v39  ;;  %v3821_v29 = vld [vmem:[%s5024_s0 + $0x3a8] sm:$0xff]  }
 0x166   :  { %v2348_v35 = vmax.f32 %v2346_v34, %v2347_v38  ;;  %v2831_v37 = vunpack.c.l.b16 %v2284_v55  ;;  %v2832_v61 = vunpack.c.l.b16 %v2297_v10  ;;  %v2360_v63 = vrot.slane %v2359_v4, 1 }
 0x167   :  { %v2371_v47 = vrot.slane %v2370_v26, 2  ;;  %v2833_v53 = vunpack.c.l.b16 %v2310_v22  ;;  %v2834_v59 = vunpack.c.l.b16 %v2323_v9  ;;  %v2835_v48 = vunpack.c.l.b16 %v2336_v32 }
 0x168   :  { %v2349_v60 = vpack.i.bf16 %v2348_v35, %v2348_v35  ;;  %v2946_v52 = vsel %vm2855_vm1, %v2824_v8, %v2823_v24  ;;  %v2953_v57 = vsel %vm2855_vm1, %v2832_v61, %v2831_v37  ;;  %v2361_v3 = vmax.f32 %v2359_v4, %v2360_v63 }
 0x169   :  { %v2372_v45 = vmax.f32 %v2370_v26, %v2371_v47  ;;  %v2947_v39 = vsel %vm2857_vm2, %v2825_v44, %v2946_v52  ;;  %v2954_v15 = vsel %vm2857_vm2, %v2833_v53, %v2953_v57  ;;  %v2377_v7 = vsel %vm918_vm0, %v3816_v43, 4286644096  ;;  %v3823_v53 = vld [vmem:[%s5024_s0 + $0x3b8] sm:$0xff]  }
 0x16a   :  { %v2836_v13 = vunpack.c.l.b16 %v2349_v60  ;;  %v2948_v40 = vsel %vm2859_vm3, %v2826_v62, %v2947_v39  ;;  %v2955_v25 = vsel %vm2859_vm3, %v2834_v59, %v2954_v15  ;;  %v2362_v41 = vpack.i.bf16 %v2361_v3, %v2361_v3 }
 0x16b   :  { %v2373_v46 = vrot.slane %v2372_v45, 1  ;;  %v2949_v55 = vsel %vm2861_vm4, %v2827_v49, %v2948_v40  ;;  %v2956_v2 = vsel %vm2861_vm4, %v2835_v48, %v2955_v25  ;;  %v2379_v12 = vunpack.i.l.bf16 %v2377_v7  ;;  %v3822_v49 = vld [vmem:[%s5024_s0 + $0x3b0] sm:$0xff]  }
 0x16c   :  { %v2950_v31 = vsel %vm2863_vm5, %v2828_v36, %v2949_v55  ;;  %v2957_v56 = vsel %vm2863_vm5, %v2836_v13, %v2956_v2  ;;  %v2380_v0 = vunpack.i.h.bf16 %v2377_v7  ;;  %v2837_v30 = vunpack.c.l.b16 %v2362_v41 }
 0x16d   :  { %v2374_v27 = vmax.f32 %v2372_v45, %v2373_v46  ;;  %v2951_v14 = vsel %vm2865_vm6, %v2829_v33, %v2950_v31  ;;  %v2390_v10 = vsel %vm918_vm0, %v3817_v54, 4286644096  ;;  %v2403_v18 = vsel %vm918_vm0, %v3818_v51, 4286644096  ;;  %v3824_v31 = vld [vmem:[%s5024_s0 + $0x3c0] sm:$0xff]  }
 0x16e   :  { %v2952_v11 = vsel %vm2867_vm7, %v2830_v28, %v2951_v14  ;;  %v2381_v19 = vmax.f32 %v2379_v12, %v2380_v0  ;;  %v2392_v24 = vunpack.i.l.bf16 %v2390_v10  ;;  %v2393_v22 = vunpack.i.h.bf16 %v2390_v10 }
 0x16f   :  { %v2375_v50 = vpack.i.bf16 %v2374_v27, %v2374_v27  ;;  %v2958_v16 = vsel %vm2865_vm6, %v2837_v30, %v2957_v56  ;;  %v2416_v34 = vsel %vm918_vm0, %v3819_v6, 4286644096  ;;  %v2405_v20 = vunpack.i.l.bf16 %v2403_v18 }
 0x170   :  { %v2382_v8 = vrot.slane %v2381_v19, 4  ;;  %v2394_v44 = vmax.f32 %v2392_v24, %v2393_v22  ;;  %v2406_v17 = vunpack.i.h.bf16 %v2403_v18  ;;  %v2418_v62 = vunpack.i.l.bf16 %v2416_v34  ;;  %v3825_v18 = vld [vmem:[%s5024_s0 + $0x3c8] sm:$0xff]  }
 0x171   :  { %v2838_v1 = vunpack.c.l.b16 %v2375_v50  ;;  %v2419_v9 = vunpack.i.h.bf16 %v2416_v34  ;;  %v2429_v38 = vsel %vm918_vm0, %v3820_v5, 4286644096  ;;  %v2442_v37 = vsel %vm918_vm0, %v3821_v29, 4286644096  ;;  %v3826_v34 = vld [vmem:[%s5024_s0 + $0x3d0] sm:$0xff]  }
 0x172   :  { %v2383_v36 = vmax.f32 %v2381_v19, %v2382_v8  ;;  %v2395_v32 = vrot.slane %v2394_v44, 4  ;;  %v2407_v4 = vmax.f32 %v2405_v20, %v2406_v17  ;;  %v2431_v26 = vunpack.i.l.bf16 %v2429_v38 }
 0x173   :  { %v2959_v33 = vsel %vm2867_vm7, %v2838_v1, %v2958_v16  ;;  %v2420_v35 = vmax.f32 %v2418_v62, %v2419_v9  ;;  %v2432_v28 = vunpack.i.h.bf16 %v2429_v38  ;;  %v2444_v48 = vunpack.i.l.bf16 %v2442_v37 }
 0x174   :  { %v2980_v61 = vpack.c.b16 %v2959_v33, %v2952_v11  ;;  %v2384_v43 = vrot.slane %v2383_v36, 2  ;;  %v2396_v63 = vmax.f32 %v2394_v44, %v2395_v32  ;;  %v2408_v47 = vrot.slane %v2407_v4, 4 }
 0x175   :  { %v2421_v59 = vrot.slane %v2420_v35, 4  ;;  %v2433_v60 = vmax.f32 %v2431_v26, %v2432_v28  ;;  %v2445_v52 = vunpack.i.h.bf16 %v2442_v37  ;;  %v2455_v39 = vsel %vm918_vm0, %v3822_v49, 4286644096  ;;  %v3827_v26 = vld [vmem:[%s5024_s0 + $0x3d8] sm:$0xff]  }
 0x176   :  { %3672 = vmatprep.mubr.msk.bf16.mxu0 %vm918_vm0, %v2980_v61  ;;  %v2385_v57 = vmax.f32 %v2383_v36, %v2384_v43  ;;  %v2397_v3 = vrot.slane %v2396_v63, 2  ;;  %v2409_v45 = vmax.f32 %v2407_v4, %v2408_v47  ;;  %v2457_v40 = vunpack.i.l.bf16 %v2455_v39 }
 0x177   :  { %v2422_v15 = vmax.f32 %v2420_v35, %v2421_v59  ;;  %v2434_v54 = vrot.slane %v2433_v60, 4  ;;  %v2446_v13 = vmax.f32 %v2444_v48, %v2445_v52  ;;  %v2458_v46 = vunpack.i.h.bf16 %v2455_v39 }
 0x178   :  { %v2386_v25 = vrot.slane %v2385_v57, 1  ;;  %v2398_v7 = vmax.f32 %v2396_v63, %v2397_v3  ;;  %v2410_v41 = vrot.slane %v2409_v45, 2  ;;  %v2468_v6 = vsel %vm918_vm0, %v3823_v53, 4286644096  ;;  %v3828_v53 = vld [vmem:[%s5024_s0 + $0x3e0] sm:$0xff]  }
 0x179   :  { %v2423_v55 = vrot.slane %v2422_v15, 2  ;;  %v2435_v2 = vmax.f32 %v2433_v60, %v2434_v54  ;;  %v2447_v51 = vrot.slane %v2446_v13, 4  ;;  %v2459_v27 = vmax.f32 %v2457_v40, %v2458_v46 }
 0x17a   :  { %v4848_v56 = vmax.f32 %v2385_v57, %v2386_v25  ;;  %v2399_v12 = vrot.slane %v2398_v7, 1  ;;  %v2411_v0 = vmax.f32 %v2409_v45, %v2410_v41  ;;  %v2470_v10 = vunpack.i.l.bf16 %v2468_v6  ;;  %v3829_v25 = vld [vmem:[%s5024_s0 + $0x3e8] sm:$0xff]  }
 0x17b   :  { %v2424_v30 = vmax.f32 %v2422_v15, %v2423_v55  ;;  %v2436_v14 = vrot.slane %v2435_v2, 2  ;;  %v2448_v5 = vmax.f32 %v2446_v13, %v2447_v51  ;;  %v2460_v24 = vrot.slane %v2459_v27, 4 }
 0x17c   :  { %v4850_v11 = vmax.f32 %v2398_v7, %v2399_v12  ;;  %v2412_v19 = vrot.slane %v2411_v0, 1  ;;  %v2471_v29 = vunpack.i.h.bf16 %v2468_v6  ;;  %v2388_v8 = vpack.i.bf16 %v4848_v56, %v4848_v56  ;;  %v3830_v7 = vld [vmem:[%s5024_s0 + $0x3f0] sm:$0xff]  }
 0x17d   :  { %v2425_v22 = vrot.slane %v2424_v30, 1  ;;  %v2437_v50 = vmax.f32 %v2435_v2, %v2436_v14  ;;  %v2449_v16 = vrot.slane %v2448_v5, 2  ;;  %v2461_v20 = vmax.f32 %v2459_v27, %v2460_v24 }
 0x17e   :  { %v4860_v44 = vmax.f32 %v2411_v0, %v2412_v19  ;;  %v2481_v17 = vsel %vm918_vm0, %v3824_v31, 4286644096  ;;  %v2472_v38 = vmax.f32 %v2470_v10, %v2471_v29  ;;  %v2401_v49 = vpack.i.bf16 %v4850_v11, %v4850_v11 }
 0x17f   :  { %v4863_v1 = vmax.f32 %v2424_v30, %v2425_v22  ;;  %v2438_v62 = vrot.slane %v2437_v50, 1  ;;  %v2450_v9 = vmax.f32 %v2448_v5, %v2449_v16  ;;  %v2462_v36 = vrot.slane %v2461_v20, 2 }
 0x180   :  { %v2483_v32 = vunpack.i.l.bf16 %v2481_v17  ;;  %v2484_v4 = vunpack.i.h.bf16 %v2481_v17  ;;  %v2414_v33 = vpack.i.bf16 %v4860_v44, %v4860_v44  ;;  %v2473_v37 = vrot.slane %v2472_v38, 4 }
 0x181   :  { %v4872_v35 = vmax.f32 %v2437_v50, %v2438_v62  ;;  %v2451_v28 = vrot.slane %v2450_v9, 1  ;;  %v2463_v61 = vmax.f32 %v2461_v20, %v2462_v36  ;;  %v2494_v63 = vsel %vm918_vm0, %v3825_v18, 4286644096  ;;  %v3831_v62 = vld [vmem:[%s5024_s0 + $0x3f8] sm:$0xff]  }
 0x182   :  { %v2485_v43 = vmax.f32 %v2483_v32, %v2484_v4  ;;  %v2507_v47 = vsel %vm918_vm0, %v3826_v34, 4286644096  ;;  %v2427_v59 = vpack.i.bf16 %v4863_v1, %v4863_v1  ;;  %v2474_v48 = vmax.f32 %v2472_v38, %v2473_v37 }
 0x183   :  { %v4881_v60 = vmax.f32 %v2450_v9, %v2451_v28  ;;  %v2496_v52 = vunpack.i.l.bf16 %v2494_v63  ;;  %v2464_v57 = vrot.slane %v2463_v61, 1  ;;  %v2497_v45 = vunpack.i.h.bf16 %v2494_v63 }
 0x184   :  { %v2486_v3 = vrot.slane %v2485_v43, 4  ;;  %v2509_v39 = vunpack.i.l.bf16 %v2507_v47  ;;  %v2440_v15 = vpack.i.bf16 %v4872_v35, %v4872_v35  ;;  %v2475_v54 = vrot.slane %v2474_v48, 2 }
 0x185   :  { %v2510_v13 = vunpack.i.h.bf16 %v2507_v47  ;;  %v2520_v40 = vsel %vm918_vm0, %v3827_v26, 4286644096  ;;  %v2453_v41 = vpack.i.bf16 %v4881_v60, %v4881_v60  ;;  %v2498_v55 = vmax.f32 %v2496_v52, %v2497_v45  ;;  %v4932_v60 = vld [vmem:[%s5026_s2] ss:$0 sm:$0xff] }
 0x186   :  { %v2487_v46 = vmax.f32 %v2485_v43, %v2486_v3  ;;  %v2522_v2 = vunpack.i.l.bf16 %v2520_v40  ;;  %v2476_v51 = vmax.f32 %v2474_v48, %v2475_v54  ;;  %v2523_v31 = vunpack.i.h.bf16 %v2520_v40 }
 0x187   :  { %v2511_v6 = vmax.f32 %v2509_v39, %v2510_v13  ;;  %v2533_v12 = vsel %vm918_vm0, %v3828_v53, 4286644096  ;;  %v4895_v0 = vmax.f32 %v2463_v61, %v2464_v57  ;;  %v2499_v30 = vrot.slane %v2498_v55, 4 }
 0x188   :  { %v2488_v27 = vrot.slane %v2487_v46, 2  ;;  %v2535_v14 = vunpack.i.l.bf16 %v2533_v12  ;;  %v2477_v5 = vrot.slane %v2476_v51, 1  ;;  %v2524_v19 = vmax.f32 %v2522_v2, %v2523_v31 }
 0x189   :  { %v2512_v10 = vrot.slane %v2511_v6, 4  ;;  %v2536_v24 = vunpack.i.h.bf16 %v2533_v12  ;;  %v2500_v50 = vmax.f32 %v2498_v55, %v2499_v30  ;;  %v2546_v16 = vsel %vm918_vm0, %v3829_v25, 4286644096 }
 0x18a   :  { %v2489_v22 = vmax.f32 %v2487_v46, %v2488_v27  ;;  %v2559_v29 = vsel %vm918_vm0, %v3830_v7, 4286644096  ;;  %v4899_v18 = vmax.f32 %v2476_v51, %v2477_v5  ;;  %v2525_v20 = vrot.slane %v2524_v19, 4 }
 0x18b   :  { %v2513_v34 = vmax.f32 %v2511_v6, %v2512_v10  ;;  %v2537_v17 = vmax.f32 %v2535_v14, %v2536_v24  ;;  %v2501_v38 = vrot.slane %v2500_v50, 2  ;;  %v2548_v36 = vunpack.i.l.bf16 %v2546_v16 }
 0x18c   :  { %v2490_v9 = vrot.slane %v2489_v22, 1  ;;  %v2549_v32 = vunpack.i.h.bf16 %v2546_v16  ;;  %v2466_v4 = vpack.i.bf16 %v4895_v0, %v4895_v0  ;;  %v2526_v28 = vmax.f32 %v2524_v19, %v2525_v20 }
 0x18d   :  { %v2514_v26 = vrot.slane %v2513_v34, 2  ;;  %v2538_v37 = vrot.slane %v2537_v17, 4  ;;  %v2479_v61 = vpack.i.bf16 %v4899_v18, %v4899_v18  ;;  %v2502_v43 = vmax.f32 %v2500_v50, %v2501_v38 }
 0x18e   :  { %v2550_v63 = vmax.f32 %v2548_v36, %v2549_v32  ;;  %v2561_v47 = vunpack.i.l.bf16 %v2559_v29  ;;  %v2527_v48 = vrot.slane %v2526_v28, 2  ;;  %v2562_v57 = vunpack.i.h.bf16 %v2559_v29 }
 0x18f   :  { %v2515_v53 = vmax.f32 %v2513_v34, %v2514_v26  ;;  %v2539_v52 = vmax.f32 %v2537_v17, %v2538_v37  ;;  %v2491_v3 = vmax.f32 %v2489_v22, %v2490_v9  ;;  %v2503_v45 = vrot.slane %v2502_v43, 1 }
 0x190   :  { %v2551_v39 = vrot.slane %v2550_v63, 4  ;;  %v2572_v54 = vsel %vm918_vm0, %v3831_v62, 4286644096  ;;  %v2528_v40 = vmax.f32 %v2526_v28, %v2527_v48  ;;  %v2563_v7 = vmax.f32 %v2561_v47, %v2562_v57 }
 0x191   :  { %v2516_v13 = vrot.slane %v2515_v53, 1  ;;  %v2540_v25 = vrot.slane %v2539_v52, 2  ;;  %v2504_v46 = vmax.f32 %v2502_v43, %v2503_v45  ;;  %v2574_v2 = vunpack.i.l.bf16 %v2572_v54 }
 0x192   :  { %v2552_v55 = vmax.f32 %v2550_v63, %v2551_v39  ;;  %v2575_v51 = vunpack.i.h.bf16 %v2572_v54  ;;  %v2529_v31 = vrot.slane %v2528_v40, 1  ;;  %v2564_v0 = vrot.slane %v2563_v7, 4 }
 0x193   :  { %v2517_v6 = vmax.f32 %v2515_v53, %v2516_v13  ;;  %v2541_v12 = vmax.f32 %v2539_v52, %v2540_v25  ;;  %v2492_v27 = vpack.i.bf16 %v2491_v3, %v2491_v3  ;;  %v2505_v30 = vpack.i.bf16 %v2504_v46, %v2504_v46 }
 0x194   :  { %v2553_v14 = vrot.slane %v2552_v55, 2  ;;  %v2576_v5 = vmax.f32 %v2574_v2, %v2575_v51  ;;  %v2530_v10 = vmax.f32 %v2528_v40, %v2529_v31  ;;  %v2565_v24 = vmax.f32 %v2563_v7, %v2564_v0 }
 0x195   :  { %v2542_v19 = vrot.slane %v2541_v12, 1  ;;  %v2839_v22 = vunpack.c.l.b16 %v2388_v8  ;;  %v2518_v50 = vpack.i.bf16 %v2517_v6, %v2517_v6  ;;  %v2840_v34 = vunpack.c.l.b16 %v2401_v49 }
 0x196   :  { %v2554_v16 = vmax.f32 %v2552_v55, %v2553_v14  ;;  %v2577_v29 = vrot.slane %v2576_v5, 4  ;;  %v2531_v20 = vpack.i.bf16 %v2530_v10, %v2530_v10  ;;  %v2566_v62 = vrot.slane %v2565_v24, 2 }
 0x197   :  { %v2543_v17 = vmax.f32 %v2541_v12, %v2542_v19  ;;  %v2841_v9 = vunpack.c.l.b16 %v2414_v33  ;;  %v2842_v56 = vunpack.c.l.b16 %v2427_v59  ;;  %v2843_v8 = vunpack.c.l.b16 %v2440_v15 }
 0x198   :  { %v2555_v38 = vrot.slane %v2554_v16, 1  ;;  %v2578_v36 = vmax.f32 %v2576_v5, %v2577_v29  ;;  %v2567_v11 = vmax.f32 %v2565_v24, %v2566_v62  ;;  %v2844_v49 = vunpack.c.l.b16 %v2453_v41 }
 0x199   :  { %v2544_v32 = vpack.i.bf16 %v2543_v17, %v2543_v17  ;;  %v2845_v26 = vunpack.c.l.b16 %v2466_v4  ;;  %v2847_v33 = vunpack.c.l.b16 %v2492_v27  ;;  %v2848_v37 = vunpack.c.l.b16 %v2505_v30 }
 0x19a   :  { %v2556_v28 = vmax.f32 %v2554_v16, %v2555_v38  ;;  %v2579_v44 = vrot.slane %v2578_v36, 2  ;;  %v2568_v43 = vrot.slane %v2567_v11, 1  ;;  %v2849_v63 = vunpack.c.l.b16 %v2518_v50 }
 0x19b   :  { %v2850_v47 = vunpack.c.l.b16 %v2531_v20  ;;  %v2851_v1 = vunpack.c.l.b16 %v2544_v32  ;;  %v2960_v35 = vsel %vm2855_vm1, %v2840_v34, %v2839_v22  ;;  %v2967_v15 = vsel %vm2855_vm1, %v2848_v37, %v2847_v33 }
 0x19c   :  { %v2557_v59 = vpack.i.bf16 %v2556_v28, %v2556_v28  ;;  %v2580_v53 = vmax.f32 %v2578_v36, %v2579_v44  ;;  %v2569_v41 = vmax.f32 %v2567_v11, %v2568_v43  ;;  %v2846_v4 = vunpack.c.l.b16 %v2479_v61  ;;  %v4975_v11 = vld [vmem:[%s5027_s4] ss:$0 sm:$0xff] }
 0x19d   :  { %v2961_v48 = vsel %vm2857_vm2, %v2841_v9, %v2960_v35  ;;  %v2968_v52 = vsel %vm2857_vm2, %v2849_v63, %v2967_v15  ;;  %v3073_v25 = vadd.f32 %v4714_v21, %v4932_v60  ;;  %v3076_v46 = vadd.f32 %v4720_v23, %v4932_v60 }
 0x19e   :  { %v2581_v57 = vrot.slane %v2580_v53, 1  ;;  %v2852_v3 = vunpack.c.l.b16 %v2557_v59  ;;  %v2962_v45 = vsel %vm2859_vm3, %v2842_v56, %v2961_v48  ;;  %v2969_v39 = vsel %vm2859_vm3, %v2850_v47, %v2968_v52 }
 0x19f   :  { %v2570_v54 = vpack.i.bf16 %v2569_v41, %v2569_v41  ;;  %v2963_v13 = vsel %vm2861_vm4, %v2843_v8, %v2962_v45  ;;  %v2970_v40 = vsel %vm2861_vm4, %v2851_v1, %v2969_v39  ;;  %v3065_v51 = vadd.f32 %v4932_v60, %v4716_v58 }
 0x1a0   :  { %v2582_v18 = vmax.f32 %v2580_v53, %v2581_v57  ;;  %v2964_v61 = vsel %vm2863_vm5, %v2844_v49, %v2963_v13  ;;  %v2971_v7 = vsel %vm2863_vm5, %v2852_v3, %v2970_v40  ;;  %v3068_v6 = vadd.f32 %v4932_v60, %v4724_v42 }
 0x1a1   :  { %v2853_v55 = vunpack.c.l.b16 %v2570_v54  ;;  %v2965_v2 = vsel %vm2865_vm6, %v2845_v26, %v2964_v61  ;;  %v3128_v12 = vpack.c.bf16 %v3076_v46, %v3073_v25 }
 0x1a2   :  { %v2583_v31 = vpack.i.bf16 %v2582_v18, %v2582_v18  ;;  %v3127_v0 = vpack.c.bf16 %v3068_v6, %v3065_v51  ;;  %v2966_v30 = vsel %vm2867_vm7, %v2846_v4, %v2965_v2 }
 0x1a3   :  { %v2972_v21 = vsel %vm2865_vm6, %v2853_v55, %v2971_v7 }
 0x1a4   :  { %v2854_v27 = vunpack.c.l.b16 %v2583_v31  ;;  %3684 = vmatprep.mubr.msk.bf16.mxu1 %vm918_vm0, %v3127_v0 }
 0x1a5   :  { %3685 = vmatmul.mubr.msk.bf16.vlgmr.msra.gmra.mrb[0].mxu1 %vm918_vm0, %v3128_v12 }
 0x1a6   :  { %v2973_v23 = vsel %vm2867_vm7, %v2854_v27, %v2972_v21 }
 0x1a7   :  { %v2981_v14 = vpack.c.b16 %v2973_v23, %v2966_v30 }
 0x1a9   :  { %3673 = vmatmul.mubr.msk.bf16.gmra.mrb[12].mxu0 %vm918_vm0, %v2981_v14 }
 0x1ad   :  { %v3666_v58 = vpop.f32.mrb[4].mxu0 }
 0x1ae   :  { %v3080_v5 = vpop.f32.mrb[5].mxu0  ;;  %v3089_v10 = vadd.f32 %v3666_v58, %v4932_v60 }
 0x1af   :  { %v3667_v42 = vpop.f32.mrb[6].mxu0  ;;  %v3081_v22 = vadd.f32 %v4932_v60, %v3080_v5 }
 0x1b0   :  { %v3092_v19 = vadd.f32 %v3667_v42, %v4932_v60  ;;  %v3083_v24 = vpop.f32.mrb[7].mxu0 }
 0x1b1   :  { %v3084_v50 = vadd.f32 %v4932_v60, %v3083_v24 }
 0x1b2   :  { %v3130_v16 = vpack.c.bf16 %v3092_v19, %v3089_v10 }
 0x1b3   :  { %v3129_v29 = vpack.c.bf16 %v3084_v50, %v3081_v22 }
 0x1b5   :  { %3688 = vmatprep.mubr.msk.bf16.mxu1 %vm918_vm0, %v3129_v29 }
 0x1b6   :  { %3689 = vmatmul.mubr.msk.bf16.gmra.mrb[4].mxu1 %vm918_vm0, %v3130_v16 }
 0x215   :  { %v3670_v34 = vpop.f32.mrb[8].mxu0 }
 0x216   :  { %v3096_v20 = vpop.f32.mrb[9].mxu0  ;;  %v3105_v62 = vadd.f32 %v3670_v34, %v4932_v60 }
 0x217   :  { %v3671_v17 = vpop.f32.mrb[10].mxu0  ;;  %v3097_v36 = vadd.f32 %v4932_v60, %v3096_v20 }
 0x218   :  { %v3108_v9 = vadd.f32 %v3671_v17, %v4932_v60  ;;  %v3099_v38 = vpop.f32.mrb[11].mxu0 }
 0x219   :  { %v3100_v56 = vadd.f32 %v4932_v60, %v3099_v38 }
 0x21a   :  { %v3132_v8 = vpack.c.bf16 %v3108_v9, %v3105_v62 }
 0x21b   :  { %v3131_v32 = vpack.c.bf16 %v3100_v56, %v3097_v36 }
 0x21d   :  { %3692 = vmatprep.mubr.msk.bf16.mxu1 %vm918_vm0, %v3131_v32 }
 0x21e   :  { %3693 = vmatmul.mubr.msk.bf16.gmra.mrb[8].mxu1 %vm918_vm0, %v3132_v8 }
 0x278   :  { %v3686_v49 = vpop.f32.mrb[0].mxu1 }
 0x279   :  { %v3241_v26 = vadd.f32 %v3686_v49, %v4975_v11  ;;  %v3232_v28 = vpop.f32.mrb[1].mxu1 }
 0x27a   :  { %v3233_v44 = vadd.f32 %v4975_v11, %v3232_v28  ;;  %v3687_v33 = vpop.f32.mrb[2].mxu1 }
 0x27b   :  { %v3244_v43 = vadd.f32 %v3687_v33, %v4975_v11  ;;  %v3235_v63 = vpop.f32.mrb[3].mxu1  ;;  %v3297_v53 = vmax.f32 %v3241_v26, 0.0 }
 0x27c   :  { %v3674_v37 = vpop.f32.mrb[12].mxu0  ;;  %v3236_v1 = vadd.f32 %v4975_v11, %v3235_v63  ;;  %v3295_v48 = vmax.f32 %v3233_v44, 0.0 }
 0x27d   :  { %v3112_v47 = vpop.f32.mrb[13].mxu0  ;;  %v3298_v35 = vmax.f32 %v3244_v43, 0.0  ;;  %v3121_v15 = vadd.f32 %v3674_v37, %v4932_v60 }
 0x27e   :  { %v3675_v59 = vpop.f32.mrb[14].mxu0  ;;  %v3296_v52 = vmax.f32 %v3236_v1, 0.0  ;;  %v3113_v57 = vadd.f32 %v4932_v60, %v3112_v47 }
 0x27f   :  { %v3124_v41 = vadd.f32 %v3675_v59, %v4932_v60  ;;  %v3115_v4 = vpop.f32.mrb[15].mxu0  ;;  %v3589_v45 = vpack.c.bf16 %v3298_v35, %v3297_v53 }
 0x280   :  { %v3116_v3 = vadd.f32 %v4932_v60, %v3115_v4  ;;  %v3584_v54 = vpack.c.bf16 %v3296_v52, %v3295_v48 }
 0x281   :  { %v3134_v39 = vpack.c.bf16 %v3124_v41, %v3121_v15  ;;  %3621 = vst [vmem:[%s5028_s5 + $0x8] sm:$0xff] %v3589_v45  }
 0x282   :  { %v3133_v13 = vpack.c.bf16 %v3116_v3, %v3113_v57  ;;  %3585 = vst [vmem:[%s5028_s5] sm:$0xff] %v3584_v54  }
 0x284   :  { %3696 = vmatprep.mubr.msk.bf16.mxu1 %vm918_vm0, %v3133_v13 }
 0x285   :  { %3697 = vmatmul.mubr.msk.bf16.gmra.mrb[12].mxu1 %vm918_vm0, %v3134_v39 }
 0x289   :  { %v3690_v40 = vpop.f32.mrb[4].mxu1 }
 0x28a   :  { %v3257_v25 = vadd.f32 %v3690_v40, %v4975_v11  ;;  %v3248_v60 = vpop.f32.mrb[5].mxu1 }
 0x28b   :  { %v3249_v18 = vadd.f32 %v4975_v11, %v3248_v60  ;;  %v3691_v61 = vpop.f32.mrb[6].mxu1 }
 0x28c   :  { %v3260_v7 = vadd.f32 %v3691_v61, %v4975_v11  ;;  %v3251_v46 = vpop.f32.mrb[7].mxu1  ;;  %v3301_v2 = vmax.f32 %v3257_v25, 0.0 }
 0x28d   :  { %v3252_v55 = vadd.f32 %v4975_v11, %v3251_v46  ;;  %v3299_v6 = vmax.f32 %v3249_v18, 0.0 }
 0x28e   :  { %v3302_v51 = vmax.f32 %v3260_v7, 0.0 }
 0x28f   :  { %v3300_v31 = vmax.f32 %v3252_v55, 0.0 }
 0x290   :  { %v3599_v12 = vpack.c.bf16 %v3302_v51, %v3301_v2 }
 0x291   :  { %v3594_v21 = vpack.c.bf16 %v3300_v31, %v3299_v6 }
 0x292   :  { %3623 = vst [vmem:[%s5028_s5 + $0x18] sm:$0xff] %v3599_v12  }
 0x293   :  { %3622 = vst [vmem:[%s5028_s5 + $0x10] sm:$0xff] %v3594_v21  }
 0x2f1   :  { %v3694_v0 = vpop.f32.mrb[8].mxu1 }
 0x2f2   :  { %v3273_v27 = vadd.f32 %v3694_v0, %v4975_v11  ;;  %v3264_v30 = vpop.f32.mrb[9].mxu1 }
 0x2f3   :  { %v3265_v23 = vadd.f32 %v4975_v11, %v3264_v30  ;;  %v3695_v14 = vpop.f32.mrb[10].mxu1 }
 0x2f4   :  { %v3276_v58 = vadd.f32 %v3695_v14, %v4975_v11  ;;  %v3267_v5 = vpop.f32.mrb[11].mxu1  ;;  %v3305_v10 = vmax.f32 %v3273_v27, 0.0 }
 0x2f5   :  { %v3268_v42 = vadd.f32 %v4975_v11, %v3267_v5  ;;  %v3303_v24 = vmax.f32 %v3265_v23, 0.0 }
 0x2f6   :  { %v3306_v19 = vmax.f32 %v3276_v58, 0.0 }
 0x2f7   :  { %v3304_v22 = vmax.f32 %v3268_v42, 0.0 }
 0x2f8   :  { %v3609_v50 = vpack.c.bf16 %v3306_v19, %v3305_v10 }
 0x2f9   :  { %v3604_v16 = vpack.c.bf16 %v3304_v22, %v3303_v24 }
 0x2fa   :  { %3625 = vst [vmem:[%s5028_s5 + $0x28] sm:$0xff] %v3609_v50  }
 0x2fb   :  { %3624 = vst [vmem:[%s5028_s5 + $0x20] sm:$0xff] %v3604_v16  }
 0x358   :  { %v3698_v29 = vpop.f32.mrb[12].mxu1 }
 0x359   :  { %v3289_v34 = vadd.f32 %v3698_v29, %v4975_v11  ;;  %v3280_v20 = vpop.f32.mrb[13].mxu1 }
 0x35a   :  { %v3281_v17 = vadd.f32 %v4975_v11, %v3280_v20  ;;  %v3699_v62 = vpop.f32.mrb[14].mxu1 }
 0x35b   :  { %v3292_v9 = vadd.f32 %v3699_v62, %v4975_v11  ;;  %v3283_v38 = vpop.f32.mrb[15].mxu1  ;;  %v3309_v56 = vmax.f32 %v3289_v34, 0.0 }
 0x35c   :  { %v3284_v36 = vadd.f32 %v4975_v11, %v3283_v38  ;;  %v3307_v32 = vmax.f32 %v3281_v17, 0.0 }
 0x35d   :  { %v3310_v8 = vmax.f32 %v3292_v9, 0.0 }
 0x35e   :  { %v3308_v49 = vmax.f32 %v3284_v36, 0.0 }
 0x35f   :  { %v3619_v26 = vpack.c.bf16 %v3310_v8, %v3309_v56 }
 0x360   :  { %v3614_v28 = vpack.c.bf16 %v3308_v49, %v3307_v32 }
 0x361   :  { %3627 = vst [vmem:[%s5028_s5 + $0x38] sm:$0xff] %v3619_v26  }
 0x362   :  { %3626 = vst [vmem:[%s5028_s5 + $0x30] sm:$0xff] %v3614_v28  }

// kernel: foldnet_encoder_forward.8
= control target key start
LH: loop header
LB: loop body
LE: loop exit
PB: predicated region body
PF: predicated region fallthrough
CT: control target
= control target key end

     0   :  { %s3102_s18 = smov 0   ;;  %s3104_s19 = smov 0   ;;  %s3912_s0 = inlined_call_operand.vmem [shape: bf16[2,64,16,128], index: 0, kind: input, shape index: {}]   ;;  %s3913_s1 = inlined_call_operand.vmem [shape: bf16[128,128], index: 1, kind: input, shape index: {}]   ;;  %s3914_s2 = inlined_call_operand.vmem [shape: f32[1,128], index: 2, kind: input, shape index: {}]   ;;  %s3915_s3 = inlined_call_operand.vmem [shape: bf16[128,1024], index: 3, kind: input, shape index: {}]   ;;  %s3916_s4 = inlined_call_operand.vmem [shape: f32[1,1024], index: 4, kind: input, shape index: {}]   ;;  %s3917_s5 = inlined_call_operand.vmem [shape: f32[2,1,1024], index: 5, kind: output, shape index: {}]  }
   0x1   :  { %s3106_s20 = smov 0  }
   0x2 LB: > { %s34_s21 = sadd.s32 1, %s3064_s19  ;;  %p2751_p0 = scmp.ge.s32.totalorder %s3068_s20, 1  ;;  %s3068_s20 = sphi %s3106_s20, %s15_s20   ;;  %s3064_s19 = sphi %s3104_s19, %s3919_s19   ;;  %s3060_s18 = sphi %s3102_s18, %s3918_s18  }
   0x3   : > { %p36_p1 = scmp.ge.s32.totalorder %s34_s21, 2  ;;  %p220_p2 = scmp.lt.s32.totalorder %s3068_s20, 3 }
   0x5   : > { %s3921_s21 = smov (%p36_p1, %s34_s21), 0  ;;  %p221_p3 = pnand %p2751_p0, %p220_p2 }
   0x6   : > { %v2974_v0 = vld [vmem:[%s3913_s1] sm:$0xff] (!%p221_p3)   ;;  %p259_p4 = scmp.lt.s32.totalorder (!%p221_p3), %s3060_s18, 1  ;;  %v2975_v1 = vld [vmem:[%s3913_s1 + $0x8] sm:$0xff] (!%p221_p3)   ;;  %v2976_v2 = vld [vmem:[%s3913_s1 + $0x10] sm:$0xff] (!%p221_p3)   ;;  %vm1587_vm0 = vcmask (!%p221_p3), 1041409   ;;  %vm1589_vm1 = vcmask (!%p221_p3), 1042434  }
   0x7   : > { %224 = sbr.rel (%p221_p3) target bundleno = 731 (0x2db), region = 40  ;;  %2907 = vmatprep.subr.bf16.mxu0 (!%p221_p3), %v2974_v0  ;;  %v2977_v3 = vld [vmem:[%s3913_s1 + $0x18] sm:$0xff] (!%p221_p3)   ;;  %v2978_v4 = vld [vmem:[%s3913_s1 + $0x20] sm:$0xff] (!%p221_p3)   ;;  %v2979_v5 = vld [vmem:[%s3913_s1 + $0x28] sm:$0xff] (!%p221_p3)   ;;  %vm1591_vm2 = vcmask (!%p221_p3), 1043459   ;;  %vm1593_vm3 = vcmask (!%p221_p3), 1044484  }
   0x8   : > { %2908 = vmatpush3.bf16.msra.mxu0 (!%p221_p3), %v2974_v0  ;;  %v2980_v6 = vld [vmem:[%s3913_s1 + $0x30] sm:$0xff] (!%p221_p3)   ;;  %v2981_v29 = vld [vmem:[%s3913_s1 + $0x38] sm:$0xff] (!%p221_p3)   ;;  %vm1595_vm4 = vcmask (!%p221_p3), 1045509   ;;  %vm1597_vm5 = vcmask (!%p221_p3), 1046534   ;;  %vm1599_vm6 = vcmask (!%p221_p3), 1047559  }
   0x9   : > { %2909 = vmatprep.subr.bf16.mxu0 (!%p221_p3), %v2975_v1 }
   0xc   : > { %2910 = vmatpush3.bf16.msra.mxu0 (!%p221_p3), %v2975_v1 }
   0xd   : > { %2911 = vmatprep.subr.bf16.mxu0 (!%p221_p3), %v2976_v2 }
   0xe   : > { %s3923_s18 = smov (!%p259_p4, %s3060_s18), 1 }
   0xf   : > { %s2894_s28 = sshll.u32 %s3923_s18, 9  ;;  %s2754_s27 = sshll.u32 %s3923_s18, 3 }
  0x10   : > { %s3138_s8 = scalar_lea.vmem %s3912_s0, %s2894_s28  ;;  %2912 = vmatpush3.bf16.msra.mxu0 %v2976_v2  ;;  %s277_s30 = scalar_lea.vmem %s3917_s5, %s2754_s27 }
  0x11   : > { %2913 = vmatprep.subr.bf16.mxu0 %v2977_v3  ;;  %v2982_v7 = vld [vmem:[%s3138_s8] sm:$0xff]   ;;  %v2983_v8 = vld [vmem:[%s3138_s8 + $0x8] sm:$0xff]   ;;  %v2984_v9 = vld [vmem:[%s3138_s8 + $0x10] sm:$0xff]  }
  0x12   : > { %v2985_v10 = vld [vmem:[%s3138_s8 + $0x18] sm:$0xff]   ;;  %v2986_v11 = vld [vmem:[%s3138_s8 + $0x20] sm:$0xff]   ;;  %v2987_v12 = vld [vmem:[%s3138_s8 + $0x28] sm:$0xff]   ;;  %v796_v14 = vunpack.i.l.bf16 %v2982_v7  ;;  %v797_v15 = vunpack.i.h.bf16 %v2982_v7  ;;  %v806_v16 = vunpack.i.l.bf16 %v2983_v8  ;;  %v807_v17 = vunpack.i.h.bf16 %v2983_v8 }
  0x13   : > { %v2988_v13 = vld [vmem:[%s3138_s8 + $0x30] sm:$0xff]   ;;  %v816_v18 = vunpack.i.l.bf16 %v2984_v9  ;;  %v817_v19 = vunpack.i.h.bf16 %v2984_v9  ;;  %v2989_v20 = vld [vmem:[%s3138_s8 + $0x38] sm:$0xff]   ;;  %v826_v22 = vunpack.i.l.bf16 %v2985_v10  ;;  %v827_v23 = vunpack.i.h.bf16 %v2985_v10  ;;  %v2990_v62 = vld [vmem:[%s3138_s8 + $0x40] sm:$0xff]  }
  0x14   : > { %2914 = vmatpush3.bf16.msra.mxu0 %v2977_v3  ;;  %v798_v21 = vmax.f32 %v796_v14, %v797_v15  ;;  %v836_v24 = vunpack.i.l.bf16 %v2986_v11  ;;  %v808_v25 = vmax.f32 %v806_v16, %v807_v17  ;;  %v837_v27 = vunpack.i.h.bf16 %v2986_v11  ;;  %v2991_v3 = vld [vmem:[%s3138_s8 + $0x48] sm:$0xff]   ;;  %v2992_v8 = vld [vmem:[%s3138_s8 + $0x50] sm:$0xff]  }
  0x15   : > { %2915 = vmatprep.subr.bf16.mxu0 %v2978_v4  ;;  %v818_v26 = vmax.f32 %v816_v18, %v817_v19  ;;  %v846_v28 = vunpack.i.l.bf16 %v2987_v12  ;;  %v828_v31 = vmax.f32 %v826_v22, %v827_v23  ;;  %v847_v32 = vunpack.i.h.bf16 %v2987_v12  ;;  %v2994_v18 = vld [vmem:[%s3138_s8 + $0x60] sm:$0xff]   ;;  %v2995_v23 = vld [vmem:[%s3138_s8 + $0x68] sm:$0xff]  }
  0x16   : > { %v799_v30 = vrot.slane %v798_v21, 4  ;;  %v856_v33 = vunpack.i.l.bf16 %v2988_v13  ;;  %v809_v34 = vrot.slane %v808_v25, 4  ;;  %v838_v36 = vmax.f32 %v836_v24, %v837_v27 }
  0x17   : > { %v819_v35 = vrot.slane %v818_v26, 4  ;;  %v857_v37 = vunpack.i.h.bf16 %v2988_v13  ;;  %v829_v39 = vrot.slane %v828_v31, 4  ;;  %v848_v40 = vmax.f32 %v846_v28, %v847_v32  ;;  %v2993_v13 = vld [vmem:[%s3138_s8 + $0x58] sm:$0xff]  }
  0x18   : > { %2916 = vmatpush3.bf16.msra.mxu0 %v2978_v4  ;;  %v800_v38 = vmax.f32 %v798_v21, %v799_v30  ;;  %v866_v41 = vunpack.i.l.bf16 %v2989_v20  ;;  %v810_v42 = vmax.f32 %v808_v25, %v809_v34  ;;  %v839_v44 = vrot.slane %v838_v36, 4 }
  0x19   : > { %2917 = vmatprep.subr.bf16.mxu0 %v2979_v5  ;;  %v820_v43 = vmax.f32 %v818_v26, %v819_v35  ;;  %v858_v45 = vmax.f32 %v856_v33, %v857_v37  ;;  %v830_v47 = vmax.f32 %v828_v31, %v829_v39  ;;  %v849_v48 = vrot.slane %v848_v40, 4 }
  0x1a   : > { %v801_v46 = vrot.slane %v800_v38, 2  ;;  %v867_v49 = vunpack.i.h.bf16 %v2989_v20  ;;  %v811_v50 = vrot.slane %v810_v42, 2  ;;  %v840_v52 = vmax.f32 %v838_v36, %v839_v44 }
  0x1b   : > { %v821_v51 = vrot.slane %v820_v43, 2  ;;  %v859_v53 = vrot.slane %v858_v45, 4  ;;  %v831_v55 = vrot.slane %v830_v47, 2  ;;  %v850_v56 = vmax.f32 %v848_v40, %v849_v48  ;;  %v2996_v40 = vld [vmem:[%s3138_s8 + $0x70] sm:$0xff]  }
  0x1c   : > { %2918 = vmatpush3.bf16.msra.mxu0 %v2979_v5  ;;  %v802_v54 = vmax.f32 %v800_v38, %v801_v46  ;;  %v868_v57 = vmax.f32 %v866_v41, %v867_v49  ;;  %v812_v58 = vmax.f32 %v810_v42, %v811_v50  ;;  %v841_v60 = vrot.slane %v840_v52, 2  ;;  %v2997_v49 = vld [vmem:[%s3138_s8 + $0x78] sm:$0xff]  }
  0x1d   : > { %2919 = vmatprep.subr.bf16.mxu0 %v2980_v6  ;;  %v822_v59 = vmax.f32 %v820_v43, %v821_v51  ;;  %v860_v61 = vmax.f32 %v858_v45, %v859_v53  ;;  %v832_v0 = vmax.f32 %v830_v47, %v831_v55  ;;  %v851_v1 = vrot.slane %v850_v56, 2 }
  0x1e   : > { %v803_v63 = vrot.slane %v802_v54, 1  ;;  %v869_v2 = vrot.slane %v868_v57, 4  ;;  %v813_v4 = vrot.slane %v812_v58, 1  ;;  %v876_v31 = vunpack.i.l.bf16 %v2990_v62 }
  0x1f   : > { %v823_v5 = vrot.slane %v822_v59, 1  ;;  %v861_v7 = vrot.slane %v860_v61, 2  ;;  %v833_v10 = vrot.slane %v832_v0, 1  ;;  %v852_v11 = vmax.f32 %v850_v56, %v851_v1 }
  0x20   : > { %2920 = vmatpush3.bf16.msra.mxu0 %v2980_v6  ;;  %v842_v6 = vmax.f32 %v840_v52, %v841_v60  ;;  %v3163_v9 = vmax.f32 %v802_v54, %v803_v63  ;;  %v870_v12 = vmax.f32 %v868_v57, %v869_v2  ;;  %v3166_v14 = vmax.f32 %v812_v58, %v813_v4 }
  0x21   : > { %2921 = vmatprep.subr.bf16.mxu0 %v2981_v29  ;;  %v3168_v15 = vmax.f32 %v822_v59, %v823_v5  ;;  %v862_v17 = vmax.f32 %v860_v61, %v861_v7  ;;  %v3173_v20 = vmax.f32 %v832_v0, %v833_v10  ;;  %v853_v21 = vrot.slane %v852_v11, 1 }
  0x22   : > { %v843_v16 = vrot.slane %v842_v6, 1  ;;  %v805_v19 = vpack.i.bf16 %v3163_v9, %v3163_v9  ;;  %v871_v22 = vrot.slane %v870_v12, 2  ;;  %v815_v24 = vpack.i.bf16 %v3166_v14, %v3166_v14 }
  0x23   : > { %v825_v25 = vpack.i.bf16 %v3168_v15, %v3168_v15  ;;  %v863_v27 = vrot.slane %v862_v17, 1  ;;  %v835_v28 = vpack.i.bf16 %v3173_v20, %v3173_v20  ;;  %v877_v34 = vunpack.i.h.bf16 %v2990_v62 }
  0x24   : > { %2922 = vmatpush3.bf16.msra.mxu0 %v2981_v29  ;;  %v3180_v26 = vmax.f32 %v842_v6, %v843_v16  ;;  %v3184_v29 = vmax.f32 %v852_v11, %v853_v21  ;;  %v872_v30 = vmax.f32 %v870_v12, %v871_v22  ;;  %v886_v35 = vunpack.i.l.bf16 %v2991_v3 }
  0x25   : > { %v3188_v33 = vmax.f32 %v862_v17, %v863_v27  ;;  %v887_v38 = vunpack.i.h.bf16 %v2991_v3  ;;  %v896_v39 = vunpack.i.l.bf16 %v2992_v8  ;;  %v878_v42 = vmax.f32 %v876_v31, %v877_v34 }
  0x26   : > { %v845_v32 = vpack.i.bf16 %v3180_v26, %v3180_v26  ;;  %v855_v36 = vpack.i.bf16 %v3184_v29, %v3184_v29  ;;  %v873_v37 = vrot.slane %v872_v30, 1  ;;  %v897_v43 = vunpack.i.h.bf16 %v2992_v8  ;;  %v3000_v29 = vld [vmem:[%s3138_s8 + $0x90] sm:$0xff]  }
  0x27   : > { %v865_v41 = vpack.i.bf16 %v3188_v33, %v3188_v33  ;;  %v906_v44 = vunpack.i.l.bf16 %v2993_v13  ;;  %v888_v46 = vmax.f32 %v886_v35, %v887_v38  ;;  %v907_v47 = vunpack.i.h.bf16 %v2993_v13 }
  0x28   : > { %v3195_v45 = vmax.f32 %v872_v30, %v873_v37  ;;  %v916_v48 = vunpack.i.l.bf16 %v2994_v18  ;;  %v879_v50 = vrot.slane %v878_v42, 4  ;;  %v898_v51 = vmax.f32 %v896_v39, %v897_v43 }
  0x29   : > { %v917_v52 = vunpack.i.h.bf16 %v2994_v18  ;;  %v926_v53 = vunpack.i.l.bf16 %v2995_v23  ;;  %v889_v55 = vrot.slane %v888_v46, 4  ;;  %v908_v56 = vmax.f32 %v906_v44, %v907_v47 }
  0x2a   : > { %v875_v54 = vpack.i.bf16 %v3195_v45, %v3195_v45  ;;  %v927_v57 = vunpack.i.h.bf16 %v2995_v23  ;;  %v880_v58 = vmax.f32 %v878_v42, %v879_v50  ;;  %v899_v59 = vrot.slane %v898_v51, 4 }
  0x2b   : > { %v918_v60 = vmax.f32 %v916_v48, %v917_v52  ;;  %v936_v61 = vunpack.i.l.bf16 %v2996_v40  ;;  %v890_v62 = vmax.f32 %v888_v46, %v889_v55  ;;  %v909_v63 = vrot.slane %v908_v56, 4 }
  0x2c   : > { %v928_v0 = vmax.f32 %v926_v53, %v927_v57  ;;  %v937_v1 = vunpack.i.h.bf16 %v2996_v40  ;;  %v881_v2 = vrot.slane %v880_v58, 2  ;;  %v900_v3 = vmax.f32 %v898_v51, %v899_v59 }
  0x2d   : > { %v919_v4 = vrot.slane %v918_v60, 4  ;;  %v946_v5 = vunpack.i.l.bf16 %v2997_v49  ;;  %v891_v6 = vrot.slane %v890_v62, 2  ;;  %v910_v7 = vmax.f32 %v908_v56, %v909_v63 }
  0x2e   : > { %v929_v8 = vrot.slane %v928_v0, 4  ;;  %v938_v10 = vmax.f32 %v936_v61, %v937_v1  ;;  %v882_v11 = vmax.f32 %v880_v58, %v881_v2  ;;  %v901_v12 = vrot.slane %v900_v3, 2 }
  0x2f   : > { %v920_v13 = vmax.f32 %v918_v60, %v919_v4  ;;  %v947_v16 = vunpack.i.h.bf16 %v2997_v49  ;;  %v892_v17 = vmax.f32 %v890_v62, %v891_v6  ;;  %v911_v18 = vrot.slane %v910_v7, 2  ;;  %v2998_v6 = vld [vmem:[%s3138_s8 + $0x80] sm:$0xff]  }
  0x30   : > { %v930_v21 = vmax.f32 %v928_v0, %v929_v8  ;;  %v939_v22 = vrot.slane %v938_v10, 4  ;;  %v883_v23 = vrot.slane %v882_v11, 1  ;;  %v902_v27 = vmax.f32 %v900_v3, %v901_v12 }
  0x31   : > { %v921_v30 = vrot.slane %v920_v13, 2  ;;  %v948_v31 = vmax.f32 %v946_v5, %v947_v16  ;;  %v893_v34 = vrot.slane %v892_v17, 1  ;;  %v912_v35 = vmax.f32 %v910_v7, %v911_v18 }
  0x32   : > { %v931_v37 = vrot.slane %v930_v21, 2  ;;  %v940_v38 = vmax.f32 %v938_v10, %v939_v22  ;;  %v884_v39 = vmax.f32 %v882_v11, %v883_v23  ;;  %v903_v40 = vrot.slane %v902_v27, 1  ;;  %v3002_v22 = vld [vmem:[%s3138_s8 + $0xa0] sm:$0xff]  }
  0x33   : > { %v922_v42 = vmax.f32 %v920_v13, %v921_v30  ;;  %v949_v43 = vrot.slane %v948_v31, 4  ;;  %v894_v44 = vmax.f32 %v892_v17, %v893_v34  ;;  %v913_v46 = vrot.slane %v912_v35, 1 }
  0x34   : > { %v932_v47 = vmax.f32 %v930_v21, %v931_v37  ;;  %v941_v48 = vrot.slane %v940_v38, 2  ;;  %v885_v49 = vpack.i.bf16 %v884_v39, %v884_v39  ;;  %v904_v50 = vmax.f32 %v902_v27, %v903_v40 }
  0x35   : > { %v923_v51 = vrot.slane %v922_v42, 1  ;;  %v950_v52 = vmax.f32 %v948_v31, %v949_v43  ;;  %v895_v53 = vpack.i.bf16 %v894_v44, %v894_v44  ;;  %v914_v55 = vmax.f32 %v912_v35, %v913_v46  ;;  %v3003_v31 = vld [vmem:[%s3138_s8 + $0xa8] sm:$0xff]  }
  0x36   : > { %v933_v56 = vrot.slane %v932_v47, 1  ;;  %v942_v57 = vmax.f32 %v940_v38, %v941_v48  ;;  %v905_v58 = vpack.i.bf16 %v904_v50, %v904_v50  ;;  %v1523_v61 = vunpack.c.l.b16 %v805_v19 }
  0x37   : > { %v924_v59 = vmax.f32 %v922_v42, %v923_v51  ;;  %v951_v60 = vrot.slane %v950_v52, 2  ;;  %v915_v62 = vpack.i.bf16 %v914_v55, %v914_v55  ;;  %v1524_v1 = vunpack.c.l.b16 %v815_v24 }
  0x38   : > { %v934_v63 = vmax.f32 %v932_v47, %v933_v56  ;;  %v943_v0 = vrot.slane %v942_v57, 1  ;;  %v1525_v4 = vunpack.c.l.b16 %v825_v25  ;;  %v1526_v9 = vunpack.c.l.b16 %v835_v28  ;;  %v2999_v28 = vld [vmem:[%s3138_s8 + $0x88] sm:$0xff]  }
  0x39   : > { %v925_v2 = vpack.i.bf16 %v924_v59, %v924_v59  ;;  %v952_v3 = vmax.f32 %v950_v52, %v951_v60  ;;  %v1527_v14 = vunpack.c.l.b16 %v845_v32  ;;  %v1528_v24 = vunpack.c.l.b16 %v855_v36 }
  0x3a   : > { %v935_v19 = vpack.i.bf16 %v934_v63, %v934_v63  ;;  %v944_v5 = vmax.f32 %v942_v57, %v943_v0  ;;  %v1529_v15 = vunpack.c.l.b16 %v865_v41  ;;  %v1530_v20 = vunpack.c.l.b16 %v875_v54  ;;  %v3001_v54 = vld [vmem:[%s3138_s8 + $0x98] sm:$0xff]  }
  0x3b   : > { %v953_v7 = vrot.slane %v952_v3, 1  ;;  %v1531_v25 = vunpack.c.l.b16 %v885_v49  ;;  %v1532_v26 = vunpack.c.l.b16 %v895_v53  ;;  %v1533_v32 = vunpack.c.l.b16 %v905_v58  ;;  %v3004_v49 = vld [vmem:[%s3138_s8 + $0xb0] sm:$0xff]   ;;  %v3005_v53 = vld [vmem:[%s3138_s8 + $0xb8] sm:$0xff]  }
  0x3c   : > { %v945_v8 = vpack.i.bf16 %v944_v5, %v944_v5  ;;  %v1534_v10 = vunpack.c.l.b16 %v915_v62  ;;  %v1535_v11 = vunpack.c.l.b16 %v925_v2  ;;  %v1536_v12 = vunpack.c.l.b16 %v935_v19 }
  0x3d   : > { %v954_v36 = vmax.f32 %v952_v3, %v953_v7  ;;  %v1588_v33 = vsel %vm1587_vm0, %v1524_v1, %v1523_v61  ;;  %v1601_v45 = vsel %vm1587_vm0, %v1532_v26, %v1531_v25  ;;  %v956_v16 = vunpack.i.l.bf16 %v2998_v6 }
  0x3e   : > { %v1537_v41 = vunpack.c.l.b16 %v945_v8  ;;  %v1590_v13 = vsel %vm1589_vm1, %v1525_v4, %v1588_v33  ;;  %v1602_v21 = vsel %vm1589_vm1, %v1533_v32, %v1601_v45  ;;  %v957_v23 = vunpack.i.h.bf16 %v2998_v6 }
  0x3f   : > { %v955_v17 = vpack.i.bf16 %v954_v36, %v954_v36  ;;  %v1592_v18 = vsel %vm1591_vm2, %v1526_v9, %v1590_v13  ;;  %v1603_v30 = vsel %vm1591_vm2, %v1534_v10, %v1602_v21  ;;  %v966_v34 = vunpack.i.l.bf16 %v2999_v28  ;;  %v3006_v13 = vld [vmem:[%s3138_s8 + $0xc0] sm:$0xff]  }
  0x40   : > { %v1594_v27 = vsel %vm1593_vm3, %v1527_v14, %v1592_v18  ;;  %v967_v35 = vunpack.i.h.bf16 %v2999_v28  ;;  %v1604_v39 = vsel %vm1593_vm3, %v1535_v11, %v1603_v30  ;;  %v958_v40 = vmax.f32 %v956_v16, %v957_v23 }
  0x41   : > { %v1538_v37 = vunpack.c.l.b16 %v955_v17  ;;  %v1596_v38 = vsel %vm1595_vm4, %v1528_v24, %v1594_v27  ;;  %v1605_v43 = vsel %vm1595_vm4, %v1536_v12, %v1604_v39  ;;  %v976_v46 = vunpack.i.l.bf16 %v3000_v29  ;;  %v3007_v27 = vld [vmem:[%s3138_s8 + $0xc8] sm:$0xff]  }
  0x42   : > { %v1598_v42 = vsel %vm1597_vm5, %v1529_v15, %v1596_v38  ;;  %v968_v44 = vmax.f32 %v966_v34, %v967_v35  ;;  %v1606_v48 = vsel %vm1597_vm5, %v1537_v41, %v1605_v43  ;;  %v959_v50 = vrot.slane %v958_v40, 4 }
  0x43   : > { %v1600_v47 = vsel %vm1599_vm6, %v1530_v20, %v1598_v42  ;;  %v977_v51 = vunpack.i.h.bf16 %v3000_v29  ;;  %v1607_v52 = vsel %vm1599_vm6, %v1538_v37, %v1606_v48  ;;  %v986_v56 = vunpack.i.l.bf16 %v3001_v54  ;;  %v3008_v42 = vld [vmem:[%s3138_s8 + $0xd0] sm:$0xff]  }
  0x44   : > { %v969_v55 = vrot.slane %v968_v44, 4  ;;  %v987_v57 = vunpack.i.h.bf16 %v3001_v54  ;;  %v1650_v58 = vpack.c.b16 %v1607_v52, %v1600_v47  ;;  %v960_v59 = vmax.f32 %v958_v40, %v959_v50  ;;  %v3009_v52 = vld [vmem:[%s3138_s8 + $0xd8] sm:$0xff]  }
  0x45   : > { %v978_v60 = vmax.f32 %v976_v46, %v977_v51  ;;  %v996_v61 = vunpack.i.l.bf16 %v3002_v22  ;;  %v997_v0 = vunpack.i.h.bf16 %v3002_v22  ;;  %v1006_v1 = vunpack.i.l.bf16 %v3003_v31 }
  0x46   : > { %v970_v62 = vmax.f32 %v968_v44, %v969_v55  ;;  %v988_v63 = vmax.f32 %v986_v56, %v987_v57  ;;  %2923 = vmatprep.mubr.bf16.mxu0 %v1650_v58  ;;  %v961_v2 = vrot.slane %v960_v59, 2  ;;  %v1007_v4 = vunpack.i.h.bf16 %v3003_v31 }
  0x47   : > { %v979_v3 = vrot.slane %v978_v60, 4  ;;  %v1016_v9 = vunpack.i.l.bf16 %v3004_v49  ;;  %v998_v14 = vmax.f32 %v996_v61, %v997_v0  ;;  %v1017_v24 = vunpack.i.h.bf16 %v3004_v49 }
  0x48   : > { %v971_v19 = vrot.slane %v970_v62, 2  ;;  %v989_v5 = vrot.slane %v988_v63, 4  ;;  %v962_v6 = vmax.f32 %v960_v59, %v961_v2  ;;  %v1008_v15 = vmax.f32 %v1006_v1, %v1007_v4 }
  0x49   : > { %v980_v7 = vmax.f32 %v978_v60, %v979_v3  ;;  %v1026_v20 = vunpack.i.l.bf16 %v3005_v53  ;;  %v999_v8 = vrot.slane %v998_v14, 4  ;;  %v1018_v26 = vmax.f32 %v1016_v9, %v1017_v24  ;;  %v3011_v3 = vld [vmem:[%s3138_s8 + $0xe8] sm:$0xff]  }
  0x4a   : > { %v972_v25 = vmax.f32 %v970_v62, %v971_v19  ;;  %v990_v28 = vmax.f32 %v988_v63, %v989_v5  ;;  %v963_v32 = vrot.slane %v962_v6, 1  ;;  %v1009_v29 = vrot.slane %v1008_v15, 4  ;;  %v3010_v62 = vld [vmem:[%s3138_s8 + $0xe0] sm:$0xff]  }
  0x4b   : > { %v981_v10 = vrot.slane %v980_v7, 2  ;;  %v1027_v36 = vunpack.i.h.bf16 %v3005_v53  ;;  %v1000_v33 = vmax.f32 %v998_v14, %v999_v8  ;;  %v1019_v41 = vrot.slane %v1018_v26, 4 }
  0x4c   : > { %v973_v11 = vrot.slane %v972_v25, 1  ;;  %v991_v12 = vrot.slane %v990_v28, 2  ;;  %v3247_v45 = vmax.f32 %v962_v6, %v963_v32  ;;  %v1010_v16 = vmax.f32 %v1008_v15, %v1009_v29  ;;  %v3012_v15 = vld [vmem:[%s3138_s8 + $0xf0] sm:$0xff]  }
  0x4d   : > { %v982_v54 = vmax.f32 %v980_v7, %v981_v10  ;;  %v1028_v17 = vmax.f32 %v1026_v20, %v1027_v36  ;;  %v1001_v22 = vrot.slane %v1000_v33, 2  ;;  %v1020_v23 = vmax.f32 %v1018_v26, %v1019_v41  ;;  %v3013_v36 = vld [vmem:[%s3138_s8 + $0xf8] sm:$0xff]  }
  0x4e   : > { %v3249_v18 = vmax.f32 %v972_v25, %v973_v11  ;;  %v992_v21 = vmax.f32 %v990_v28, %v991_v12  ;;  %v965_v30 = vpack.i.bf16 %v3247_v45, %v3247_v45  ;;  %v1011_v34 = vrot.slane %v1010_v16, 2 }
  0x4f   : > { %v983_v31 = vrot.slane %v982_v54, 1  ;;  %v1029_v35 = vrot.slane %v1028_v17, 4  ;;  %v1002_v39 = vmax.f32 %v1000_v33, %v1001_v22  ;;  %v1021_v40 = vrot.slane %v1020_v23, 2 }
  0x50   : > { %v975_v37 = vpack.i.bf16 %v3249_v18, %v3249_v18  ;;  %v993_v38 = vrot.slane %v992_v21, 1  ;;  %v1012_v44 = vmax.f32 %v1010_v16, %v1011_v34  ;;  %v1036_v47 = vunpack.i.l.bf16 %v3006_v13 }
  0x51   : > { %v3257_v43 = vmax.f32 %v982_v54, %v983_v31  ;;  %v1030_v46 = vmax.f32 %v1028_v17, %v1029_v35  ;;  %v1003_v49 = vrot.slane %v1002_v39, 1  ;;  %v1022_v50 = vmax.f32 %v1020_v23, %v1021_v40 }
  0x52   : > { %v3259_v48 = vmax.f32 %v992_v21, %v993_v38  ;;  %v1037_v51 = vunpack.i.h.bf16 %v3006_v13  ;;  %v1013_v55 = vrot.slane %v1012_v44, 1  ;;  %v1046_v57 = vunpack.i.l.bf16 %v3007_v27 }
  0x53   : > { %v985_v53 = vpack.i.bf16 %v3257_v43, %v3257_v43  ;;  %v1031_v56 = vrot.slane %v1030_v46, 2  ;;  %v3266_v59 = vmax.f32 %v1002_v39, %v1003_v49  ;;  %v1023_v60 = vrot.slane %v1022_v50, 1 }
  0x54   : > { %v995_v58 = vpack.i.bf16 %v3259_v48, %v3259_v48  ;;  %v1038_v61 = vmax.f32 %v1036_v47, %v1037_v51  ;;  %v3269_v63 = vmax.f32 %v1012_v44, %v1013_v55  ;;  %v1047_v1 = vunpack.i.h.bf16 %v3007_v27 }
  0x55   : > { %v1032_v0 = vmax.f32 %v1030_v46, %v1031_v56  ;;  %v1056_v2 = vunpack.i.l.bf16 %v3008_v42  ;;  %v1005_v4 = vpack.i.bf16 %v3266_v59, %v3266_v59  ;;  %v3274_v9 = vmax.f32 %v1022_v50, %v1023_v60 }
  0x56   : > { %v1039_v19 = vrot.slane %v1038_v61, 4  ;;  %v1057_v5 = vunpack.i.h.bf16 %v3008_v42  ;;  %v1015_v14 = vpack.i.bf16 %v3269_v63, %v3269_v63  ;;  %v1048_v6 = vmax.f32 %v1046_v57, %v1047_v1 }
  0x57   : > { %v1033_v24 = vrot.slane %v1032_v0, 1  ;;  %v1066_v7 = vunpack.i.l.bf16 %v3009_v52  ;;  %v1025_v20 = vpack.i.bf16 %v3274_v9, %v3274_v9  ;;  %v1067_v8 = vunpack.i.h.bf16 %v3009_v52 }
  0x58   : > { %v1040_v25 = vmax.f32 %v1038_v61, %v1039_v19  ;;  %v1058_v28 = vmax.f32 %v1056_v2, %v1057_v5  ;;  %v1049_v32 = vrot.slane %v1048_v6, 4  ;;  %v1076_v10 = vunpack.i.l.bf16 %v3010_v62 }
  0x59   : > { %v3281_v26 = vmax.f32 %v1032_v0, %v1033_v24  ;;  %v1077_v29 = vunpack.i.h.bf16 %v3010_v62  ;;  %v1068_v33 = vmax.f32 %v1066_v7, %v1067_v8  ;;  %v1086_v41 = vunpack.i.l.bf16 %v3011_v3 }
  0x5a   : > { %v1041_v11 = vrot.slane %v1040_v25, 2  ;;  %v1059_v12 = vrot.slane %v1058_v28, 4  ;;  %v1050_v54 = vmax.f32 %v1048_v6, %v1049_v32  ;;  %v1087_v17 = vunpack.i.h.bf16 %v3011_v3 }
  0x5b   : > { %v1035_v13 = vpack.i.bf16 %v3281_v26, %v3281_v26  ;;  %v1078_v16 = vmax.f32 %v1076_v10, %v1077_v29  ;;  %v1069_v23 = vrot.slane %v1068_v33, 4  ;;  %v1096_v27 = vunpack.i.l.bf16 %v3012_v15 }
  0x5c   : > { %v1042_v21 = vmax.f32 %v1040_v25, %v1041_v11  ;;  %v1060_v22 = vmax.f32 %v1058_v28, %v1059_v12  ;;  %v1051_v31 = vrot.slane %v1050_v54, 2  ;;  %v1088_v35 = vmax.f32 %v1086_v41, %v1087_v17 }
  0x5d   : > { %v1079_v34 = vrot.slane %v1078_v16, 4  ;;  %v1097_v38 = vunpack.i.h.bf16 %v3012_v15  ;;  %v1070_v42 = vmax.f32 %v1068_v33, %v1069_v23  ;;  %v1106_v44 = vunpack.i.l.bf16 %v3013_v36 }
  0x5e   : > { %v1043_v39 = vrot.slane %v1042_v21, 1  ;;  %v1061_v40 = vrot.slane %v1060_v22, 2  ;;  %v1052_v46 = vmax.f32 %v1050_v54, %v1051_v31  ;;  %v1089_v49 = vrot.slane %v1088_v35, 4 }
  0x5f   : > { %v1080_v47 = vmax.f32 %v1078_v16, %v1079_v34  ;;  %v1098_v50 = vmax.f32 %v1096_v27, %v1097_v38  ;;  %v1071_v55 = vrot.slane %v1070_v42, 2  ;;  %v1107_v56 = vunpack.i.h.bf16 %v3013_v36 }
  0x60   : > { %v1044_v51 = vmax.f32 %v1042_v21, %v1043_v39  ;;  %v1062_v52 = vmax.f32 %v1060_v22, %v1061_v40  ;;  %v1053_v57 = vrot.slane %v1052_v46, 1  ;;  %v1090_v61 = vmax.f32 %v1088_v35, %v1089_v49 }
  0x61   : > { %v1081_v60 = vrot.slane %v1080_v47, 2  ;;  %v1099_v62 = vrot.slane %v1098_v50, 4  ;;  %v1072_v2 = vmax.f32 %v1070_v42, %v1071_v55  ;;  %v1108_v3 = vmax.f32 %v1106_v44, %v1107_v56  ;;  %v3017_v55 = vld [vmem:[%s3138_s8 + $0x118] sm:$0xff]  }
  0x62   : > { %v1045_v0 = vpack.i.bf16 %v1044_v51, %v1044_v51  ;;  %v1063_v1 = vrot.slane %v1062_v52, 1  ;;  %v1054_v19 = vmax.f32 %v1052_v46, %v1053_v57  ;;  %v1091_v24 = vrot.slane %v1090_v61, 2 }
  0x63   : > { %v1082_v5 = vmax.f32 %v1080_v47, %v1081_v60  ;;  %v1100_v6 = vmax.f32 %v1098_v50, %v1099_v62  ;;  %v1073_v15 = vrot.slane %v1072_v2, 1  ;;  %v1109_v25 = vrot.slane %v1108_v3, 4  ;;  %v3016_v47 = vld [vmem:[%s3138_s8 + $0x110] sm:$0xff]   ;;  %v3018_v62 = vld [vmem:[%s3138_s8 + $0x120] sm:$0xff]  }
  0x64   : > { %v1064_v7 = vmax.f32 %v1062_v52, %v1063_v1  ;;  %v1539_v28 = vunpack.c.l.b16 %v965_v30  ;;  %v1055_v8 = vpack.i.bf16 %v1054_v19, %v1054_v19  ;;  %v1092_v32 = vmax.f32 %v1090_v61, %v1091_v24 }
  0x65   : > { %v1083_v26 = vrot.slane %v1082_v5, 1  ;;  %v1101_v10 = vrot.slane %v1100_v6, 2  ;;  %v1074_v36 = vmax.f32 %v1072_v2, %v1073_v15  ;;  %v1110_v11 = vmax.f32 %v1108_v3, %v1109_v25  ;;  %v3020_v25 = vld [vmem:[%s3138_s8 + $0x130] sm:$0xff]  }
  0x66   : > { %v1065_v29 = vpack.i.bf16 %v1064_v7, %v1064_v7  ;;  %v1540_v12 = vunpack.c.l.b16 %v975_v37  ;;  %v1093_v41 = vrot.slane %v1092_v32, 1  ;;  %v1541_v45 = vunpack.c.l.b16 %v985_v53  ;;  %v3019_v7 = vld [vmem:[%s3138_s8 + $0x128] sm:$0xff]  }
  0x67   : > { %v1084_v33 = vmax.f32 %v1082_v5, %v1083_v26  ;;  %v1102_v54 = vmax.f32 %v1100_v6, %v1101_v10  ;;  %v1075_v30 = vpack.i.bf16 %v1074_v36, %v1074_v36  ;;  %v1111_v16 = vrot.slane %v1110_v11, 2 }
  0x68   : > { %v1542_v17 = vunpack.c.l.b16 %v995_v58  ;;  %v1543_v21 = vunpack.c.l.b16 %v1005_v4  ;;  %v1094_v37 = vmax.f32 %v1092_v32, %v1093_v41  ;;  %v1544_v23 = vunpack.c.l.b16 %v1015_v14  ;;  %v3014_v58 = vld [vmem:[%s3138_s8 + $0x100] sm:$0xff]   ;;  %v3015_v14 = vld [vmem:[%s3138_s8 + $0x108] sm:$0xff]  }
  0x69   : > { %v1085_v18 = vpack.i.bf16 %v1084_v33, %v1084_v33  ;;  %v1103_v22 = vrot.slane %v1102_v54, 1  ;;  %v1112_v43 = vmax.f32 %v1110_v11, %v1111_v16  ;;  %v1545_v53 = vunpack.c.l.b16 %v1025_v20  ;;  %v3021_v33 = vld [vmem:[%s3138_s8 + $0x138] sm:$0xff]  }
  0x6a   : > { %v1546_v27 = vunpack.c.l.b16 %v1035_v13  ;;  %v1547_v48 = vunpack.c.l.b16 %v1045_v0  ;;  %v1095_v31 = vpack.i.bf16 %v1094_v37, %v1094_v37  ;;  %v1548_v4 = vunpack.c.l.b16 %v1055_v8 }
  0x6b   : > { %v1104_v59 = vmax.f32 %v1102_v54, %v1103_v22  ;;  %v1549_v34 = vunpack.c.l.b16 %v1065_v29  ;;  %v1113_v35 = vrot.slane %v1112_v43, 1  ;;  %v1550_v38 = vunpack.c.l.b16 %v1075_v30 }
  0x6c   : > { %v1551_v39 = vunpack.c.l.b16 %v1085_v18  ;;  %v1608_v63 = vsel %vm1587_vm0, %v1540_v12, %v1539_v28  ;;  %v1552_v42 = vunpack.c.l.b16 %v1095_v31  ;;  %v1615_v20 = vsel %vm1587_vm0, %v1548_v4, %v1547_v48 }
  0x6d   : > { %v1105_v40 = vpack.i.bf16 %v1104_v59, %v1104_v59  ;;  %v1609_v9 = vsel %vm1589_vm1, %v1541_v45, %v1608_v63  ;;  %v1114_v13 = vmax.f32 %v1112_v43, %v1113_v35  ;;  %v1616_v46 = vsel %vm1589_vm1, %v1549_v34, %v1615_v20 }
  0x6e   : > { %v1610_v44 = vsel %vm1591_vm2, %v1542_v17, %v1609_v9  ;;  %v1116_v49 = vunpack.i.l.bf16 %v3014_v58  ;;  %v1617_v52 = vsel %vm1591_vm2, %v1550_v38, %v1616_v46  ;;  %v1117_v56 = vunpack.i.h.bf16 %v3014_v58  ;;  %v3022_v46 = vld [vmem:[%s3138_s8 + $0x140] sm:$0xff]  }
  0x6f   : > { %v1553_v50 = vunpack.c.l.b16 %v1105_v40  ;;  %v1611_v51 = vsel %vm1593_vm3, %v1543_v21, %v1610_v44  ;;  %v1115_v57 = vpack.i.bf16 %v1114_v13, %v1114_v13  ;;  %v1618_v61 = vsel %vm1593_vm3, %v1551_v39, %v1617_v52 }
  0x70   : > { %v1612_v60 = vsel %vm1595_vm4, %v1544_v23, %v1611_v51  ;;  %v1126_v0 = vunpack.i.l.bf16 %v3015_v14  ;;  %v1619_v2 = vsel %vm1595_vm4, %v1552_v42, %v1618_v61  ;;  %v1118_v3 = vmax.f32 %v1116_v49, %v1117_v56 }
  0x71   : > { %v1613_v1 = vsel %vm1597_vm5, %v1545_v53, %v1612_v60  ;;  %v1127_v19 = vunpack.i.h.bf16 %v3015_v14  ;;  %v1554_v5 = vunpack.c.l.b16 %v1115_v57  ;;  %v1620_v6 = vsel %vm1597_vm5, %v1553_v50, %v1619_v2  ;;  %v3023_v60 = vld [vmem:[%s3138_s8 + $0x148] sm:$0xff]  }
  0x72   : > { %v1614_v24 = vsel %vm1599_vm6, %v1546_v27, %v1613_v1  ;;  %v1136_v15 = vunpack.i.l.bf16 %v3016_v47  ;;  %v1119_v28 = vrot.slane %v1118_v3, 4  ;;  %v1137_v26 = vunpack.i.h.bf16 %v3016_v47 }
  0x73   : > { %v1128_v8 = vmax.f32 %v1126_v0, %v1127_v19  ;;  %v1146_v32 = vunpack.i.l.bf16 %v3017_v55  ;;  %v1621_v10 = vsel %vm1599_vm6, %v1554_v5, %v1620_v6  ;;  %v1147_v29 = vunpack.i.h.bf16 %v3017_v55 }
  0x74   : > { %v1156_v36 = vunpack.i.l.bf16 %v3018_v62  ;;  %v1157_v11 = vunpack.i.h.bf16 %v3018_v62  ;;  %v1651_v12 = vpack.c.b16 %v1621_v10, %v1614_v24  ;;  %v1120_v41 = vmax.f32 %v1118_v3, %v1119_v28  ;;  %v3024_v24 = vld [vmem:[%s3138_s8 + $0x150] sm:$0xff]   ;;  %v3025_v28 = vld [vmem:[%s3138_s8 + $0x158] sm:$0xff]  }
  0x75   : > { %v1129_v54 = vrot.slane %v1128_v8, 4  ;;  %v1138_v45 = vmax.f32 %v1136_v15, %v1137_v26  ;;  %v1148_v30 = vmax.f32 %v1146_v32, %v1147_v29  ;;  %v1166_v17 = vunpack.i.l.bf16 %v3019_v7 }
  0x76   : > { %v1158_v16 = vmax.f32 %v1156_v36, %v1157_v11  ;;  %v1167_v21 = vunpack.i.h.bf16 %v3019_v7  ;;  %2924 = vmatmul.mubr.bf16.vlgmr.msra.gmra.mrb[0].mxu0 %v1651_v12  ;;  %v1121_v18 = vrot.slane %v1120_v41, 2  ;;  %v1176_v23 = vunpack.i.l.bf16 %v3020_v25 }
  0x77   : > { %v1130_v37 = vmax.f32 %v1128_v8, %v1129_v54  ;;  %v1139_v22 = vrot.slane %v1138_v45, 4  ;;  %v1149_v43 = vrot.slane %v1148_v30, 4  ;;  %v1177_v48 = vunpack.i.h.bf16 %v3020_v25 }
  0x78   : > { %v1159_v53 = vrot.slane %v1158_v16, 4  ;;  %v1168_v27 = vmax.f32 %v1166_v17, %v1167_v21  ;;  %v1122_v58 = vmax.f32 %v1120_v41, %v1121_v18  ;;  %v1186_v4 = vunpack.i.l.bf16 %v3021_v33 }
  0x79   : > { %v1131_v31 = vrot.slane %v1130_v37, 2  ;;  %v1140_v59 = vmax.f32 %v1138_v45, %v1139_v22  ;;  %v1150_v34 = vmax.f32 %v1148_v30, %v1149_v43  ;;  %v1178_v39 = vmax.f32 %v1176_v23, %v1177_v48 }
  0x7a   : > { %v1160_v35 = vmax.f32 %v1158_v16, %v1159_v53  ;;  %v1169_v38 = vrot.slane %v1168_v27, 4  ;;  %v1123_v63 = vrot.slane %v1122_v58, 1  ;;  %v1187_v42 = vunpack.i.h.bf16 %v3021_v33  ;;  %v3026_v33 = vld [vmem:[%s3138_s8 + $0x160] sm:$0xff]  }
  0x7b   : > { %v1132_v14 = vmax.f32 %v1130_v37, %v1131_v31  ;;  %v1141_v40 = vrot.slane %v1140_v59, 2  ;;  %v1151_v9 = vrot.slane %v1150_v34, 2  ;;  %v1179_v44 = vrot.slane %v1178_v39, 4  ;;  %v3027_v37 = vld [vmem:[%s3138_s8 + $0x168] sm:$0xff]  }
  0x7c   : > { %v1161_v20 = vrot.slane %v1160_v35, 2  ;;  %v1170_v13 = vmax.f32 %v1168_v27, %v1169_v38  ;;  %v3330_v47 = vmax.f32 %v1122_v58, %v1123_v63  ;;  %v1188_v51 = vmax.f32 %v1186_v4, %v1187_v42  ;;  %v3029_v42 = vld [vmem:[%s3138_s8 + $0x178] sm:$0xff]  }
  0x7d   : > { %v1133_v49 = vrot.slane %v1132_v14, 1  ;;  %v1142_v50 = vmax.f32 %v1140_v59, %v1141_v40  ;;  %v1152_v52 = vmax.f32 %v1150_v34, %v1151_v9  ;;  %v1180_v57 = vmax.f32 %v1178_v39, %v1179_v44  ;;  %v3028_v59 = vld [vmem:[%s3138_s8 + $0x170] sm:$0xff]  }
  0x7e   : > { %v1162_v55 = vmax.f32 %v1160_v35, %v1161_v20  ;;  %v1171_v56 = vrot.slane %v1170_v13, 2  ;;  %v1125_v61 = vpack.i.bf16 %v3330_v47, %v3330_v47  ;;  %v1189_v1 = vrot.slane %v1188_v51, 4 }
  0x7f   : > { %v3335_v62 = vmax.f32 %v1132_v14, %v1133_v49  ;;  %v1143_v0 = vrot.slane %v1142_v50, 1  ;;  %v1153_v2 = vrot.slane %v1152_v52, 1  ;;  %v1181_v5 = vrot.slane %v1180_v57, 2 }
  0x80   : > { %v1163_v3 = vrot.slane %v1162_v55, 1  ;;  %v1172_v19 = vmax.f32 %v1170_v13, %v1171_v56  ;;  %v1190_v15 = vmax.f32 %v1188_v51, %v1189_v1  ;;  %v1196_v25 = vunpack.i.l.bf16 %v3022_v46 }
  0x81   : > { %v1135_v6 = vpack.i.bf16 %v3335_v62, %v3335_v62  ;;  %v3340_v7 = vmax.f32 %v1142_v50, %v1143_v0  ;;  %v3343_v8 = vmax.f32 %v1152_v52, %v1153_v2  ;;  %v1182_v10 = vmax.f32 %v1180_v57, %v1181_v5 }
  0x82   : > { %v3345_v26 = vmax.f32 %v1162_v55, %v1163_v3  ;;  %v1173_v32 = vrot.slane %v1172_v19, 1  ;;  %v1191_v36 = vrot.slane %v1190_v15, 2  ;;  %v1197_v11 = vunpack.i.h.bf16 %v3022_v46 }
  0x83   : > { %v1145_v29 = vpack.i.bf16 %v3340_v7, %v3340_v7  ;;  %v1206_v12 = vunpack.i.l.bf16 %v3023_v60  ;;  %v1155_v41 = vpack.i.bf16 %v3343_v8, %v3343_v8  ;;  %v1183_v30 = vrot.slane %v1182_v10, 1  ;;  %v3030_v7 = vld [vmem:[%s3138_s8 + $0x180] sm:$0xff]  }
  0x84   : > { %v1165_v54 = vpack.i.bf16 %v3345_v26, %v3345_v26  ;;  %v3354_v45 = vmax.f32 %v1172_v19, %v1173_v32  ;;  %v1192_v16 = vmax.f32 %v1190_v15, %v1191_v36  ;;  %v1198_v17 = vmax.f32 %v1196_v25, %v1197_v11 }
  0x85   : > { %v1207_v21 = vunpack.i.h.bf16 %v3023_v60  ;;  %v1216_v18 = vunpack.i.l.bf16 %v3024_v24  ;;  %v3359_v23 = vmax.f32 %v1182_v10, %v1183_v30  ;;  %v1217_v43 = vunpack.i.h.bf16 %v3024_v24 }
  0x86   : > { %v1175_v22 = vpack.i.bf16 %v3354_v45, %v3354_v45  ;;  %v1226_v53 = vunpack.i.l.bf16 %v3025_v28  ;;  %v1193_v27 = vrot.slane %v1192_v16, 1  ;;  %v1199_v48 = vrot.slane %v1198_v17, 4 }
  0x87   : > { %v1208_v58 = vmax.f32 %v1206_v12, %v1207_v21  ;;  %v1227_v31 = vunpack.i.h.bf16 %v3025_v28  ;;  %v1185_v4 = vpack.i.bf16 %v3359_v23, %v3359_v23  ;;  %v1218_v34 = vmax.f32 %v1216_v18, %v1217_v43 }
  0x88   : > { %v1236_v35 = vunpack.i.l.bf16 %v3026_v33  ;;  %v1237_v38 = vunpack.i.h.bf16 %v3026_v33  ;;  %v3364_v39 = vmax.f32 %v1192_v16, %v1193_v27  ;;  %v1200_v63 = vmax.f32 %v1198_v17, %v1199_v48 }
  0x89   : > { %v1209_v14 = vrot.slane %v1208_v58, 4  ;;  %v1228_v40 = vmax.f32 %v1226_v53, %v1227_v31  ;;  %v1219_v9 = vrot.slane %v1218_v34, 4  ;;  %v1246_v13 = vunpack.i.l.bf16 %v3027_v37 }
  0x8a   : > { %v1238_v20 = vmax.f32 %v1236_v35, %v1237_v38  ;;  %v1247_v44 = vunpack.i.h.bf16 %v3027_v37  ;;  %v1195_v46 = vpack.i.bf16 %v3364_v39, %v3364_v39  ;;  %v1201_v49 = vrot.slane %v1200_v63, 2  ;;  %v3032_v39 = vld [vmem:[%s3138_s8 + $0x190] sm:$0xff]  }
  0x8b   : > { %v1210_v50 = vmax.f32 %v1208_v58, %v1209_v14  ;;  %v1229_v51 = vrot.slane %v1228_v40, 4  ;;  %v1220_v52 = vmax.f32 %v1218_v34, %v1219_v9  ;;  %v1256_v57 = vunpack.i.l.bf16 %v3028_v59 }
  0x8c   : > { %v1239_v55 = vrot.slane %v1238_v20, 4  ;;  %v1248_v56 = vmax.f32 %v1246_v13, %v1247_v44  ;;  %v1202_v60 = vmax.f32 %v1200_v63, %v1201_v49  ;;  %v1257_v2 = vunpack.i.h.bf16 %v3028_v59 }
  0x8d   : > { %v1211_v0 = vrot.slane %v1210_v50, 2  ;;  %v1230_v1 = vmax.f32 %v1228_v40, %v1229_v51  ;;  %v1221_v3 = vrot.slane %v1220_v52, 2  ;;  %v1266_v24 = vunpack.i.l.bf16 %v3029_v42 }
  0x8e   : > { %v1240_v19 = vmax.f32 %v1238_v20, %v1239_v55  ;;  %v1249_v5 = vrot.slane %v1248_v56, 4  ;;  %v1203_v15 = vrot.slane %v1202_v60, 1  ;;  %v1258_v32 = vmax.f32 %v1256_v57, %v1257_v2  ;;  %v3031_v2 = vld [vmem:[%s3138_s8 + $0x188] sm:$0xff]  }
  0x8f   : > { %v1212_v25 = vmax.f32 %v1210_v50, %v1211_v0  ;;  %v1231_v28 = vrot.slane %v1230_v1, 2  ;;  %v1222_v10 = vmax.f32 %v1220_v52, %v1221_v3  ;;  %v1267_v12 = vunpack.i.h.bf16 %v3029_v42 }
  0x90   : > { %v1241_v36 = vrot.slane %v1240_v19, 2  ;;  %v1250_v11 = vmax.f32 %v1248_v56, %v1249_v5  ;;  %v1204_v33 = vmax.f32 %v1202_v60, %v1203_v15  ;;  %v1259_v17 = vrot.slane %v1258_v32, 4 }
  0x91   : > { %v1213_v30 = vrot.slane %v1212_v25, 1  ;;  %v1232_v16 = vmax.f32 %v1230_v1, %v1231_v28  ;;  %v1223_v21 = vrot.slane %v1222_v10, 1  ;;  %v1268_v43 = vmax.f32 %v1266_v24, %v1267_v12 }
  0x92   : > { %v1242_v18 = vmax.f32 %v1240_v19, %v1241_v36  ;;  %v1251_v37 = vrot.slane %v1250_v11, 2  ;;  %v1205_v53 = vpack.i.bf16 %v1204_v33, %v1204_v33  ;;  %v1260_v58 = vmax.f32 %v1258_v32, %v1259_v17  ;;  %v3034_v17 = vld [vmem:[%s3138_s8 + $0x1a0] sm:$0xff]  }
  0x93   : > { %v1214_v27 = vmax.f32 %v1212_v25, %v1213_v30  ;;  %v1233_v48 = vrot.slane %v1232_v16, 1  ;;  %v1224_v31 = vmax.f32 %v1222_v10, %v1223_v21  ;;  %v1269_v35 = vrot.slane %v1268_v43, 4 }
  0x94   : > { %v1243_v59 = vrot.slane %v1242_v18, 1  ;;  %v1252_v34 = vmax.f32 %v1250_v11, %v1251_v37  ;;  %v1261_v14 = vrot.slane %v1260_v58, 2  ;;  %v1555_v40 = vunpack.c.l.b16 %v1125_v61  ;;  %v3033_v11 = vld [vmem:[%s3138_s8 + $0x198] sm:$0xff]  }
  0x95   : > { %v1215_v38 = vpack.i.bf16 %v1214_v27, %v1214_v27  ;;  %v1234_v63 = vmax.f32 %v1232_v16, %v1233_v48  ;;  %v1225_v42 = vpack.i.bf16 %v1224_v31, %v1224_v31  ;;  %v1270_v13 = vmax.f32 %v1268_v43, %v1269_v35  ;;  %v3035_v31 = vld [vmem:[%s3138_s8 + $0x1a8] sm:$0xff]  }
  0x96   : > { %v1244_v9 = vmax.f32 %v1242_v18, %v1243_v59  ;;  %v1253_v20 = vrot.slane %v1252_v34, 1  ;;  %v1262_v49 = vmax.f32 %v1260_v58, %v1261_v14  ;;  %v1556_v50 = vunpack.c.l.b16 %v1135_v6 }
  0x97   : > { %v1235_v44 = vpack.i.bf16 %v1234_v63, %v1234_v63  ;;  %v1557_v51 = vunpack.c.l.b16 %v1145_v29  ;;  %v1271_v47 = vrot.slane %v1270_v13, 2  ;;  %v1558_v61 = vunpack.c.l.b16 %v1155_v41 }
  0x98   : > { %v1245_v52 = vpack.i.bf16 %v1244_v9, %v1244_v9  ;;  %v1254_v55 = vmax.f32 %v1252_v34, %v1253_v20  ;;  %v1263_v56 = vrot.slane %v1262_v49, 1  ;;  %v1559_v57 = vunpack.c.l.b16 %v1165_v54  ;;  %v3036_v34 = vld [vmem:[%s3138_s8 + $0x1b0] sm:$0xff]  }
  0x99   : > { %v1560_v62 = vunpack.c.l.b16 %v1175_v22  ;;  %v1561_v6 = vunpack.c.l.b16 %v1185_v4  ;;  %v1272_v60 = vmax.f32 %v1270_v13, %v1271_v47  ;;  %v1562_v8 = vunpack.c.l.b16 %v1195_v46 }
  0x9a   : > { %v1255_v29 = vpack.i.bf16 %v1254_v55, %v1254_v55  ;;  %v1563_v41 = vunpack.c.l.b16 %v1205_v53  ;;  %v1264_v0 = vmax.f32 %v1262_v49, %v1263_v56  ;;  %v1564_v26 = vunpack.c.l.b16 %v1215_v38 }
  0x9b   : > { %v1565_v54 = vunpack.c.l.b16 %v1225_v42  ;;  %v1566_v1 = vunpack.c.l.b16 %v1235_v44  ;;  %v1273_v45 = vrot.slane %v1272_v60, 1  ;;  %v1567_v22 = vunpack.c.l.b16 %v1245_v52  ;;  %v3037_v44 = vld [vmem:[%s3138_s8 + $0x1b8] sm:$0xff]  }
  0x9c   : > { %v1568_v3 = vunpack.c.l.b16 %v1255_v29  ;;  %v1622_v23 = vsel %vm1587_vm0, %v1556_v50, %v1555_v40  ;;  %v1265_v4 = vpack.i.bf16 %v1264_v0, %v1264_v0  ;;  %v1629_v5 = vsel %vm1587_vm0, %v1564_v26, %v1563_v41 }
  0x9d   : > { %v1623_v19 = vsel %vm1589_vm1, %v1557_v51, %v1622_v23  ;;  %v1276_v46 = vunpack.i.l.bf16 %v3030_v7  ;;  %v1274_v24 = vmax.f32 %v1272_v60, %v1273_v45  ;;  %v1630_v25 = vsel %vm1589_vm1, %v1565_v54, %v1629_v5  ;;  %v3038_v5 = vld [vmem:[%s3138_s8 + $0x1c0] sm:$0xff]  }
  0x9e   : > { %v1624_v15 = vsel %vm1591_vm2, %v1558_v61, %v1623_v19  ;;  %v1277_v28 = vunpack.i.h.bf16 %v3030_v7  ;;  %v1569_v32 = vunpack.c.l.b16 %v1265_v4  ;;  %v1631_v36 = vsel %vm1591_vm2, %v1566_v1, %v1630_v25 }
  0x9f   : > { %v1625_v10 = vsel %vm1593_vm3, %v1559_v57, %v1624_v15  ;;  %v1286_v12 = vunpack.i.l.bf16 %v3031_v2  ;;  %v1275_v33 = vpack.i.bf16 %v1274_v24, %v1274_v24  ;;  %v1632_v16 = vsel %vm1593_vm3, %v1567_v22, %v1631_v36 }
  0xa0   : > { %v1626_v30 = vsel %vm1595_vm4, %v1560_v62, %v1625_v10  ;;  %v1278_v21 = vmax.f32 %v1276_v46, %v1277_v28  ;;  %v1633_v37 = vsel %vm1595_vm4, %v1568_v3, %v1632_v16  ;;  %v1287_v43 = vunpack.i.h.bf16 %v3031_v2 }
  0xa1   : > { %v1627_v18 = vsel %vm1597_vm5, %v1561_v6, %v1626_v30  ;;  %v1296_v53 = vunpack.i.l.bf16 %v3032_v39  ;;  %v1570_v27 = vunpack.c.l.b16 %v1275_v33  ;;  %v1634_v58 = vsel %vm1597_vm5, %v1569_v32, %v1633_v37  ;;  %v3039_v30 = vld [vmem:[%s3138_s8 + $0x1c8] sm:$0xff]  }
  0xa2   : > { %v1628_v48 = vsel %vm1599_vm6, %v1562_v8, %v1627_v18  ;;  %v1279_v59 = vrot.slane %v1278_v21, 4  ;;  %v1288_v35 = vmax.f32 %v1286_v12, %v1287_v43  ;;  %v1297_v38 = vunpack.i.h.bf16 %v3032_v39 }
  0xa3   : > { %v1306_v63 = vunpack.i.l.bf16 %v3033_v11  ;;  %v1307_v14 = vunpack.i.h.bf16 %v3033_v11  ;;  %v1635_v40 = vsel %vm1599_vm6, %v1570_v27, %v1634_v58  ;;  %v1316_v9 = vunpack.i.l.bf16 %v3034_v17 }
  0xa4   : > { %v1280_v42 = vmax.f32 %v1278_v21, %v1279_v59  ;;  %v1317_v20 = vunpack.i.h.bf16 %v3034_v17  ;;  %v1652_v13 = vpack.c.b16 %v1635_v40, %v1628_v48  ;;  %v1289_v49 = vrot.slane %v1288_v35, 4  ;;  %v3040_v48 = vld [vmem:[%s3138_s8 + $0x1d0] sm:$0xff]  }
  0xa5   : > { %v1298_v50 = vmax.f32 %v1296_v53, %v1297_v38  ;;  %v1308_v51 = vmax.f32 %v1306_v63, %v1307_v14  ;;  %v1326_v47 = vunpack.i.l.bf16 %v3035_v31  ;;  %v1327_v61 = vunpack.i.h.bf16 %v3035_v31 }
  0xa6   : > { %v1281_v52 = vrot.slane %v1280_v42, 2  ;;  %v1318_v55 = vmax.f32 %v1316_v9, %v1317_v20  ;;  %2927 = vmatprep.mubr.bf16.mxu0 %v1652_v13  ;;  %v1290_v56 = vmax.f32 %v1288_v35, %v1289_v49  ;;  %v1336_v6 = vunpack.i.l.bf16 %v3036_v34  ;;  %v3041_v35 = vld [vmem:[%s3138_s8 + $0x1d8] sm:$0xff]  }
  0xa7   : > { %v1299_v57 = vrot.slane %v1298_v50, 4  ;;  %v1309_v62 = vrot.slane %v1308_v51, 4  ;;  %v1328_v60 = vmax.f32 %v1326_v47, %v1327_v61  ;;  %v1337_v8 = vunpack.i.h.bf16 %v3036_v34 }
  0xa8   : > { %v1282_v7 = vmax.f32 %v1280_v42, %v1281_v52  ;;  %v1319_v29 = vrot.slane %v1318_v55, 4  ;;  %v1291_v41 = vrot.slane %v1290_v56, 2  ;;  %v1346_v54 = vunpack.i.l.bf16 %v3037_v44 }
  0xa9   : > { %v1300_v0 = vmax.f32 %v1298_v50, %v1299_v57  ;;  %v1310_v26 = vmax.f32 %v1308_v51, %v1309_v62  ;;  %v1329_v45 = vrot.slane %v1328_v60, 4  ;;  %v1338_v22 = vmax.f32 %v1336_v6, %v1337_v8  ;;  %v3043_v57 = vld [vmem:[%s3138_s8 + $0x1e8] sm:$0xff]  }
  0xaa   : > { %v1283_v1 = vrot.slane %v1282_v7, 1  ;;  %v1320_v2 = vmax.f32 %v1318_v55, %v1319_v29  ;;  %v1292_v3 = vmax.f32 %v1290_v56, %v1291_v41  ;;  %v1347_v19 = vunpack.i.h.bf16 %v3037_v44  ;;  %v3042_v44 = vld [vmem:[%s3138_s8 + $0x1e0] sm:$0xff]  }
  0xab   : > { %v1301_v23 = vrot.slane %v1300_v0, 2  ;;  %v1311_v4 = vrot.slane %v1310_v26, 2  ;;  %v1330_v24 = vmax.f32 %v1328_v60, %v1329_v45  ;;  %v1339_v15 = vrot.slane %v1338_v22, 4 }
  0xac   : > { %v3416_v39 = vmax.f32 %v1282_v7, %v1283_v1  ;;  %v1321_v46 = vrot.slane %v1320_v2, 2  ;;  %v1293_v25 = vrot.slane %v1292_v3, 1  ;;  %v1348_v10 = vmax.f32 %v1346_v54, %v1347_v19  ;;  %v3045_v19 = vld [vmem:[%s3138_s8 + $0x1f8] sm:$0xff]  }
  0xad   : > { %v1302_v28 = vmax.f32 %v1300_v0, %v1301_v23  ;;  %v1312_v32 = vmax.f32 %v1310_v26, %v1311_v4  ;;  %v1331_v12 = vrot.slane %v1330_v24, 2  ;;  %v1340_v33 = vmax.f32 %v1338_v22, %v1339_v15  ;;  %v3044_v26 = vld [vmem:[%s3138_s8 + $0x1f0] sm:$0xff]  }
  0xae   : > { %v1285_v36 = vpack.i.bf16 %v3416_v39, %v3416_v39  ;;  %v1322_v11 = vmax.f32 %v1320_v2, %v1321_v46  ;;  %v3421_v16 = vmax.f32 %v1292_v3, %v1293_v25  ;;  %v1349_v18 = vrot.slane %v1348_v10, 4 }
  0xaf   : > { %v1303_v17 = vrot.slane %v1302_v28, 1  ;;  %v1313_v21 = vrot.slane %v1312_v32, 1  ;;  %v1332_v43 = vmax.f32 %v1330_v24, %v1331_v12  ;;  %v1341_v53 = vrot.slane %v1340_v33, 2 }
  0xb0   : > { %v1323_v37 = vrot.slane %v1322_v11, 1  ;;  %v1356_v27 = vunpack.i.l.bf16 %v3038_v5  ;;  %v1295_v58 = vpack.i.bf16 %v3421_v16, %v3421_v16  ;;  %v1350_v34 = vmax.f32 %v1348_v10, %v1349_v18 }
  0xb1   : > { %v3426_v31 = vmax.f32 %v1302_v28, %v1303_v17  ;;  %v3428_v59 = vmax.f32 %v1312_v32, %v1313_v21  ;;  %v1333_v63 = vrot.slane %v1332_v43, 1  ;;  %v1342_v14 = vmax.f32 %v1340_v33, %v1341_v53 }
  0xb2   : > { %v3431_v38 = vmax.f32 %v1322_v11, %v1323_v37  ;;  %v1357_v40 = vunpack.i.h.bf16 %v3038_v5  ;;  %v1351_v20 = vrot.slane %v1350_v34, 2  ;;  %v1366_v13 = vunpack.i.l.bf16 %v3039_v30 }
  0xb3   : > { %v1305_v42 = vpack.i.bf16 %v3426_v31, %v3426_v31  ;;  %v1315_v9 = vpack.i.bf16 %v3428_v59, %v3428_v59  ;;  %v3440_v50 = vmax.f32 %v1332_v43, %v1333_v63  ;;  %v1343_v51 = vrot.slane %v1342_v14, 1 }
  0xb4   : > { %v1325_v49 = vpack.i.bf16 %v3431_v38, %v3431_v38  ;;  %v1358_v52 = vmax.f32 %v1356_v27, %v1357_v40  ;;  %v1352_v55 = vmax.f32 %v1350_v34, %v1351_v20  ;;  %v1367_v47 = vunpack.i.h.bf16 %v3039_v30  ;;  %v1779_v38 = vld [vmem:[%s3915_s3 + $0x20] sm:$0xff] }
  0xb5   : > { %v1376_v61 = vunpack.i.l.bf16 %v3040_v48  ;;  %v1377_v56 = vunpack.i.h.bf16 %v3040_v48  ;;  %v1335_v62 = vpack.i.bf16 %v3440_v50, %v3440_v50  ;;  %v3445_v6 = vmax.f32 %v1342_v14, %v1343_v51 }
  0xb6   : > { %v1359_v7 = vrot.slane %v1358_v52, 4  ;;  %v1386_v29 = vunpack.i.l.bf16 %v3041_v35  ;;  %v1353_v60 = vrot.slane %v1352_v55, 1  ;;  %v1368_v8 = vmax.f32 %v1366_v13, %v1367_v47 }
  0xb7   : > { %v1378_v41 = vmax.f32 %v1376_v61, %v1377_v56  ;;  %v1387_v0 = vunpack.i.h.bf16 %v3041_v35  ;;  %v1345_v54 = vpack.i.bf16 %v3445_v6, %v3445_v6  ;;  %v1396_v2 = vunpack.i.l.bf16 %v3042_v44 }
  0xb8   : > { %v1360_v1 = vmax.f32 %v1358_v52, %v1359_v7  ;;  %v1397_v45 = vunpack.i.h.bf16 %v3042_v44  ;;  %v3450_v22 = vmax.f32 %v1352_v55, %v1353_v60  ;;  %v1369_v3 = vrot.slane %v1368_v8, 4 }
  0xb9   : > { %v1379_v23 = vrot.slane %v1378_v41, 4  ;;  %v1388_v4 = vmax.f32 %v1386_v29, %v1387_v0  ;;  %v1406_v24 = vunpack.i.l.bf16 %v3043_v57  ;;  %v1407_v15 = vunpack.i.h.bf16 %v3043_v57 }
  0xba   : > { %v1361_v5 = vrot.slane %v1360_v1, 2  ;;  %v1398_v46 = vmax.f32 %v1396_v2, %v1397_v45  ;;  %v1355_v25 = vpack.i.bf16 %v3450_v22, %v3450_v22  ;;  %v1370_v28 = vmax.f32 %v1368_v8, %v1369_v3 }
  0xbb   : > { %v1380_v32 = vmax.f32 %v1378_v41, %v1379_v23  ;;  %v1389_v10 = vrot.slane %v1388_v4, 4  ;;  %v1408_v33 = vmax.f32 %v1406_v24, %v1407_v15  ;;  %v1416_v30 = vunpack.i.l.bf16 %v3044_v26 }
  0xbc   : > { %v1362_v11 = vmax.f32 %v1360_v1, %v1361_v5  ;;  %v1399_v12 = vrot.slane %v1398_v46, 4  ;;  %v1371_v17 = vrot.slane %v1370_v28, 2  ;;  %v1417_v37 = vunpack.i.h.bf16 %v3044_v26 }
  0xbd   : > { %v1381_v21 = vrot.slane %v1380_v32, 2  ;;  %v1390_v18 = vmax.f32 %v1388_v4, %v1389_v10  ;;  %v1409_v27 = vrot.slane %v1408_v33, 4  ;;  %v1426_v48 = vunpack.i.l.bf16 %v3045_v19 }
  0xbe   : > { %v1363_v43 = vrot.slane %v1362_v11, 1  ;;  %v1400_v53 = vmax.f32 %v1398_v46, %v1399_v12  ;;  %v1372_v34 = vmax.f32 %v1370_v28, %v1371_v17  ;;  %v1418_v14 = vmax.f32 %v1416_v30, %v1417_v37  ;;  %v1775_v30 = vld [vmem:[%s3915_s3] sm:$0xff]  ;;  %v1780_v37 = vld [vmem:[%s3915_s3 + $0x28] sm:$0xff] }
  0xbf   : > { %v1382_v35 = vmax.f32 %v1380_v32, %v1381_v21  ;;  %v1391_v63 = vrot.slane %v1390_v18, 2  ;;  %v1410_v13 = vmax.f32 %v1408_v33, %v1409_v27  ;;  %v1427_v44 = vunpack.i.h.bf16 %v3045_v19 }
  0xc0   : > { %v1364_v40 = vmax.f32 %v1362_v11, %v1363_v43  ;;  %v1401_v20 = vrot.slane %v1400_v53, 2  ;;  %v1373_v51 = vrot.slane %v1372_v34, 1  ;;  %v1419_v47 = vrot.slane %v1418_v14, 4 }
  0xc1   : > { %v1383_v52 = vrot.slane %v1382_v35, 1  ;;  %v1392_v55 = vmax.f32 %v1390_v18, %v1391_v63  ;;  %v1411_v57 = vrot.slane %v1410_v13, 2  ;;  %v1428_v7 = vmax.f32 %v1426_v48, %v1427_v44  ;;  %v1776_v18 = vld [vmem:[%s3915_s3 + $0x8] sm:$0xff] }
  0xc2   : > { %v1365_v61 = vpack.i.bf16 %v1364_v40, %v1364_v40  ;;  %v1402_v56 = vmax.f32 %v1400_v53, %v1401_v20  ;;  %v1374_v29 = vmax.f32 %v1372_v34, %v1373_v51  ;;  %v1420_v41 = vmax.f32 %v1418_v14, %v1419_v47  ;;  %v1783_v40 = vld [vmem:[%s3915_s3 + $0x40] sm:$0xff]  ;;  %v1788_v47 = vld [vmem:[%s3915_s3 + $0x68] sm:$0xff] }
  0xc3   : > { %v1384_v60 = vmax.f32 %v1382_v35, %v1383_v52  ;;  %v1393_v8 = vrot.slane %v1392_v55, 1  ;;  %v1412_v26 = vmax.f32 %v1410_v13, %v1411_v57  ;;  %v1429_v1 = vrot.slane %v1428_v7, 4  ;;  %v1787_v20 = vld [vmem:[%s3915_s3 + $0x60] sm:$0xff] }
  0xc4   : > { %v1403_v0 = vrot.slane %v1402_v56, 1  ;;  %v1571_v2 = vunpack.c.l.b16 %v1285_v36  ;;  %v1375_v45 = vpack.i.bf16 %v1374_v29, %v1374_v29  ;;  %v1421_v23 = vrot.slane %v1420_v41, 2  ;;  %v1791_v29 = vld [vmem:[%s3915_s3 + $0x80] sm:$0xff] }
  0xc5   : > { %v1385_v22 = vpack.i.bf16 %v1384_v60, %v1384_v60  ;;  %v1394_v3 = vmax.f32 %v1392_v55, %v1393_v8  ;;  %v1413_v19 = vrot.slane %v1412_v26, 1  ;;  %v1430_v5 = vmax.f32 %v1428_v7, %v1429_v1  ;;  %v1784_v55 = vld [vmem:[%s3915_s3 + $0x48] sm:$0xff]  ;;  %v1795_v60 = vld [vmem:[%s3915_s3 + $0xa0] sm:$0xff] }
  0xc6   : > { %v1404_v4 = vmax.f32 %v1402_v56, %v1403_v0  ;;  %v1572_v46 = vunpack.c.l.b16 %v1295_v58  ;;  %v1422_v15 = vmax.f32 %v1420_v41, %v1421_v23  ;;  %v1573_v28 = vunpack.c.l.b16 %v1305_v42  ;;  %v1792_v1 = vld [vmem:[%s3915_s3 + $0x88] sm:$0xff]  ;;  %v1799_v23 = vld [vmem:[%s3915_s3 + $0xc0] sm:$0xff] }
  0xc7   : > { %v1395_v24 = vpack.i.bf16 %v1394_v3, %v1394_v3  ;;  %v1574_v39 = vunpack.c.l.b16 %v1315_v9  ;;  %v1414_v32 = vmax.f32 %v1412_v26, %v1413_v19  ;;  %v1431_v10 = vrot.slane %v1430_v5, 2  ;;  %v1796_v3 = vld [vmem:[%s3915_s3 + $0xa8] sm:$0xff] }
  0xc8   : > { %v1405_v36 = vpack.i.bf16 %v1404_v4, %v1404_v4  ;;  %v1575_v11 = vunpack.c.l.b16 %v1325_v49  ;;  %v1423_v12 = vrot.slane %v1422_v15, 1  ;;  %v1576_v16 = vunpack.c.l.b16 %v1335_v62  ;;  %v1803_v4 = vld [vmem:[%s3915_s3 + $0xe0] sm:$0xff] }
  0xc9   : > { %v1577_v58 = vunpack.c.l.b16 %v1345_v54  ;;  %v1578_v31 = vunpack.c.l.b16 %v1355_v25  ;;  %v1415_v42 = vpack.i.bf16 %v1414_v32, %v1414_v32  ;;  %v1432_v59 = vmax.f32 %v1430_v5, %v1431_v10  ;;  %v1804_v32 = vld [vmem:[%s3915_s3 + $0xe8] sm:$0xff]  ;;  %v1807_v10 = vld [vmem:[%s3915_s3 + $0x100] sm:$0xff] }
  0xca   : > { %v1579_v9 = vunpack.c.l.b16 %v1365_v61  ;;  %v1580_v33 = vunpack.c.l.b16 %v1375_v45  ;;  %v1424_v49 = vmax.f32 %v1422_v15, %v1423_v12  ;;  %v1581_v50 = vunpack.c.l.b16 %v1385_v22 }
  0xcb   : > { %v1582_v62 = vunpack.c.l.b16 %v1395_v24  ;;  %v1583_v17 = vunpack.c.l.b16 %v1405_v36  ;;  %v1433_v21 = vrot.slane %v1432_v59, 1  ;;  %v1584_v6 = vunpack.c.l.b16 %v1415_v42  ;;  %v1800_v36 = vld [vmem:[%s3915_s3 + $0xc8] sm:$0xff] }
  0xcc   : > { %v1636_v54 = vsel %vm1587_vm0, %v1572_v46, %v1571_v2  ;;  %v1643_v25 = vsel %vm1587_vm0, %v1580_v33, %v1579_v9  ;;  %v1425_v43 = vpack.i.bf16 %v1424_v49, %v1424_v49  ;;  %v2829_v48 = vcombine.high %v1775_v30, %v1779_v38  ;;  %v1782_v9 = vld [vmem:[%s3915_s3 + $0x38] sm:$0xff]  ;;  %v1812_v49 = vld [vmem:[%s3915_s3 + $0x128] sm:$0xff] }
  0xcd   : > { %v1637_v53 = vsel %vm1589_vm1, %v1573_v28, %v1636_v54  ;;  %v1644_v27 = vsel %vm1589_vm1, %v1581_v50, %v1643_v25  ;;  %v1434_v34 = vmax.f32 %v1432_v59, %v1433_v21  ;;  %v2828_v14 = vcombine.low %v1775_v30, %v1779_v38  ;;  %v1778_v59 = vld [vmem:[%s3915_s3 + $0x18] sm:$0xff]  ;;  %v1808_v38 = vld [vmem:[%s3915_s3 + $0x108] sm:$0xff]  ;;  %v1815_v50 = vld [vmem:[%s3915_s3 + $0x140] sm:$0xff] }
  0xce   : > { %v1638_v35 = vsel %vm1591_vm2, %v1574_v39, %v1637_v53  ;;  %v1645_v63 = vsel %vm1591_vm2, %v1582_v62, %v1644_v27  ;;  %v1585_v13 = vunpack.c.l.b16 %v1425_v43  ;;  %2201 = vmatprep.subr.bf16.mxu1 %v2829_v48  ;;  %v2830_v52 = vcombine.low %v1776_v18, %v1780_v37  ;;  %v1819_v62 = vld [vmem:[%s3915_s3 + $0x160] sm:$0xff]  ;;  %v1820_v43 = vld [vmem:[%s3915_s3 + $0x168] sm:$0xff] }
  0xcf   : > { %v1639_v44 = vsel %vm1593_vm3, %v1575_v11, %v1638_v35  ;;  %v1646_v51 = vsel %vm1593_vm3, %v1583_v17, %v1645_v63  ;;  %v1435_v61 = vpack.i.bf16 %v1434_v34, %v1434_v34  ;;  %2202 = vmatpush1.bf16.msra.mxu1 %v2828_v14  ;;  %v2831_v7 = vcombine.high %v1776_v18, %v1780_v37  ;;  %v1811_v11 = vld [vmem:[%s3915_s3 + $0x120] sm:$0xff]  ;;  %v1816_v37 = vld [vmem:[%s3915_s3 + $0x148] sm:$0xff] }
  0xd0   : > { %v1640_v56 = vsel %vm1595_vm4, %v1576_v16, %v1639_v44  ;;  %v1647_v57 = vsel %vm1595_vm4, %v1584_v6, %v1646_v51  ;;  %v2837_v0 = vcombine.high %v1783_v40, %v1787_v20  ;;  %v2836_v26 = vcombine.low %v1783_v40, %v1787_v20  ;;  %v3548_v16 = vld [vmem:[%s3915_s3 + $0x10] sm:$0xff]  ;;  %v1823_v53 = vld [vmem:[%s3915_s3 + $0x180] sm:$0xff]  ;;  %v1824_v14 = vld [vmem:[%s3915_s3 + $0x188] sm:$0xff] }
  0xd1   : > { %v1641_v8 = vsel %vm1597_vm5, %v1577_v58, %v1640_v56  ;;  %v1648_v41 = vsel %vm1597_vm5, %v1585_v13, %v1647_v57  ;;  %v1586_v2 = vunpack.c.l.b16 %v1435_v61  ;;  %2274 = vmatprep.subr.bf16.mxu0 %v2831_v7  ;;  %v2839_v22 = vcombine.high %v1784_v55, %v1788_v47  ;;  %v3553_v58 = vld [vmem:[%s3915_s3 + $0x30] sm:$0xff]  ;;  %v1827_v27 = vld [vmem:[%s3915_s3 + $0x1a0] sm:$0xff]  ;;  %v1828_v40 = vld [vmem:[%s3915_s3 + $0x1a8] sm:$0xff] }
  0xd2   : > { %v1642_v45 = vsel %vm1599_vm6, %v1578_v31, %v1641_v8  ;;  %2275 = vmatpush1.bf16.msra.mxu0 %v2830_v52  ;;  %2203 = vmatprep.subr.bf16.mxu1 %v2837_v0  ;;  %v2845_v19 = vcombine.high %v1791_v29, %v1795_v60  ;;  %v2838_v46 = vcombine.low %v1784_v55, %v1788_v47  ;;  %v3070_v12 = vmov 0   ;;  %v1831_v20 = vld [vmem:[%s3915_s3 + $0x1c0] sm:$0xff]  ;;  %v1832_v47 = vld [vmem:[%s3915_s3 + $0x1c8] sm:$0xff] }
  0xd3   : > { %v1649_v5 = vsel %vm1599_vm6, %v1586_v2, %v1648_v41  ;;  %2204 = vmatpush1.bf16.msra.mxu1 %v2836_v26  ;;  %2276 = vmatprep.subr.bf16.mxu0 %v2839_v22  ;;  %v2844_v24 = vcombine.low %v1791_v29, %v1795_v60  ;;  %v2847_v28 = vcombine.high %v1792_v1, %v1796_v3  ;;  %v1835_v13 = vld [vmem:[%s3915_s3 + $0x1e0] sm:$0xff]  ;;  %v1836_v61 = vld [vmem:[%s3915_s3 + $0x1e8] sm:$0xff]  ;;  %v1785_v2 = vld [vmem:[%s3915_s3 + $0x50] sm:$0xff] }
  0xd4   : > { %v1653_v15 = vpack.c.b16 %v1649_v5, %v1642_v45  ;;  %2205 = vmatprep.subr.bf16.mxu1 %v2845_v19  ;;  %v2853_v39 = vcombine.high %v1799_v23, %v1803_v4  ;;  %2233 = vmatprep.mubr.bf16.mxu1 %v3070_v12  ;;  %v2846_v31 = vcombine.low %v1792_v1, %v1796_v3  ;;  %v3616_v0 = vld [vmem:[%s3914_s2] ss:$0 sm:$0xff]  ;;  %v1790_v19 = vld [vmem:[%s3915_s3 + $0x78] sm:$0xff] }
  0xd5   : > { %v2852_v42 = vcombine.low %v1799_v23, %v1803_v4  ;;  %v2855_v33 = vcombine.high %v1800_v36, %v1804_v32  ;;  %v2861_v30 = vcombine.high %v1807_v10, %v1811_v11  ;;  %v2832_v17 = vcombine.low %v3548_v16, %v3553_v58  ;;  %v1789_v23 = vld [vmem:[%s3915_s3 + $0x70] sm:$0xff]  ;;  %v1786_v4 = vld [vmem:[%s3915_s3 + $0x58] sm:$0xff] }
  0xd6   : > { %2928 = vmatmul.mubr.bf16.gmra.mrb[4].mxu0 %v1653_v15  ;;  %v3576_v21 = vcombine.low %v1778_v59, %v1782_v9  ;;  %v2854_v6 = vcombine.low %v1800_v36, %v1804_v32  ;;  %v2860_v54 = vcombine.low %v1807_v10, %v1811_v11  ;;  %v2863_v25 = vcombine.high %v1808_v38, %v1812_v49  ;;  %v1793_v36 = vld [vmem:[%s3915_s3 + $0x90] sm:$0xff]  ;;  %v1794_v10 = vld [vmem:[%s3915_s3 + $0x98] sm:$0xff] }
  0xd7   : > { %2277 = vmatpush1.bf16.msra.mxu0 %v2838_v46  ;;  %2206 = vmatpush1.bf16.msra.mxu1 %v2844_v24  ;;  %v2869_v18 = vcombine.high %v1815_v50, %v1819_v62  ;;  %v2862_v48 = vcombine.low %v1808_v38, %v1812_v49  ;;  %v2868_v34 = vcombine.low %v1815_v50, %v1819_v62  ;;  %v1797_v32 = vld [vmem:[%s3915_s3 + $0xb0] sm:$0xff]  ;;  %v1798_v11 = vld [vmem:[%s3915_s3 + $0xb8] sm:$0xff] }
  0xd8   : > { %2278 = vmatprep.subr.bf16.mxu0 %v2847_v28  ;;  %2207 = vmatprep.subr.bf16.mxu1 %v2853_v39  ;;  %v2871_v35 = vcombine.high %v1816_v37, %v1820_v43  ;;  %v2877_v63 = vcombine.high %v1823_v53, %v1827_v27  ;;  %v2870_v44 = vcombine.low %v1816_v37, %v1820_v43 }
  0xd9   : > { %2306 = vmatprep.mubr.bf16.mxu0 %v3070_v12  ;;  %v2876_v51 = vcombine.low %v1823_v53, %v1827_v27  ;;  %v2879_v52 = vcombine.high %v1824_v14, %v1828_v40  ;;  %v2885_v55 = vcombine.high %v1831_v20, %v1835_v13  ;;  %v2878_v56 = vcombine.low %v1824_v14, %v1828_v40  ;;  %v1817_v27 = vld [vmem:[%s3915_s3 + $0x150] sm:$0xff] }
  0xda   : > { %v2884_v57 = vcombine.low %v1831_v20, %v1835_v13  ;;  %v2887_v7 = vcombine.high %v1832_v47, %v1836_v61  ;;  %v2833_v29 = vcombine.high %v3548_v16, %v3553_v58  ;;  %v2886_v60 = vcombine.low %v1832_v47, %v1836_v61  ;;  %v1805_v16 = vld [vmem:[%s3915_s3 + $0xf0] sm:$0xff]  ;;  %v1802_v58 = vld [vmem:[%s3915_s3 + $0xd8] sm:$0xff] }
  0xdb   : > { %2279 = vmatpush1.bf16.msra.mxu0 %v2846_v31  ;;  %2208 = vmatpush1.bf16.msra.mxu1 %v2852_v42  ;;  %v3610_v8 = vcombine.high %v1778_v59, %v1782_v9  ;;  %v2841_v28 = vcombine.high %v1785_v2, %v1789_v23  ;;  %v3638_v39 = vcombine.high %v1786_v4, %v1790_v19  ;;  %v1825_v13 = vld [vmem:[%s3915_s3 + $0x190] sm:$0xff] }
  0xdc   : > { %2280 = vmatprep.subr.bf16.mxu0 %v2855_v33  ;;  %2209 = vmatprep.subr.bf16.mxu1 %v2861_v30  ;;  %v2840_v31 = vcombine.low %v1785_v2, %v1789_v23  ;;  %v3658_v42 = vcombine.low %v1786_v4, %v1790_v19  ;;  %v2849_v59 = vcombine.high %v1793_v36, %v1797_v32  ;;  %v1801_v33 = vld [vmem:[%s3915_s3 + $0xd0] sm:$0xff]  ;;  %v1806_v30 = vld [vmem:[%s3915_s3 + $0xf8] sm:$0xff] }
  0xdd   : > { %v3661_v9 = vcombine.high %v1794_v10, %v1798_v11  ;;  %v2848_v38 = vcombine.low %v1793_v36, %v1797_v32  ;;  %v3678_v49 = vcombine.low %v1794_v10, %v1798_v11  ;;  %v2857_v50 = vcombine.high %v1801_v33, %v1805_v16 }
  0xde   : > { %v3681_v62 = vcombine.high %v1802_v58, %v1806_v30  ;;  %v3698_v37 = vcombine.low %v1802_v58, %v1806_v30 }
  0xdf   : > { %2281 = vmatpush1.bf16.msra.mxu0 %v2854_v6  ;;  %2210 = vmatpush1.bf16.msra.mxu1 %v2860_v54  ;;  %v1813_v6 = vld [vmem:[%s3915_s3 + $0x130] sm:$0xff]  ;;  %v1810_v54 = vld [vmem:[%s3915_s3 + $0x118] sm:$0xff] }
  0xe0   : > { %2282 = vmatprep.subr.bf16.mxu0 %v2863_v25  ;;  %2211 = vmatprep.subr.bf16.mxu1 %v2869_v18  ;;  %v1814_v25 = vld [vmem:[%s3915_s3 + $0x138] sm:$0xff]  ;;  %v2856_v18 = vcombine.low %v1801_v33, %v1805_v16 }
  0xe1   : > { %v3701_v53 = vcombine.high %v1810_v54, %v1814_v25  ;;  %v3718_v14 = vcombine.low %v1810_v54, %v1814_v25 }
  0xe3   : > { %2283 = vmatpush1.bf16.msra.mxu0 %v2862_v48  ;;  %2212 = vmatpush1.bf16.msra.mxu1 %v2868_v34  ;;  %v1821_v48 = vld [vmem:[%s3915_s3 + $0x170] sm:$0xff]  ;;  %v1818_v34 = vld [vmem:[%s3915_s3 + $0x158] sm:$0xff] }
  0xe4   : > { %2284 = vmatprep.subr.bf16.mxu0 %v2871_v35  ;;  %2213 = vmatprep.subr.bf16.mxu1 %v2877_v63  ;;  %v1822_v35 = vld [vmem:[%s3915_s3 + $0x178] sm:$0xff]  ;;  %v2873_v40 = vcombine.high %v1817_v27, %v1821_v48 }
  0xe5   : > { %v3721_v20 = vcombine.high %v1818_v34, %v1822_v35  ;;  %v2874_v47 = vcombine.low %v1818_v34, %v1822_v35 }
  0xe7   : > { %2285 = vmatpush1.bf16.msra.mxu0 %v2870_v44  ;;  %2214 = vmatpush1.bf16.msra.mxu1 %v2876_v51  ;;  %v1829_v44 = vld [vmem:[%s3915_s3 + $0x1b0] sm:$0xff]  ;;  %v1826_v51 = vld [vmem:[%s3915_s3 + $0x198] sm:$0xff] }
  0xe8   : > { %2286 = vmatprep.subr.bf16.mxu0 %v2879_v52  ;;  %2215 = vmatprep.subr.bf16.mxu1 %v2885_v55  ;;  %v1830_v52 = vld [vmem:[%s3915_s3 + $0x1b8] sm:$0xff]  ;;  %v2872_v55 = vcombine.low %v1817_v27, %v1821_v48  ;;  %v2881_v61 = vcombine.high %v1825_v13, %v1829_v44 }
  0xeb   : > { %2287 = vmatpush1.bf16.msra.mxu0 %v2878_v56  ;;  %2216 = vmatpush1.bf16.msra.mxu1 %v2884_v57  ;;  %v2883_v56 = vcombine.high %v1826_v51, %v1830_v52  ;;  %v1833_v57 = vld [vmem:[%s3915_s3 + $0x1d0] sm:$0xff] }
  0xec   : > { %2288 = vmatprep.subr.bf16.mxu0 %v2887_v7  ;;  %2347 = vmatprep.subr.bf16.mxu1 %v2833_v29  ;;  %v1837_v7 = vld [vmem:[%s3915_s3 + $0x1f0] sm:$0xff]  ;;  %v1834_v29 = vld [vmem:[%s3915_s3 + $0x1d8] sm:$0xff] }
  0xef   : > { %2289 = vmatpush1.bf16.msra.mxu0 %v2886_v60  ;;  %v1838_v60 = vld [vmem:[%s3915_s3 + $0x1f8] sm:$0xff] }
  0xf0   : > { %2420 = vmatprep.subr.bf16.mxu0 %v3610_v8  ;;  %v2891_v2 = vcombine.high %v1834_v29, %v1838_v60 }
 0x149   : > { %v2925_v41 = vpop.f32.mrb[0].mxu0 }
 0x14a   : > { %v1740_v26 = vpop.f32.mrb[1].mxu0  ;;  %v1749_v45 = vadd.f32 %v2925_v41, %v3616_v0  ;;  %v2880_v41 = vcombine.low %v1825_v13, %v1829_v44 }
 0x14b   : > { %v2926_v1 = vpop.f32.mrb[2].mxu0  ;;  %v1741_v5 = vadd.f32 %v3616_v0, %v1740_v26  ;;  %v2882_v26 = vcombine.low %v1826_v51, %v1830_v52 }
 0x14c   : > { %v1752_v22 = vadd.f32 %v2926_v1, %v3616_v0  ;;  %v1743_v3 = vpop.f32.mrb[3].mxu0  ;;  %v2889_v1 = vcombine.high %v1833_v57, %v1837_v7 }
 0x14d   : > { %v1744_v46 = vadd.f32 %v3616_v0, %v1743_v3 }
 0x14e   : > { %v3634_v24 = vpack.c.bf16 %v1752_v22, %v1749_v45  ;;  %v2888_v45 = vcombine.low %v1833_v57, %v1837_v7  ;;  %v2890_v22 = vcombine.low %v1834_v29, %v1838_v60 }
 0x14f   : > { %v3636_v15 = vpack.c.bf16 %v1744_v46, %v1741_v5 }
 0x151   : > { %2234 = vmatmul.mubr.bf16.vlgmr.msra.gmra.mrb[0].mxu1 %v3636_v15  ;;  %2307 = vmatmul.mubr.bf16.vlgmr.msra.gmra.mrb[8].mxu0 %v3636_v15 }
 0x152   : > { %2348 = vmatpush1.bf16.msra.mxu1 %v2832_v17  ;;  %2421 = vmatpush1.bf16.msra.mxu0 %v3576_v21  ;;  %v1809_v17 = vld [vmem:[%s3915_s3 + $0x110] sm:$0xff] }
 0x153   : > { %2349 = vmatprep.subr.bf16.mxu1 %v2841_v28  ;;  %2422 = vmatprep.subr.bf16.mxu0 %v3638_v39  ;;  %v2865_v43 = vcombine.high %v1809_v17, %v1813_v6  ;;  %v2864_v63 = vcombine.low %v1809_v17, %v1813_v6 }
 0x154   : > { %2243 = vmatprep.mubr.bf16.mxu1 %v3070_v12  ;;  %2316 = vmatprep.mubr.bf16.mxu0 %v3070_v12 }
 0x156   : > { %2350 = vmatpush1.bf16.msra.mxu1 %v2840_v31  ;;  %2423 = vmatpush1.bf16.msra.mxu0 %v3658_v42 }
 0x157   : > { %2351 = vmatprep.subr.bf16.mxu1 %v2849_v59  ;;  %2424 = vmatprep.subr.bf16.mxu0 %v3661_v9 }
 0x159   : > { %2244 = vmatmul.mubr.bf16.gmra.mrb[4].mxu1 %v3634_v24  ;;  %2317 = vmatmul.mubr.bf16.gmra.mrb[12].mxu0 %v3634_v24 }
 0x15a   : > { %2352 = vmatpush1.bf16.msra.mxu1 %v2848_v38  ;;  %2425 = vmatpush1.bf16.msra.mxu0 %v3678_v49 }
 0x15b   : > { %2353 = vmatprep.subr.bf16.mxu1 %v2857_v50  ;;  %2426 = vmatprep.subr.bf16.mxu0 %v3681_v62 }
 0x15c   : > { %2253 = vmatprep.mubr.bf16.mxu1 %v3070_v12  ;;  %2326 = vmatprep.mubr.bf16.mxu0 %v3070_v12 }
 0x15e   : > { %2354 = vmatpush1.bf16.msra.mxu1 %v2856_v18  ;;  %2427 = vmatpush1.bf16.msra.mxu0 %v3698_v37 }
 0x15f   : > { %2355 = vmatprep.subr.bf16.mxu1 %v2865_v43  ;;  %2428 = vmatprep.subr.bf16.mxu0 %v3701_v53 }
 0x162   : > { %2356 = vmatpush1.bf16.msra.mxu1 %v2864_v63  ;;  %2429 = vmatpush1.bf16.msra.mxu0 %v3718_v14 }
 0x163   : > { %2357 = vmatprep.subr.bf16.mxu1 %v2873_v40  ;;  %2430 = vmatprep.subr.bf16.mxu0 %v3721_v20 }
 0x166   : > { %2358 = vmatpush1.bf16.msra.mxu1 %v2872_v55  ;;  %2431 = vmatpush1.bf16.msra.mxu0 %v2874_v47 }
 0x167   : > { %2359 = vmatprep.subr.bf16.mxu1 %v2881_v61  ;;  %2432 = vmatprep.subr.bf16.mxu0 %v2883_v56 }
 0x16a   : > { %2360 = vmatpush1.bf16.msra.mxu1 %v2880_v41  ;;  %2433 = vmatpush1.bf16.msra.mxu0 %v2882_v26 }
 0x16b   : > { %2361 = vmatprep.subr.bf16.mxu1 %v2889_v1  ;;  %2434 = vmatprep.subr.bf16.mxu0 %v2891_v2 }
 0x16e   : > { %2362 = vmatpush1.bf16.msra.mxu1 %v2888_v45  ;;  %2435 = vmatpush1.bf16.msra.mxu0 %v2890_v22 }
 0x16f   : > { %2931 = vmatprep.subr.bf16.mxu1 %v3610_v8 }
 0x1a9   : > { %v2929_v3 = vpop.f32.mrb[4].mxu0 }
 0x1aa   : > { %v1765_v23 = vadd.f32 %v2929_v3, %v3616_v0  ;;  %v1756_v4 = vpop.f32.mrb[5].mxu0 }
 0x1ab   : > { %v1757_v19 = vadd.f32 %v3616_v0, %v1756_v4  ;;  %v2930_v5 = vpop.f32.mrb[6].mxu0 }
 0x1ac   : > { %v1768_v46 = vadd.f32 %v2930_v5, %v3616_v0  ;;  %v1759_v28 = vpop.f32.mrb[7].mxu0 }
 0x1ad   : > { %v1760_v36 = vadd.f32 %v3616_v0, %v1759_v28 }
 0x1ae   : > { %v1774_v32 = vpack.c.bf16 %v1768_v46, %v1765_v23 }
 0x1af   : > { %v1773_v10 = vpack.c.bf16 %v1760_v36, %v1757_v19 }
 0x1b1   : > { %2254 = vmatmul.mubr.bf16.gmra.mrb[8].mxu1 %v1773_v10  ;;  %2327 = vmatmul.mubr.bf16.gmra.mrb[16].mxu0 %v1773_v10 }
 0x1b2   : > { %2263 = vmatprep.mubr.bf16.mxu1 %v3070_v12  ;;  %2336 = vmatprep.mubr.bf16.mxu0 %v3070_v12 }
 0x1b9   : > { %2264 = vmatmul.mubr.bf16.gmra.mrb[12].mxu1 %v1774_v32  ;;  %2337 = vmatmul.mubr.bf16.gmra.mrb[20].mxu0 %v1774_v32 }
 0x1ba   : > { %2379 = vmatprep.mubr.bf16.mxu1 %v3070_v12  ;;  %2452 = vmatprep.mubr.bf16.mxu0 %v3070_v12 }
 0x1c1   : > { %2380 = vmatmul.mubr.bf16.vlgmr.msra.gmra.mrb[16].mxu1 %v3636_v15  ;;  %2453 = vmatmul.mubr.bf16.vlgmr.msra.gmra.mrb[24].mxu0 %v3636_v15  ;;  %v3785_v15 = vld [vmem:[%s3916_s4] sm:$0xff] }
 0x1c2   : > { %2939 = vmatpush1.bf16.msra.mxu1 %v3576_v21  ;;  %2389 = vmatprep.mubr.bf16.mxu1 %v3070_v12  ;;  %v1841_v21 = vlaneseq }
 0x1c3   : > { %2932 = vmatprep.subr.bf16.mxu1 %v3638_v39  ;;  %2462 = vmatprep.mubr.bf16.mxu0 %v3070_v12 }
 0x1c4   : > { %v3778_v8 = vshrl.u32 %v1841_v21, 7 }
 0x1c6   : > { %2940 = vmatpush1.bf16.msra.mxu1 %v3658_v42  ;;  %v1843_v0 = vsub.s32 0, %v3778_v8  ;;  %v1847_v39 = vsub.s32 1, %v3778_v8  ;;  %v1855_v11 = vsub.s32 3, %v3778_v8 }
 0x1c7   : > { %2933 = vmatprep.subr.bf16.mxu1 %v3661_v9 }
 0x1c8   : > { %v3790_v31 = vrot.slane %v3785_v15, %v1843_v0  ;;  %v3796_v9 = vrot.slane %v3785_v15, %v1847_v39  ;;  %v3799_v33 = vrot.slane %v3785_v15, %v1855_v11 }
 0x1c9   : > { %2390 = vmatmul.mubr.bf16.gmra.mrb[20].mxu1 %v3634_v24  ;;  %2463 = vmatmul.mubr.bf16.gmra.mrb[28].mxu0 %v3634_v24  ;;  %v1851_v24 = vsub.s32 2, %v3778_v8 }
 0x1ca   : > { %2941 = vmatpush1.bf16.msra.mxu1 %v3678_v49  ;;  %2399 = vmatprep.mubr.bf16.mxu1 %v3070_v12 }
 0x1cb   : > { %2934 = vmatprep.subr.bf16.mxu1 %v3681_v62 }
 0x1ce   : > { %2942 = vmatpush1.bf16.msra.mxu1 %v3698_v37 }
 0x1cf   : > { %2935 = vmatprep.subr.bf16.mxu1 %v3701_v53 }
 0x1d1   : > { %2400 = vmatmul.mubr.bf16.gmra.mrb[24].mxu1 %v1773_v10 }
 0x1d2   : > { %2943 = vmatpush1.bf16.msra.mxu1 %v3718_v14  ;;  %2409 = vmatprep.mubr.bf16.mxu1 %v3070_v12 }
 0x1d3   : > { %2936 = vmatprep.subr.bf16.mxu1 %v3721_v20 }
 0x1d6   : > { %2944 = vmatpush1.bf16.msra.mxu1 %v2874_v47 }
 0x1d7   : > { %2937 = vmatprep.subr.bf16.mxu1 %v2883_v56 }
 0x1d9   : > { %2410 = vmatmul.mubr.bf16.gmra.mrb[28].mxu1 %v1774_v32 }
 0x1da   : > { %2945 = vmatpush1.bf16.msra.mxu1 %v2882_v26  ;;  %2472 = vmatprep.mubr.bf16.mxu1 %v3070_v12 }
 0x1db   : > { %2938 = vmatprep.subr.bf16.mxu1 %v2891_v2 }
 0x1de   : > { %2946 = vmatpush1.bf16.msra.mxu1 %v2890_v22 }
 0x1e1   : > { %2473 = vmatmul.mubr.bf16.vlgmr.msra.gmra.mrb[32].mxu1 %v1773_v10 }
 0x1e2   : > { %2482 = vmatprep.mubr.bf16.mxu1 %v3070_v12  ;;  %v3793_v12 = vrot.slane %v3785_v15, %v1851_v24 }
 0x1e9   : > { %2483 = vmatmul.mubr.bf16.gmra.mrb[36].mxu1 %v1774_v32 }
 0x224   : > { %v2235_v42 = vpop.f32.mrb[0].mxu1  ;;  %v2308_v59 = vpop.f32.mrb[8].mxu0 }
 0x225   : > { %v2237_v16 = vpop.f32.mrb[1].mxu1  ;;  %v2310_v58 = vpop.f32.mrb[9].mxu0  ;;  %v2236_v49 = vadd.f32 %v2235_v42, %v3790_v31  ;;  %v2309_v50 = vadd.f32 %v2308_v59, %v3793_v12 }
 0x226   : > { %v2239_v30 = vpop.f32.mrb[2].mxu1  ;;  %v2312_v38 = vpop.f32.mrb[10].mxu0  ;;  %v2238_v25 = vadd.f32 %v2237_v16, %v3796_v9  ;;  %v2311_v18 = vadd.f32 %v2310_v58, %v3799_v33 }
 0x227   : > { %v2240_v62 = vadd.f32 %v2239_v30, %v3790_v31  ;;  %v2313_v17 = vadd.f32 %v2312_v38, %v3793_v12  ;;  %v2241_v6 = vpop.f32.mrb[3].mxu1  ;;  %v2314_v54 = vpop.f32.mrb[11].mxu0 }
 0x228   : > { %v2242_v37 = vadd.f32 %v2241_v6, %v3796_v9  ;;  %v2315_v43 = vadd.f32 %v2314_v54, %v3799_v33 }
 0x229   : > { %v2494_v53 = vmax.f32 %v2236_v49, %v2240_v62  ;;  %v2520_v27 = vmax.f32 %v2309_v50, %v2313_v17 }
 0x22a   : > { %v2507_v48 = vmax.f32 %v2238_v25, %v2242_v37  ;;  %v2533_v34 = vmax.f32 %v2311_v18, %v2315_v43  ;;  %v1859_v25 = vsub.s32 4, %v3778_v8 }
 0x22c   : > { %v2245_v35 = vpop.f32.mrb[4].mxu1  ;;  %v2318_v63 = vpop.f32.mrb[12].mxu0 }
 0x22d   : > { %v2246_v14 = vadd.f32 %v2245_v35, %v3790_v31  ;;  %v2319_v40 = vadd.f32 %v2318_v63, %v3793_v12  ;;  %v2247_v20 = vpop.f32.mrb[5].mxu1  ;;  %v2320_v13 = vpop.f32.mrb[13].mxu0 }
 0x22e   : > { %v2248_v44 = vadd.f32 %v2247_v20, %v3796_v9  ;;  %v2321_v51 = vadd.f32 %v2320_v13, %v3799_v33  ;;  %v2249_v52 = vpop.f32.mrb[6].mxu1  ;;  %v2322_v55 = vpop.f32.mrb[14].mxu0  ;;  %v1871_v13 = vsub.s32 7, %v3778_v8 }
 0x22f   : > { %v2495_v47 = vmax.f32 %v2494_v53, %v2246_v14  ;;  %v2521_v61 = vmax.f32 %v2520_v27, %v2319_v40  ;;  %v2250_v56 = vadd.f32 %v2249_v52, %v3790_v31  ;;  %v2323_v57 = vadd.f32 %v2322_v55, %v3793_v12  ;;  %v2251_v7 = vpop.f32.mrb[7].mxu1  ;;  %v2324_v29 = vpop.f32.mrb[15].mxu0 }
 0x230   : > { %v2508_v60 = vmax.f32 %v2507_v48, %v2248_v44  ;;  %v2534_v41 = vmax.f32 %v2533_v34, %v2321_v51  ;;  %v2252_v26 = vadd.f32 %v2251_v7, %v3796_v9  ;;  %v2325_v1 = vadd.f32 %v2324_v29, %v3799_v33 }
 0x231   : > { %v2496_v2 = vmax.f32 %v2495_v47, %v2250_v56  ;;  %v2522_v45 = vmax.f32 %v2521_v61, %v2323_v57  ;;  %v1867_v27 = vsub.s32 6, %v3778_v8  ;;  %v1863_v48 = vsub.s32 5, %v3778_v8 }
 0x232   : > { %v2509_v22 = vmax.f32 %v2508_v60, %v2252_v26  ;;  %v2535_v3 = vmax.f32 %v2534_v41, %v2325_v1  ;;  %v3071_v40 = vmov 1966171168   ;;  %v3838_v26 = vrot.slane %v3785_v15, %v1859_v25 }
 0x233   : > { %v2611_v20 = vunpack.c.l.s4 %v3071_v40  ;;  %v3841_v1 = vrot.slane %v3785_v15, %v1867_v27 }
 0x284   : > { %v2255_v23 = vpop.f32.mrb[8].mxu1  ;;  %v2328_v4 = vpop.f32.mrb[16].mxu0 }
 0x285   : > { %v2256_v19 = vadd.f32 %v2255_v23, %v3790_v31  ;;  %v2329_v5 = vadd.f32 %v2328_v4, %v3793_v12  ;;  %v2257_v46 = vpop.f32.mrb[9].mxu1  ;;  %v2330_v28 = vpop.f32.mrb[17].mxu0 }
 0x286   : > { %v2258_v36 = vadd.f32 %v2257_v46, %v3796_v9  ;;  %v2331_v32 = vadd.f32 %v2330_v28, %v3799_v33  ;;  %v2259_v10 = vpop.f32.mrb[10].mxu1  ;;  %v2332_v21 = vpop.f32.mrb[18].mxu0 }
 0x287   : > { %v2497_v0 = vmax.f32 %v2496_v2, %v2256_v19  ;;  %v2523_v24 = vmax.f32 %v2522_v45, %v2329_v5  ;;  %v2260_v39 = vadd.f32 %v2259_v10, %v3790_v31  ;;  %v2333_v11 = vadd.f32 %v2332_v21, %v3793_v12  ;;  %v2261_v42 = vpop.f32.mrb[11].mxu1  ;;  %v2334_v59 = vpop.f32.mrb[19].mxu0 }
 0x288   : > { %v2510_v16 = vmax.f32 %v2509_v22, %v2258_v36  ;;  %v2536_v58 = vmax.f32 %v2535_v3, %v2331_v32  ;;  %v2262_v30 = vadd.f32 %v2261_v42, %v3796_v9  ;;  %v2335_v38 = vadd.f32 %v2334_v59, %v3799_v33 }
 0x289   : > { %v2498_v49 = vmax.f32 %v2497_v0, %v2260_v39  ;;  %v2524_v50 = vmax.f32 %v2523_v24, %v2333_v11  ;;  %v3847_v45 = vrot.slane %v3785_v15, %v1871_v13 }
 0x28a   : > { %v2511_v62 = vmax.f32 %v2510_v16, %v2262_v30  ;;  %v2537_v17 = vmax.f32 %v2536_v58, %v2335_v38 }
 0x28c   : > { %v2265_v6 = vpop.f32.mrb[12].mxu1  ;;  %v2338_v54 = vpop.f32.mrb[20].mxu0 }
 0x28d   : > { %v2266_v18 = vadd.f32 %v2265_v6, %v3790_v31  ;;  %v2339_v37 = vadd.f32 %v2338_v54, %v3793_v12  ;;  %v2267_v43 = vpop.f32.mrb[13].mxu1  ;;  %v2340_v53 = vpop.f32.mrb[21].mxu0 }
 0x28e   : > { %v2268_v34 = vadd.f32 %v2267_v43, %v3796_v9  ;;  %v2341_v35 = vadd.f32 %v2340_v53, %v3799_v33  ;;  %v2269_v63 = vpop.f32.mrb[14].mxu1  ;;  %v2342_v14 = vpop.f32.mrb[22].mxu0 }
 0x28f   : > { %v2499_v44 = vmax.f32 %v2498_v49, %v2266_v18  ;;  %v2525_v51 = vmax.f32 %v2524_v50, %v2339_v37  ;;  %v2270_v52 = vadd.f32 %v2269_v63, %v3790_v31  ;;  %v2343_v55 = vadd.f32 %v2342_v14, %v3793_v12  ;;  %v2271_v47 = vpop.f32.mrb[15].mxu1  ;;  %v2344_v61 = vpop.f32.mrb[23].mxu0 }
 0x290   : > { %v2512_v56 = vmax.f32 %v2511_v62, %v2268_v34  ;;  %v2538_v57 = vmax.f32 %v2537_v17, %v2341_v35  ;;  %v2272_v7 = vadd.f32 %v2271_v47, %v3796_v9  ;;  %v2345_v29 = vadd.f32 %v2344_v61, %v3799_v33 }
 0x291   : > { %v2500_v60 = vmax.f32 %v2499_v44, %v2270_v52  ;;  %v2526_v41 = vmax.f32 %v2525_v51, %v2343_v55  ;;  %v3844_v12 = vrot.slane %v3785_v15, %v1863_v48  ;;  %v2612_v33 = vunpack.c.0.s8 %v2611_v20 }
 0x292   : > { %v2513_v2 = vmax.f32 %v2512_v56, %v2272_v7  ;;  %v2539_v31 = vmax.f32 %v2538_v57, %v2345_v29 }
 0x293   : > { %v2501_v22 = vrot.slane %v2500_v60, 4  ;;  %v2527_v9 = vrot.slane %v2526_v41, 4  ;;  %v3858_v63 = vsub.s32 %v2612_v33, %v3778_v8 }
 0x294   : > { %v2514_v3 = vrot.slane %v2513_v2, 4  ;;  %v2540_v23 = vrot.slane %v2539_v31, 4  ;;  %v2381_v4 = vpop.f32.mrb[16].mxu1  ;;  %v2454_v19 = vpop.f32.mrb[24].mxu0 }
 0x295   : > { %v2502_v5 = vmax.f32 %v2500_v60, %v2501_v22  ;;  %v2528_v46 = vmax.f32 %v2526_v41, %v2527_v9  ;;  %v2382_v28 = vadd.f32 %v2381_v4, %v3838_v26  ;;  %v2455_v36 = vadd.f32 %v2454_v19, %v3841_v1  ;;  %v2383_v32 = vpop.f32.mrb[17].mxu1  ;;  %v2456_v10 = vpop.f32.mrb[25].mxu0 }
 0x296   : > { %v2515_v21 = vmax.f32 %v2513_v2, %v2514_v3  ;;  %v2541_v0 = vmax.f32 %v2539_v31, %v2540_v23  ;;  %v2384_v15 = vadd.f32 %v2383_v32, %v3844_v12  ;;  %v2457_v24 = vadd.f32 %v2456_v10, %v3847_v45  ;;  %v2385_v39 = vpop.f32.mrb[18].mxu1  ;;  %v2458_v11 = vpop.f32.mrb[26].mxu0 }
 0x297   : > { %v2503_v42 = vrot.slane %v2502_v5, 2  ;;  %v2529_v59 = vrot.slane %v2528_v46, 2  ;;  %v2386_v16 = vadd.f32 %v2385_v39, %v3838_v26  ;;  %v2459_v58 = vadd.f32 %v2458_v11, %v3841_v1  ;;  %v2387_v30 = vpop.f32.mrb[19].mxu1  ;;  %v2460_v38 = vpop.f32.mrb[27].mxu0 }
 0x298   : > { %v2516_v49 = vrot.slane %v2515_v21, 2  ;;  %v2542_v50 = vrot.slane %v2541_v0, 2  ;;  %v2388_v62 = vadd.f32 %v2387_v30, %v3844_v12  ;;  %v2461_v17 = vadd.f32 %v2460_v38, %v3847_v45 }
 0x299   : > { %v2504_v6 = vmax.f32 %v2502_v5, %v2503_v42  ;;  %v2530_v54 = vmax.f32 %v2528_v46, %v2529_v59  ;;  %v2546_v25 = vmax.f32 %v2382_v28, %v2386_v16  ;;  %v2572_v18 = vmax.f32 %v2455_v36, %v2459_v58 }
 0x29a   : > { %v2517_v37 = vmax.f32 %v2515_v21, %v2516_v49  ;;  %v2543_v43 = vmax.f32 %v2541_v0, %v2542_v50  ;;  %v2559_v53 = vmax.f32 %v2384_v15, %v2388_v62  ;;  %v2585_v27 = vmax.f32 %v2457_v24, %v2461_v17 }
 0x29b   : > { %v2505_v48 = vrot.slane %v2504_v6, 1  ;;  %v2531_v34 = vrot.slane %v2530_v54, 1 }
 0x29c   : > { %v2518_v35 = vrot.slane %v2517_v37, 1  ;;  %v2544_v14 = vrot.slane %v2543_v43, 1  ;;  %v2391_v40 = vpop.f32.mrb[20].mxu1  ;;  %v2464_v20 = vpop.f32.mrb[28].mxu0 }
 0x29d   : > { %v2506_v13 = vmax.f32 %v2504_v6, %v2505_v48  ;;  %v2532_v44 = vmax.f32 %v2530_v54, %v2531_v34  ;;  %v2392_v51 = vadd.f32 %v2391_v40, %v3838_v26  ;;  %v2465_v52 = vadd.f32 %v2464_v20, %v3841_v1  ;;  %v2393_v55 = vpop.f32.mrb[21].mxu1  ;;  %v2466_v47 = vpop.f32.mrb[29].mxu0 }
 0x29e   : > { %v2519_v61 = vmax.f32 %v2517_v37, %v2518_v35  ;;  %v2545_v56 = vmax.f32 %v2543_v43, %v2544_v14  ;;  %v2394_v57 = vadd.f32 %v2393_v55, %v3844_v12  ;;  %v2467_v7 = vadd.f32 %v2466_v47, %v3847_v45  ;;  %v2395_v29 = vpop.f32.mrb[22].mxu1  ;;  %v2468_v8 = vpop.f32.mrb[30].mxu0 }
 0x29f   : > { %v2547_v60 = vmax.f32 %v2546_v25, %v2392_v51  ;;  %v2573_v41 = vmax.f32 %v2572_v18, %v2465_v52  ;;  %v2396_v2 = vadd.f32 %v2395_v29, %v3838_v26  ;;  %v2469_v31 = vadd.f32 %v2468_v8, %v3841_v1  ;;  %v2397_v22 = vpop.f32.mrb[23].mxu1  ;;  %v2470_v9 = vpop.f32.mrb[31].mxu0 }
 0x2a0   : > { %v2606_v3 = vcombine.low %v2506_v13, %v2519_v61  ;;  %v2607_v33 = vcombine.low %v2532_v44, %v2545_v56  ;;  %v2560_v23 = vmax.f32 %v2559_v53, %v2394_v57  ;;  %v2586_v4 = vmax.f32 %v2585_v27, %v2467_v7 }
 0x2a1   : > { %v2548_v19 = vmax.f32 %v2547_v60, %v2396_v2  ;;  %v2574_v5 = vmax.f32 %v2573_v41, %v2469_v31  ;;  %v2398_v46 = vadd.f32 %v2397_v22, %v3844_v12  ;;  %v2471_v28 = vadd.f32 %v2470_v9, %v3847_v45 }
 0x2a2   : > { %v3869_v36 = vrot.slane %v2606_v3, %v3858_v63  ;;  %v3872_v32 = vrot.slane %v2607_v33, %v3858_v63 }
 0x2a3   : > { %v2561_v10 = vmax.f32 %v2560_v23, %v2398_v46  ;;  %v2587_v21 = vmax.f32 %v2586_v4, %v2471_v28 }
 0x2a4   : > { %v2638_v0 = vcombine.low %v3869_v36, %v3872_v32  ;;  %v2401_v15 = vpop.f32.mrb[24].mxu1 }
 0x2a5   : > { %v2402_v24 = vadd.f32 %v2401_v15, %v3838_v26  ;;  %v2403_v39 = vpop.f32.mrb[25].mxu1 }
 0x2a6   : > { %v2404_v11 = vadd.f32 %v2403_v39, %v3844_v12  ;;  %v2405_v42 = vpop.f32.mrb[26].mxu1 }
 0x2a7   : > { %v2549_v59 = vmax.f32 %v2548_v19, %v2402_v24  ;;  %v2406_v16 = vadd.f32 %v2405_v42, %v3838_v26  ;;  %v2407_v58 = vpop.f32.mrb[27].mxu1 }
 0x2a8   : > { %v2562_v30 = vmax.f32 %v2561_v10, %v2404_v11  ;;  %v2408_v38 = vadd.f32 %v2407_v58, %v3844_v12 }
 0x2a9   : > { %v2550_v49 = vmax.f32 %v2549_v59, %v2406_v16 }
 0x2aa   : > { %v2563_v50 = vmax.f32 %v2562_v30, %v2408_v38 }
 0x2ac   : > { %v2411_v62 = vpop.f32.mrb[28].mxu1 }
 0x2ad   : > { %v2412_v17 = vadd.f32 %v2411_v62, %v3838_v26  ;;  %v2413_v6 = vpop.f32.mrb[29].mxu1 }
 0x2ae   : > { %v2414_v54 = vadd.f32 %v2413_v6, %v3844_v12  ;;  %v2415_v25 = vpop.f32.mrb[30].mxu1 }
 0x2af   : > { %v2551_v18 = vmax.f32 %v2550_v49, %v2412_v17  ;;  %v2416_v37 = vadd.f32 %v2415_v25, %v3838_v26  ;;  %v2417_v43 = vpop.f32.mrb[31].mxu1 }
 0x2b0   : > { %v2564_v53 = vmax.f32 %v2563_v50, %v2414_v54  ;;  %v2418_v27 = vadd.f32 %v2417_v43, %v3844_v12 }
 0x2b1   : > { %v2552_v48 = vmax.f32 %v2551_v18, %v2416_v37  ;;  %v2646_v18 = vrot.slane %v2638_v0, %v3858_v63 }
 0x2b2   : > { %v2565_v34 = vmax.f32 %v2564_v53, %v2418_v27 }
 0x2b3   : > { %v2553_v35 = vrot.slane %v2552_v48, 4 }
 0x2b4   : > { %v2566_v14 = vrot.slane %v2565_v34, 4  ;;  %v2474_v40 = vpop.f32.mrb[32].mxu1 }
 0x2b5   : > { %v2554_v20 = vmax.f32 %v2552_v48, %v2553_v35  ;;  %v2475_v13 = vadd.f32 %v2474_v40, %v3841_v1  ;;  %v2476_v44 = vpop.f32.mrb[33].mxu1 }
 0x2b6   : > { %v2567_v51 = vmax.f32 %v2565_v34, %v2566_v14  ;;  %v2477_v52 = vadd.f32 %v2476_v44, %v3847_v45  ;;  %v2478_v55 = vpop.f32.mrb[34].mxu1 }
 0x2b7   : > { %v2555_v47 = vrot.slane %v2554_v20, 2  ;;  %v2575_v61 = vmax.f32 %v2574_v5, %v2475_v13  ;;  %v2479_v26 = vadd.f32 %v2478_v55, %v3841_v1  ;;  %v2480_v56 = vpop.f32.mrb[35].mxu1 }
 0x2b8   : > { %v2568_v57 = vrot.slane %v2567_v51, 2  ;;  %v2588_v12 = vmax.f32 %v2587_v21, %v2477_v52  ;;  %v2481_v7 = vadd.f32 %v2480_v56, %v3847_v45 }
 0x2b9   : > { %v2556_v29 = vmax.f32 %v2554_v20, %v2555_v47  ;;  %v2576_v8 = vmax.f32 %v2575_v61, %v2479_v26 }
 0x2ba   : > { %v2569_v60 = vmax.f32 %v2567_v51, %v2568_v57  ;;  %v2589_v41 = vmax.f32 %v2588_v12, %v2481_v7 }
 0x2bb   : > { %v2557_v2 = vrot.slane %v2556_v29, 1 }
 0x2bc   : > { %v2570_v31 = vrot.slane %v2569_v60, 1  ;;  %v2484_v22 = vpop.f32.mrb[36].mxu1 }
 0x2bd   : > { %v2558_v9 = vmax.f32 %v2556_v29, %v2557_v2  ;;  %v2485_v3 = vadd.f32 %v2484_v22, %v3841_v1  ;;  %v2486_v33 = vpop.f32.mrb[37].mxu1 }
 0x2be   : > { %v2571_v23 = vmax.f32 %v2569_v60, %v2570_v31  ;;  %v2487_v4 = vadd.f32 %v2486_v33, %v3847_v45  ;;  %v2488_v19 = vpop.f32.mrb[38].mxu1 }
 0x2bf   : > { %v2577_v5 = vmax.f32 %v2576_v8, %v2485_v3  ;;  %v2489_v46 = vadd.f32 %v2488_v19, %v3841_v1  ;;  %v2490_v28 = vpop.f32.mrb[39].mxu1 }
 0x2c0   : > { %v2608_v10 = vcombine.low %v2558_v9, %v2571_v23  ;;  %v2590_v21 = vmax.f32 %v2589_v41, %v2487_v4  ;;  %v2491_v15 = vadd.f32 %v2490_v28, %v3847_v45 }
 0x2c1   : > { %v2578_v24 = vmax.f32 %v2577_v5, %v2489_v46 }
 0x2c2   : > { %v2591_v39 = vmax.f32 %v2590_v21, %v2491_v15  ;;  %v2630_v54 = vrot.slane %v2608_v10, %v3858_v63 }
 0x2c3   : > { %v2579_v11 = vrot.slane %v2578_v24, 4 }
 0x2c4   : > { %v2592_v42 = vrot.slane %v2591_v39, 4 }
 0x2c5   : > { %v2580_v59 = vmax.f32 %v2578_v24, %v2579_v11 }
 0x2c6   : > { %v2593_v16 = vmax.f32 %v2591_v39, %v2592_v42 }
 0x2c7   : > { %v2581_v58 = vrot.slane %v2580_v59, 2 }
 0x2c8   : > { %v2594_v30 = vrot.slane %v2593_v16, 2 }
 0x2c9   : > { %v2582_v38 = vmax.f32 %v2580_v59, %v2581_v58 }
 0x2ca   : > { %v2595_v49 = vmax.f32 %v2593_v16, %v2594_v30 }
 0x2cb   : > { %v2583_v50 = vrot.slane %v2582_v38, 1 }
 0x2cc   : > { %v2596_v62 = vrot.slane %v2595_v49, 1 }
 0x2cd   : > { %v2584_v17 = vmax.f32 %v2582_v38, %v2583_v50 }
 0x2ce   : > { %v2597_v1 = vmax.f32 %v2595_v49, %v2596_v62 }
 0x2d0   : > { %v2609_v6 = vcombine.low %v2584_v17, %v2597_v1 }
 0x2d2   : > { %v2637_v45 = vrot.slane %v2609_v6, %v3858_v63 }
 0x2d4   : > { %v2639_v25 = vcombine.low %v2630_v54, %v2637_v45 }
 0x2d6   : > { %v2653_v37 = vrot.slane %v2639_v25, %v3858_v63 }
 0x2d8   : > { %v2654_v43 = vcombine.low %v2646_v18, %v2653_v37 }
 0x2da   : > { %2657 = vst [vmem:[%s277_s30] sm:$0xff] %v2654_v43 }
 0x2db PF: > { %s15_s20 = sadd.s32 1, %s3068_s20   ;;  %s3918_s18 = smov %s3064_s19 }
 0x2dc   : > { %p12_p5 = scmp.ge.s32.totalorder %s15_s20, 4   ;;  %s3919_s19 = smov %s3921_s21 }
 0x2de   :  { %14 = sbr.rel (!%p12_p5) target bundleno = 2 (0x2), region = 74 }

// kernel: foldnet_encoder_forward.9
= control target key start
LH: loop header
LB: loop body
LE: loop exit
PB: predicated region body
PF: predicated region fallthrough
CT: control target
= control target key end

     0   :  { %v3952_v36 = vmov 1983009808   ;;  %v28_v38 = vlaneseq  ;;  %s5209_s1 = inlined_call_operand.vmem [shape: bf16[1024,512], index: 1, kind: input, shape index: {}]   ;;  %s5210_s0 = inlined_call_operand.vmem [shape: f32[2,1024], index: 0, kind: input, shape index: {}]   ;;  %s5211_s3 = inlined_call_operand.vmem [shape: bf16[512,512], index: 3, kind: input, shape index: {}]   ;;  %s5212_s2 = inlined_call_operand.vmem [shape: f32[1,512], index: 2, kind: input, shape index: {}]   ;;  %s5213_s4 = inlined_call_operand.vmem [shape: f32[1,512], index: 4, kind: input, shape index: {}]   ;;  %s5214_s5 = inlined_call_operand.vmem [shape: f32[2,512], index: 5, kind: output, shape index: {}]  }
   0x1   :  { %v3374_v0 = vld [vmem:[%s5209_s1 + $0x4] ss:$16 sps:$4 sm:$0xff]   ;;  %v3376_v1 = vld [vmem:[%s5209_s1 + $0xc] ss:$16 sps:$4 sm:$0xff]   ;;  %v3378_v2 = vld [vmem:[%s5209_s1] ss:$16 sps:$4 sm:$0xff]   ;;  %v26_v37 = vunpack.c.l.s4 %v3952_v36 }
   0x2   :  { %1632 = vmatprep.subr.bf16.mxu0 %v3374_v0  ;;  %v3379_v3 = vld [vmem:[%s5209_s1 + $0x8] ss:$16 sps:$4 sm:$0xff]   ;;  %1796 = vmatprep.subr.bf16.mxu1 %v3376_v1  ;;  %v3380_v4 = vld [vmem:[%s5209_s1 + $0x24] ss:$16 sps:$4 sm:$0xff]   ;;  %v3382_v5 = vld [vmem:[%s5209_s1 + $0x2c] ss:$16 sps:$4 sm:$0xff]  }
   0x3   :  { %1633 = vmatpush1.bf16.msra.mxu0 %v3378_v2  ;;  %1797 = vmatpush1.bf16.msra.mxu1 %v3379_v3  ;;  %v3384_v6 = vld [vmem:[%s5209_s1 + $0x20] ss:$16 sps:$4 sm:$0xff]   ;;  %v3385_v7 = vld [vmem:[%s5209_s1 + $0x28] ss:$16 sps:$4 sm:$0xff]   ;;  %v3386_v8 = vld [vmem:[%s5209_s1 + $0x44] ss:$16 sps:$4 sm:$0xff]   ;;  %v27_v42 = vunpack.c.0.s8 %v26_v37 }
   0x4   :  { %1634 = vmatprep.subr.bf16.mxu0 %v3380_v4  ;;  %1798 = vmatprep.subr.bf16.mxu1 %v3382_v5  ;;  %v3388_v9 = vld [vmem:[%s5209_s1 + $0x4c] ss:$16 sps:$4 sm:$0xff]   ;;  %v3390_v10 = vld [vmem:[%s5209_s1 + $0x40] ss:$16 sps:$4 sm:$0xff]   ;;  %v3391_v11 = vld [vmem:[%s5209_s1 + $0x48] ss:$16 sps:$4 sm:$0xff]  }
   0x5   :  { %v3392_v12 = vld [vmem:[%s5209_s1 + $0x64] ss:$16 sps:$4 sm:$0xff]   ;;  %v3394_v13 = vld [vmem:[%s5209_s1 + $0x6c] ss:$16 sps:$4 sm:$0xff]   ;;  %v3396_v14 = vld [vmem:[%s5209_s1 + $0x60] ss:$16 sps:$4 sm:$0xff]  }
   0x6   :  { %v3397_v15 = vld [vmem:[%s5209_s1 + $0x68] ss:$16 sps:$4 sm:$0xff]   ;;  %v3398_v16 = vld [vmem:[%s5209_s1 + $0x84] ss:$16 sps:$4 sm:$0xff]   ;;  %v3400_v17 = vld [vmem:[%s5209_s1 + $0x8c] ss:$16 sps:$4 sm:$0xff]  }
   0x7   :  { %1635 = vmatpush1.bf16.msra.mxu0 %v3384_v6  ;;  %1799 = vmatpush1.bf16.msra.mxu1 %v3385_v7  ;;  %v3402_v18 = vld [vmem:[%s5209_s1 + $0x80] ss:$16 sps:$4 sm:$0xff]   ;;  %v3403_v19 = vld [vmem:[%s5209_s1 + $0x88] ss:$16 sps:$4 sm:$0xff]   ;;  %v3404_v20 = vld [vmem:[%s5209_s1 + $0xa4] ss:$16 sps:$4 sm:$0xff]  }
   0x8   :  { %1636 = vmatprep.subr.bf16.mxu0 %v3386_v8  ;;  %1800 = vmatprep.subr.bf16.mxu1 %v3388_v9  ;;  %v3406_v21 = vld [vmem:[%s5209_s1 + $0xac] ss:$16 sps:$4 sm:$0xff]   ;;  %v3408_v22 = vld [vmem:[%s5209_s1 + $0xa0] ss:$16 sps:$4 sm:$0xff]   ;;  %v3409_v23 = vld [vmem:[%s5209_s1 + $0xa8] ss:$16 sps:$4 sm:$0xff]  }
   0x9   :  { %v3410_v24 = vld [vmem:[%s5209_s1 + $0xc4] ss:$16 sps:$4 sm:$0xff]   ;;  %v3412_v25 = vld [vmem:[%s5209_s1 + $0xcc] ss:$16 sps:$4 sm:$0xff]   ;;  %v3414_v26 = vld [vmem:[%s5209_s1 + $0xc0] ss:$16 sps:$4 sm:$0xff]  }
   0xa   :  { %v3415_v27 = vld [vmem:[%s5209_s1 + $0xc8] ss:$16 sps:$4 sm:$0xff]   ;;  %v3416_v28 = vld [vmem:[%s5209_s1 + $0xe4] ss:$16 sps:$4 sm:$0xff]   ;;  %v3418_v29 = vld [vmem:[%s5209_s1 + $0xec] ss:$16 sps:$4 sm:$0xff]  }
   0xb   :  { %1637 = vmatpush1.bf16.msra.mxu0 %v3390_v10  ;;  %1801 = vmatpush1.bf16.msra.mxu1 %v3391_v11  ;;  %v3420_v30 = vld [vmem:[%s5209_s1 + $0xe0] ss:$16 sps:$4 sm:$0xff]   ;;  %v3421_v31 = vld [vmem:[%s5209_s1 + $0xe8] ss:$16 sps:$4 sm:$0xff]   ;;  %v3422_v32 = vld [vmem:[%s5209_s1 + $0x104] ss:$16 sps:$4 sm:$0xff]  }
   0xc   :  { %1638 = vmatprep.subr.bf16.mxu0 %v3392_v12  ;;  %1802 = vmatprep.subr.bf16.mxu1 %v3394_v13  ;;  %v3424_v33 = vld [vmem:[%s5209_s1 + $0x10c] ss:$16 sps:$4 sm:$0xff]   ;;  %v3426_v34 = vld [vmem:[%s5209_s1 + $0x100] ss:$16 sps:$4 sm:$0xff]   ;;  %v3427_v35 = vld [vmem:[%s5209_s1 + $0x108] ss:$16 sps:$4 sm:$0xff]  }
   0xd   :  { %v3428_v39 = vld [vmem:[%s5209_s1 + $0x124] ss:$16 sps:$4 sm:$0xff]   ;;  %v3430_v40 = vld [vmem:[%s5209_s1 + $0x12c] ss:$16 sps:$4 sm:$0xff]   ;;  %v3432_v41 = vld [vmem:[%s5209_s1 + $0x120] ss:$16 sps:$4 sm:$0xff]  }
   0xe   :  { %v4100_v43 = vshrl.u32 %v28_v38, 7  ;;  %v3433_v44 = vld [vmem:[%s5209_s1 + $0x128] ss:$16 sps:$4 sm:$0xff]   ;;  %v3434_v45 = vld [vmem:[%s5209_s1 + $0x144] ss:$16 sps:$4 sm:$0xff]  }
   0xf   :  { %1639 = vmatpush1.bf16.msra.mxu0 %v3396_v14  ;;  %1803 = vmatpush1.bf16.msra.mxu1 %v3397_v15  ;;  %v3436_v46 = vld [vmem:[%s5209_s1 + $0x14c] ss:$16 sps:$4 sm:$0xff]   ;;  %v3438_v47 = vld [vmem:[%s5209_s1 + $0x140] ss:$16 sps:$4 sm:$0xff]   ;;  %v3439_v48 = vld [vmem:[%s5209_s1 + $0x148] ss:$16 sps:$4 sm:$0xff]  }
  0x10   :  { %1640 = vmatprep.subr.bf16.mxu0 %v3398_v16  ;;  %1804 = vmatprep.subr.bf16.mxu1 %v3400_v17  ;;  %v4118_v49 = vsub.s32 %v27_v42, %v4100_v43  ;;  %v3440_v50 = vld [vmem:[%s5209_s1 + $0x164] ss:$16 sps:$4 sm:$0xff]   ;;  %v3442_v51 = vld [vmem:[%s5209_s1 + $0x16c] ss:$16 sps:$4 sm:$0xff]   ;;  %v3444_v54 = vld [vmem:[%s5209_s1 + $0x160] ss:$16 sps:$4 sm:$0xff]  }
  0x11   :  { %v20_v52 = vld [vmem:[%s5210_s0] sm:$0xff]  ;;  %v3445_v55 = vld [vmem:[%s5209_s1 + $0x168] ss:$16 sps:$4 sm:$0xff]   ;;  %v3448_v57 = vld [vmem:[%s5209_s1 + $0x18c] ss:$16 sps:$4 sm:$0xff]  }
  0x12   :  { %v31_v53 = vrot.slane %v20_v52, %v4118_v49  ;;  %v3446_v56 = vld [vmem:[%s5209_s1 + $0x184] ss:$16 sps:$4 sm:$0xff]   ;;  %v3450_v60 = vld [vmem:[%s5209_s1 + $0x180] ss:$16 sps:$4 sm:$0xff]   ;;  %v3451_v61 = vld [vmem:[%s5209_s1 + $0x188] ss:$16 sps:$4 sm:$0xff]   ;;  %v24_v4 = vcombine.high %v20_v52, %v20_v52 }
  0x13   :  { %1641 = vmatpush1.bf16.msra.mxu0 %v3402_v18  ;;  %1805 = vmatpush1.bf16.msra.mxu1 %v3403_v19  ;;  %v3452_v62 = vld [vmem:[%s5209_s1 + $0x1a4] ss:$16 sps:$4 sm:$0xff]   ;;  %v3454_v63 = vld [vmem:[%s5209_s1 + $0x1ac] ss:$16 sps:$4 sm:$0xff]   ;;  %v3456_v0 = vld [vmem:[%s5209_s1 + $0x1a0] ss:$16 sps:$4 sm:$0xff]  }
  0x14   :  { %1642 = vmatprep.subr.bf16.mxu0 %v3404_v20  ;;  %1806 = vmatprep.subr.bf16.mxu1 %v3406_v21  ;;  %v39_v58 = vcombine.high %v31_v53, %v31_v53  ;;  %v3457_v1 = vld [vmem:[%s5209_s1 + $0x1a8] ss:$16 sps:$4 sm:$0xff]   ;;  %v3458_v2 = vld [vmem:[%s5209_s1 + $0x1c4] ss:$16 sps:$4 sm:$0xff]   ;;  %v3460_v3 = vld [vmem:[%s5209_s1 + $0x1cc] ss:$16 sps:$4 sm:$0xff]   ;;  %v4179_v9 = vrot.slane %v24_v4, %v4118_v49  ;;  %v66_v15 = vpack.c.bf16 %v31_v53, %v31_v53 }
  0x15   :  { %v3462_v5 = vld [vmem:[%s5209_s1 + $0x1c0] ss:$16 sps:$4 sm:$0xff]   ;;  %v3463_v6 = vld [vmem:[%s5209_s1 + $0x1c8] ss:$16 sps:$4 sm:$0xff]   ;;  %v3464_v7 = vld [vmem:[%s5209_s1 + $0x1e4] ss:$16 sps:$4 sm:$0xff]  }
  0x16   :  { %v67_v59 = vpack.c.bf16 %v39_v58, %v39_v58  ;;  %v3466_v8 = vld [vmem:[%s5209_s1 + $0x1ec] ss:$16 sps:$4 sm:$0xff]   ;;  %v3468_v10 = vld [vmem:[%s5209_s1 + $0x1e0] ss:$16 sps:$4 sm:$0xff]   ;;  %v3469_v11 = vld [vmem:[%s5209_s1 + $0x1e8] ss:$16 sps:$4 sm:$0xff]   ;;  %v40_v14 = vcombine.high %v4179_v9, %v4179_v9 }
  0x17   :  { %1643 = vmatpush1.bf16.msra.mxu0 %v3408_v22  ;;  %1807 = vmatpush1.bf16.msra.mxu1 %v3409_v23  ;;  %v3474_v12 = vld [vmem:[%s5209_s1 + $0x204] ss:$16 sps:$4 sm:$0xff]   ;;  %v3477_v13 = vld [vmem:[%s5209_s1 + $0x20c] ss:$16 sps:$4 sm:$0xff]   ;;  %v3472_v16 = vld [vmem:[%s5209_s1 + $0x200] ss:$16 sps:$4 sm:$0xff]  }
  0x18   :  { %1644 = vmatprep.subr.bf16.mxu0 %v3410_v24  ;;  %1808 = vmatprep.subr.bf16.mxu1 %v3412_v25  ;;  %v3475_v17 = vld [vmem:[%s5209_s1 + $0x208] ss:$16 sps:$4 sm:$0xff]   ;;  %v3480_v18 = vld [vmem:[%s5209_s1 + $0x224] ss:$16 sps:$4 sm:$0xff]   ;;  %v3483_v19 = vld [vmem:[%s5209_s1 + $0x22c] ss:$16 sps:$4 sm:$0xff]   ;;  %v69_v20 = vpack.c.bf16 %v40_v14, %v40_v14 }
  0x19   :  { %1664 = vmatprep.mubr.bf16.mxu0 %v67_v59  ;;  %1828 = vmatprep.mubr.bf16.mxu1 %v67_v59  ;;  %v3478_v21 = vld [vmem:[%s5209_s1 + $0x220] ss:$16 sps:$4 sm:$0xff]   ;;  %v3481_v22 = vld [vmem:[%s5209_s1 + $0x228] ss:$16 sps:$4 sm:$0xff]   ;;  %v3486_v23 = vld [vmem:[%s5209_s1 + $0x244] ss:$16 sps:$4 sm:$0xff]  }
  0x1a   :  { %v3489_v24 = vld [vmem:[%s5209_s1 + $0x24c] ss:$16 sps:$4 sm:$0xff]   ;;  %v3484_v25 = vld [vmem:[%s5209_s1 + $0x240] ss:$16 sps:$4 sm:$0xff]   ;;  %v3505_v38 = vld [vmem:[%s5209_s1 + $0x2a8] ss:$16 sps:$4 sm:$0xff]  }
  0x1b   :  { %1645 = vmatpush1.bf16.msra.mxu0 %v3414_v26  ;;  %1809 = vmatpush1.bf16.msra.mxu1 %v3415_v27  ;;  %v3487_v26 = vld [vmem:[%s5209_s1 + $0x248] ss:$16 sps:$4 sm:$0xff]   ;;  %v3492_v27 = vld [vmem:[%s5209_s1 + $0x264] ss:$16 sps:$4 sm:$0xff]   ;;  %v3507_v36 = vld [vmem:[%s5209_s1 + $0x2ac] ss:$16 sps:$4 sm:$0xff]  }
  0x1c   :  { %1646 = vmatprep.subr.bf16.mxu0 %v3416_v28  ;;  %1810 = vmatprep.subr.bf16.mxu1 %v3418_v29  ;;  %v3495_v28 = vld [vmem:[%s5209_s1 + $0x26c] ss:$16 sps:$4 sm:$0xff]   ;;  %v3490_v29 = vld [vmem:[%s5209_s1 + $0x260] ss:$16 sps:$4 sm:$0xff]   ;;  %v3511_v42 = vld [vmem:[%s5209_s1 + $0x2c8] ss:$16 sps:$4 sm:$0xff]  }
  0x1d   :  { %v3502_v37 = vld [vmem:[%s5209_s1 + $0x2a0] ss:$16 sps:$4 sm:$0xff]   ;;  %v3523_v52 = vld [vmem:[%s5209_s1 + $0x308] ss:$16 sps:$4 sm:$0xff]   ;;  %v3528_v53 = vld [vmem:[%s5209_s1 + $0x324] ss:$16 sps:$4 sm:$0xff]  }
  0x1e   :  { %v3537_v58 = vld [vmem:[%s5209_s1 + $0x34c] ss:$16 sps:$4 sm:$0xff]   ;;  %v3532_v59 = vld [vmem:[%s5209_s1 + $0x340] ss:$16 sps:$4 sm:$0xff]   ;;  %v3547_v4 = vld [vmem:[%s5209_s1 + $0x388] ss:$16 sps:$4 sm:$0xff]  }
  0x1f   :  { %1647 = vmatpush1.bf16.msra.mxu0 %v3420_v30  ;;  %1811 = vmatpush1.bf16.msra.mxu1 %v3421_v31  ;;  %v3493_v30 = vld [vmem:[%s5209_s1 + $0x268] ss:$16 sps:$4 sm:$0xff]   ;;  %v3498_v31 = vld [vmem:[%s5209_s1 + $0x284] ss:$16 sps:$4 sm:$0xff]  }
  0x20   :  { %1648 = vmatprep.subr.bf16.mxu0 %v3422_v32  ;;  %1812 = vmatprep.subr.bf16.mxu1 %v3424_v33  ;;  %v3501_v32 = vld [vmem:[%s5209_s1 + $0x28c] ss:$16 sps:$4 sm:$0xff]   ;;  %v3496_v33 = vld [vmem:[%s5209_s1 + $0x280] ss:$16 sps:$4 sm:$0xff]   ;;  %v3559_v14 = vld [vmem:[%s5209_s1 + $0x3c8] ss:$16 sps:$4 sm:$0xff]  }
  0x23   :  { %1649 = vmatpush1.bf16.msra.mxu0 %v3426_v34  ;;  %1813 = vmatpush1.bf16.msra.mxu1 %v3427_v35  ;;  %v3499_v34 = vld [vmem:[%s5209_s1 + $0x288] ss:$16 sps:$4 sm:$0xff]   ;;  %v3504_v35 = vld [vmem:[%s5209_s1 + $0x2a4] ss:$16 sps:$4 sm:$0xff]  }
  0x24   :  { %1650 = vmatprep.subr.bf16.mxu0 %v3428_v39  ;;  %1814 = vmatprep.subr.bf16.mxu1 %v3430_v40  ;;  %v3510_v39 = vld [vmem:[%s5209_s1 + $0x2c4] ss:$16 sps:$4 sm:$0xff]   ;;  %v3513_v40 = vld [vmem:[%s5209_s1 + $0x2cc] ss:$16 sps:$4 sm:$0xff]  }
  0x27   :  { %1651 = vmatpush1.bf16.msra.mxu0 %v3432_v41  ;;  %1815 = vmatpush1.bf16.msra.mxu1 %v3433_v44  ;;  %v3508_v41 = vld [vmem:[%s5209_s1 + $0x2c0] ss:$16 sps:$4 sm:$0xff]   ;;  %v3516_v44 = vld [vmem:[%s5209_s1 + $0x2e4] ss:$16 sps:$4 sm:$0xff]  }
  0x28   :  { %1652 = vmatprep.subr.bf16.mxu0 %v3434_v45  ;;  %1816 = vmatprep.subr.bf16.mxu1 %v3436_v46  ;;  %v3519_v45 = vld [vmem:[%s5209_s1 + $0x2ec] ss:$16 sps:$4 sm:$0xff]   ;;  %v3514_v46 = vld [vmem:[%s5209_s1 + $0x2e0] ss:$16 sps:$4 sm:$0xff]  }
  0x2b   :  { %1653 = vmatpush1.bf16.msra.mxu0 %v3438_v47  ;;  %1817 = vmatpush1.bf16.msra.mxu1 %v3439_v48  ;;  %v3517_v47 = vld [vmem:[%s5209_s1 + $0x2e8] ss:$16 sps:$4 sm:$0xff]   ;;  %v3522_v48 = vld [vmem:[%s5209_s1 + $0x304] ss:$16 sps:$4 sm:$0xff]  }
  0x2c   :  { %1654 = vmatprep.subr.bf16.mxu0 %v3440_v50  ;;  %1818 = vmatprep.subr.bf16.mxu1 %v3442_v51  ;;  %v3525_v50 = vld [vmem:[%s5209_s1 + $0x30c] ss:$16 sps:$4 sm:$0xff]   ;;  %v3520_v51 = vld [vmem:[%s5209_s1 + $0x300] ss:$16 sps:$4 sm:$0xff]  }
  0x2f   :  { %1655 = vmatpush1.bf16.msra.mxu0 %v3444_v54  ;;  %1819 = vmatpush1.bf16.msra.mxu1 %v3445_v55  ;;  %v3531_v54 = vld [vmem:[%s5209_s1 + $0x32c] ss:$16 sps:$4 sm:$0xff]   ;;  %v3526_v55 = vld [vmem:[%s5209_s1 + $0x320] ss:$16 sps:$4 sm:$0xff]  }
  0x30   :  { %1656 = vmatprep.subr.bf16.mxu0 %v3446_v56  ;;  %1820 = vmatprep.subr.bf16.mxu1 %v3448_v57  ;;  %v3529_v56 = vld [vmem:[%s5209_s1 + $0x328] ss:$16 sps:$4 sm:$0xff]   ;;  %v3534_v57 = vld [vmem:[%s5209_s1 + $0x344] ss:$16 sps:$4 sm:$0xff]  }
  0x33   :  { %1657 = vmatpush1.bf16.msra.mxu0 %v3450_v60  ;;  %1821 = vmatpush1.bf16.msra.mxu1 %v3451_v61  ;;  %v3535_v60 = vld [vmem:[%s5209_s1 + $0x348] ss:$16 sps:$4 sm:$0xff]   ;;  %v3540_v61 = vld [vmem:[%s5209_s1 + $0x364] ss:$16 sps:$4 sm:$0xff]  }
  0x34   :  { %1658 = vmatprep.subr.bf16.mxu0 %v3452_v62  ;;  %1822 = vmatprep.subr.bf16.mxu1 %v3454_v63  ;;  %v3543_v62 = vld [vmem:[%s5209_s1 + $0x36c] ss:$16 sps:$4 sm:$0xff]   ;;  %v3538_v63 = vld [vmem:[%s5209_s1 + $0x360] ss:$16 sps:$4 sm:$0xff]  }
  0x37   :  { %1659 = vmatpush1.bf16.msra.mxu0 %v3456_v0  ;;  %1823 = vmatpush1.bf16.msra.mxu1 %v3457_v1  ;;  %v3541_v0 = vld [vmem:[%s5209_s1 + $0x368] ss:$16 sps:$4 sm:$0xff]   ;;  %v3546_v1 = vld [vmem:[%s5209_s1 + $0x384] ss:$16 sps:$4 sm:$0xff]  }
  0x38   :  { %1660 = vmatprep.subr.bf16.mxu0 %v3458_v2  ;;  %1824 = vmatprep.subr.bf16.mxu1 %v3460_v3  ;;  %v3549_v2 = vld [vmem:[%s5209_s1 + $0x38c] ss:$16 sps:$4 sm:$0xff]   ;;  %v3544_v3 = vld [vmem:[%s5209_s1 + $0x380] ss:$16 sps:$4 sm:$0xff]  }
  0x3b   :  { %1661 = vmatpush1.bf16.msra.mxu0 %v3462_v5  ;;  %1825 = vmatpush1.bf16.msra.mxu1 %v3463_v6  ;;  %v3552_v5 = vld [vmem:[%s5209_s1 + $0x3a4] ss:$16 sps:$4 sm:$0xff]   ;;  %v3555_v6 = vld [vmem:[%s5209_s1 + $0x3ac] ss:$16 sps:$4 sm:$0xff]  }
  0x3c   :  { %1662 = vmatprep.subr.bf16.mxu0 %v3464_v7  ;;  %1826 = vmatprep.subr.bf16.mxu1 %v3466_v8  ;;  %v3550_v7 = vld [vmem:[%s5209_s1 + $0x3a0] ss:$16 sps:$4 sm:$0xff]   ;;  %v3553_v8 = vld [vmem:[%s5209_s1 + $0x3a8] ss:$16 sps:$4 sm:$0xff]  }
  0x3f   :  { %1663 = vmatpush1.bf16.msra.mxu0 %v3468_v10  ;;  %1827 = vmatpush1.bf16.msra.mxu1 %v3469_v11  ;;  %v3558_v10 = vld [vmem:[%s5209_s1 + $0x3c4] ss:$16 sps:$4 sm:$0xff]   ;;  %v3561_v11 = vld [vmem:[%s5209_s1 + $0x3cc] ss:$16 sps:$4 sm:$0xff]  }
  0x40   :  { %1673 = vmatprep.subr.bf16.mxu0 %v3474_v12  ;;  %1837 = vmatprep.subr.bf16.mxu1 %v3477_v13  ;;  %v4366_v12 = vld [vmem:[%s5210_s0 + $0x8] sm:$0xff]  ;;  %v3556_v13 = vld [vmem:[%s5209_s1 + $0x3c0] ss:$16 sps:$4 sm:$0xff]  }
  0x42   :  { %1665 = vmatmul.mubr.bf16.vlgmr.msra.gmra.mrb[0].mxu0 %v66_v15  ;;  %1829 = vmatmul.mubr.bf16.vlgmr.msra.gmra.mrb[0].mxu1 %v66_v15  ;;  %v3564_v15 = vld [vmem:[%s5209_s1 + $0x3e4] ss:$16 sps:$4 sm:$0xff]  }
  0x43   :  { %1674 = vmatpush1.bf16.msra.mxu0 %v3472_v16  ;;  %1838 = vmatpush1.bf16.msra.mxu1 %v3475_v17  ;;  %v3567_v16 = vld [vmem:[%s5209_s1 + $0x3ec] ss:$16 sps:$4 sm:$0xff]   ;;  %v4382_v17 = vrot.slane %v4366_v12, %v4118_v49 }
  0x44   :  { %1675 = vmatprep.subr.bf16.mxu0 %v3480_v18  ;;  %1839 = vmatprep.subr.bf16.mxu1 %v3483_v19  ;;  %v3562_v18 = vld [vmem:[%s5209_s1 + $0x3e0] ss:$16 sps:$4 sm:$0xff]   ;;  %v3565_v19 = vld [vmem:[%s5209_s1 + $0x3e8] ss:$16 sps:$4 sm:$0xff]  }
  0x45   :  { %1705 = vmatprep.mubr.bf16.mxu0 %v69_v20  ;;  %1869 = vmatprep.mubr.bf16.mxu1 %v69_v20  ;;  %v3570_v20 = vld [vmem:[%s5209_s1 + $0x404] ss:$16 sps:$4 sm:$0xff]  }
  0x47   :  { %1676 = vmatpush1.bf16.msra.mxu0 %v3478_v21  ;;  %1840 = vmatpush1.bf16.msra.mxu1 %v3481_v22  ;;  %v3573_v21 = vld [vmem:[%s5209_s1 + $0x40c] ss:$16 sps:$4 sm:$0xff]   ;;  %v56_v22 = vcombine.high %v4382_v17, %v4382_v17 }
  0x48   :  { %1677 = vmatprep.subr.bf16.mxu0 %v3486_v23  ;;  %1841 = vmatprep.subr.bf16.mxu1 %v3489_v24  ;;  %v68_v23 = vpack.c.bf16 %v4179_v9, %v4179_v9  ;;  %v3568_v24 = vld [vmem:[%s5209_s1 + $0x400] ss:$16 sps:$4 sm:$0xff]   ;;  %v3579_v9 = vld [vmem:[%s5209_s1 + $0x42c] ss:$16 sps:$4 sm:$0xff]  }
  0x4b   :  { %1678 = vmatpush1.bf16.msra.mxu0 %v3484_v25  ;;  %1842 = vmatpush1.bf16.msra.mxu1 %v3487_v26  ;;  %v3571_v25 = vld [vmem:[%s5209_s1 + $0x408] ss:$16 sps:$4 sm:$0xff]   ;;  %v3576_v26 = vld [vmem:[%s5209_s1 + $0x424] ss:$16 sps:$4 sm:$0xff]  }
  0x4c   :  { %1679 = vmatprep.subr.bf16.mxu0 %v3492_v27  ;;  %1843 = vmatprep.subr.bf16.mxu1 %v3495_v28  ;;  %v71_v27 = vpack.c.bf16 %v56_v22, %v56_v22  ;;  %v3574_v28 = vld [vmem:[%s5209_s1 + $0x420] ss:$16 sps:$4 sm:$0xff]  }
  0x4d   :  { %v3652_v22 = vld [vmem:[%s5209_s1 + $0x5c0] ss:$16 sps:$4 sm:$0xff]  }
  0x4f   :  { %1680 = vmatpush1.bf16.msra.mxu0 %v3490_v29  ;;  %1844 = vmatpush1.bf16.msra.mxu1 %v3493_v30  ;;  %v3577_v29 = vld [vmem:[%s5209_s1 + $0x428] ss:$16 sps:$4 sm:$0xff]   ;;  %v3582_v30 = vld [vmem:[%s5209_s1 + $0x444] ss:$16 sps:$4 sm:$0xff]  }
  0x50   :  { %1681 = vmatprep.subr.bf16.mxu0 %v3498_v31  ;;  %1845 = vmatprep.subr.bf16.mxu1 %v3501_v32  ;;  %v3585_v31 = vld [vmem:[%s5209_s1 + $0x44c] ss:$16 sps:$4 sm:$0xff]   ;;  %v3580_v32 = vld [vmem:[%s5209_s1 + $0x440] ss:$16 sps:$4 sm:$0xff]  }
  0x53   :  { %1682 = vmatpush1.bf16.msra.mxu0 %v3496_v33  ;;  %1846 = vmatpush1.bf16.msra.mxu1 %v3499_v34  ;;  %v3583_v33 = vld [vmem:[%s5209_s1 + $0x448] ss:$16 sps:$4 sm:$0xff]   ;;  %v3588_v34 = vld [vmem:[%s5209_s1 + $0x464] ss:$16 sps:$4 sm:$0xff]  }
  0x54   :  { %1683 = vmatprep.subr.bf16.mxu0 %v3504_v35  ;;  %1847 = vmatprep.subr.bf16.mxu1 %v3507_v36  ;;  %v3591_v35 = vld [vmem:[%s5209_s1 + $0x46c] ss:$16 sps:$4 sm:$0xff]   ;;  %v3586_v36 = vld [vmem:[%s5209_s1 + $0x460] ss:$16 sps:$4 sm:$0xff]  }
  0x57   :  { %1684 = vmatpush1.bf16.msra.mxu0 %v3502_v37  ;;  %1848 = vmatpush1.bf16.msra.mxu1 %v3505_v38  ;;  %v3589_v37 = vld [vmem:[%s5209_s1 + $0x468] ss:$16 sps:$4 sm:$0xff]   ;;  %v3594_v38 = vld [vmem:[%s5209_s1 + $0x484] ss:$16 sps:$4 sm:$0xff]  }
  0x58   :  { %1685 = vmatprep.subr.bf16.mxu0 %v3510_v39  ;;  %1849 = vmatprep.subr.bf16.mxu1 %v3513_v40  ;;  %v3597_v39 = vld [vmem:[%s5209_s1 + $0x48c] ss:$16 sps:$4 sm:$0xff]   ;;  %v3592_v40 = vld [vmem:[%s5209_s1 + $0x480] ss:$16 sps:$4 sm:$0xff]  }
  0x5b   :  { %1686 = vmatpush1.bf16.msra.mxu0 %v3508_v41  ;;  %1850 = vmatpush1.bf16.msra.mxu1 %v3511_v42  ;;  %v3595_v41 = vld [vmem:[%s5209_s1 + $0x488] ss:$16 sps:$4 sm:$0xff]   ;;  %v3600_v42 = vld [vmem:[%s5209_s1 + $0x4a4] ss:$16 sps:$4 sm:$0xff]  }
  0x5c   :  { %1687 = vmatprep.subr.bf16.mxu0 %v3516_v44  ;;  %1851 = vmatprep.subr.bf16.mxu1 %v3519_v45  ;;  %v3603_v44 = vld [vmem:[%s5209_s1 + $0x4ac] ss:$16 sps:$4 sm:$0xff]   ;;  %v3598_v45 = vld [vmem:[%s5209_s1 + $0x4a0] ss:$16 sps:$4 sm:$0xff]  }
  0x5f   :  { %1688 = vmatpush1.bf16.msra.mxu0 %v3514_v46  ;;  %1852 = vmatpush1.bf16.msra.mxu1 %v3517_v47  ;;  %v3601_v46 = vld [vmem:[%s5209_s1 + $0x4a8] ss:$16 sps:$4 sm:$0xff]   ;;  %v3606_v47 = vld [vmem:[%s5209_s1 + $0x4c4] ss:$16 sps:$4 sm:$0xff]  }
  0x60   :  { %1689 = vmatprep.subr.bf16.mxu0 %v3522_v48  ;;  %1853 = vmatprep.subr.bf16.mxu1 %v3525_v50  ;;  %v3609_v48 = vld [vmem:[%s5209_s1 + $0x4cc] ss:$16 sps:$4 sm:$0xff]   ;;  %v3604_v50 = vld [vmem:[%s5209_s1 + $0x4c0] ss:$16 sps:$4 sm:$0xff]  }
  0x63   :  { %1690 = vmatpush1.bf16.msra.mxu0 %v3520_v51  ;;  %1854 = vmatpush1.bf16.msra.mxu1 %v3523_v52  ;;  %v3607_v51 = vld [vmem:[%s5209_s1 + $0x4c8] ss:$16 sps:$4 sm:$0xff]   ;;  %v3612_v52 = vld [vmem:[%s5209_s1 + $0x4e4] ss:$16 sps:$4 sm:$0xff]  }
  0x64   :  { %1691 = vmatprep.subr.bf16.mxu0 %v3528_v53  ;;  %1855 = vmatprep.subr.bf16.mxu1 %v3531_v54  ;;  %v3615_v53 = vld [vmem:[%s5209_s1 + $0x4ec] ss:$16 sps:$4 sm:$0xff]   ;;  %v3610_v54 = vld [vmem:[%s5209_s1 + $0x4e0] ss:$16 sps:$4 sm:$0xff]  }
  0x67   :  { %1692 = vmatpush1.bf16.msra.mxu0 %v3526_v55  ;;  %1856 = vmatpush1.bf16.msra.mxu1 %v3529_v56  ;;  %v3613_v55 = vld [vmem:[%s5209_s1 + $0x4e8] ss:$16 sps:$4 sm:$0xff]   ;;  %v3618_v56 = vld [vmem:[%s5209_s1 + $0x504] ss:$16 sps:$4 sm:$0xff]  }
  0x68   :  { %1693 = vmatprep.subr.bf16.mxu0 %v3534_v57  ;;  %1857 = vmatprep.subr.bf16.mxu1 %v3537_v58  ;;  %v3621_v57 = vld [vmem:[%s5209_s1 + $0x50c] ss:$16 sps:$4 sm:$0xff]   ;;  %v3616_v58 = vld [vmem:[%s5209_s1 + $0x500] ss:$16 sps:$4 sm:$0xff]  }
  0x6b   :  { %1694 = vmatpush1.bf16.msra.mxu0 %v3532_v59  ;;  %1858 = vmatpush1.bf16.msra.mxu1 %v3535_v60  ;;  %v3619_v59 = vld [vmem:[%s5209_s1 + $0x508] ss:$16 sps:$4 sm:$0xff]   ;;  %v3624_v60 = vld [vmem:[%s5209_s1 + $0x524] ss:$16 sps:$4 sm:$0xff]  }
  0x6c   :  { %1695 = vmatprep.subr.bf16.mxu0 %v3540_v61  ;;  %1859 = vmatprep.subr.bf16.mxu1 %v3543_v62  ;;  %v3627_v61 = vld [vmem:[%s5209_s1 + $0x52c] ss:$16 sps:$4 sm:$0xff]   ;;  %v3622_v62 = vld [vmem:[%s5209_s1 + $0x520] ss:$16 sps:$4 sm:$0xff]  }
  0x6f   :  { %1696 = vmatpush1.bf16.msra.mxu0 %v3538_v63  ;;  %1860 = vmatpush1.bf16.msra.mxu1 %v3541_v0  ;;  %v3625_v63 = vld [vmem:[%s5209_s1 + $0x528] ss:$16 sps:$4 sm:$0xff]   ;;  %v3630_v0 = vld [vmem:[%s5209_s1 + $0x544] ss:$16 sps:$4 sm:$0xff]  }
  0x70   :  { %1697 = vmatprep.subr.bf16.mxu0 %v3546_v1  ;;  %1861 = vmatprep.subr.bf16.mxu1 %v3549_v2  ;;  %v3633_v1 = vld [vmem:[%s5209_s1 + $0x54c] ss:$16 sps:$4 sm:$0xff]   ;;  %v3628_v2 = vld [vmem:[%s5209_s1 + $0x540] ss:$16 sps:$4 sm:$0xff]  }
  0x73   :  { %1698 = vmatpush1.bf16.msra.mxu0 %v3544_v3  ;;  %1862 = vmatpush1.bf16.msra.mxu1 %v3547_v4  ;;  %v3631_v3 = vld [vmem:[%s5209_s1 + $0x548] ss:$16 sps:$4 sm:$0xff]   ;;  %v3636_v4 = vld [vmem:[%s5209_s1 + $0x564] ss:$16 sps:$4 sm:$0xff]  }
  0x74   :  { %1699 = vmatprep.subr.bf16.mxu0 %v3552_v5  ;;  %1863 = vmatprep.subr.bf16.mxu1 %v3555_v6  ;;  %v3639_v5 = vld [vmem:[%s5209_s1 + $0x56c] ss:$16 sps:$4 sm:$0xff]   ;;  %v3634_v6 = vld [vmem:[%s5209_s1 + $0x560] ss:$16 sps:$4 sm:$0xff]  }
  0x77   :  { %1700 = vmatpush1.bf16.msra.mxu0 %v3550_v7  ;;  %1864 = vmatpush1.bf16.msra.mxu1 %v3553_v8  ;;  %v3637_v7 = vld [vmem:[%s5209_s1 + $0x568] ss:$16 sps:$4 sm:$0xff]   ;;  %v3642_v8 = vld [vmem:[%s5209_s1 + $0x584] ss:$16 sps:$4 sm:$0xff]  }
  0x78   :  { %1701 = vmatprep.subr.bf16.mxu0 %v3558_v10  ;;  %1865 = vmatprep.subr.bf16.mxu1 %v3561_v11  ;;  %v3645_v10 = vld [vmem:[%s5209_s1 + $0x58c] ss:$16 sps:$4 sm:$0xff]   ;;  %v3640_v11 = vld [vmem:[%s5209_s1 + $0x580] ss:$16 sps:$4 sm:$0xff]  }
  0x7b   :  { %1702 = vmatpush1.bf16.msra.mxu0 %v3556_v13  ;;  %1866 = vmatpush1.bf16.msra.mxu1 %v3559_v14  ;;  %v3643_v13 = vld [vmem:[%s5209_s1 + $0x588] ss:$16 sps:$4 sm:$0xff]   ;;  %v3648_v14 = vld [vmem:[%s5209_s1 + $0x5a4] ss:$16 sps:$4 sm:$0xff]  }
  0x7c   :  { %1703 = vmatprep.subr.bf16.mxu0 %v3564_v15  ;;  %1867 = vmatprep.subr.bf16.mxu1 %v3567_v16  ;;  %v3651_v15 = vld [vmem:[%s5209_s1 + $0x5ac] ss:$16 sps:$4 sm:$0xff]   ;;  %v3646_v16 = vld [vmem:[%s5209_s1 + $0x5a0] ss:$16 sps:$4 sm:$0xff]  }
  0x7f   :  { %1704 = vmatpush1.bf16.msra.mxu0 %v3562_v18  ;;  %1868 = vmatpush1.bf16.msra.mxu1 %v3565_v19  ;;  %v3649_v18 = vld [vmem:[%s5209_s1 + $0x5a8] ss:$16 sps:$4 sm:$0xff]   ;;  %v3654_v19 = vld [vmem:[%s5209_s1 + $0x5c4] ss:$16 sps:$4 sm:$0xff]  }
  0x80   :  { %1714 = vmatprep.subr.bf16.mxu0 %v3570_v20  ;;  %1878 = vmatprep.subr.bf16.mxu1 %v3573_v21  ;;  %v3657_v20 = vld [vmem:[%s5209_s1 + $0x5cc] ss:$16 sps:$4 sm:$0xff]   ;;  %v41_v21 = vcombine.high %v4366_v12, %v4366_v12 }
  0x81   :  { %v3663_v12 = vld [vmem:[%s5209_s1 + $0x5ec] ss:$16 sps:$4 sm:$0xff]  }
  0x82   :  { %1706 = vmatmul.mubr.bf16.vlgmr.msra.gmra.mrb[0].mxu0 %v68_v23  ;;  %1870 = vmatmul.mubr.bf16.vlgmr.msra.gmra.mrb[0].mxu1 %v68_v23  ;;  %v3655_v23 = vld [vmem:[%s5209_s1 + $0x5c8] ss:$16 sps:$4 sm:$0xff]  }
  0x83   :  { %1715 = vmatpush1.bf16.msra.mxu0 %v3568_v24  ;;  %1879 = vmatpush1.bf16.msra.mxu1 %v3571_v25  ;;  %v3660_v24 = vld [vmem:[%s5209_s1 + $0x5e4] ss:$16 sps:$4 sm:$0xff]   ;;  %v4583_v25 = vrot.slane %v41_v21, %v4118_v49  ;;  %v3739_v21 = vld [vmem:[%s5209_s1 + $0x788] ss:$16 sps:$4 sm:$0xff]  }
  0x84   :  { %1716 = vmatprep.subr.bf16.mxu0 %v3576_v26  ;;  %1880 = vmatprep.subr.bf16.mxu1 %v3579_v9  ;;  %v3658_v26 = vld [vmem:[%s5209_s1 + $0x5e0] ss:$16 sps:$4 sm:$0xff]   ;;  %v3661_v9 = vld [vmem:[%s5209_s1 + $0x5e8] ss:$16 sps:$4 sm:$0xff]  }
  0x85   :  { %1746 = vmatprep.mubr.bf16.mxu0 %v71_v27  ;;  %1910 = vmatprep.mubr.bf16.mxu1 %v71_v27  ;;  %v3666_v27 = vld [vmem:[%s5209_s1 + $0x604] ss:$16 sps:$4 sm:$0xff]  }
  0x87   :  { %1717 = vmatpush1.bf16.msra.mxu0 %v3574_v28  ;;  %1881 = vmatpush1.bf16.msra.mxu1 %v3577_v29  ;;  %v3669_v28 = vld [vmem:[%s5209_s1 + $0x60c] ss:$16 sps:$4 sm:$0xff]   ;;  %v57_v29 = vcombine.high %v4583_v25, %v4583_v25 }
  0x88   :  { %1718 = vmatprep.subr.bf16.mxu0 %v3582_v30  ;;  %1882 = vmatprep.subr.bf16.mxu1 %v3585_v31  ;;  %v70_v30 = vpack.c.bf16 %v4382_v17, %v4382_v17  ;;  %v3664_v31 = vld [vmem:[%s5209_s1 + $0x600] ss:$16 sps:$4 sm:$0xff]   ;;  %v3675_v17 = vld [vmem:[%s5209_s1 + $0x62c] ss:$16 sps:$4 sm:$0xff]  }
  0x8b   :  { %1719 = vmatpush1.bf16.msra.mxu0 %v3580_v32  ;;  %1883 = vmatpush1.bf16.msra.mxu1 %v3583_v33  ;;  %v3667_v32 = vld [vmem:[%s5209_s1 + $0x608] ss:$16 sps:$4 sm:$0xff]   ;;  %v3672_v33 = vld [vmem:[%s5209_s1 + $0x624] ss:$16 sps:$4 sm:$0xff]  }
  0x8c   :  { %1720 = vmatprep.subr.bf16.mxu0 %v3588_v34  ;;  %1884 = vmatprep.subr.bf16.mxu1 %v3591_v35  ;;  %v73_v34 = vpack.c.bf16 %v57_v29, %v57_v29  ;;  %v3670_v35 = vld [vmem:[%s5209_s1 + $0x620] ss:$16 sps:$4 sm:$0xff]   ;;  %v3756_v29 = vld [vmem:[%s5209_s1 + $0x7e4] ss:$16 sps:$4 sm:$0xff]  }
  0x8f   :  { %1721 = vmatpush1.bf16.msra.mxu0 %v3586_v36  ;;  %1885 = vmatpush1.bf16.msra.mxu1 %v3589_v37  ;;  %v3673_v36 = vld [vmem:[%s5209_s1 + $0x628] ss:$16 sps:$4 sm:$0xff]   ;;  %v3678_v37 = vld [vmem:[%s5209_s1 + $0x644] ss:$16 sps:$4 sm:$0xff]  }
  0x90   :  { %1722 = vmatprep.subr.bf16.mxu0 %v3594_v38  ;;  %1886 = vmatprep.subr.bf16.mxu1 %v3597_v39  ;;  %v3681_v38 = vld [vmem:[%s5209_s1 + $0x64c] ss:$16 sps:$4 sm:$0xff]   ;;  %v3676_v39 = vld [vmem:[%s5209_s1 + $0x640] ss:$16 sps:$4 sm:$0xff]  }
  0x93   :  { %1723 = vmatpush1.bf16.msra.mxu0 %v3592_v40  ;;  %1887 = vmatpush1.bf16.msra.mxu1 %v3595_v41  ;;  %v3679_v40 = vld [vmem:[%s5209_s1 + $0x648] ss:$16 sps:$4 sm:$0xff]   ;;  %v3684_v41 = vld [vmem:[%s5209_s1 + $0x664] ss:$16 sps:$4 sm:$0xff]  }
  0x94   :  { %1724 = vmatprep.subr.bf16.mxu0 %v3600_v42  ;;  %1888 = vmatprep.subr.bf16.mxu1 %v3603_v44  ;;  %v3687_v42 = vld [vmem:[%s5209_s1 + $0x66c] ss:$16 sps:$4 sm:$0xff]   ;;  %v3682_v44 = vld [vmem:[%s5209_s1 + $0x660] ss:$16 sps:$4 sm:$0xff]  }
  0x97   :  { %1725 = vmatpush1.bf16.msra.mxu0 %v3598_v45  ;;  %1889 = vmatpush1.bf16.msra.mxu1 %v3601_v46  ;;  %v3685_v45 = vld [vmem:[%s5209_s1 + $0x668] ss:$16 sps:$4 sm:$0xff]   ;;  %v3690_v46 = vld [vmem:[%s5209_s1 + $0x684] ss:$16 sps:$4 sm:$0xff]  }
  0x98   :  { %1726 = vmatprep.subr.bf16.mxu0 %v3606_v47  ;;  %1890 = vmatprep.subr.bf16.mxu1 %v3609_v48  ;;  %v3693_v47 = vld [vmem:[%s5209_s1 + $0x68c] ss:$16 sps:$4 sm:$0xff]   ;;  %v3688_v48 = vld [vmem:[%s5209_s1 + $0x680] ss:$16 sps:$4 sm:$0xff]  }
  0x9b   :  { %1727 = vmatpush1.bf16.msra.mxu0 %v3604_v50  ;;  %1891 = vmatpush1.bf16.msra.mxu1 %v3607_v51  ;;  %v3691_v50 = vld [vmem:[%s5209_s1 + $0x688] ss:$16 sps:$4 sm:$0xff]   ;;  %v3696_v51 = vld [vmem:[%s5209_s1 + $0x6a4] ss:$16 sps:$4 sm:$0xff]  }
  0x9c   :  { %1728 = vmatprep.subr.bf16.mxu0 %v3612_v52  ;;  %1892 = vmatprep.subr.bf16.mxu1 %v3615_v53  ;;  %v3699_v52 = vld [vmem:[%s5209_s1 + $0x6ac] ss:$16 sps:$4 sm:$0xff]   ;;  %v3694_v53 = vld [vmem:[%s5209_s1 + $0x6a0] ss:$16 sps:$4 sm:$0xff]  }
  0x9f   :  { %1729 = vmatpush1.bf16.msra.mxu0 %v3610_v54  ;;  %1893 = vmatpush1.bf16.msra.mxu1 %v3613_v55  ;;  %v3697_v54 = vld [vmem:[%s5209_s1 + $0x6a8] ss:$16 sps:$4 sm:$0xff]   ;;  %v3702_v55 = vld [vmem:[%s5209_s1 + $0x6c4] ss:$16 sps:$4 sm:$0xff]  }
  0xa0   :  { %1730 = vmatprep.subr.bf16.mxu0 %v3618_v56  ;;  %1894 = vmatprep.subr.bf16.mxu1 %v3621_v57  ;;  %v3705_v56 = vld [vmem:[%s5209_s1 + $0x6cc] ss:$16 sps:$4 sm:$0xff]   ;;  %v3700_v57 = vld [vmem:[%s5209_s1 + $0x6c0] ss:$16 sps:$4 sm:$0xff]  }
  0xa3   :  { %1731 = vmatpush1.bf16.msra.mxu0 %v3616_v58  ;;  %1895 = vmatpush1.bf16.msra.mxu1 %v3619_v59  ;;  %v3703_v58 = vld [vmem:[%s5209_s1 + $0x6c8] ss:$16 sps:$4 sm:$0xff]   ;;  %v3708_v59 = vld [vmem:[%s5209_s1 + $0x6e4] ss:$16 sps:$4 sm:$0xff]  }
  0xa4   :  { %1732 = vmatprep.subr.bf16.mxu0 %v3624_v60  ;;  %1896 = vmatprep.subr.bf16.mxu1 %v3627_v61  ;;  %v3711_v60 = vld [vmem:[%s5209_s1 + $0x6ec] ss:$16 sps:$4 sm:$0xff]   ;;  %v3706_v61 = vld [vmem:[%s5209_s1 + $0x6e0] ss:$16 sps:$4 sm:$0xff]  }
  0xa7   :  { %1733 = vmatpush1.bf16.msra.mxu0 %v3622_v62  ;;  %1897 = vmatpush1.bf16.msra.mxu1 %v3625_v63  ;;  %v3709_v62 = vld [vmem:[%s5209_s1 + $0x6e8] ss:$16 sps:$4 sm:$0xff]   ;;  %v3714_v63 = vld [vmem:[%s5209_s1 + $0x704] ss:$16 sps:$4 sm:$0xff]  }
  0xa8   :  { %1734 = vmatprep.subr.bf16.mxu0 %v3630_v0  ;;  %1898 = vmatprep.subr.bf16.mxu1 %v3633_v1  ;;  %v3717_v0 = vld [vmem:[%s5209_s1 + $0x70c] ss:$16 sps:$4 sm:$0xff]   ;;  %v3712_v1 = vld [vmem:[%s5209_s1 + $0x700] ss:$16 sps:$4 sm:$0xff]  }
  0xab   :  { %1735 = vmatpush1.bf16.msra.mxu0 %v3628_v2  ;;  %1899 = vmatpush1.bf16.msra.mxu1 %v3631_v3  ;;  %v3715_v2 = vld [vmem:[%s5209_s1 + $0x708] ss:$16 sps:$4 sm:$0xff]   ;;  %v3720_v3 = vld [vmem:[%s5209_s1 + $0x724] ss:$16 sps:$4 sm:$0xff]  }
  0xac   :  { %1736 = vmatprep.subr.bf16.mxu0 %v3636_v4  ;;  %1900 = vmatprep.subr.bf16.mxu1 %v3639_v5  ;;  %v3723_v4 = vld [vmem:[%s5209_s1 + $0x72c] ss:$16 sps:$4 sm:$0xff]   ;;  %v3718_v5 = vld [vmem:[%s5209_s1 + $0x720] ss:$16 sps:$4 sm:$0xff]  }
  0xaf   :  { %1737 = vmatpush1.bf16.msra.mxu0 %v3634_v6  ;;  %1901 = vmatpush1.bf16.msra.mxu1 %v3637_v7  ;;  %v3721_v6 = vld [vmem:[%s5209_s1 + $0x728] ss:$16 sps:$4 sm:$0xff]   ;;  %v3726_v7 = vld [vmem:[%s5209_s1 + $0x744] ss:$16 sps:$4 sm:$0xff]  }
  0xb0   :  { %1738 = vmatprep.subr.bf16.mxu0 %v3642_v8  ;;  %1902 = vmatprep.subr.bf16.mxu1 %v3645_v10  ;;  %v3729_v8 = vld [vmem:[%s5209_s1 + $0x74c] ss:$16 sps:$4 sm:$0xff]   ;;  %v3724_v10 = vld [vmem:[%s5209_s1 + $0x740] ss:$16 sps:$4 sm:$0xff]  }
  0xb3   :  { %1739 = vmatpush1.bf16.msra.mxu0 %v3640_v11  ;;  %1903 = vmatpush1.bf16.msra.mxu1 %v3643_v13  ;;  %v3727_v11 = vld [vmem:[%s5209_s1 + $0x748] ss:$16 sps:$4 sm:$0xff]   ;;  %v3732_v13 = vld [vmem:[%s5209_s1 + $0x764] ss:$16 sps:$4 sm:$0xff]  }
  0xb4   :  { %1740 = vmatprep.subr.bf16.mxu0 %v3648_v14  ;;  %1904 = vmatprep.subr.bf16.mxu1 %v3651_v15  ;;  %v3735_v14 = vld [vmem:[%s5209_s1 + $0x76c] ss:$16 sps:$4 sm:$0xff]   ;;  %v3730_v15 = vld [vmem:[%s5209_s1 + $0x760] ss:$16 sps:$4 sm:$0xff]  }
  0xb7   :  { %1741 = vmatpush1.bf16.msra.mxu0 %v3646_v16  ;;  %1905 = vmatpush1.bf16.msra.mxu1 %v3649_v18  ;;  %v3733_v16 = vld [vmem:[%s5209_s1 + $0x768] ss:$16 sps:$4 sm:$0xff]   ;;  %v3738_v18 = vld [vmem:[%s5209_s1 + $0x784] ss:$16 sps:$4 sm:$0xff]  }
  0xb8   :  { %1742 = vmatprep.subr.bf16.mxu0 %v3654_v19  ;;  %1906 = vmatprep.subr.bf16.mxu1 %v3657_v20  ;;  %v3741_v19 = vld [vmem:[%s5209_s1 + $0x78c] ss:$16 sps:$4 sm:$0xff]   ;;  %v3736_v20 = vld [vmem:[%s5209_s1 + $0x780] ss:$16 sps:$4 sm:$0xff]  }
  0xbb   :  { %1743 = vmatpush1.bf16.msra.mxu0 %v3652_v22  ;;  %1907 = vmatpush1.bf16.msra.mxu1 %v3655_v23  ;;  %v3744_v22 = vld [vmem:[%s5209_s1 + $0x7a4] ss:$16 sps:$4 sm:$0xff]   ;;  %v3747_v23 = vld [vmem:[%s5209_s1 + $0x7ac] ss:$16 sps:$4 sm:$0xff]  }
  0xbc   :  { %1744 = vmatprep.subr.bf16.mxu0 %v3660_v24  ;;  %1908 = vmatprep.subr.bf16.mxu1 %v3663_v12  ;;  %v3742_v24 = vld [vmem:[%s5209_s1 + $0x7a0] ss:$16 sps:$4 sm:$0xff]   ;;  %v3745_v12 = vld [vmem:[%s5209_s1 + $0x7a8] ss:$16 sps:$4 sm:$0xff]  }
  0xbf   :  { %1745 = vmatpush1.bf16.msra.mxu0 %v3658_v26  ;;  %1909 = vmatpush1.bf16.msra.mxu1 %v3661_v9  ;;  %v3750_v26 = vld [vmem:[%s5209_s1 + $0x7c4] ss:$16 sps:$4 sm:$0xff]   ;;  %v3753_v9 = vld [vmem:[%s5209_s1 + $0x7cc] ss:$16 sps:$4 sm:$0xff]  }
  0xc0   :  { %1755 = vmatprep.subr.bf16.mxu0 %v3666_v27  ;;  %1919 = vmatprep.subr.bf16.mxu1 %v3669_v28  ;;  %v3748_v27 = vld [vmem:[%s5209_s1 + $0x7c0] ss:$16 sps:$4 sm:$0xff]   ;;  %v3751_v28 = vld [vmem:[%s5209_s1 + $0x7c8] ss:$16 sps:$4 sm:$0xff]  }
  0xc2   :  { %1747 = vmatmul.mubr.bf16.vlgmr.msra.gmra.mrb[0].mxu0 %v70_v30  ;;  %1911 = vmatmul.mubr.bf16.vlgmr.msra.gmra.mrb[0].mxu1 %v70_v30  ;;  %v3759_v30 = vld [vmem:[%s5209_s1 + $0x7ec] ss:$16 sps:$4 sm:$0xff]  }
  0xc3   :  { %1756 = vmatpush1.bf16.msra.mxu0 %v3664_v31  ;;  %1920 = vmatpush1.bf16.msra.mxu1 %v3667_v32  ;;  %v3754_v31 = vld [vmem:[%s5209_s1 + $0x7e0] ss:$16 sps:$4 sm:$0xff]   ;;  %v3757_v32 = vld [vmem:[%s5209_s1 + $0x7e8] ss:$16 sps:$4 sm:$0xff]  }
  0xc4   :  { %1757 = vmatprep.subr.bf16.mxu0 %v3672_v33  ;;  %1921 = vmatprep.subr.bf16.mxu1 %v3675_v17  ;;  %v3762_v33 = vld [vmem:[%s5211_s3 + $0x4] ss:$16 sps:$4 sm:$0xff]   ;;  %v3765_v17 = vld [vmem:[%s5211_s3 + $0xc] ss:$16 sps:$4 sm:$0xff]  }
  0xc5   :  { %1787 = vmatprep.mubr.bf16.mxu0 %v73_v34  ;;  %1951 = vmatprep.mubr.bf16.mxu1 %v73_v34  ;;  %v72_v34 = vpack.c.bf16 %v4583_v25, %v4583_v25  ;;  %v3771_v25 = vld [vmem:[%s5211_s3 + $0x2c] ss:$16 sps:$4 sm:$0xff]  }
  0xc7   :  { %1758 = vmatpush1.bf16.msra.mxu0 %v3670_v35  ;;  %1922 = vmatpush1.bf16.msra.mxu1 %v3673_v36  ;;  %v3760_v35 = vld [vmem:[%s5211_s3] ss:$16 sps:$4 sm:$0xff]   ;;  %v3763_v36 = vld [vmem:[%s5211_s3 + $0x8] ss:$16 sps:$4 sm:$0xff]  }
  0xc8   :  { %1759 = vmatprep.subr.bf16.mxu0 %v3678_v37  ;;  %1923 = vmatprep.subr.bf16.mxu1 %v3681_v38  ;;  %v3768_v37 = vld [vmem:[%s5211_s3 + $0x24] ss:$16 sps:$4 sm:$0xff]   ;;  %v3766_v38 = vld [vmem:[%s5211_s3 + $0x20] ss:$16 sps:$4 sm:$0xff]  }
  0xcb   :  { %1760 = vmatpush1.bf16.msra.mxu0 %v3676_v39  ;;  %1924 = vmatpush1.bf16.msra.mxu1 %v3679_v40  ;;  %v3769_v39 = vld [vmem:[%s5211_s3 + $0x28] ss:$16 sps:$4 sm:$0xff]   ;;  %v3774_v40 = vld [vmem:[%s5211_s3 + $0x44] ss:$16 sps:$4 sm:$0xff]  }
  0xcc   :  { %1761 = vmatprep.subr.bf16.mxu0 %v3684_v41  ;;  %1925 = vmatprep.subr.bf16.mxu1 %v3687_v42  ;;  %v3777_v41 = vld [vmem:[%s5211_s3 + $0x4c] ss:$16 sps:$4 sm:$0xff]   ;;  %v3772_v42 = vld [vmem:[%s5211_s3 + $0x40] ss:$16 sps:$4 sm:$0xff]  }
  0xcf   :  { %1762 = vmatpush1.bf16.msra.mxu0 %v3682_v44  ;;  %1926 = vmatpush1.bf16.msra.mxu1 %v3685_v45  ;;  %v3775_v44 = vld [vmem:[%s5211_s3 + $0x48] ss:$16 sps:$4 sm:$0xff]   ;;  %v3780_v45 = vld [vmem:[%s5211_s3 + $0x64] ss:$16 sps:$4 sm:$0xff]  }
  0xd0   :  { %1763 = vmatprep.subr.bf16.mxu0 %v3690_v46  ;;  %1927 = vmatprep.subr.bf16.mxu1 %v3693_v47  ;;  %v3783_v46 = vld [vmem:[%s5211_s3 + $0x6c] ss:$16 sps:$4 sm:$0xff]   ;;  %v3778_v47 = vld [vmem:[%s5211_s3 + $0x60] ss:$16 sps:$4 sm:$0xff]  }
  0xd3   :  { %1764 = vmatpush1.bf16.msra.mxu0 %v3688_v48  ;;  %1928 = vmatpush1.bf16.msra.mxu1 %v3691_v50  ;;  %v3781_v48 = vld [vmem:[%s5211_s3 + $0x68] ss:$16 sps:$4 sm:$0xff]   ;;  %v3786_v50 = vld [vmem:[%s5211_s3 + $0x84] ss:$16 sps:$4 sm:$0xff]  }
  0xd4   :  { %1765 = vmatprep.subr.bf16.mxu0 %v3696_v51  ;;  %1929 = vmatprep.subr.bf16.mxu1 %v3699_v52  ;;  %v3789_v51 = vld [vmem:[%s5211_s3 + $0x8c] ss:$16 sps:$4 sm:$0xff]   ;;  %v3784_v52 = vld [vmem:[%s5211_s3 + $0x80] ss:$16 sps:$4 sm:$0xff]  }
  0xd7   :  { %1766 = vmatpush1.bf16.msra.mxu0 %v3694_v53  ;;  %1930 = vmatpush1.bf16.msra.mxu1 %v3697_v54  ;;  %v3787_v53 = vld [vmem:[%s5211_s3 + $0x88] ss:$16 sps:$4 sm:$0xff]   ;;  %v3792_v54 = vld [vmem:[%s5211_s3 + $0xa4] ss:$16 sps:$4 sm:$0xff]  }
  0xd8   :  { %1767 = vmatprep.subr.bf16.mxu0 %v3702_v55  ;;  %1931 = vmatprep.subr.bf16.mxu1 %v3705_v56  ;;  %v3795_v55 = vld [vmem:[%s5211_s3 + $0xac] ss:$16 sps:$4 sm:$0xff]   ;;  %v3790_v56 = vld [vmem:[%s5211_s3 + $0xa0] ss:$16 sps:$4 sm:$0xff]  }
  0xdb   :  { %1768 = vmatpush1.bf16.msra.mxu0 %v3700_v57  ;;  %1932 = vmatpush1.bf16.msra.mxu1 %v3703_v58  ;;  %v3793_v57 = vld [vmem:[%s5211_s3 + $0xa8] ss:$16 sps:$4 sm:$0xff]   ;;  %v3798_v58 = vld [vmem:[%s5211_s3 + $0xc4] ss:$16 sps:$4 sm:$0xff]  }
  0xdc   :  { %1769 = vmatprep.subr.bf16.mxu0 %v3708_v59  ;;  %1933 = vmatprep.subr.bf16.mxu1 %v3711_v60  ;;  %v3801_v59 = vld [vmem:[%s5211_s3 + $0xcc] ss:$16 sps:$4 sm:$0xff]   ;;  %v3796_v60 = vld [vmem:[%s5211_s3 + $0xc0] ss:$16 sps:$4 sm:$0xff]  }
  0xdf   :  { %1770 = vmatpush1.bf16.msra.mxu0 %v3706_v61  ;;  %1934 = vmatpush1.bf16.msra.mxu1 %v3709_v62  ;;  %v3799_v61 = vld [vmem:[%s5211_s3 + $0xc8] ss:$16 sps:$4 sm:$0xff]   ;;  %v3804_v62 = vld [vmem:[%s5211_s3 + $0xe4] ss:$16 sps:$4 sm:$0xff]  }
  0xe0   :  { %1771 = vmatprep.subr.bf16.mxu0 %v3714_v63  ;;  %1935 = vmatprep.subr.bf16.mxu1 %v3717_v0  ;;  %v3807_v63 = vld [vmem:[%s5211_s3 + $0xec] ss:$16 sps:$4 sm:$0xff]   ;;  %v3802_v0 = vld [vmem:[%s5211_s3 + $0xe0] ss:$16 sps:$4 sm:$0xff]  }
  0xe3   :  { %1772 = vmatpush1.bf16.msra.mxu0 %v3712_v1  ;;  %1936 = vmatpush1.bf16.msra.mxu1 %v3715_v2  ;;  %v3805_v1 = vld [vmem:[%s5211_s3 + $0xe8] ss:$16 sps:$4 sm:$0xff]   ;;  %v3810_v2 = vld [vmem:[%s5211_s3 + $0x104] ss:$16 sps:$4 sm:$0xff]  }
  0xe4   :  { %1773 = vmatprep.subr.bf16.mxu0 %v3720_v3  ;;  %1937 = vmatprep.subr.bf16.mxu1 %v3723_v4  ;;  %v3813_v3 = vld [vmem:[%s5211_s3 + $0x10c] ss:$16 sps:$4 sm:$0xff]   ;;  %v3808_v4 = vld [vmem:[%s5211_s3 + $0x100] ss:$16 sps:$4 sm:$0xff]  }
  0xe7   :  { %1774 = vmatpush1.bf16.msra.mxu0 %v3718_v5  ;;  %1938 = vmatpush1.bf16.msra.mxu1 %v3721_v6  ;;  %v3811_v5 = vld [vmem:[%s5211_s3 + $0x108] ss:$16 sps:$4 sm:$0xff]   ;;  %v3816_v6 = vld [vmem:[%s5211_s3 + $0x124] ss:$16 sps:$4 sm:$0xff]  }
  0xe8   :  { %1775 = vmatprep.subr.bf16.mxu0 %v3726_v7  ;;  %1939 = vmatprep.subr.bf16.mxu1 %v3729_v8  ;;  %v3819_v7 = vld [vmem:[%s5211_s3 + $0x12c] ss:$16 sps:$4 sm:$0xff]   ;;  %v3814_v8 = vld [vmem:[%s5211_s3 + $0x120] ss:$16 sps:$4 sm:$0xff]  }
  0xeb   :  { %1776 = vmatpush1.bf16.msra.mxu0 %v3724_v10  ;;  %1940 = vmatpush1.bf16.msra.mxu1 %v3727_v11  ;;  %v3817_v10 = vld [vmem:[%s5211_s3 + $0x128] ss:$16 sps:$4 sm:$0xff]   ;;  %v3822_v11 = vld [vmem:[%s5211_s3 + $0x144] ss:$16 sps:$4 sm:$0xff]  }
  0xec   :  { %1777 = vmatprep.subr.bf16.mxu0 %v3732_v13  ;;  %1941 = vmatprep.subr.bf16.mxu1 %v3735_v14  ;;  %v3825_v13 = vld [vmem:[%s5211_s3 + $0x14c] ss:$16 sps:$4 sm:$0xff]   ;;  %v3820_v14 = vld [vmem:[%s5211_s3 + $0x140] ss:$16 sps:$4 sm:$0xff]  }
  0xef   :  { %1778 = vmatpush1.bf16.msra.mxu0 %v3730_v15  ;;  %1942 = vmatpush1.bf16.msra.mxu1 %v3733_v16  ;;  %v3823_v15 = vld [vmem:[%s5211_s3 + $0x148] ss:$16 sps:$4 sm:$0xff]   ;;  %v3828_v16 = vld [vmem:[%s5211_s3 + $0x164] ss:$16 sps:$4 sm:$0xff]  }
  0xf0   :  { %1779 = vmatprep.subr.bf16.mxu0 %v3738_v18  ;;  %1943 = vmatprep.subr.bf16.mxu1 %v3741_v19  ;;  %v3831_v18 = vld [vmem:[%s5211_s3 + $0x16c] ss:$16 sps:$4 sm:$0xff]   ;;  %v3826_v19 = vld [vmem:[%s5211_s3 + $0x160] ss:$16 sps:$4 sm:$0xff]  }
  0xf3   :  { %1780 = vmatpush1.bf16.msra.mxu0 %v3736_v20  ;;  %1944 = vmatpush1.bf16.msra.mxu1 %v3739_v21  ;;  %v3829_v20 = vld [vmem:[%s5211_s3 + $0x168] ss:$16 sps:$4 sm:$0xff]   ;;  %v3834_v21 = vld [vmem:[%s5211_s3 + $0x184] ss:$16 sps:$4 sm:$0xff]  }
  0xf4   :  { %1781 = vmatprep.subr.bf16.mxu0 %v3744_v22  ;;  %1945 = vmatprep.subr.bf16.mxu1 %v3747_v23  ;;  %v3837_v22 = vld [vmem:[%s5211_s3 + $0x18c] ss:$16 sps:$4 sm:$0xff]   ;;  %v3832_v23 = vld [vmem:[%s5211_s3 + $0x180] ss:$16 sps:$4 sm:$0xff]  }
  0xf7   :  { %1782 = vmatpush1.bf16.msra.mxu0 %v3742_v24  ;;  %1946 = vmatpush1.bf16.msra.mxu1 %v3745_v12  ;;  %v3835_v24 = vld [vmem:[%s5211_s3 + $0x188] ss:$16 sps:$4 sm:$0xff]   ;;  %v3840_v12 = vld [vmem:[%s5211_s3 + $0x1a4] ss:$16 sps:$4 sm:$0xff]  }
  0xf8   :  { %1783 = vmatprep.subr.bf16.mxu0 %v3750_v26  ;;  %1947 = vmatprep.subr.bf16.mxu1 %v3753_v9  ;;  %v3843_v26 = vld [vmem:[%s5211_s3 + $0x1ac] ss:$16 sps:$4 sm:$0xff]   ;;  %v3838_v9 = vld [vmem:[%s5211_s3 + $0x1a0] ss:$16 sps:$4 sm:$0xff]  }
  0xfb   :  { %1784 = vmatpush1.bf16.msra.mxu0 %v3748_v27  ;;  %1948 = vmatpush1.bf16.msra.mxu1 %v3751_v28  ;;  %v3841_v27 = vld [vmem:[%s5211_s3 + $0x1a8] ss:$16 sps:$4 sm:$0xff]   ;;  %v3846_v28 = vld [vmem:[%s5211_s3 + $0x1c4] ss:$16 sps:$4 sm:$0xff]  }
  0xfc   :  { %1785 = vmatprep.subr.bf16.mxu0 %v3756_v29  ;;  %1949 = vmatprep.subr.bf16.mxu1 %v3759_v30  ;;  %v3849_v29 = vld [vmem:[%s5211_s3 + $0x1cc] ss:$16 sps:$4 sm:$0xff]   ;;  %v3844_v30 = vld [vmem:[%s5211_s3 + $0x1c0] ss:$16 sps:$4 sm:$0xff]  }
  0xff   :  { %1786 = vmatpush1.bf16.msra.mxu0 %v3754_v31  ;;  %1950 = vmatpush1.bf16.msra.mxu1 %v3757_v32  ;;  %v3847_v31 = vld [vmem:[%s5211_s3 + $0x1c8] ss:$16 sps:$4 sm:$0xff]   ;;  %v3852_v32 = vld [vmem:[%s5211_s3 + $0x1e4] ss:$16 sps:$4 sm:$0xff]  }
 0x100   :  { %2758 = vmatprep.subr.bf16.mxu0 %v3762_v33  ;;  %2840 = vmatprep.subr.bf16.mxu1 %v3765_v17  ;;  %v3855_v33 = vld [vmem:[%s5211_s3 + $0x1ec] ss:$16 sps:$4 sm:$0xff]   ;;  %v3850_v17 = vld [vmem:[%s5211_s3 + $0x1e0] ss:$16 sps:$4 sm:$0xff]  }
 0x102   :  { %1788 = vmatmul.mubr.bf16.vlgmr.msra.gmra.mrb[0].mxu0 %v72_v34  ;;  %1952 = vmatmul.mubr.bf16.vlgmr.msra.gmra.mrb[0].mxu1 %v72_v34  ;;  %v3853_v34 = vld [vmem:[%s5211_s3 + $0x1e8] ss:$16 sps:$4 sm:$0xff]  }
 0x103   :  { %2759 = vmatpush1.bf16.msra.mxu0 %v3760_v35  ;;  %2841 = vmatpush1.bf16.msra.mxu1 %v3763_v36  ;;  %v3858_v35 = vld [vmem:[%s5211_s3 + $0x204] ss:$16 sps:$4 sm:$0xff]   ;;  %v3861_v36 = vld [vmem:[%s5211_s3 + $0x20c] ss:$16 sps:$4 sm:$0xff]  }
 0x104   :  { %2760 = vmatprep.subr.bf16.mxu0 %v3768_v37  ;;  %2842 = vmatprep.subr.bf16.mxu1 %v3771_v25  ;;  %v334_v37 = vsub.s32 0, %v4100_v43  ;;  %v4991_v25 = vld [vmem:[%s5212_s2] sm:$0xf] }
 0x107   :  { %2761 = vmatpush1.bf16.msra.mxu0 %v3766_v38  ;;  %2843 = vmatpush1.bf16.msra.mxu1 %v3769_v39  ;;  %v338_v38 = vsub.s32 1, %v4100_v43  ;;  %v346_v39 = vsub.s32 3, %v4100_v43 }
 0x108   :  { %2762 = vmatprep.subr.bf16.mxu0 %v3774_v40  ;;  %2844 = vmatprep.subr.bf16.mxu1 %v3777_v41  ;;  %v335_v40 = vrot.slane %v4991_v25, %v334_v37 }
 0x109   :  { %v339_v41 = vrot.slane %v4991_v25, %v338_v38 }
 0x10b   :  { %2763 = vmatpush1.bf16.msra.mxu0 %v3772_v42  ;;  %2845 = vmatpush1.bf16.msra.mxu1 %v3775_v44  ;;  %v347_v42 = vrot.slane %v4991_v25, %v346_v39 }
 0x10c   :  { %2764 = vmatprep.subr.bf16.mxu0 %v3780_v45  ;;  %2846 = vmatprep.subr.bf16.mxu1 %v3783_v46 }
 0x10f   :  { %2765 = vmatpush1.bf16.msra.mxu0 %v3778_v47  ;;  %2847 = vmatpush1.bf16.msra.mxu1 %v3781_v48 }
 0x110   :  { %2766 = vmatprep.subr.bf16.mxu0 %v3786_v50  ;;  %2848 = vmatprep.subr.bf16.mxu1 %v3789_v51 }
 0x113   :  { %2767 = vmatpush1.bf16.msra.mxu0 %v3784_v52  ;;  %2849 = vmatpush1.bf16.msra.mxu1 %v3787_v53 }
 0x114   :  { %2768 = vmatprep.subr.bf16.mxu0 %v3792_v54  ;;  %2850 = vmatprep.subr.bf16.mxu1 %v3795_v55 }
 0x117   :  { %2769 = vmatpush1.bf16.msra.mxu0 %v3790_v56  ;;  %2851 = vmatpush1.bf16.msra.mxu1 %v3793_v57 }
 0x118   :  { %2770 = vmatprep.subr.bf16.mxu0 %v3798_v58  ;;  %2852 = vmatprep.subr.bf16.mxu1 %v3801_v59 }
 0x11b   :  { %2771 = vmatpush1.bf16.msra.mxu0 %v3796_v60  ;;  %2853 = vmatpush1.bf16.msra.mxu1 %v3799_v61  ;;  %v3856_v60 = vld [vmem:[%s5211_s3 + $0x200] ss:$16 sps:$4 sm:$0xff]   ;;  %v3859_v61 = vld [vmem:[%s5211_s3 + $0x208] ss:$16 sps:$4 sm:$0xff]  }
 0x11c   :  { %2772 = vmatprep.subr.bf16.mxu0 %v3804_v62  ;;  %2854 = vmatprep.subr.bf16.mxu1 %v3807_v63  ;;  %v3864_v63 = vld [vmem:[%s5211_s3 + $0x224] ss:$16 sps:$4 sm:$0xff]  }
 0x11f   :  { %2773 = vmatpush1.bf16.msra.mxu0 %v3802_v0  ;;  %2855 = vmatpush1.bf16.msra.mxu1 %v3805_v1  ;;  %v3867_v0 = vld [vmem:[%s5211_s3 + $0x22c] ss:$16 sps:$4 sm:$0xff]  }
 0x120   :  { %2774 = vmatprep.subr.bf16.mxu0 %v3810_v2  ;;  %2856 = vmatprep.subr.bf16.mxu1 %v3813_v3  ;;  %v3862_v2 = vld [vmem:[%s5211_s3 + $0x220] ss:$16 sps:$4 sm:$0xff]   ;;  %v3865_v3 = vld [vmem:[%s5211_s3 + $0x228] ss:$16 sps:$4 sm:$0xff]  }
 0x123   :  { %2775 = vmatpush1.bf16.msra.mxu0 %v3808_v4  ;;  %2857 = vmatpush1.bf16.msra.mxu1 %v3811_v5  ;;  %v3870_v4 = vld [vmem:[%s5211_s3 + $0x244] ss:$16 sps:$4 sm:$0xff]   ;;  %v3873_v5 = vld [vmem:[%s5211_s3 + $0x24c] ss:$16 sps:$4 sm:$0xff]  }
 0x124   :  { %2776 = vmatprep.subr.bf16.mxu0 %v3816_v6  ;;  %2858 = vmatprep.subr.bf16.mxu1 %v3819_v7  ;;  %v3868_v6 = vld [vmem:[%s5211_s3 + $0x240] ss:$16 sps:$4 sm:$0xff]   ;;  %v3871_v7 = vld [vmem:[%s5211_s3 + $0x248] ss:$16 sps:$4 sm:$0xff]  }
 0x127   :  { %2777 = vmatpush1.bf16.msra.mxu0 %v3814_v8  ;;  %2859 = vmatpush1.bf16.msra.mxu1 %v3817_v10  ;;  %v3876_v8 = vld [vmem:[%s5211_s3 + $0x264] ss:$16 sps:$4 sm:$0xff]   ;;  %v3879_v10 = vld [vmem:[%s5211_s3 + $0x26c] ss:$16 sps:$4 sm:$0xff]  }
 0x128   :  { %2778 = vmatprep.subr.bf16.mxu0 %v3822_v11  ;;  %2860 = vmatprep.subr.bf16.mxu1 %v3825_v13  ;;  %v3874_v11 = vld [vmem:[%s5211_s3 + $0x260] ss:$16 sps:$4 sm:$0xff]   ;;  %v3877_v13 = vld [vmem:[%s5211_s3 + $0x268] ss:$16 sps:$4 sm:$0xff]  }
 0x12b   :  { %2779 = vmatpush1.bf16.msra.mxu0 %v3820_v14  ;;  %2861 = vmatpush1.bf16.msra.mxu1 %v3823_v15  ;;  %v3882_v14 = vld [vmem:[%s5211_s3 + $0x284] ss:$16 sps:$4 sm:$0xff]   ;;  %v3885_v15 = vld [vmem:[%s5211_s3 + $0x28c] ss:$16 sps:$4 sm:$0xff]  }
 0x12c   :  { %2780 = vmatprep.subr.bf16.mxu0 %v3828_v16  ;;  %2862 = vmatprep.subr.bf16.mxu1 %v3831_v18  ;;  %v3880_v16 = vld [vmem:[%s5211_s3 + $0x280] ss:$16 sps:$4 sm:$0xff]   ;;  %v3883_v18 = vld [vmem:[%s5211_s3 + $0x288] ss:$16 sps:$4 sm:$0xff]  }
 0x12f   :  { %2781 = vmatpush1.bf16.msra.mxu0 %v3826_v19  ;;  %2863 = vmatpush1.bf16.msra.mxu1 %v3829_v20  ;;  %v3888_v19 = vld [vmem:[%s5211_s3 + $0x2a4] ss:$16 sps:$4 sm:$0xff]   ;;  %v3891_v20 = vld [vmem:[%s5211_s3 + $0x2ac] ss:$16 sps:$4 sm:$0xff]  }
 0x130   :  { %2782 = vmatprep.subr.bf16.mxu0 %v3834_v21  ;;  %2864 = vmatprep.subr.bf16.mxu1 %v3837_v22  ;;  %v3886_v21 = vld [vmem:[%s5211_s3 + $0x2a0] ss:$16 sps:$4 sm:$0xff]   ;;  %v3889_v22 = vld [vmem:[%s5211_s3 + $0x2a8] ss:$16 sps:$4 sm:$0xff]  }
 0x133   :  { %2783 = vmatpush1.bf16.msra.mxu0 %v3832_v23  ;;  %2865 = vmatpush1.bf16.msra.mxu1 %v3835_v24  ;;  %v3894_v23 = vld [vmem:[%s5211_s3 + $0x2c4] ss:$16 sps:$4 sm:$0xff]   ;;  %v3897_v24 = vld [vmem:[%s5211_s3 + $0x2cc] ss:$16 sps:$4 sm:$0xff]  }
 0x134   :  { %2784 = vmatprep.subr.bf16.mxu0 %v3840_v12  ;;  %2866 = vmatprep.subr.bf16.mxu1 %v3843_v26  ;;  %v3892_v12 = vld [vmem:[%s5211_s3 + $0x2c0] ss:$16 sps:$4 sm:$0xff]   ;;  %v3895_v26 = vld [vmem:[%s5211_s3 + $0x2c8] ss:$16 sps:$4 sm:$0xff]  }
 0x137   :  { %2785 = vmatpush1.bf16.msra.mxu0 %v3838_v9  ;;  %2867 = vmatpush1.bf16.msra.mxu1 %v3841_v27  ;;  %v3900_v9 = vld [vmem:[%s5211_s3 + $0x2e4] ss:$16 sps:$4 sm:$0xff]   ;;  %v3903_v27 = vld [vmem:[%s5211_s3 + $0x2ec] ss:$16 sps:$4 sm:$0xff]  }
 0x138   :  { %2786 = vmatprep.subr.bf16.mxu0 %v3846_v28  ;;  %2868 = vmatprep.subr.bf16.mxu1 %v3849_v29  ;;  %v3898_v28 = vld [vmem:[%s5211_s3 + $0x2e0] ss:$16 sps:$4 sm:$0xff]   ;;  %v3901_v29 = vld [vmem:[%s5211_s3 + $0x2e8] ss:$16 sps:$4 sm:$0xff]  }
 0x13b   :  { %2787 = vmatpush1.bf16.msra.mxu0 %v3844_v30  ;;  %2869 = vmatpush1.bf16.msra.mxu1 %v3847_v31  ;;  %v3906_v30 = vld [vmem:[%s5211_s3 + $0x304] ss:$16 sps:$4 sm:$0xff]   ;;  %v3909_v31 = vld [vmem:[%s5211_s3 + $0x30c] ss:$16 sps:$4 sm:$0xff]  }
 0x13c   :  { %2788 = vmatprep.subr.bf16.mxu0 %v3852_v32  ;;  %2870 = vmatprep.subr.bf16.mxu1 %v3855_v33  ;;  %v3904_v32 = vld [vmem:[%s5211_s3 + $0x300] ss:$16 sps:$4 sm:$0xff]   ;;  %v3907_v33 = vld [vmem:[%s5211_s3 + $0x308] ss:$16 sps:$4 sm:$0xff]  }
 0x13f   :  { %2789 = vmatpush1.bf16.msra.mxu0 %v3850_v17  ;;  %2871 = vmatpush1.bf16.msra.mxu1 %v3853_v34  ;;  %v3912_v17 = vld [vmem:[%s5211_s3 + $0x324] ss:$16 sps:$4 sm:$0xff]   ;;  %v3915_v34 = vld [vmem:[%s5211_s3 + $0x32c] ss:$16 sps:$4 sm:$0xff]  }
 0x140   :  { %2799 = vmatprep.subr.bf16.mxu0 %v3858_v35  ;;  %2881 = vmatprep.subr.bf16.mxu1 %v3861_v36  ;;  %v3910_v35 = vld [vmem:[%s5211_s3 + $0x320] ss:$16 sps:$4 sm:$0xff]   ;;  %v3913_v36 = vld [vmem:[%s5211_s3 + $0x328] ss:$16 sps:$4 sm:$0xff]  }
 0x1d5   :  { %v1789_v44 = vpop.f32.mrb[0].mxu0  ;;  %v5004_v45 = vpop.f32.mrb[0].mxu1 }
 0x1d6   :  { %v3333_v46 = vadd.f32 %v1789_v44, %v335_v40  ;;  %v1791_v47 = vpop.f32.mrb[1].mxu0  ;;  %v1955_v48 = vpop.f32.mrb[1].mxu1  ;;  %v3918_v40 = vld [vmem:[%s5211_s3 + $0x344] ss:$16 sps:$4 sm:$0xff]   ;;  %v3919_v44 = vld [vmem:[%s5211_s3 + $0x348] ss:$16 sps:$4 sm:$0xff]  }
 0x1d7   :  { %v3334_v50 = vadd.f32 %v1791_v47, %v339_v41  ;;  %v3336_v51 = vadd.f32 %v1955_v48, %v347_v42  ;;  %v1793_v52 = vpop.f32.mrb[2].mxu0  ;;  %v1957_v53 = vpop.f32.mrb[2].mxu1  ;;  %v3921_v41 = vld [vmem:[%s5211_s3 + $0x34c] ss:$16 sps:$4 sm:$0xff]   ;;  %v3916_v42 = vld [vmem:[%s5211_s3 + $0x340] ss:$16 sps:$4 sm:$0xff]  }
 0x1d8   :  { %v1960_v54 = vmax.f32 %v3333_v46, 0.0  ;;  %v1794_v55 = vpop.f32.mrb[3].mxu0  ;;  %v1958_v56 = vpop.f32.mrb[3].mxu1  ;;  %v3924_v46 = vld [vmem:[%s5211_s3 + $0x364] ss:$16 sps:$4 sm:$0xff]  }
 0x1d9   :  { %v1961_v57 = vmax.f32 %v3334_v50, 0.0  ;;  %v1963_v58 = vmax.f32 %v3336_v51, 0.0  ;;  %v3927_v47 = vld [vmem:[%s5211_s3 + $0x36c] ss:$16 sps:$4 sm:$0xff]   ;;  %v3922_v48 = vld [vmem:[%s5211_s3 + $0x360] ss:$16 sps:$4 sm:$0xff]  }
 0x1da   :  { %v1964_v62 = vpack.c.bf16 %v1960_v54, %v1960_v54  ;;  %v3925_v50 = vld [vmem:[%s5211_s3 + $0x368] ss:$16 sps:$4 sm:$0xff]   ;;  %v3930_v51 = vld [vmem:[%s5211_s3 + $0x384] ss:$16 sps:$4 sm:$0xff]   ;;  %v3933_v52 = vld [vmem:[%s5211_s3 + $0x38c] ss:$16 sps:$4 sm:$0xff]  }
 0x1db   :  { %v1965_v59 = vpack.c.bf16 %v1961_v57, %v1961_v57  ;;  %v1967_v1 = vpack.c.bf16 %v1963_v58, %v1963_v58  ;;  %v3928_v53 = vld [vmem:[%s5211_s3 + $0x380] ss:$16 sps:$4 sm:$0xff]   ;;  %v3931_v54 = vld [vmem:[%s5211_s3 + $0x388] ss:$16 sps:$4 sm:$0xff]   ;;  %v342_v55 = vsub.s32 2, %v4100_v43 }
 0x1dc   :  { %v3936_v56 = vld [vmem:[%s5211_s3 + $0x3a4] ss:$16 sps:$4 sm:$0xff]   ;;  %v3939_v57 = vld [vmem:[%s5211_s3 + $0x3ac] ss:$16 sps:$4 sm:$0xff]   ;;  %v3934_v58 = vld [vmem:[%s5211_s3 + $0x3a0] ss:$16 sps:$4 sm:$0xff]  }
 0x1dd   :  { %2790 = vmatprep.mubr.bf16.mxu0 %v1965_v59  ;;  %2872 = vmatprep.mubr.bf16.mxu1 %v1965_v59  ;;  %v3937_v59 = vld [vmem:[%s5211_s3 + $0x3a8] ss:$16 sps:$4 sm:$0xff]  }
 0x1de   :  { %2791 = vmatmul.mubr.bf16.vlgmr.msra.gmra.mrb[4].mxu0 %v1964_v62  ;;  %2873 = vmatmul.mubr.bf16.vlgmr.msra.gmra.mrb[4].mxu1 %v1964_v62  ;;  %v3945_v62 = vld [vmem:[%s5211_s3 + $0x3cc] ss:$16 sps:$4 sm:$0xff]  }
 0x1df   :  { %2800 = vmatpush1.bf16.msra.mxu0 %v3856_v60  ;;  %2882 = vmatpush1.bf16.msra.mxu1 %v3859_v61  ;;  %v343_v60 = vrot.slane %v4991_v25, %v342_v55  ;;  %v3942_v61 = vld [vmem:[%s5211_s3 + $0x3c4] ss:$16 sps:$4 sm:$0xff]   ;;  %v3943_v25 = vld [vmem:[%s5211_s3 + $0x3c8] ss:$16 sps:$4 sm:$0xff]  }
 0x1e0   :  { %2831 = vmatprep.mubr.bf16.mxu0 %v1967_v1  ;;  %2913 = vmatprep.mubr.bf16.mxu1 %v1967_v1  ;;  %v3948_v1 = vld [vmem:[%s5211_s3 + $0x3e4] ss:$16 sps:$4 sm:$0xff]  }
 0x1e1   :  { %2801 = vmatprep.subr.bf16.mxu0 %v3864_v63  ;;  %2883 = vmatprep.subr.bf16.mxu1 %v3867_v0  ;;  %v3940_v63 = vld [vmem:[%s5211_s3 + $0x3c0] ss:$16 sps:$4 sm:$0xff]   ;;  %v3335_v0 = vadd.f32 %v5004_v45, %v343_v60  ;;  %v3949_v45 = vld [vmem:[%s5211_s3 + $0x3e8] ss:$16 sps:$4 sm:$0xff]  }
 0x1e3   :  { %2802 = vmatpush1.bf16.msra.mxu0 %v3862_v2  ;;  %2884 = vmatpush1.bf16.msra.mxu1 %v3865_v3  ;;  %v3951_v2 = vld [vmem:[%s5211_s3 + $0x3ec] ss:$16 sps:$4 sm:$0xff]   ;;  %v3946_v3 = vld [vmem:[%s5211_s3 + $0x3e0] ss:$16 sps:$4 sm:$0xff]  }
 0x1e4   :  { %2803 = vmatprep.subr.bf16.mxu0 %v3870_v4  ;;  %2885 = vmatprep.subr.bf16.mxu1 %v3873_v5  ;;  %v1962_v4 = vmax.f32 %v3335_v0, 0.0 }
 0x1e6   :  { %v1966_v5 = vpack.c.bf16 %v1962_v4, %v1962_v4 }
 0x1e7   :  { %2804 = vmatpush1.bf16.msra.mxu0 %v3868_v6  ;;  %2886 = vmatpush1.bf16.msra.mxu1 %v3871_v7  ;;  %v2096_v6 = vld [vmem:[%s5213_s4] sm:$0xf] }
 0x1e8   :  { %2805 = vmatprep.subr.bf16.mxu0 %v3876_v8  ;;  %2887 = vmatprep.subr.bf16.mxu1 %v3879_v10  ;;  %v2101_v7 = vrot.slane %v2096_v6, %v334_v37  ;;  %v2109_v8 = vrot.slane %v2096_v6, %v342_v55  ;;  %v2105_v10 = vrot.slane %v2096_v6, %v338_v38 }
 0x1eb   :  { %2806 = vmatpush1.bf16.msra.mxu0 %v3874_v11  ;;  %2888 = vmatpush1.bf16.msra.mxu1 %v3877_v13  ;;  %v2113_v11 = vrot.slane %v2096_v6, %v346_v39 }
 0x1ec   :  { %2807 = vmatprep.subr.bf16.mxu0 %v3882_v14  ;;  %2889 = vmatprep.subr.bf16.mxu1 %v3885_v15 }
 0x1ef   :  { %2808 = vmatpush1.bf16.msra.mxu0 %v3880_v16  ;;  %2890 = vmatpush1.bf16.msra.mxu1 %v3883_v18 }
 0x1f0   :  { %2809 = vmatprep.subr.bf16.mxu0 %v3888_v19  ;;  %2891 = vmatprep.subr.bf16.mxu1 %v3891_v20 }
 0x1f3   :  { %2810 = vmatpush1.bf16.msra.mxu0 %v3886_v21  ;;  %2892 = vmatpush1.bf16.msra.mxu1 %v3889_v22 }
 0x1f4   :  { %2811 = vmatprep.subr.bf16.mxu0 %v3894_v23  ;;  %2893 = vmatprep.subr.bf16.mxu1 %v3897_v24 }
 0x1f7   :  { %2812 = vmatpush1.bf16.msra.mxu0 %v3892_v12  ;;  %2894 = vmatpush1.bf16.msra.mxu1 %v3895_v26 }
 0x1f8   :  { %2813 = vmatprep.subr.bf16.mxu0 %v3900_v9  ;;  %2895 = vmatprep.subr.bf16.mxu1 %v3903_v27 }
 0x1fb   :  { %2814 = vmatpush1.bf16.msra.mxu0 %v3898_v28  ;;  %2896 = vmatpush1.bf16.msra.mxu1 %v3901_v29 }
 0x1fc   :  { %2815 = vmatprep.subr.bf16.mxu0 %v3906_v30  ;;  %2897 = vmatprep.subr.bf16.mxu1 %v3909_v31 }
 0x1ff   :  { %2816 = vmatpush1.bf16.msra.mxu0 %v3904_v32  ;;  %2898 = vmatpush1.bf16.msra.mxu1 %v3907_v33 }
 0x200   :  { %2817 = vmatprep.subr.bf16.mxu0 %v3912_v17  ;;  %2899 = vmatprep.subr.bf16.mxu1 %v3915_v34 }
 0x203   :  { %2818 = vmatpush1.bf16.msra.mxu0 %v3910_v35  ;;  %2900 = vmatpush1.bf16.msra.mxu1 %v3913_v36 }
 0x204   :  { %2819 = vmatprep.subr.bf16.mxu0 %v3918_v40  ;;  %2901 = vmatprep.subr.bf16.mxu1 %v3921_v41 }
 0x207   :  { %2820 = vmatpush1.bf16.msra.mxu0 %v3916_v42  ;;  %2902 = vmatpush1.bf16.msra.mxu1 %v3919_v44 }
 0x208   :  { %2821 = vmatprep.subr.bf16.mxu0 %v3924_v46  ;;  %2903 = vmatprep.subr.bf16.mxu1 %v3927_v47 }
 0x20b   :  { %2822 = vmatpush1.bf16.msra.mxu0 %v3922_v48  ;;  %2904 = vmatpush1.bf16.msra.mxu1 %v3925_v50 }
 0x20c   :  { %2823 = vmatprep.subr.bf16.mxu0 %v3930_v51  ;;  %2905 = vmatprep.subr.bf16.mxu1 %v3933_v52 }
 0x20f   :  { %2824 = vmatpush1.bf16.msra.mxu0 %v3928_v53  ;;  %2906 = vmatpush1.bf16.msra.mxu1 %v3931_v54 }
 0x210   :  { %2825 = vmatprep.subr.bf16.mxu0 %v3936_v56  ;;  %2907 = vmatprep.subr.bf16.mxu1 %v3939_v57 }
 0x213   :  { %2826 = vmatpush1.bf16.msra.mxu0 %v3934_v58  ;;  %2908 = vmatpush1.bf16.msra.mxu1 %v3937_v59 }
 0x214   :  { %2827 = vmatprep.subr.bf16.mxu0 %v3942_v61  ;;  %2909 = vmatprep.subr.bf16.mxu1 %v3945_v62 }
 0x217   :  { %2828 = vmatpush1.bf16.msra.mxu0 %v3940_v63  ;;  %2910 = vmatpush1.bf16.msra.mxu1 %v3943_v25 }
 0x218   :  { %2829 = vmatprep.subr.bf16.mxu0 %v3948_v1  ;;  %2911 = vmatprep.subr.bf16.mxu1 %v3951_v2 }
 0x21b   :  { %2830 = vmatpush1.bf16.msra.mxu0 %v3946_v3  ;;  %2912 = vmatpush1.bf16.msra.mxu1 %v3949_v45 }
 0x21e   :  { %2832 = vmatmul.mubr.bf16.vlgmr.msra.gmra.mrb[4].mxu0 %v1966_v5  ;;  %2914 = vmatmul.mubr.bf16.vlgmr.msra.gmra.mrb[4].mxu1 %v1966_v5 }
 0x2f1   :  { %v2833_v13 = vpop.f32.mrb[4].mxu0  ;;  %v2915_v14 = vpop.f32.mrb[4].mxu1 }
 0x2f2   :  { %v3337_v15 = vadd.f32 %v2833_v13, %v2101_v7  ;;  %v3339_v16 = vadd.f32 %v2915_v14, %v2109_v8  ;;  %v2835_v18 = vpop.f32.mrb[5].mxu0  ;;  %v2917_v19 = vpop.f32.mrb[5].mxu1 }
 0x2f3   :  { %v3338_v20 = vadd.f32 %v2835_v18, %v2105_v10  ;;  %v3340_v21 = vadd.f32 %v2917_v19, %v2113_v11  ;;  %v2837_v22 = vpop.f32.mrb[6].mxu0  ;;  %v2919_v23 = vpop.f32.mrb[6].mxu1 }
 0x2f4   :  { %v2838_v24 = vpop.f32.mrb[7].mxu0  ;;  %v2920_v12 = vpop.f32.mrb[7].mxu1 }
 0x2f5   :  { %v2926_v37 = vcombine.low %v3337_v15, %v3338_v20  ;;  %v2927_v26 = vcombine.low %v3339_v16, %v3340_v21 }
 0x2f7   :  { %v2934_v9 = vrot.slane %v2926_v37, %v4118_v49  ;;  %v2941_v38 = vrot.slane %v2927_v26, %v4118_v49 }
 0x2f9   :  { %v2942_v43 = vcombine.low %v2934_v9, %v2941_v38 }
 0x2fb   :  { %2944 = vst [vmem:[%s5214_s5] sm:$0xff] %v2942_v43 }

</bundles_post_ra>
